<compile_context>
chip_gen: v6e
topology: v6e:2x2x1
jax: 0.10.0
libtpu: 0.0.40
codegen_flags: <defaults>
</compile_context>

<pallas_src>
import functools

import jax
import jax.numpy as jnp
import numpy as np
from jax.experimental import pallas as pl
from jax.experimental.pallas import tpu as pltpu

LATENT_DIM = 20


def _vmem_limit_bytes():
    # <= ~48 MiB on v7x (64 MiB physical / TC), ~96 MiB on v5e/v6e (128 MiB).
    try:
        cap = int(pltpu.get_tpu_info().vmem_capacity_bytes)
    except Exception:
        cap = 64 * 1024 * 1024
    return int(min(cap * 3 // 4, 96 * 1024 * 1024))


_VMEM_LIMIT = _vmem_limit_bytes()


# ----------------------------------------------------------------------------
# Pallas kernels
# ----------------------------------------------------------------------------
def _matmul_bias_act_kernel(x_ref, w_ref, b_ref, o_ref, *, activation):
    """(tm, K) x (K, N) tile: bf16 MXU matmul -> f32 acc, fused bias + act."""
    acc = jnp.dot(x_ref[...], w_ref[...], preferred_element_type=jnp.float32)
    acc = acc + b_ref[...]
    if activation == "relu":
        acc = jnp.maximum(acc, 0.0)
    elif activation == "sigmoid":
        acc = 0.5 * (jnp.tanh(0.5 * acc) + 1.0)   # EUP tanh, no VALU divide
    o_ref[...] = acc.astype(o_ref.dtype)


def matmul_bias_act(x, w, b2, activation="none", out_dtype=jnp.float32,
                    tile_m=2048):
    """y = act(x @ w + b); x:(M,K) bf16, w:(K,N) bf16, b2:(1,N) f32."""
    M, K = x.shape
    K2, N = w.shape
    assert K == K2 and b2.shape == (1, N)
    if M <= 16:
        tm = M
    else:
        # >= 2 grid steps so the "parallel" axis shards across v7x's 2 TCs.
        tm = min(tile_m, ((pl.cdiv(M, 2) + 7) // 8) * 8)
    grid_m = pl.cdiv(M, tm)
    kern = functools.partial(_matmul_bias_act_kernel, activation=activation)
    cost = pl.CostEstimate(
        flops=2 * M * K * N,
        transcendentals=M * N if activation == "sigmoid" else 0,
        bytes_accessed=(M * K * x.dtype.itemsize + K * N * w.dtype.itemsize
                        + N * 4 + M * N * np.dtype(out_dtype).itemsize),
    )
    return pl.pallas_call(
        kern,
        out_shape=jax.ShapeDtypeStruct((M, N), out_dtype),
        grid=(grid_m,),
        in_specs=[
            pl.BlockSpec((tm, K), lambda i: (i, 0)),
            pl.BlockSpec((K, N), lambda i: (0, 0)),
            pl.BlockSpec((1, N), lambda i: (0, 0)),
        ],
        out_specs=pl.BlockSpec((tm, N), lambda i: (i, 0)),
        compiler_params=pltpu.CompilerParams(
            dimension_semantics=("parallel",),
            vmem_limit_bytes=_VMEM_LIMIT,
        ),
        cost_estimate=cost,
    )(x, w, b2)


def _row_band_conv_kernel(x_ref, w_ref, b_ref, o_ref, *, n_taps, out_rows,
                          activation):
    """Fused conv: sum of row-shifted matmuls against a banded weight.

    x_ref: (TB, G, K) padded/row-grouped flattened-NHWC activation (bf16)
    w_ref: (T, K, N)  banded weight (bf16, resident across grid steps)
    b_ref: (1, N)     bias tiled over W (f32)
    o_ref: (TB, out_rows, N) with N = Wout*Cout (flattened NHWC rows)
    """
    n = o_ref.shape[-1]
    bias = b_ref[...]
    for b in range(o_ref.shape[0]):            # small static batch-tile loop
        acc = jnp.zeros((out_rows, n), jnp.float32)
        for t in range(n_taps):
            acc = acc + jnp.dot(x_ref[b, pl.ds(t, out_rows), :], w_ref[t],
                                preferred_element_type=jnp.float32)
        acc = acc + bias
        if activation == "relu":
            acc = jnp.maximum(acc, 0.0)
        elif activation == "sigmoid":
            acc = 0.5 * (jnp.tanh(0.5 * acc) + 1.0)
        o_ref[b] = acc.astype(o_ref.dtype)


def row_band_conv(x, w_band, b2, out_rows, activation="none",
                  out_dtype=jnp.bfloat16):
    """Conv/deconv layer as row-banded matmuls; grid over batch ("parallel")."""
    B, G, K = x.shape
    T, K2, N = w_band.shape
    assert K == K2 and b2.shape == (1, N) and G >= out_rows + T - 1
    tb = 1 if B <= 3 else min(4, B // 2)
    grid_b = pl.cdiv(B, tb)
    kern = functools.partial(_row_band_conv_kernel, n_taps=T,
                             out_rows=out_rows, activation=activation)
    cost = pl.CostEstimate(
        flops=2 * B * T * out_rows * K * N,
        transcendentals=B * out_rows * N if activation == "sigmoid" else 0,
        bytes_accessed=(B * G * K * x.dtype.itemsize
                        + T * K * N * w_band.dtype.itemsize + N * 4
                        + B * out_rows * N * np.dtype(out_dtype).itemsize),
    )
    return pl.pallas_call(
        kern,
        out_shape=jax.ShapeDtypeStruct((B, out_rows, N), out_dtype),
        grid=(grid_b,),
        in_specs=[
            pl.BlockSpec((tb, G, K), lambda i: (i, 0, 0)),
            pl.BlockSpec((T, K, N), lambda i: (0, 0, 0)),   # stays resident
            pl.BlockSpec((1, N), lambda i: (0, 0)),
        ],
        out_specs=pl.BlockSpec((tb, out_rows, N), lambda i: (i, 0, 0)),
        compiler_params=pltpu.CompilerParams(
            dimension_semantics=("parallel",),
            vmem_limit_bytes=_VMEM_LIMIT,
        ),
        cost_estimate=cost,
    )(x, w_band, b2)


# ----------------------------------------------------------------------------
# One-time host-side weight re-layout (review: hoist all re-layout out of the
# hot path).  All banded weights / permutations / bf16 casts happen here once.
# ----------------------------------------------------------------------------
def _banded_weight(w_t, stride, w_pad, w_out):
    """w_t: (k, k, Cin, F) numpy -> banded (T, stride*w_pad*Cin, w_out*F).

    Implements: out[oh, ow*F + f] = sum_{i,j,c} x_pad[s*oh+i, s*ow+j, c] *
    w_t[i, j, c, f], with input rows grouped by `stride`.
    """
    k = w_t.shape[0]
    cin, f = w_t.shape[2], w_t.shape[3]
    n_taps = -(-k // stride)
    band = np.zeros((n_taps, stride * w_pad * cin, w_out * f), np.float32)
    for rt in range(n_taps):
        for p in range(stride):
            i = stride * rt + p
            if i >= k:
                continue
            for j in range(k):
                for ow in range(w_out):
                    wcol = stride * ow + j
                    if wcol >= w_pad:
                        continue
                    r0 = (p * w_pad + wcol) * cin
                    band[rt, r0:r0 + cin, ow * f:(ow + 1) * f] = w_t[i, j]
    return band


def _deconv_as_phase_conv(w_torch):
    """ConvTranspose2d(k=4,s=2,p=1) weight (Cin,Cout,4,4) -> equivalent
    stride-1 3x3 conv weight (3, 3, Cin, 4*Cout) with out-features (ph,pw,co)."""
    w = np.asarray(w_torch, np.float32)
    cin, cout = w.shape[0], w.shape[1]
    w_eff = np.zeros((3, 3, cin, 2, 2, cout), np.float32)
    for dr in range(3):
        for dc in range(3):
            for ph in range(2):
                for pw in range(2):
                    i = ph + 3 - 2 * dr          # kernel tap hit by this phase
                    j = pw + 3 - 2 * dc
                    if 0 <= i < 4 and 0 <= j < 4:
                        w_eff[dr, dc, :, ph, pw, :] = w[:, :, i, j]
    return w_eff.reshape(3, 3, cin, 4 * cout)


def _phase_major_cols(band, w_out, cout):
    """Reorder deconv band cols (ow, ph, pw, co) -> (ph, ow, pw, co) so the
    sub-pixel un-shuffle back to NHWC rows becomes a pure reshape."""
    t, kdim, _ = band.shape
    band = band.reshape(t, kdim, w_out, 2, 2 * cout)
    return band.transpose(0, 1, 3, 2, 4).reshape(t, kdim, 2 * w_out * 2 * cout)


def prepare_params(params):
    """Build kernel-ready device params (run once, outside the hot path)."""
    f32 = np.float32
    bf16 = jnp.bfloat16
    p = {k: np.asarray(v, f32) for k, v in params.items()}
    dp = {}

    def conv_band(w_oihw, bias, stride, w_pad, w_out):
        w_t = np.transpose(w_oihw, (2, 3, 1, 0))        # (k, k, Cin, Cout)
        band = _banded_weight(w_t, stride, w_pad, w_out)
        b2 = np.tile(bias, w_out)[None, :]
        return jnp.asarray(band, bf16), jnp.asarray(b2, jnp.float32)

    def deconv_band(w_iohw, bias, w_pad, w_out):
        cout = w_iohw.shape[1]
        w_eff = _deconv_as_phase_conv(w_iohw)           # (3, 3, Cin, 4*Cout)
        band = _banded_weight(w_eff, 1, w_pad, w_out)
        band = _phase_major_cols(band, w_out, cout)
        b2 = np.tile(bias, 4 * w_out)[None, :]
        return jnp.asarray(band, bf16), jnp.asarray(b2, jnp.float32)

    dp["conv1_w"], dp["conv1_b"] = conv_band(p["conv1_w"], p["conv1_b"], 2, 30, 14)
    dp["conv2_w"], dp["conv2_b"] = conv_band(p["conv2_w"], p["conv2_b"], 2, 16, 7)
    dp["deconv1_w"], dp["deconv1_b"] = deconv_band(p["deconv1_w"], p["deconv1_b"], 9, 7)
    dp["deconv2_w"], dp["deconv2_b"] = deconv_band(p["deconv2_w"], p["deconv2_b"], 16, 14)

    # fc1/fc2: permute rows from PyTorch (c,h,w) flatten to our (h,w,c)
    # flatten, and merge both heads into one (3136, 2*latent) matmul.
    def rows_chw_to_hwc(w_fc):
        n = w_fc.shape[1]
        return w_fc.reshape(64, 7, 7, n).transpose(1, 2, 0, 3).reshape(64 * 49, n)

    w12 = np.concatenate([rows_chw_to_hwc(p["fc1_w"]),
                          rows_chw_to_hwc(p["fc2_w"])], axis=1)
    b12 = np.concatenate([p["fc1_b"], p["fc2_b"]])[None, :]
    dp["fc12_w"] = jnp.asarray(w12, bf16)
    dp["fc12_b"] = jnp.asarray(b12, jnp.float32)

    # fc3: permute output columns / bias from (c,h,w) to (h,w,c).
    w3 = p["fc3_w"].reshape(LATENT_DIM, 64, 7, 7).transpose(0, 2, 3, 1)
    w3 = w3.reshape(LATENT_DIM, 64 * 49)
    b3 = p["fc3_b"].reshape(64, 7, 7).transpose(1, 2, 0).reshape(64 * 49)[None, :]
    dp["fc3_w"] = jnp.asarray(w3, bf16)
    dp["fc3_b"] = jnp.asarray(b3, jnp.float32)
    return dp


# ----------------------------------------------------------------------------
# Parameters (PyTorch layouts) + forward
# ----------------------------------------------------------------------------
def init_params(key):
    ks = jax.random.split(key, 14)

    def u(kw, kb, fan_in, shape_w, shape_b):
        bound = 1.0 / jnp.sqrt(jnp.float32(fan_in))
        w = jax.random.uniform(kw, shape_w, jnp.float32, -bound, bound)
        b = jax.random.uniform(kb, shape_b, jnp.float32, -bound, bound)
        return w, b

    p = {}
    p["conv1_w"], p["conv1_b"] = u(ks[0], ks[1], 1 * 4 * 4, (32, 1, 4, 4), (32,))
    p["conv2_w"], p["conv2_b"] = u(ks[2], ks[3], 32 * 4 * 4, (64, 32, 4, 4), (64,))
    p["fc1_w"], p["fc1_b"] = u(ks[4], ks[5], 64 * 7 * 7, (64 * 7 * 7, LATENT_DIM), (LATENT_DIM,))
    p["fc2_w"], p["fc2_b"] = u(ks[6], ks[7], 64 * 7 * 7, (64 * 7 * 7, LATENT_DIM), (LATENT_DIM,))
    p["fc3_w"], p["fc3_b"] = u(ks[8], ks[9], LATENT_DIM, (LATENT_DIM, 64 * 7 * 7), (64 * 7 * 7,))
    # ConvTranspose2d weight shape in PyTorch: (Cin, Cout, k, k)
    p["deconv1_w"], p["deconv1_b"] = u(ks[10], ks[11], 64 * 4 * 4, (64, 32, 4, 4), (32,))
    p["deconv2_w"], p["deconv2_b"] = u(ks[12], ks[13], 32 * 4 * 4, (32, 1, 4, 4), (1,))
    return p


def vae_forward(dp, x, eps):
    """x: (B,1,28,28) NCHW (PyTorch convention).  Returns (x_rec, mu, log_var)."""
    B = x.shape[0]
    bf16 = jnp.bfloat16

    # ---- encoder (activations stay flattened-NHWC, bf16, row-banded convs) ----
    h = x.reshape(B, 28, 28).astype(bf16)                 # C=1: NCHW==NHWC rows
    h = jnp.pad(h, ((0, 0), (1, 1), (1, 1))).reshape(B, 15, 60)        # row pairs
    h = row_band_conv(h, dp["conv1_w"], dp["conv1_b"], 14, "relu", bf16)   # (B,14,448)
    h = jnp.pad(h, ((0, 0), (1, 1), (32, 32))).reshape(B, 8, 1024)     # row pairs
    h = row_band_conv(h, dp["conv2_w"], dp["conv2_b"], 7, "relu", bf16)    # (B,7,448)
    hf = h.reshape(B, 7 * 7 * 64)

    # ---- fc1 + fc2 (merged into one matmul) + reparameterize ----
    mulv = matmul_bias_act(hf, dp["fc12_w"], dp["fc12_b"], "none", jnp.float32)
    mu, log_var = mulv[:, :LATENT_DIM], mulv[:, LATENT_DIM:]
    z = mu + eps * jnp.exp(0.5 * log_var)   # (B,20) elementwise -> left to XLA

    # ---- decoder (leading ReLU fused into the fc3 epilogue) ----
    d = matmul_bias_act(z.astype(bf16), dp["fc3_w"], dp["fc3_b"], "relu", bf16)
    d = d.reshape(B, 7, 448)
    d = jnp.pad(d, ((0, 0), (1, 1), (64, 64)))                         # (B,9,576)
    d = row_band_conv(d, dp["deconv1_w"], dp["deconv1_b"], 7, "relu", bf16)  # (B,7,896)
    d = d.reshape(B, 14, 448)     # sub-pixel un-shuffle: pure reshape (ph -> rows)
    d = jnp.pad(d, ((0, 0), (1, 1), (32, 32)))                         # (B,16,512)
    xr = row_band_conv(d, dp["deconv2_w"], dp["deconv2_b"], 14, "sigmoid",
                       jnp.float32)                                    # (B,14,56)
    xr = xr.reshape(B, 28, 28).reshape(B, 1, 28, 28)
    return xr, mu, log_var


# ----------------------------------------------------------------------------
# Plain-JAX (f32, lax.conv) reference of the PyTorch module for cross-checking
# ----------------------------------------------------------------------------
def reference_forward(params, x, eps):
    def conv(x, w, b, s, p):
        y = jax.lax.conv_general_dilated(
            x, w, (s, s), [(p, p), (p, p)],
            dimension_numbers=("NCHW", "OIHW", "NCHW"))
        return y + b.reshape(1, -1, 1, 1)

    def deconv(x, w, b, s, p, k):
        w2 = jnp.flip(w, (2, 3)).transpose(1, 0, 2, 3)
        y = jax.lax.conv_general_dilated(
            x, w2, (1, 1), [(k - 1 - p, k - 1 - p)] * 2, lhs_dilation=(s, s),
            dimension_numbers=("NCHW", "OIHW", "NCHW"))
        return y + b.reshape(1, -1, 1, 1)

    B = x.shape[0]
    h = jax.nn.relu(conv(x, params["conv1_w"], params["conv1_b"], 2, 1))
    h = jax.nn.relu(conv(h, params["conv2_w"], params["conv2_b"], 2, 1))
    hf = h.reshape(B, -1)
    mu = hf @ params["fc1_w"] + params["fc1_b"]
    lv = hf @ params["fc2_w"] + params["fc2_b"]
    z = mu + eps * jnp.exp(0.5 * lv)
    d = jax.nn.relu(z @ params["fc3_w"] + params["fc3_b"]).reshape(B, 64, 7, 7)
    d = jax.nn.relu(deconv(d, params["deconv1_w"], params["deconv1_b"], 2, 1, 4))
    xr = jax.nn.sigmoid(deconv(d, params["deconv2_w"], params["deconv2_b"], 2, 1, 4))
    return xr, mu, lv


if __name__ == "__main__":
    key = jax.random.PRNGKey(0)
    k_params, k_x, k_eps = jax.random.split(key, 3)

    B = 2
    x = jax.random.uniform(k_x, (B, 1, 28, 28), jnp.float32)       # MNIST-shaped NCHW input
    eps = jax.random.normal(k_eps, (B, LATENT_DIM), jnp.float32)   # torch.randn_like(std)
    params = init_params(k_params)
    dev_params = prepare_params(params)   # one-time weight re-layout (hoisted)

    fwd = jax.jit(vae_forward)
    x_rec, mu, log_var = fwd(dev_params, x, eps)
    jax.block_until_ready((x_rec, mu, log_var))

    assert x_rec.shape == (B, 1, 28, 28)
    assert mu.shape == (B, LATENT_DIM) and log_var.shape == (B, LATENT_DIM)
    assert bool(jnp.all(jnp.isfinite(x_rec)))
    assert bool(jnp.all((x_rec >= 0.0) & (x_rec <= 1.0)))

    # Cross-check the Pallas path (bf16 activations + MXU) vs f32 lax reference.
    xr_ref, mu_ref, lv_ref = jax.jit(reference_forward)(params, x, eps)
    tol = 3e-2   # covers bf16 storage of intermediate activations
    assert float(jnp.max(jnp.abs(x_rec - xr_ref))) < tol
    assert float(jnp.max(jnp.abs(mu - mu_ref))) < tol
    assert float(jnp.max(jnp.abs(log_var - lv_ref))) < tol

    print("KERNEL_OK")
</pallas_src>

<mosaic_0001>
module attributes {stable_mosaic.version = 11 : i64} {
  func.func @_row_band_conv_kernel(%arg0: i32, %arg1: memref<1x15x60xbf16, #tpu.memory_space<vmem>>, %arg2: memref<2x60x448xbf16, #tpu.memory_space<vmem>>, %arg3: memref<1x448xf32, #tpu.memory_space<vmem>>, %arg4: memref<1x14x448xbf16, #tpu.memory_space<vmem>>) attributes {dimension_semantics = [#tpu.dimension_semantics<parallel>], iteration_bounds = array<i64: 2>, scalar_prefetch = 0 : i64, scratch_operands = 0 : i64, tpu.core_type = #tpu.core_type<tc>, window_params = [{transform_indices = @transform_0, window_bounds = array<i64: 1, 15, 60>}, {pipeline_mode = #tpu.pipeline_mode<synchronous>, transform_indices = @transform_1, window_bounds = array<i64: 2, 60, 448>}, {pipeline_mode = #tpu.pipeline_mode<synchronous>, transform_indices = @transform_2, window_bounds = array<i64: 1, 448>}, {transform_indices = @transform_3, window_bounds = array<i64: 1, 14, 448>}]} {
    %c0 = arith.constant 0 : index
    %c0_0 = arith.constant 0 : index
    %0 = vector.load %arg3[%c0, %c0_0] : memref<1x448xf32, #tpu.memory_space<vmem>>, vector<1x448xf32>
    %cst = arith.constant 0.000000e+00 : f32
    %1 = vector.broadcast %cst : f32 to vector<14x448xf32>
    %c0_1 = arith.constant 0 : index
    %c0_2 = arith.constant 0 : index
    %c0_3 = arith.constant 0 : index
    %2 = vector.load %arg1[%c0_1, %c0_2, %c0_3] : memref<1x15x60xbf16, #tpu.memory_space<vmem>>, vector<1x14x60xbf16>
    %3 = vector.shape_cast %2 : vector<1x14x60xbf16> to vector<14x60xbf16>
    %c0_4 = arith.constant 0 : index
    %c0_5 = arith.constant 0 : index
    %c0_6 = arith.constant 0 : index
    %4 = vector.load %arg2[%c0_4, %c0_5, %c0_6] : memref<2x60x448xbf16, #tpu.memory_space<vmem>>, vector<1x60x448xbf16>
    %5 = vector.shape_cast %4 : vector<1x60x448xbf16> to vector<60x448xbf16>
    %cst_7 = arith.constant dense<0.000000e+00> : vector<14x448xf32>
    %6 = tpu.matmul %3, %5, %cst_7 {dimension_numbers = #tpu.dot_dimension_numbers<[1], [0], [0], [1], [0, 0, 1, 1], [], []>} : vector<14x60xbf16>, vector<60x448xbf16>, vector<14x448xf32> -> vector<14x448xf32>
    %7 = arith.addf %1, %6 : vector<14x448xf32>
    %c0_8 = arith.constant 0 : index
    %c1 = arith.constant 1 : index
    %c0_9 = arith.constant 0 : index
    %8 = vector.load %arg1[%c0_8, %c1, %c0_9] : memref<1x15x60xbf16, #tpu.memory_space<vmem>>, vector<1x14x60xbf16>
    %9 = vector.shape_cast %8 : vector<1x14x60xbf16> to vector<14x60xbf16>
    %c1_10 = arith.constant 1 : index
    %c0_11 = arith.constant 0 : index
    %c0_12 = arith.constant 0 : index
    %10 = vector.load %arg2[%c1_10, %c0_11, %c0_12] : memref<2x60x448xbf16, #tpu.memory_space<vmem>>, vector<1x60x448xbf16>
    %11 = vector.shape_cast %10 : vector<1x60x448xbf16> to vector<60x448xbf16>
    %cst_13 = arith.constant dense<0.000000e+00> : vector<14x448xf32>
    %12 = tpu.matmul %9, %11, %cst_13 {dimension_numbers = #tpu.dot_dimension_numbers<[1], [0], [0], [1], [0, 0, 1, 1], [], []>} : vector<14x60xbf16>, vector<60x448xbf16>, vector<14x448xf32> -> vector<14x448xf32>
    %13 = arith.addf %7, %12 : vector<14x448xf32>
    %14 = vector.broadcast %0 : vector<1x448xf32> to vector<14x448xf32>
    %15 = arith.addf %13, %14 : vector<14x448xf32>
    %cst_14 = arith.constant 0.000000e+00 : f32
    %16 = vector.broadcast %cst_14 : f32 to vector<14x448xf32>
    %17 = arith.maximumf %15, %16 : vector<14x448xf32>
    %18 = arith.truncf %17 : vector<14x448xf32> to vector<14x448xbf16>
    %c0_15 = arith.constant 0 : index
    %c0_16 = arith.constant 0 : index
    %c0_17 = arith.constant 0 : index
    %19 = vector.load %arg4[%c0_15, %c0_16, %c0_17] : memref<1x14x448xbf16, #tpu.memory_space<vmem>>, vector<1x14x448xbf16>
    %20 = vector.shape_cast %19 : vector<1x14x448xbf16> to vector<14x448xbf16>
    %21 = vector.shape_cast %18 : vector<14x448xbf16> to vector<1x14x448xbf16>
    tpu.vector_store %arg4[%c0_15, %c0_16, %c0_17], %21 {strides = array<i32>} : memref<1x14x448xbf16, #tpu.memory_space<vmem>>, vector<1x14x448xbf16>,
    return
  }
  func.func @transform_0(%arg0: i32) -> (i32, i32, i32) {
    %c0_i32 = arith.constant 0 : i32
    %c0_i32_0 = arith.constant 0 : i32
    %c0_i32_1 = arith.constant 0 : i32
    return %arg0, %c0_i32, %c0_i32_0 : i32, i32, i32
  }
  func.func @transform_1(%arg0: i32) -> (i32, i32, i32) {
    %c0_i32 = arith.constant 0 : i32
    %c0_i32_0 = arith.constant 0 : i32
    %c0_i32_1 = arith.constant 0 : i32
    %c0_i32_2 = arith.constant 0 : i32
    return %c0_i32, %c0_i32_0, %c0_i32_1 : i32, i32, i32
  }
  func.func @transform_2(%arg0: i32) -> (i32, i32) {
    %c0_i32 = arith.constant 0 : i32
    %c0_i32_0 = arith.constant 0 : i32
    %c0_i32_1 = arith.constant 0 : i32
    return %c0_i32, %c0_i32_0 : i32, i32
  }
  func.func @transform_3(%arg0: i32) -> (i32, i32, i32) {
    %c0_i32 = arith.constant 0 : i32
    %c0_i32_0 = arith.constant 0 : i32
    %c0_i32_1 = arith.constant 0 : i32
    return %arg0, %c0_i32, %c0_i32_0 : i32, i32, i32
  }
}

module attributes {stable_mosaic.version = 11 : i64} {
  func.func @_row_band_conv_kernel(%arg0: i32, %arg1: memref<1x8x1024xbf16, #tpu.memory_space<vmem>>, %arg2: memref<2x1024x448xbf16, #tpu.memory_space<vmem>>, %arg3: memref<1x448xf32, #tpu.memory_space<vmem>>, %arg4: memref<1x7x448xbf16, #tpu.memory_space<vmem>>) attributes {dimension_semantics = [#tpu.dimension_semantics<parallel>], iteration_bounds = array<i64: 2>, scalar_prefetch = 0 : i64, scratch_operands = 0 : i64, tpu.core_type = #tpu.core_type<tc>, window_params = [{transform_indices = @transform_0, window_bounds = array<i64: 1, 8, 1024>}, {pipeline_mode = #tpu.pipeline_mode<synchronous>, transform_indices = @transform_1, window_bounds = array<i64: 2, 1024, 448>}, {pipeline_mode = #tpu.pipeline_mode<synchronous>, transform_indices = @transform_2, window_bounds = array<i64: 1, 448>}, {transform_indices = @transform_3, window_bounds = array<i64: 1, 7, 448>}]} {
    %c0 = arith.constant 0 : index
    %c0_0 = arith.constant 0 : index
    %0 = vector.load %arg3[%c0, %c0_0] : memref<1x448xf32, #tpu.memory_space<vmem>>, vector<1x448xf32>
    %cst = arith.constant 0.000000e+00 : f32
    %1 = vector.broadcast %cst : f32 to vector<7x448xf32>
    %c0_1 = arith.constant 0 : index
    %c0_2 = arith.constant 0 : index
    %c0_3 = arith.constant 0 : index
    %2 = vector.load %arg1[%c0_1, %c0_2, %c0_3] : memref<1x8x1024xbf16, #tpu.memory_space<vmem>>, vector<1x7x1024xbf16>
    %3 = vector.shape_cast %2 : vector<1x7x1024xbf16> to vector<7x1024xbf16>
    %c0_4 = arith.constant 0 : index
    %c0_5 = arith.constant 0 : index
    %c0_6 = arith.constant 0 : index
    %4 = vector.load %arg2[%c0_4, %c0_5, %c0_6] : memref<2x1024x448xbf16, #tpu.memory_space<vmem>>, vector<1x1024x448xbf16>
    %5 = vector.shape_cast %4 : vector<1x1024x448xbf16> to vector<1024x448xbf16>
    %cst_7 = arith.constant dense<0.000000e+00> : vector<7x448xf32>
    %6 = tpu.matmul %3, %5, %cst_7 {dimension_numbers = #tpu.dot_dimension_numbers<[1], [0], [0], [1], [0, 0, 1, 1], [], []>} : vector<7x1024xbf16>, vector<1024x448xbf16>, vector<7x448xf32> -> vector<7x448xf32>
    %7 = arith.addf %1, %6 : vector<7x448xf32>
    %c0_8 = arith.constant 0 : index
    %c1 = arith.constant 1 : index
    %c0_9 = arith.constant 0 : index
    %8 = vector.load %arg1[%c0_8, %c1, %c0_9] : memref<1x8x1024xbf16, #tpu.memory_space<vmem>>, vector<1x7x1024xbf16>
    %9 = vector.shape_cast %8 : vector<1x7x1024xbf16> to vector<7x1024xbf16>
    %c1_10 = arith.constant 1 : index
    %c0_11 = arith.constant 0 : index
    %c0_12 = arith.constant 0 : index
    %10 = vector.load %arg2[%c1_10, %c0_11, %c0_12] : memref<2x1024x448xbf16, #tpu.memory_space<vmem>>, vector<1x1024x448xbf16>
    %11 = vector.shape_cast %10 : vector<1x1024x448xbf16> to vector<1024x448xbf16>
    %cst_13 = arith.constant dense<0.000000e+00> : vector<7x448xf32>
    %12 = tpu.matmul %9, %11, %cst_13 {dimension_numbers = #tpu.dot_dimension_numbers<[1], [0], [0], [1], [0, 0, 1, 1], [], []>} : vector<7x1024xbf16>, vector<1024x448xbf16>, vector<7x448xf32> -> vector<7x448xf32>
    %13 = arith.addf %7, %12 : vector<7x448xf32>
    %14 = vector.broadcast %0 : vector<1x448xf32> to vector<7x448xf32>
    %15 = arith.addf %13, %14 : vector<7x448xf32>
    %cst_14 = arith.constant 0.000000e+00 : f32
    %16 = vector.broadcast %cst_14 : f32 to vector<7x448xf32>
    %17 = arith.maximumf %15, %16 : vector<7x448xf32>
    %18 = arith.truncf %17 : vector<7x448xf32> to vector<7x448xbf16>
    %c0_15 = arith.constant 0 : index
    %c0_16 = arith.constant 0 : index
    %c0_17 = arith.constant 0 : index
    %19 = vector.load %arg4[%c0_15, %c0_16, %c0_17] : memref<1x7x448xbf16, #tpu.memory_space<vmem>>, vector<1x7x448xbf16>
    %20 = vector.shape_cast %19 : vector<1x7x448xbf16> to vector<7x448xbf16>
    %21 = vector.shape_cast %18 : vector<7x448xbf16> to vector<1x7x448xbf16>
    tpu.vector_store %arg4[%c0_15, %c0_16, %c0_17], %21 {strides = array<i32>} : memref<1x7x448xbf16, #tpu.memory_space<vmem>>, vector<1x7x448xbf16>,
    return
  }
  func.func @transform_0(%arg0: i32) -> (i32, i32, i32) {
    %c0_i32 = arith.constant 0 : i32
    %c0_i32_0 = arith.constant 0 : i32
    %c0_i32_1 = arith.constant 0 : i32
    return %arg0, %c0_i32, %c0_i32_0 : i32, i32, i32
  }
  func.func @transform_1(%arg0: i32) -> (i32, i32, i32) {
    %c0_i32 = arith.constant 0 : i32
    %c0_i32_0 = arith.constant 0 : i32
    %c0_i32_1 = arith.constant 0 : i32
    %c0_i32_2 = arith.constant 0 : i32
    return %c0_i32, %c0_i32_0, %c0_i32_1 : i32, i32, i32
  }
  func.func @transform_2(%arg0: i32) -> (i32, i32) {
    %c0_i32 = arith.constant 0 : i32
    %c0_i32_0 = arith.constant 0 : i32
    %c0_i32_1 = arith.constant 0 : i32
    return %c0_i32, %c0_i32_0 : i32, i32
  }
  func.func @transform_3(%arg0: i32) -> (i32, i32, i32) {
    %c0_i32 = arith.constant 0 : i32
    %c0_i32_0 = arith.constant 0 : i32
    %c0_i32_1 = arith.constant 0 : i32
    return %arg0, %c0_i32, %c0_i32_0 : i32, i32, i32
  }
}

module attributes {stable_mosaic.version = 11 : i64} {
  func.func @_matmul_bias_act_kernel(%arg0: i32, %arg1: memref<2x3136xbf16, #tpu.memory_space<vmem>>, %arg2: memref<3136x40xbf16, #tpu.memory_space<vmem>>, %arg3: memref<1x40xf32, #tpu.memory_space<vmem>>, %arg4: memref<2x40xf32, #tpu.memory_space<vmem>>) attributes {dimension_semantics = [#tpu.dimension_semantics<parallel>], iteration_bounds = array<i64: 1>, scalar_prefetch = 0 : i64, scratch_operands = 0 : i64, tpu.core_type = #tpu.core_type<tc>, window_params = [{transform_indices = @transform_0, window_bounds = array<i64: 2, 3136>}, {pipeline_mode = #tpu.pipeline_mode<synchronous>, transform_indices = @transform_1, window_bounds = array<i64: 3136, 40>}, {pipeline_mode = #tpu.pipeline_mode<synchronous>, transform_indices = @transform_2, window_bounds = array<i64: 1, 40>}, {transform_indices = @transform_3, window_bounds = array<i64: 2, 40>}]} {
    %c0 = arith.constant 0 : index
    %c0_0 = arith.constant 0 : index
    %0 = vector.load %arg1[%c0, %c0_0] : memref<2x3136xbf16, #tpu.memory_space<vmem>>, vector<2x3136xbf16>
    %c0_1 = arith.constant 0 : index
    %c0_2 = arith.constant 0 : index
    %1 = vector.load %arg2[%c0_1, %c0_2] : memref<3136x40xbf16, #tpu.memory_space<vmem>>, vector<3136x40xbf16>
    %cst = arith.constant dense<0.000000e+00> : vector<2x40xf32>
    %2 = tpu.matmul %0, %1, %cst {dimension_numbers = #tpu.dot_dimension_numbers<[1], [0], [0], [1], [0, 0, 1, 1], [], []>} : vector<2x3136xbf16>, vector<3136x40xbf16>, vector<2x40xf32> -> vector<2x40xf32>
    %c0_3 = arith.constant 0 : index
    %c0_4 = arith.constant 0 : index
    %3 = vector.load %arg3[%c0_3, %c0_4] : memref<1x40xf32, #tpu.memory_space<vmem>>, vector<1x40xf32>
    %4 = vector.broadcast %3 : vector<1x40xf32> to vector<2x40xf32>
    %5 = arith.addf %2, %4 : vector<2x40xf32>
    %c0_5 = arith.constant 0 : index
    %c0_6 = arith.constant 0 : index
    %6 = vector.load %arg4[%c0_5, %c0_6] : memref<2x40xf32, #tpu.memory_space<vmem>>, vector<2x40xf32>
    tpu.vector_store %arg4[%c0_5, %c0_6], %5 {strides = array<i32>} : memref<2x40xf32, #tpu.memory_space<vmem>>, vector<2x40xf32>,
    return
  }
  func.func @transform_0(%arg0: i32) -> (i32, i32) {
    %c0_i32 = arith.constant 0 : i32
    %c0_i32_0 = arith.constant 0 : i32
    return %arg0, %c0_i32 : i32, i32
  }
  func.func @transform_1(%arg0: i32) -> (i32, i32) {
    %c0_i32 = arith.constant 0 : i32
    %c0_i32_0 = arith.constant 0 : i32
    %c0_i32_1 = arith.constant 0 : i32
    return %c0_i32, %c0_i32_0 : i32, i32
  }
  func.func @transform_2(%arg0: i32) -> (i32, i32) {
    %c0_i32 = arith.constant 0 : i32
    %c0_i32_0 = arith.constant 0 : i32
    %c0_i32_1 = arith.constant 0 : i32
    return %c0_i32, %c0_i32_0 : i32, i32
  }
  func.func @transform_3(%arg0: i32) -> (i32, i32) {
    %c0_i32 = arith.constant 0 : i32
    %c0_i32_0 = arith.constant 0 : i32
    return %arg0, %c0_i32 : i32, i32
  }
}

module attributes {stable_mosaic.version = 11 : i64} {
  func.func @_matmul_bias_act_kernel(%arg0: i32, %arg1: memref<2x20xbf16, #tpu.memory_space<vmem>>, %arg2: memref<20x3136xbf16, #tpu.memory_space<vmem>>, %arg3: memref<1x3136xf32, #tpu.memory_space<vmem>>, %arg4: memref<2x3136xbf16, #tpu.memory_space<vmem>>) attributes {dimension_semantics = [#tpu.dimension_semantics<parallel>], iteration_bounds = array<i64: 1>, scalar_prefetch = 0 : i64, scratch_operands = 0 : i64, tpu.core_type = #tpu.core_type<tc>, window_params = [{transform_indices = @transform_0, window_bounds = array<i64: 2, 20>}, {pipeline_mode = #tpu.pipeline_mode<synchronous>, transform_indices = @transform_1, window_bounds = array<i64: 20, 3136>}, {pipeline_mode = #tpu.pipeline_mode<synchronous>, transform_indices = @transform_2, window_bounds = array<i64: 1, 3136>}, {transform_indices = @transform_3, window_bounds = array<i64: 2, 3136>}]} {
    %c0 = arith.constant 0 : index
    %c0_0 = arith.constant 0 : index
    %0 = vector.load %arg1[%c0, %c0_0] : memref<2x20xbf16, #tpu.memory_space<vmem>>, vector<2x20xbf16>
    %c0_1 = arith.constant 0 : index
    %c0_2 = arith.constant 0 : index
    %1 = vector.load %arg2[%c0_1, %c0_2] : memref<20x3136xbf16, #tpu.memory_space<vmem>>, vector<20x3136xbf16>
    %cst = arith.constant dense<0.000000e+00> : vector<2x3136xf32>
    %2 = tpu.matmul %0, %1, %cst {dimension_numbers = #tpu.dot_dimension_numbers<[1], [0], [0], [1], [0, 0, 1, 1], [], []>} : vector<2x20xbf16>, vector<20x3136xbf16>, vector<2x3136xf32> -> vector<2x3136xf32>
    %c0_3 = arith.constant 0 : index
    %c0_4 = arith.constant 0 : index
    %3 = vector.load %arg3[%c0_3, %c0_4] : memref<1x3136xf32, #tpu.memory_space<vmem>>, vector<1x3136xf32>
    %4 = vector.broadcast %3 : vector<1x3136xf32> to vector<2x3136xf32>
    %5 = arith.addf %2, %4 : vector<2x3136xf32>
    %cst_5 = arith.constant 0.000000e+00 : f32
    %6 = vector.broadcast %cst_5 : f32 to vector<2x3136xf32>
    %7 = arith.maximumf %5, %6 : vector<2x3136xf32>
    %8 = arith.truncf %7 : vector<2x3136xf32> to vector<2x3136xbf16>
    %c0_6 = arith.constant 0 : index
    %c0_7 = arith.constant 0 : index
    %9 = vector.load %arg4[%c0_6, %c0_7] : memref<2x3136xbf16, #tpu.memory_space<vmem>>, vector<2x3136xbf16>
    tpu.vector_store %arg4[%c0_6, %c0_7], %8 {strides = array<i32>} : memref<2x3136xbf16, #tpu.memory_space<vmem>>, vector<2x3136xbf16>,
    return
  }
  func.func @transform_0(%arg0: i32) -> (i32, i32) {
    %c0_i32 = arith.constant 0 : i32
    %c0_i32_0 = arith.constant 0 : i32
    return %arg0, %c0_i32 : i32, i32
  }
  func.func @transform_1(%arg0: i32) -> (i32, i32) {
    %c0_i32 = arith.constant 0 : i32
    %c0_i32_0 = arith.constant 0 : i32
    %c0_i32_1 = arith.constant 0 : i32
    return %c0_i32, %c0_i32_0 : i32, i32
  }
  func.func @transform_2(%arg0: i32) -> (i32, i32) {
    %c0_i32 = arith.constant 0 : i32
    %c0_i32_0 = arith.constant 0 : i32
    %c0_i32_1 = arith.constant 0 : i32
    return %c0_i32, %c0_i32_0 : i32, i32
  }
  func.func @transform_3(%arg0: i32) -> (i32, i32) {
    %c0_i32 = arith.constant 0 : i32
    %c0_i32_0 = arith.constant 0 : i32
    return %arg0, %c0_i32 : i32, i32
  }
}

module attributes {stable_mosaic.version = 11 : i64} {
  func.func @_row_band_conv_kernel(%arg0: i32, %arg1: memref<1x9x576xbf16, #tpu.memory_space<vmem>>, %arg2: memref<3x576x896xbf16, #tpu.memory_space<vmem>>, %arg3: memref<1x896xf32, #tpu.memory_space<vmem>>, %arg4: memref<1x7x896xbf16, #tpu.memory_space<vmem>>) attributes {dimension_semantics = [#tpu.dimension_semantics<parallel>], iteration_bounds = array<i64: 2>, scalar_prefetch = 0 : i64, scratch_operands = 0 : i64, tpu.core_type = #tpu.core_type<tc>, window_params = [{transform_indices = @transform_0, window_bounds = array<i64: 1, 9, 576>}, {pipeline_mode = #tpu.pipeline_mode<synchronous>, transform_indices = @transform_1, window_bounds = array<i64: 3, 576, 896>}, {pipeline_mode = #tpu.pipeline_mode<synchronous>, transform_indices = @transform_2, window_bounds = array<i64: 1, 896>}, {transform_indices = @transform_3, window_bounds = array<i64: 1, 7, 896>}]} {
    %c0 = arith.constant 0 : index
    %c0_0 = arith.constant 0 : index
    %0 = vector.load %arg3[%c0, %c0_0] : memref<1x896xf32, #tpu.memory_space<vmem>>, vector<1x896xf32>
    %cst = arith.constant 0.000000e+00 : f32
    %1 = vector.broadcast %cst : f32 to vector<7x896xf32>
    %c0_1 = arith.constant 0 : index
    %c0_2 = arith.constant 0 : index
    %c0_3 = arith.constant 0 : index
    %2 = vector.load %arg1[%c0_1, %c0_2, %c0_3] : memref<1x9x576xbf16, #tpu.memory_space<vmem>>, vector<1x7x576xbf16>
    %3 = vector.shape_cast %2 : vector<1x7x576xbf16> to vector<7x576xbf16>
    %c0_4 = arith.constant 0 : index
    %c0_5 = arith.constant 0 : index
    %c0_6 = arith.constant 0 : index
    %4 = vector.load %arg2[%c0_4, %c0_5, %c0_6] : memref<3x576x896xbf16, #tpu.memory_space<vmem>>, vector<1x576x896xbf16>
    %5 = vector.shape_cast %4 : vector<1x576x896xbf16> to vector<576x896xbf16>
    %cst_7 = arith.constant dense<0.000000e+00> : vector<7x896xf32>
    %6 = tpu.matmul %3, %5, %cst_7 {dimension_numbers = #tpu.dot_dimension_numbers<[1], [0], [0], [1], [0, 0, 1, 1], [], []>} : vector<7x576xbf16>, vector<576x896xbf16>, vector<7x896xf32> -> vector<7x896xf32>
    %7 = arith.addf %1, %6 : vector<7x896xf32>
    %c0_8 = arith.constant 0 : index
    %c1 = arith.constant 1 : index
    %c0_9 = arith.constant 0 : index
    %8 = vector.load %arg1[%c0_8, %c1, %c0_9] : memref<1x9x576xbf16, #tpu.memory_space<vmem>>, vector<1x7x576xbf16>
    %9 = vector.shape_cast %8 : vector<1x7x576xbf16> to vector<7x576xbf16>
    %c1_10 = arith.constant 1 : index
    %c0_11 = arith.constant 0 : index
    %c0_12 = arith.constant 0 : index
    %10 = vector.load %arg2[%c1_10, %c0_11, %c0_12] : memref<3x576x896xbf16, #tpu.memory_space<vmem>>, vector<1x576x896xbf16>
    %11 = vector.shape_cast %10 : vector<1x576x896xbf16> to vector<576x896xbf16>
    %cst_13 = arith.constant dense<0.000000e+00> : vector<7x896xf32>
    %12 = tpu.matmul %9, %11, %cst_13 {dimension_numbers = #tpu.dot_dimension_numbers<[1], [0], [0], [1], [0, 0, 1, 1], [], []>} : vector<7x576xbf16>, vector<576x896xbf16>, vector<7x896xf32> -> vector<7x896xf32>
    %13 = arith.addf %7, %12 : vector<7x896xf32>
    %c0_14 = arith.constant 0 : index
    %c2 = arith.constant 2 : index
    %c0_15 = arith.constant 0 : index
    %14 = vector.load %arg1[%c0_14, %c2, %c0_15] : memref<1x9x576xbf16, #tpu.memory_space<vmem>>, vector<1x7x576xbf16>
    %15 = vector.shape_cast %14 : vector<1x7x576xbf16> to vector<7x576xbf16>
    %c2_16 = arith.constant 2 : index
    %c0_17 = arith.constant 0 : index
    %c0_18 = arith.constant 0 : index
    %16 = vector.load %arg2[%c2_16, %c0_17, %c0_18] : memref<3x576x896xbf16, #tpu.memory_space<vmem>>, vector<1x576x896xbf16>
    %17 = vector.shape_cast %16 : vector<1x576x896xbf16> to vector<576x896xbf16>
    %cst_19 = arith.constant dense<0.000000e+00> : vector<7x896xf32>
    %18 = tpu.matmul %15, %17, %cst_19 {dimension_numbers = #tpu.dot_dimension_numbers<[1], [0], [0], [1], [0, 0, 1, 1], [], []>} : vector<7x576xbf16>, vector<576x896xbf16>, vector<7x896xf32> -> vector<7x896xf32>
    %19 = arith.addf %13, %18 : vector<7x896xf32>
    %20 = vector.broadcast %0 : vector<1x896xf32> to vector<7x896xf32>
    %21 = arith.addf %19, %20 : vector<7x896xf32>
    %cst_20 = arith.constant 0.000000e+00 : f32
    %22 = vector.broadcast %cst_20 : f32 to vector<7x896xf32>
    %23 = arith.maximumf %21, %22 : vector<7x896xf32>
    %24 = arith.truncf %23 : vector<7x896xf32> to vector<7x896xbf16>
    %c0_21 = arith.constant 0 : index
    %c0_22 = arith.constant 0 : index
    %c0_23 = arith.constant 0 : index
    %25 = vector.load %arg4[%c0_21, %c0_22, %c0_23] : memref<1x7x896xbf16, #tpu.memory_space<vmem>>, vector<1x7x896xbf16>
    %26 = vector.shape_cast %25 : vector<1x7x896xbf16> to vector<7x896xbf16>
    %27 = vector.shape_cast %24 : vector<7x896xbf16> to vector<1x7x896xbf16>
    tpu.vector_store %arg4[%c0_21, %c0_22, %c0_23], %27 {strides = array<i32>} : memref<1x7x896xbf16, #tpu.memory_space<vmem>>, vector<1x7x896xbf16>,
    return
  }
  func.func @transform_0(%arg0: i32) -> (i32, i32, i32) {
    %c0_i32 = arith.constant 0 : i32
    %c0_i32_0 = arith.constant 0 : i32
    %c0_i32_1 = arith.constant 0 : i32
    return %arg0, %c0_i32, %c0_i32_0 : i32, i32, i32
  }
  func.func @transform_1(%arg0: i32) -> (i32, i32, i32) {
    %c0_i32 = arith.constant 0 : i32
    %c0_i32_0 = arith.constant 0 : i32
    %c0_i32_1 = arith.constant 0 : i32
    %c0_i32_2 = arith.constant 0 : i32
    return %c0_i32, %c0_i32_0, %c0_i32_1 : i32, i32, i32
  }
  func.func @transform_2(%arg0: i32) -> (i32, i32) {
    %c0_i32 = arith.constant 0 : i32
    %c0_i32_0 = arith.constant 0 : i32
    %c0_i32_1 = arith.constant 0 : i32
    return %c0_i32, %c0_i32_0 : i32, i32
  }
  func.func @transform_3(%arg0: i32) -> (i32, i32, i32) {
    %c0_i32 = arith.constant 0 : i32
    %c0_i32_0 = arith.constant 0 : i32
    %c0_i32_1 = arith.constant 0 : i32
    return %arg0, %c0_i32, %c0_i32_0 : i32, i32, i32
  }
}

module attributes {stable_mosaic.version = 11 : i64} {
  func.func @_row_band_conv_kernel(%arg0: i32, %arg1: memref<1x16x512xbf16, #tpu.memory_space<vmem>>, %arg2: memref<3x512x56xbf16, #tpu.memory_space<vmem>>, %arg3: memref<1x56xf32, #tpu.memory_space<vmem>>, %arg4: memref<1x14x56xf32, #tpu.memory_space<vmem>>) attributes {dimension_semantics = [#tpu.dimension_semantics<parallel>], iteration_bounds = array<i64: 2>, scalar_prefetch = 0 : i64, scratch_operands = 0 : i64, tpu.core_type = #tpu.core_type<tc>, window_params = [{transform_indices = @transform_0, window_bounds = array<i64: 1, 16, 512>}, {pipeline_mode = #tpu.pipeline_mode<synchronous>, transform_indices = @transform_1, window_bounds = array<i64: 3, 512, 56>}, {pipeline_mode = #tpu.pipeline_mode<synchronous>, transform_indices = @transform_2, window_bounds = array<i64: 1, 56>}, {transform_indices = @transform_3, window_bounds = array<i64: 1, 14, 56>}]} {
    %c0 = arith.constant 0 : index
    %c0_0 = arith.constant 0 : index
    %0 = vector.load %arg3[%c0, %c0_0] : memref<1x56xf32, #tpu.memory_space<vmem>>, vector<1x56xf32>
    %cst = arith.constant 0.000000e+00 : f32
    %1 = vector.broadcast %cst : f32 to vector<14x56xf32>
    %c0_1 = arith.constant 0 : index
    %c0_2 = arith.constant 0 : index
    %c0_3 = arith.constant 0 : index
    %2 = vector.load %arg1[%c0_1, %c0_2, %c0_3] : memref<1x16x512xbf16, #tpu.memory_space<vmem>>, vector<1x14x512xbf16>
    %3 = vector.shape_cast %2 : vector<1x14x512xbf16> to vector<14x512xbf16>
    %c0_4 = arith.constant 0 : index
    %c0_5 = arith.constant 0 : index
    %c0_6 = arith.constant 0 : index
    %4 = vector.load %arg2[%c0_4, %c0_5, %c0_6] : memref<3x512x56xbf16, #tpu.memory_space<vmem>>, vector<1x512x56xbf16>
    %5 = vector.shape_cast %4 : vector<1x512x56xbf16> to vector<512x56xbf16>
    %cst_7 = arith.constant dense<0.000000e+00> : vector<14x56xf32>
    %6 = tpu.matmul %3, %5, %cst_7 {dimension_numbers = #tpu.dot_dimension_numbers<[1], [0], [0], [1], [0, 0, 1, 1], [], []>} : vector<14x512xbf16>, vector<512x56xbf16>, vector<14x56xf32> -> vector<14x56xf32>
    %7 = arith.addf %1, %6 : vector<14x56xf32>
    %c0_8 = arith.constant 0 : index
    %c1 = arith.constant 1 : index
    %c0_9 = arith.constant 0 : index
    %8 = vector.load %arg1[%c0_8, %c1, %c0_9] : memref<1x16x512xbf16, #tpu.memory_space<vmem>>, vector<1x14x512xbf16>
    %9 = vector.shape_cast %8 : vector<1x14x512xbf16> to vector<14x512xbf16>
    %c1_10 = arith.constant 1 : index
    %c0_11 = arith.constant 0 : index
    %c0_12 = arith.constant 0 : index
    %10 = vector.load %arg2[%c1_10, %c0_11, %c0_12] : memref<3x512x56xbf16, #tpu.memory_space<vmem>>, vector<1x512x56xbf16>
    %11 = vector.shape_cast %10 : vector<1x512x56xbf16> to vector<512x56xbf16>
    %cst_13 = arith.constant dense<0.000000e+00> : vector<14x56xf32>
    %12 = tpu.matmul %9, %11, %cst_13 {dimension_numbers = #tpu.dot_dimension_numbers<[1], [0], [0], [1], [0, 0, 1, 1], [], []>} : vector<14x512xbf16>, vector<512x56xbf16>, vector<14x56xf32> -> vector<14x56xf32>
    %13 = arith.addf %7, %12 : vector<14x56xf32>
    %c0_14 = arith.constant 0 : index
    %c2 = arith.constant 2 : index
    %c0_15 = arith.constant 0 : index
    %14 = vector.load %arg1[%c0_14, %c2, %c0_15] : memref<1x16x512xbf16, #tpu.memory_space<vmem>>, vector<1x14x512xbf16>
    %15 = vector.shape_cast %14 : vector<1x14x512xbf16> to vector<14x512xbf16>
    %c2_16 = arith.constant 2 : index
    %c0_17 = arith.constant 0 : index
    %c0_18 = arith.constant 0 : index
    %16 = vector.load %arg2[%c2_16, %c0_17, %c0_18] : memref<3x512x56xbf16, #tpu.memory_space<vmem>>, vector<1x512x56xbf16>
    %17 = vector.shape_cast %16 : vector<1x512x56xbf16> to vector<512x56xbf16>
    %cst_19 = arith.constant dense<0.000000e+00> : vector<14x56xf32>
    %18 = tpu.matmul %15, %17, %cst_19 {dimension_numbers = #tpu.dot_dimension_numbers<[1], [0], [0], [1], [0, 0, 1, 1], [], []>} : vector<14x512xbf16>, vector<512x56xbf16>, vector<14x56xf32> -> vector<14x56xf32>
    %19 = arith.addf %13, %18 : vector<14x56xf32>
    %20 = vector.broadcast %0 : vector<1x56xf32> to vector<14x56xf32>
    %21 = arith.addf %19, %20 : vector<14x56xf32>
    %cst_20 = arith.constant 5.000000e-01 : f32
    %22 = vector.broadcast %cst_20 : f32 to vector<14x56xf32>
    %23 = arith.mulf %22, %21 : vector<14x56xf32>
    %24 = math.tanh %23 : vector<14x56xf32>
    %cst_21 = arith.constant 1.000000e+00 : f32
    %25 = vector.broadcast %cst_21 : f32 to vector<14x56xf32>
    %26 = arith.addf %24, %25 : vector<14x56xf32>
    %cst_22 = arith.constant 5.000000e-01 : f32
    %27 = vector.broadcast %cst_22 : f32 to vector<14x56xf32>
    %28 = arith.mulf %27, %26 : vector<14x56xf32>
    %c0_23 = arith.constant 0 : index
    %c0_24 = arith.constant 0 : index
    %c0_25 = arith.constant 0 : index
    %29 = vector.load %arg4[%c0_23, %c0_24, %c0_25] : memref<1x14x56xf32, #tpu.memory_space<vmem>>, vector<1x14x56xf32>
    %30 = vector.shape_cast %29 : vector<1x14x56xf32> to vector<14x56xf32>
    %31 = vector.shape_cast %28 : vector<14x56xf32> to vector<1x14x56xf32>
    tpu.vector_store %arg4[%c0_23, %c0_24, %c0_25], %31 {strides = array<i32>} : memref<1x14x56xf32, #tpu.memory_space<vmem>>, vector<1x14x56xf32>,
    return
  }
  func.func @transform_0(%arg0: i32) -> (i32, i32, i32) {
    %c0_i32 = arith.constant 0 : i32
    %c0_i32_0 = arith.constant 0 : i32
    %c0_i32_1 = arith.constant 0 : i32
    return %arg0, %c0_i32, %c0_i32_0 : i32, i32, i32
  }
  func.func @transform_1(%arg0: i32) -> (i32, i32, i32) {
    %c0_i32 = arith.constant 0 : i32
    %c0_i32_0 = arith.constant 0 : i32
    %c0_i32_1 = arith.constant 0 : i32
    %c0_i32_2 = arith.constant 0 : i32
    return %c0_i32, %c0_i32_0, %c0_i32_1 : i32, i32, i32
  }
  func.func @transform_2(%arg0: i32) -> (i32, i32) {
    %c0_i32 = arith.constant 0 : i32
    %c0_i32_0 = arith.constant 0 : i32
    %c0_i32_1 = arith.constant 0 : i32
    return %c0_i32, %c0_i32_0 : i32, i32
  }
  func.func @transform_3(%arg0: i32) -> (i32, i32, i32) {
    %c0_i32 = arith.constant 0 : i32
    %c0_i32_0 = arith.constant 0 : i32
    %c0_i32_1 = arith.constant 0 : i32
    return %arg0, %c0_i32, %c0_i32_0 : i32, i32, i32
  }
}

</mosaic_0001>

<bundles_post_ra>
// kernel: vae_forward.6
= control target key start
LH: loop header
LB: loop body
LE: loop exit
PB: predicated region body
PF: predicated region fallthrough
CT: control target
= control target key end

     0   :  { %8 = vsyncpa [#allocation3], 0  ;;  %s942_s12 = smov 0   ;;  %s1094_s0 = inlined_call_operand.vmem [shape: bf16[2,15,60], index: 0, kind: input, shape index: {}]   ;;  %s1095_s1 = inlined_call_operand.vmem [shape: bf16[2,60,448], index: 1, kind: input, shape index: {}]   ;;  %s1096_s2 = inlined_call_operand.hbm [shape: f32[1,448], index: 2, kind: input, shape index: {}]   ;;  %s1097_s3 = inlined_call_operand.vmem [shape: bf16[2,14,448], index: 3, kind: output, shape index: {}]  }
   0x1 LB: > { %s731_s13 = sadd.s32 4294967295, %s918_s12   ;;  %p733_p0 = scmp.ge.s32.totalorder %s918_s12, 1  ;;  %s918_s12 = sphi %s942_s12, %s14_s12  }
   0x2   : > { %p113_p1 = scmp.lt.s32.totalorder %s918_s12, 3  ;;  %p820_p3 = scmp.eq.s32.totalorder %s731_s13, 0 }
   0x3   : > { %s920_s15 = smov [#allocation2]  }
   0x4   : > { %p950_p2 = pnand %p733_p0, %p113_p1  ;;  %s129_s16 = sshll.u32 %s920_s15, 4  ;;  %s130_s16 = int_to_ptr.vmem [resolvable:$true] %s129_s16 }
   0x5   : > { %s893_s17 = scalar_lea.vmem %s130_s16, 64  ;;  %p901_p10 = scmp.lt.s32.totalorder %s130_s16, %s130_s16 }
   0x6   : > { %p816_p4 = pneg %p950_p2  ;;  %p894_p7 = scmp.ne.s32.totalorder %s130_s16, %s893_s17 }
   0x7   : > { %p902_p11 = scmp.lt.s32.totalorder %s893_s17, %s893_s17 }
   0x8   : > { %p817_p5 = pnand %p820_p3, %p816_p4 }
   0x9   : > { %p903_p12 = por %p902_p11, %p901_p10 }
   0xa   : > { %p884_p6 = pneg %p817_p5 }
   0xc   : > { %p896_p8 = pnand %p894_p7, %p884_p6 }
   0xe   : > { %p897_p9 = pneg %p896_p8 }
  0x10   : > { %p904_p13 = pnand %p903_p12, %p897_p9 }
  0x12   : > { %907 = shalt.err (!%p904_p13)
}
  0x13   : > { %819 = dma.hbm_to_vmem [thread:$0]  (!%p817_p5), %s1096_s2, 64, %s130_s16, [#allocation3]  }
  0x14   : > { %150 = sbr.rel (%p950_p2) target bundleno = 270 (0x10e), region = 32 }
  0x19   : > { %913 = dma.done.wait (%p820_p3), [#allocation3], 64  }
  0x1a   : > { %915 = vsyncadd (%p820_p3), [#allocation3], 4294967232  ;;  %v921_v0 = vmov 0   ;;  %p174_p0 = scmp.lt.s32.totalorder %s731_s13, 1  ;;  %vm314_vm0 = vcmask 1045504   ;;  %vm310_vm1 = vcmask 490496   ;;  %v594_v48 = vlaneseq }
  0x1b   : > { %359 = vmatprep.mubr.bf16.mxu0 %v921_v0  ;;  %402 = vmatprep.mubr.bf16.mxu1 %v921_v0  ;;  %v832_v1 = vld [vmem:[%s1095_s1 + $0xe4] ss:$16 sps:$4 sm:$0x3f]   ;;  %v834_v2 = vld [vmem:[%s1095_s1 + $0xec] ss:$16 sps:$4 sm:$0x3f]  }
  0x1c   : > { %s1100_s13 = smov (!%p174_p0, %s731_s13), 1  ;;  %775 = vmatprep.subr.msk.bf16.mxu0 %vm314_vm0, %v832_v1  ;;  %v836_v3 = vld [vmem:[%s1095_s1 + $0xe0] ss:$16 sps:$4 sm:$0x3f]   ;;  %777 = vmatprep.subr.msk.bf16.mxu1 %vm314_vm0, %v834_v2  ;;  %v838_v5 = vld [vmem:[%s1095_s1 + $0xc4] ss:$16 sps:$4 sm:$0xff]  }
  0x1d   : > { %v837_v4 = vld [vmem:[%s1095_s1 + $0xe8] ss:$16 sps:$4 sm:$0x3f]   ;;  %v316_v6 = vsel %vm314_vm0, %v836_v3, 0  ;;  %v840_v8 = vld [vmem:[%s1095_s1 + $0xcc] ss:$16 sps:$4 sm:$0xff]  }
  0x1e   : > { %v322_v7 = vsel %vm314_vm0, %v837_v4, 0  ;;  %336 = vmatpush1.bf16.msra.mxu0 %v316_v6  ;;  %v842_v9 = vld [vmem:[%s1095_s1 + $0xc0] ss:$16 sps:$4 sm:$0xff]   ;;  %v843_v10 = vld [vmem:[%s1095_s1 + $0xc8] ss:$16 sps:$4 sm:$0xff]   ;;  %s806_s9 = sshll.u32 %s1100_s13, 3 }
  0x1f   : > { %379 = vmatpush1.bf16.msra.mxu1 %v322_v7  ;;  %337 = vmatprep.subr.bf16.mxu0 %v838_v5  ;;  %v844_v11 = vld [vmem:[%s1095_s1 + $0xa4] ss:$16 sps:$4 sm:$0xff]   ;;  %v846_v12 = vld [vmem:[%s1095_s1 + $0xac] ss:$16 sps:$4 sm:$0xff]   ;;  %v848_v13 = vld [vmem:[%s1095_s1 + $0xa0] ss:$16 sps:$4 sm:$0xff]   ;;  %s1009_s20 = scalar_lea.vmem %s1094_s0, %s806_s9 }
  0x20   : > { %380 = vmatprep.subr.bf16.mxu1 %v840_v8  ;;  %v849_v14 = vld [vmem:[%s1095_s1 + $0xa8] ss:$16 sps:$4 sm:$0xff]   ;;  %v850_v15 = vld [vmem:[%s1095_s1 + $0x84] ss:$16 sps:$4 sm:$0xff]   ;;  %v852_v16 = vld [vmem:[%s1095_s1 + $0x8c] ss:$16 sps:$4 sm:$0xff]  }
  0x21   : > { %v854_v17 = vld [vmem:[%s1095_s1 + $0x80] ss:$16 sps:$4 sm:$0xff]   ;;  %v855_v18 = vld [vmem:[%s1095_s1 + $0x88] ss:$16 sps:$4 sm:$0xff]   ;;  %v204_v20 = vld [vmem:[%s1009_s20 + $0x4] sm:$0xf] }
  0x22   : > { %338 = vmatpush1.bf16.msra.mxu0 %v842_v9  ;;  %v186_v19 = vld [vmem:[%s1009_s20] sm:$0xf]  ;;  %v857_v22 = vld [vmem:[%s1095_s1 + $0x64] ss:$16 sps:$4 sm:$0x3f]   ;;  %v595_v51 = vshrl.u32 %v594_v48, 7 }
  0x23   : > { %381 = vmatpush1.bf16.msra.mxu1 %v843_v10  ;;  %339 = vmatprep.subr.bf16.mxu0 %v844_v11  ;;  %v758_v21 = vcombine.low %v186_v19, %v204_v20  ;;  %v859_v23 = vld [vmem:[%s1095_s1 + $0x6c] ss:$16 sps:$4 sm:$0x3f]   ;;  %v861_v26 = vld [vmem:[%s1095_s1 + $0x60] ss:$16 sps:$4 sm:$0x3f]  }
  0x24   : > { %382 = vmatprep.subr.bf16.mxu1 %v846_v12  ;;  %v862_v27 = vld [vmem:[%s1095_s1 + $0x68] ss:$16 sps:$4 sm:$0x3f]   ;;  %v496_v29 = vsel %vm314_vm0, %v861_v26, 0  ;;  %v865_v32 = vld [vmem:[%s1095_s1 + $0x44] ss:$16 sps:$4 sm:$0xff]  }
  0x25   : > { %v228_v24 = vshrl.u32 %v758_v21, 16  ;;  %v230_v25 = vshll.u32 %v758_v21, 16  ;;  %v502_v31 = vsel %vm314_vm0, %v862_v27, 0  ;;  %v868_v33 = vld [vmem:[%s1095_s1 + $0x4c] ss:$16 sps:$4 sm:$0xff]   ;;  %v596_v54 = vsub.s32 0, %v595_v51 }
  0x26   : > { %340 = vmatpush1.bf16.msra.mxu0 %v848_v13  ;;  %v863_v34 = vld [vmem:[%s1095_s1 + $0x40] ss:$16 sps:$4 sm:$0xff]   ;;  %v866_v35 = vld [vmem:[%s1095_s1 + $0x48] ss:$16 sps:$4 sm:$0xff]   ;;  %v871_v36 = vld [vmem:[%s1095_s1 + $0x24] ss:$16 sps:$4 sm:$0xff]  }
  0x27   : > { %383 = vmatpush1.bf16.msra.mxu1 %v849_v14  ;;  %341 = vmatprep.subr.bf16.mxu0 %v850_v15  ;;  %v232_v28 = vrot.slane %v230_v25, 1  ;;  %v874_v37 = vld [vmem:[%s1095_s1 + $0x2c] ss:$16 sps:$4 sm:$0xff]   ;;  %v869_v38 = vld [vmem:[%s1095_s1 + $0x20] ss:$16 sps:$4 sm:$0xff]   ;;  %v604_v55 = vsub.s32 2, %v595_v51 }
  0x28   : > { %384 = vmatprep.subr.bf16.mxu1 %v852_v16  ;;  %v872_v39 = vld [vmem:[%s1095_s1 + $0x28] ss:$16 sps:$4 sm:$0xff]   ;;  %v877_v40 = vld [vmem:[%s1095_s1 + $0x4] ss:$16 sps:$4 sm:$0xff]   ;;  %v880_v41 = vld [vmem:[%s1095_s1 + $0xc] ss:$16 sps:$4 sm:$0xff]  }
  0x29   : > { %v233_v30 = vor.u32 %v232_v28, %v228_v24  ;;  %v875_v42 = vld [vmem:[%s1095_s1] ss:$16 sps:$4 sm:$0xff]   ;;  %v878_v43 = vld [vmem:[%s1095_s1 + $0x8] ss:$16 sps:$4 sm:$0xff]   ;;  %v187_v44 = vld [vmem:[%s1009_s20 + $0x4] sm:$0x7] }
  0x2a   : > { %342 = vmatpush1.bf16.msra.mxu0 %v854_v17  ;;  %v779_v45 = vcombine.low %v186_v19, %v187_v44  ;;  %v185_v56 = vld [vmem:[#allocation2] sm:$0xf]  ;;  %v600_v57 = vsub.s32 1, %v595_v51  ;;  %v608_v58 = vsub.s32 3, %v595_v51  ;;  %s807_s20 = sshll.u32 %s1100_s13, 5  ;;  %vm655_vm2 = vcmask 1043456  }
  0x2b   : > { %385 = vmatpush1.bf16.msra.mxu1 %v855_v18  ;;  %796 = vmatprep.subr.msk.bf16.mxu0 %vm314_vm0, %v857_v22  ;;  %v597_v61 = vrot.slane %v185_v56, %v596_v54  ;;  %v605_v62 = vrot.slane %v185_v56, %v604_v55  ;;  %vm656_vm3 = vcmask 523268   ;;  %s183_s16 = scalar_lea.vmem %s1097_s3, %s807_s20  ;;  %vm660_vm5 = vcmask 1042432  }
  0x2c   : > { %798 = vmatprep.subr.msk.bf16.mxu1 %vm314_vm0, %v859_v23  ;;  %v601_v3 = vrot.slane %v185_v56, %v600_v57  ;;  %v609_v4 = vrot.slane %v185_v56, %v608_v58  ;;  %vm657_vm4 = vmor %vm656_vm3, %vm655_vm2  ;;  %vm661_vm6 = vcmask 522244  }
  0x2d   : > { %776 = vmatmul.mubr.msk.bf16.vlgmr.msra.gmra.mxu0 %vm310_vm1, %v233_v30  ;;  %vm662_vm7 = vmor %vm661_vm6, %vm660_vm5 }
  0x2e   : > { %778 = vmatmul.mubr.msk.bf16.vlgmr.msra.gmra.mxu1 %vm310_vm1, %v233_v30  ;;  %516 = vmatpush1.bf16.msra.mxu0 %v496_v29 }
  0x2f   : > { %559 = vmatpush1.bf16.msra.mxu1 %v502_v31  ;;  %517 = vmatprep.subr.bf16.mxu0 %v865_v32 }
  0x30   : > { %560 = vmatprep.subr.bf16.mxu1 %v868_v33  ;;  %539 = vmatprep.mubr.bf16.mxu0 %v921_v0 }
  0x31   : > { %582 = vmatprep.mubr.bf16.mxu1 %v921_v0 }
  0x32   : > { %518 = vmatpush1.bf16.msra.mxu0 %v863_v34 }
  0x33   : > { %561 = vmatpush1.bf16.msra.mxu1 %v866_v35  ;;  %519 = vmatprep.subr.bf16.mxu0 %v871_v36 }
  0x34   : > { %562 = vmatprep.subr.bf16.mxu1 %v874_v37 }
  0x36   : > { %520 = vmatpush1.bf16.msra.mxu0 %v869_v38 }
  0x37   : > { %563 = vmatpush1.bf16.msra.mxu1 %v872_v39  ;;  %521 = vmatprep.subr.bf16.mxu0 %v877_v40 }
  0x38   : > { %564 = vmatprep.subr.bf16.mxu1 %v880_v41 }
  0x3a   : > { %522 = vmatpush1.bf16.msra.mxu0 %v875_v42 }
  0x3b   : > { %565 = vmatpush1.bf16.msra.mxu1 %v878_v43 }
  0x3d   : > { %797 = vmatmul.mubr.msk.bf16.vlgmr.msra.gmra.mxu0 %vm310_vm1, %v779_v45 }
  0x3e   : > { %799 = vmatmul.mubr.msk.bf16.vlgmr.msra.gmra.mxu1 %vm310_vm1, %v779_v45 }
  0xed   : > { %v361_v46 = vpop.f32.mrf.mxu0 }
  0xee   : > { %v404_v47 = vpop.f32.mrf.mxu1 }
  0xef   : > { %v363_v49 = vpop.f32.mrf.mxu0 }
  0xf0   : > { %v406_v50 = vpop.f32.mrf.mxu1 }
  0xf1   : > { %v365_v52 = vpop.f32.mrf.mxu0 }
  0xf2   : > { %v408_v53 = vpop.f32.mrf.mxu1 }
  0xf3   : > { %v367_v59 = vpop.f32.mrf.mxu0 }
  0xf4   : > { %v410_v60 = vpop.f32.mrf.mxu1 }
  0xfd   : > { %v541_v63 = vpop.f32.mrf.mxu0 }
  0xfe   : > { %v584_v0 = vpop.f32.mrf.mxu1  ;;  %v542_v1 = vadd.f32 %v541_v63, %v361_v46 }
  0xff   : > { %v585_v2 = vadd.f32 %v584_v0, %v404_v47  ;;  %v543_v5 = vpop.f32.mrf.mxu0 }
 0x100   : > { %v586_v6 = vpop.f32.mrf.mxu1  ;;  %v614_v7 = vadd.f32 %v597_v61, %v542_v1  ;;  %v544_v9 = vadd.f32 %v543_v5, %v363_v49 }
 0x101   : > { %v616_v8 = vadd.f32 %v605_v62, %v585_v2  ;;  %v587_v10 = vadd.f32 %v586_v6, %v406_v50  ;;  %v545_v11 = vpop.f32.mrf.mxu0 }
 0x102   : > { %v588_v12 = vpop.f32.mrf.mxu1  ;;  %v615_v13 = vadd.f32 %v601_v3, %v544_v9  ;;  %v622_v15 = vmax.f32 %v614_v7, 0.0  ;;  %v546_v17 = vadd.f32 %v545_v11, %v365_v52 }
 0x103   : > { %v617_v14 = vadd.f32 %v609_v4, %v587_v10  ;;  %v624_v16 = vmax.f32 %v616_v8, 0.0  ;;  %v589_v18 = vadd.f32 %v588_v12, %v408_v53  ;;  %v547_v19 = vpop.f32.mrf.mxu0 }
 0x104   : > { %v590_v20 = vpop.f32.mrf.mxu1  ;;  %v623_v21 = vmax.f32 %v615_v13, 0.0  ;;  %v548_v23 = vadd.f32 %v547_v19, %v367_v59  ;;  %v618_v25 = vadd.f32 %v597_v61, %v546_v17 }
 0x105   : > { %v625_v22 = vmax.f32 %v617_v14, 0.0  ;;  %v591_v24 = vadd.f32 %v590_v20, %v410_v60  ;;  %v620_v26 = vadd.f32 %v605_v62, %v589_v18 }
 0x106   : > { %v808_v27 = vpack.c.bf16 %v623_v21, %v622_v15  ;;  %v619_v29 = vadd.f32 %v601_v3, %v548_v23  ;;  %v626_v31 = vmax.f32 %v618_v25, 0.0 }
 0x107   : > { %v809_v28 = vpack.c.bf16 %v625_v22, %v624_v16  ;;  %v621_v30 = vadd.f32 %v609_v4, %v591_v24  ;;  %v628_v32 = vmax.f32 %v620_v26, 0.0 }
 0x108   : > { %654 = vst [vmem:[%s183_s16] sm:$0xff] %v808_v27  ;;  %v627_v33 = vmax.f32 %v619_v29, 0.0 }
 0x109   : > { %658 = vst.msk [vmem:[%s183_s16 + $0x8] sm:$0xff] %vm657_vm4, %v809_v28  ;;  %v629_v34 = vmax.f32 %v621_v30, 0.0 }
 0x10a   : > { %v810_v35 = vpack.c.bf16 %v627_v33, %v626_v31 }
 0x10b   : > { %v811_v36 = vpack.c.bf16 %v629_v34, %v628_v32 }
 0x10c   : > { %659 = vst [vmem:[%s183_s16 + $0x10] sm:$0x77] %v810_v35 }
 0x10d   : > { %663 = vst.msk [vmem:[%s183_s16 + $0x18] sm:$0x77] %vm662_vm7, %v811_v36 }
 0x10e PF: > { %s14_s12 = sadd.s32 1, %s918_s12  }
 0x10f   : > { %p11_p1 = scmp.ge.s32.totalorder %s14_s12, 4  }
 0x111   :  { %13 = sbr.rel (!%p11_p1) target bundleno = 1 (0x1), region = 68 }
 0x116   :  { %685 = vsyncpa [#allocation3], 1 }
 0x117   :  { %687 = vsyncpa [#allocation3 + $0x1], 1 }

// kernel: vae_forward.7
= control target key start
LH: loop header
LB: loop body
LE: loop exit
PB: predicated region body
PF: predicated region fallthrough
CT: control target
= control target key end

     0   :  { %s5718_s12 = smov 0   ;;  %s7420_s0 = inlined_call_operand.vmem [shape: bf16[2,8,1024], index: 0, kind: input, shape index: {}]   ;;  %s7421_s1 = inlined_call_operand.vmem [shape: bf16[2,1024,448], index: 1, kind: input, shape index: {}]   ;;  %s7422_s2 = inlined_call_operand.vmem [shape: f32[1,448], index: 2, kind: input, shape index: {}]   ;;  %s7423_s3 = inlined_call_operand.vmem [shape: bf16[2,7,448], index: 3, kind: output, shape index: {}]  }
   0x1 LB: > { %s4113_s13 = sadd.s32 4294967295, %s5696_s12   ;;  %p4117_p0 = scmp.ge.s32.totalorder %s5696_s12, 1  ;;  %s5696_s12 = sphi %s5718_s12, %s13_s12  }
   0x2   : > { %p137_p1 = scmp.lt.s32.totalorder %s5696_s12, 3 }
   0x4   : > { %p138_p2 = pnand %p4117_p0, %p137_p1 }
   0x5   : > { %p161_p3 = scmp.lt.s32.totalorder (!%p138_p2), %s4113_s13, 1 }
   0x6   : > { %141 = sbr.rel (%p138_p2) target bundleno = 731 (0x2db), region = 32 }
   0xb   : > { %v4914_v0 = vld [vmem:[%s7421_s1 + $0x8e4] ss:$16 sps:$4 sm:$0xff]   ;;  %v4918_v2 = vld [vmem:[%s7421_s1 + $0x8e0] ss:$16 sps:$4 sm:$0xff]   ;;  %s7427_s13 = smov (!%p161_p3, %s4113_s13), 1  ;;  %vm4042_vm0 = vcmask 1043456  }
   0xc   : > { %v4916_v1 = vld [vmem:[%s7421_s1 + $0xae4] ss:$16 sps:$4 sm:$0xff]   ;;  %2053 = vmatprep.subr.bf16.mxu0 %v4914_v0  ;;  %v4919_v3 = vld [vmem:[%s7421_s1 + $0xae0] ss:$16 sps:$4 sm:$0xff]   ;;  %s4902_s21 = sshll.u32 %s7427_s13, 5  ;;  %s4903_s22 = sshll.u32 %s7427_s13, 4 }
   0xd   : > { %2094 = vmatprep.subr.bf16.mxu1 %v4916_v1  ;;  %v4920_v4 = vld [vmem:[%s7421_s1 + $0x8c4] ss:$16 sps:$4 sm:$0xff]   ;;  %2054 = vmatpush1.bf16.msra.mxu0 %v4918_v2  ;;  %v4924_v6 = vld [vmem:[%s7421_s1 + $0x8c0] ss:$16 sps:$4 sm:$0xff]   ;;  %s5868_s30 = scalar_lea.vmem %s7420_s0, %s4902_s21  ;;  %vm4043_vm1 = vsmask.f32 3328  ;;  %s7403_s25 = scalar_lea.vmem %s7423_s3, %s4903_s22 }
   0xe   : > { %2095 = vmatpush1.bf16.msra.mxu1 %v4919_v3  ;;  %v4922_v5 = vld [vmem:[%s7421_s1 + $0xac4] ss:$16 sps:$4 sm:$0xff]   ;;  %2055 = vmatprep.subr.bf16.mxu0 %v4920_v4  ;;  %v4925_v7 = vld [vmem:[%s7421_s1 + $0xac0] ss:$16 sps:$4 sm:$0xff]   ;;  %v173_v49 = vld [vmem:[%s5868_s30 + $0x8] sm:$0xff]  ;;  %vm4045_vm2 = vcmask 1047556  }
   0xf   : > { %2096 = vmatprep.subr.bf16.mxu1 %v4922_v5  ;;  %v4926_v8 = vld [vmem:[%s7421_s1 + $0x8a4] ss:$16 sps:$4 sm:$0xff]   ;;  %v4930_v10 = vld [vmem:[%s7421_s1 + $0x8a0] ss:$16 sps:$4 sm:$0xff]   ;;  %v5889_v52 = vcombine.high %v173_v49, %v173_v49  ;;  %v5917_v3 = vcombine.low %v173_v49, %v173_v49  ;;  %vm4046_vm3 = vsmask.f32 7424  ;;  %vm7396_vm4 = vmand %vm4042_vm0, %vm4043_vm1 }
  0x10   : > { %v4928_v9 = vld [vmem:[%s7421_s1 + $0xaa4] ss:$16 sps:$4 sm:$0xff]   ;;  %v4931_v11 = vld [vmem:[%s7421_s1 + $0xaa0] ss:$16 sps:$4 sm:$0xff]   ;;  %vm4047_vm5 = vmand %vm4045_vm2, %vm4046_vm3  ;;  %vm4052_vm7 = vcmask 523268  }
  0x11   : > { %2056 = vmatpush1.bf16.msra.mxu0 %v4924_v6  ;;  %v4932_v12 = vld [vmem:[%s7421_s1 + $0x884] ss:$16 sps:$4 sm:$0xff]   ;;  %v4936_v14 = vld [vmem:[%s7421_s1 + $0x880] ss:$16 sps:$4 sm:$0xff]   ;;  %v731_v56 = vshrl.u32 %v5889_v52, 16  ;;  %v733_v57 = vshll.u32 %v5889_v52, 16  ;;  %vm4048_vm6 = vmor %vm4047_vm5, %vm7396_vm4 }
  0x12   : > { %2097 = vmatpush1.bf16.msra.mxu1 %v4925_v7  ;;  %2057 = vmatprep.subr.bf16.mxu0 %v4926_v8  ;;  %v4934_v13 = vld [vmem:[%s7421_s1 + $0xa84] ss:$16 sps:$4 sm:$0xff]   ;;  %v4937_v15 = vld [vmem:[%s7421_s1 + $0xa80] ss:$16 sps:$4 sm:$0xff]   ;;  %vm4053_vm8 = vmand %vm4052_vm7, %vm4046_vm3 }
  0x13   : > { %2098 = vmatprep.subr.bf16.mxu1 %v4928_v9  ;;  %v4938_v16 = vld [vmem:[%s7421_s1 + $0x864] ss:$16 sps:$4 sm:$0xff]   ;;  %v4942_v18 = vld [vmem:[%s7421_s1 + $0x860] ss:$16 sps:$4 sm:$0xff]   ;;  %v735_v61 = vrot.slane %v733_v57, 1  ;;  %v726_v9 = vshll.u32 %v5917_v3, 16  ;;  %vm4054_vm9 = vmor %vm4053_vm8, %vm7396_vm4 }
  0x14   : > { %v4940_v17 = vld [vmem:[%s7421_s1 + $0xa64] ss:$16 sps:$4 sm:$0xff]   ;;  %v4943_v19 = vld [vmem:[%s7421_s1 + $0xa60] ss:$16 sps:$4 sm:$0xff]  }
  0x15   : > { %2058 = vmatpush1.bf16.msra.mxu0 %v4930_v10  ;;  %v4944_v20 = vld [vmem:[%s7421_s1 + $0x844] ss:$16 sps:$4 sm:$0xff]   ;;  %v4948_v22 = vld [vmem:[%s7421_s1 + $0x840] ss:$16 sps:$4 sm:$0xff]   ;;  %v5912_v1 = vor.u32 %v735_v61, %v731_v56 }
  0x16   : > { %2099 = vmatpush1.bf16.msra.mxu1 %v4931_v11  ;;  %2059 = vmatprep.subr.bf16.mxu0 %v4932_v12  ;;  %v4946_v21 = vld [vmem:[%s7421_s1 + $0xa44] ss:$16 sps:$4 sm:$0xff]   ;;  %v4949_v23 = vld [vmem:[%s7421_s1 + $0xa40] ss:$16 sps:$4 sm:$0xff]  }
  0x17   : > { %2100 = vmatprep.subr.bf16.mxu1 %v4934_v13  ;;  %v4950_v24 = vld [vmem:[%s7421_s1 + $0x824] ss:$16 sps:$4 sm:$0xff]   ;;  %v4954_v26 = vld [vmem:[%s7421_s1 + $0x820] ss:$16 sps:$4 sm:$0xff]   ;;  %2126 = vmatprep.mubr.bf16.mxu1 %v5912_v1 }
  0x18   : > { %v4952_v25 = vld [vmem:[%s7421_s1 + $0xa24] ss:$16 sps:$4 sm:$0xff]   ;;  %v4955_v27 = vld [vmem:[%s7421_s1 + $0xa20] ss:$16 sps:$4 sm:$0xff]  }
  0x19   : > { %2060 = vmatpush1.bf16.msra.mxu0 %v4936_v14  ;;  %v4956_v28 = vld [vmem:[%s7421_s1 + $0x804] ss:$16 sps:$4 sm:$0xff]   ;;  %v4960_v30 = vld [vmem:[%s7421_s1 + $0x800] ss:$16 sps:$4 sm:$0xff]  }
  0x1a   : > { %2101 = vmatpush1.bf16.msra.mxu1 %v4937_v15  ;;  %2061 = vmatprep.subr.bf16.mxu0 %v4938_v16  ;;  %v4958_v29 = vld [vmem:[%s7421_s1 + $0xa04] ss:$16 sps:$4 sm:$0xff]   ;;  %v4961_v31 = vld [vmem:[%s7421_s1 + $0xa00] ss:$16 sps:$4 sm:$0xff]   ;;  %v724_v16 = vshrl.u32 %v5917_v3, 16 }
  0x1b   : > { %2102 = vmatprep.subr.bf16.mxu1 %v4940_v17  ;;  %v4962_v32 = vld [vmem:[%s7421_s1 + $0x9e4] ss:$16 sps:$4 sm:$0xff]   ;;  %v4966_v34 = vld [vmem:[%s7421_s1 + $0x9e0] ss:$16 sps:$4 sm:$0xff]   ;;  %v728_v17 = vrot.slane %v726_v9, 1 }
  0x1c   : > { %v4964_v33 = vld [vmem:[%s7421_s1 + $0xbe4] ss:$16 sps:$4 sm:$0xff]   ;;  %v4967_v35 = vld [vmem:[%s7421_s1 + $0xbe0] ss:$16 sps:$4 sm:$0xff]  }
  0x1d   : > { %2062 = vmatpush1.bf16.msra.mxu0 %v4942_v18  ;;  %v4968_v36 = vld [vmem:[%s7421_s1 + $0x9c4] ss:$16 sps:$4 sm:$0xff]   ;;  %v4972_v38 = vld [vmem:[%s7421_s1 + $0x9c0] ss:$16 sps:$4 sm:$0xff]  }
  0x1e   : > { %2103 = vmatpush1.bf16.msra.mxu1 %v4943_v19  ;;  %2063 = vmatprep.subr.bf16.mxu0 %v4944_v20  ;;  %v4970_v37 = vld [vmem:[%s7421_s1 + $0xbc4] ss:$16 sps:$4 sm:$0xff]   ;;  %v4973_v39 = vld [vmem:[%s7421_s1 + $0xbc0] ss:$16 sps:$4 sm:$0xff]  }
  0x1f   : > { %2104 = vmatprep.subr.bf16.mxu1 %v4946_v21  ;;  %v4974_v40 = vld [vmem:[%s7421_s1 + $0x9a4] ss:$16 sps:$4 sm:$0xff]   ;;  %v4978_v42 = vld [vmem:[%s7421_s1 + $0x9a0] ss:$16 sps:$4 sm:$0xff]  }
  0x20   : > { %v4976_v41 = vld [vmem:[%s7421_s1 + $0xba4] ss:$16 sps:$4 sm:$0xff]   ;;  %v4979_v43 = vld [vmem:[%s7421_s1 + $0xba0] ss:$16 sps:$4 sm:$0xff]  }
  0x21   : > { %2064 = vmatpush1.bf16.msra.mxu0 %v4948_v22  ;;  %v4980_v44 = vld [vmem:[%s7421_s1 + $0x984] ss:$16 sps:$4 sm:$0xff]   ;;  %v4984_v46 = vld [vmem:[%s7421_s1 + $0x980] ss:$16 sps:$4 sm:$0xff]  }
  0x22   : > { %2105 = vmatpush1.bf16.msra.mxu1 %v4949_v23  ;;  %2065 = vmatprep.subr.bf16.mxu0 %v4950_v24  ;;  %v4982_v45 = vld [vmem:[%s7421_s1 + $0xb84] ss:$16 sps:$4 sm:$0xff]   ;;  %v4985_v50 = vld [vmem:[%s7421_s1 + $0xb80] ss:$16 sps:$4 sm:$0xff]   ;;  %v5962_v23 = vor.u32 %v728_v17, %v724_v16 }
  0x23   : > { %2106 = vmatprep.subr.bf16.mxu1 %v4952_v25  ;;  %v172_v47 = vld [vmem:[%s5868_s30] sm:$0xff] }
  0x24   : > { %v5880_v48 = vcombine.high %v172_v47, %v172_v47  ;;  %v4986_v51 = vld [vmem:[%s7421_s1 + $0x964] ss:$16 sps:$4 sm:$0xff]   ;;  %v4990_v59 = vld [vmem:[%s7421_s1 + $0x960] ss:$16 sps:$4 sm:$0xff]   ;;  %v5914_v2 = vcombine.low %v172_v47, %v172_v47 }
  0x25   : > { %2066 = vmatpush1.bf16.msra.mxu0 %v4954_v26  ;;  %v4988_v53 = vld [vmem:[%s7421_s1 + $0xb64] ss:$16 sps:$4 sm:$0xff]   ;;  %v4991_v60 = vld [vmem:[%s7421_s1 + $0xb60] ss:$16 sps:$4 sm:$0xff]  }
  0x26   : > { %2107 = vmatpush1.bf16.msra.mxu1 %v4955_v27  ;;  %2067 = vmatprep.subr.bf16.mxu0 %v4956_v28  ;;  %v717_v54 = vshrl.u32 %v5880_v48, 16  ;;  %v719_v55 = vshll.u32 %v5880_v48, 16  ;;  %v4992_v62 = vld [vmem:[%s7421_s1 + $0x944] ss:$16 sps:$4 sm:$0xff]   ;;  %v4996_v4 = vld [vmem:[%s7421_s1 + $0x940] ss:$16 sps:$4 sm:$0xff]  }
  0x27   : > { %2108 = vmatprep.subr.bf16.mxu1 %v4958_v29  ;;  %v4994_v63 = vld [vmem:[%s7421_s1 + $0xb44] ss:$16 sps:$4 sm:$0xff]   ;;  %v4997_v5 = vld [vmem:[%s7421_s1 + $0xb40] ss:$16 sps:$4 sm:$0xff]   ;;  %v712_v8 = vshll.u32 %v5914_v2, 16  ;;  %v710_v14 = vshrl.u32 %v5914_v2, 16 }
  0x28   : > { %v721_v58 = vrot.slane %v719_v55, 1  ;;  %v4998_v6 = vld [vmem:[%s7421_s1 + $0x924] ss:$16 sps:$4 sm:$0xff]   ;;  %v5002_v10 = vld [vmem:[%s7421_s1 + $0x920] ss:$16 sps:$4 sm:$0xff]  }
  0x29   : > { %2068 = vmatpush1.bf16.msra.mxu0 %v4960_v30  ;;  %v5000_v7 = vld [vmem:[%s7421_s1 + $0xb24] ss:$16 sps:$4 sm:$0xff]   ;;  %v5003_v11 = vld [vmem:[%s7421_s1 + $0xb20] ss:$16 sps:$4 sm:$0xff]   ;;  %v714_v15 = vrot.slane %v712_v8, 1 }
  0x2a   : > { %2109 = vmatpush1.bf16.msra.mxu1 %v4961_v31  ;;  %2069 = vmatprep.subr.bf16.mxu0 %v4962_v32  ;;  %v5910_v0 = vor.u32 %v721_v58, %v717_v54  ;;  %v5004_v12 = vld [vmem:[%s7421_s1 + $0x904] ss:$16 sps:$4 sm:$0xff]   ;;  %v5008_v18 = vld [vmem:[%s7421_s1 + $0x900] ss:$16 sps:$4 sm:$0xff]  }
  0x2b   : > { %2110 = vmatprep.subr.bf16.mxu1 %v4964_v33  ;;  %v5006_v13 = vld [vmem:[%s7421_s1 + $0xb04] ss:$16 sps:$4 sm:$0xff]   ;;  %v5009_v19 = vld [vmem:[%s7421_s1 + $0xb00] ss:$16 sps:$4 sm:$0xff]   ;;  %v5960_v22 = vor.u32 %v714_v15, %v710_v14 }
  0x2c   : > { %2085 = vmatprep.mubr.bf16.mxu0 %v5910_v0  ;;  %v5016_v20 = vld [vmem:[%s7421_s1 + $0xce4] ss:$16 sps:$4 sm:$0xff]   ;;  %v5014_v24 = vld [vmem:[%s7421_s1 + $0xce0] ss:$16 sps:$4 sm:$0xff]  }
  0x2d   : > { %2070 = vmatpush2.bf16.msra.mxu0 %v4966_v34  ;;  %v5019_v21 = vld [vmem:[%s7421_s1 + $0xee4] ss:$16 sps:$4 sm:$0xff]   ;;  %v5017_v25 = vld [vmem:[%s7421_s1 + $0xee0] ss:$16 sps:$4 sm:$0xff]  }
  0x2e   : > { %2111 = vmatpush2.bf16.msra.mxu1 %v4967_v35  ;;  %2071 = vmatprep.subr.bf16.mxu0 %v4968_v36  ;;  %v5022_v26 = vld [vmem:[%s7421_s1 + $0xcc4] ss:$16 sps:$4 sm:$0xff]   ;;  %v5020_v28 = vld [vmem:[%s7421_s1 + $0xcc0] ss:$16 sps:$4 sm:$0xff]  }
  0x2f   : > { %2112 = vmatprep.subr.bf16.mxu1 %v4970_v37  ;;  %v5025_v27 = vld [vmem:[%s7421_s1 + $0xec4] ss:$16 sps:$4 sm:$0xff]   ;;  %v5023_v29 = vld [vmem:[%s7421_s1 + $0xec0] ss:$16 sps:$4 sm:$0xff]  }
  0x30   : > { %v5028_v30 = vld [vmem:[%s7421_s1 + $0xca4] ss:$16 sps:$4 sm:$0xff]   ;;  %v5026_v32 = vld [vmem:[%s7421_s1 + $0xca0] ss:$16 sps:$4 sm:$0xff]  }
  0x31   : > { %2072 = vmatpush2.bf16.msra.mxu0 %v4972_v38  ;;  %v5031_v31 = vld [vmem:[%s7421_s1 + $0xea4] ss:$16 sps:$4 sm:$0xff]   ;;  %v5029_v33 = vld [vmem:[%s7421_s1 + $0xea0] ss:$16 sps:$4 sm:$0xff]  }
  0x32   : > { %2113 = vmatpush2.bf16.msra.mxu1 %v4973_v39  ;;  %2073 = vmatprep.subr.bf16.mxu0 %v4974_v40  ;;  %v5034_v34 = vld [vmem:[%s7421_s1 + $0xc84] ss:$16 sps:$4 sm:$0xff]   ;;  %v5032_v36 = vld [vmem:[%s7421_s1 + $0xc80] ss:$16 sps:$4 sm:$0xff]  }
  0x33   : > { %2114 = vmatprep.subr.bf16.mxu1 %v4976_v41  ;;  %v5037_v35 = vld [vmem:[%s7421_s1 + $0xe84] ss:$16 sps:$4 sm:$0xff]   ;;  %v5035_v37 = vld [vmem:[%s7421_s1 + $0xe80] ss:$16 sps:$4 sm:$0xff]  }
  0x34   : > { %v5040_v38 = vld [vmem:[%s7421_s1 + $0xc64] ss:$16 sps:$4 sm:$0xff]   ;;  %v5038_v40 = vld [vmem:[%s7421_s1 + $0xc60] ss:$16 sps:$4 sm:$0xff]  }
  0x35   : > { %2074 = vmatpush2.bf16.msra.mxu0 %v4978_v42  ;;  %v5043_v39 = vld [vmem:[%s7421_s1 + $0xe64] ss:$16 sps:$4 sm:$0xff]   ;;  %v5041_v41 = vld [vmem:[%s7421_s1 + $0xe60] ss:$16 sps:$4 sm:$0xff]  }
  0x36   : > { %2115 = vmatpush2.bf16.msra.mxu1 %v4979_v43  ;;  %2075 = vmatprep.subr.bf16.mxu0 %v4980_v44  ;;  %v5046_v42 = vld [vmem:[%s7421_s1 + $0xc44] ss:$16 sps:$4 sm:$0xff]   ;;  %v5044_v44 = vld [vmem:[%s7421_s1 + $0xc40] ss:$16 sps:$4 sm:$0xff]  }
  0x37   : > { %2116 = vmatprep.subr.bf16.mxu1 %v4982_v45  ;;  %v5049_v43 = vld [vmem:[%s7421_s1 + $0xe44] ss:$16 sps:$4 sm:$0xff]   ;;  %v5047_v45 = vld [vmem:[%s7421_s1 + $0xe40] ss:$16 sps:$4 sm:$0xff]  }
  0x38   : > { %v5055_v47 = vld [vmem:[%s7421_s1 + $0xe24] ss:$16 sps:$4 sm:$0xff]   ;;  %v5050_v49 = vld [vmem:[%s7421_s1 + $0xc20] ss:$16 sps:$4 sm:$0xff]  }
  0x39   : > { %2076 = vmatpush2.bf16.msra.mxu0 %v4984_v46  ;;  %v5052_v46 = vld [vmem:[%s7421_s1 + $0xc24] ss:$16 sps:$4 sm:$0xff]   ;;  %v5059_v61 = vld [vmem:[%s7421_s1 + $0xe00] ss:$16 sps:$4 sm:$0xff]  }
  0x3a   : > { %2117 = vmatpush2.bf16.msra.mxu1 %v4985_v50  ;;  %2077 = vmatprep.subr.bf16.mxu0 %v4986_v51  ;;  %v5053_v50 = vld [vmem:[%s7421_s1 + $0xe20] ss:$16 sps:$4 sm:$0xff]   ;;  %v5058_v54 = vld [vmem:[%s7421_s1 + $0xc04] ss:$16 sps:$4 sm:$0xff]  }
  0x3b   : > { %2118 = vmatprep.subr.bf16.mxu1 %v4988_v53  ;;  %v6045_v51 = vld [vmem:[%s5868_s30 + $0x10] sm:$0xff]  ;;  %v6048_v53 = vld [vmem:[%s5868_s30 + $0x18] sm:$0xff] }
  0x3c   : > { %v6055_v55 = vcombine.high %v6045_v51, %v6045_v51  ;;  %v5061_v56 = vld [vmem:[%s7421_s1 + $0xe04] ss:$16 sps:$4 sm:$0xff]   ;;  %v6062_v57 = vcombine.high %v6048_v53, %v6048_v53  ;;  %v5062_v9 = vld [vmem:[%s7421_s1 + $0xde0] ss:$16 sps:$4 sm:$0xff]  }
  0x3d   : > { %2078 = vmatpush2.bf16.msra.mxu0 %v4990_v59  ;;  %v5068_v14 = vld [vmem:[%s7421_s1 + $0xdc0] ss:$16 sps:$4 sm:$0xff]   ;;  %v5076_v16 = vld [vmem:[%s7421_s1 + $0xda4] ss:$16 sps:$4 sm:$0xff]  }
  0x3e   : > { %2119 = vmatpush2.bf16.msra.mxu1 %v4991_v60  ;;  %2079 = vmatprep.subr.bf16.mxu0 %v4992_v62  ;;  %v745_v58 = vshrl.u32 %v6055_v55, 16  ;;  %v747_v59 = vshll.u32 %v6055_v55, 16  ;;  %v5056_v60 = vld [vmem:[%s7421_s1 + $0xc00] ss:$16 sps:$4 sm:$0xff]   ;;  %v759_v62 = vshrl.u32 %v6062_v57, 16 }
  0x3f   : > { %2120 = vmatprep.subr.bf16.mxu1 %v4994_v63  ;;  %v761_v63 = vshll.u32 %v6062_v57, 16  ;;  %v5071_v15 = vld [vmem:[%s7421_s1 + $0xfc0] ss:$16 sps:$4 sm:$0xff]   ;;  %v5079_v17 = vld [vmem:[%s7421_s1 + $0xfa4] ss:$16 sps:$4 sm:$0xff]  }
  0x41   : > { %2080 = vmatpush2.bf16.msra.mxu0 %v4996_v4  ;;  %v5064_v4 = vld [vmem:[%s7421_s1 + $0xde4] ss:$16 sps:$4 sm:$0xff]  }
  0x42   : > { %2121 = vmatpush2.bf16.msra.mxu1 %v4997_v5  ;;  %2081 = vmatprep.subr.bf16.mxu0 %v4998_v6  ;;  %v749_v5 = vrot.slane %v747_v59, 1  ;;  %v5067_v6 = vld [vmem:[%s7421_s1 + $0xfe4] ss:$16 sps:$4 sm:$0xff]   ;;  %v5117_v59 = vld [vmem:[%s7421_s1 + $0xae8] ss:$16 sps:$4 sm:$0xff]  }
  0x43   : > { %2122 = vmatprep.subr.bf16.mxu1 %v5000_v7  ;;  %v763_v7 = vrot.slane %v761_v63, 1  ;;  %v5123_v63 = vld [vmem:[%s7421_s1 + $0xac8] ss:$16 sps:$4 sm:$0xff]  }
  0x44   : > { %v6080_v8 = vor.u32 %v749_v5, %v745_v58  ;;  %v5114_v58 = vld [vmem:[%s7421_s1 + $0x8e8] ss:$16 sps:$4 sm:$0xff]   ;;  %v5131_v5 = vld [vmem:[%s7421_s1 + $0xaac] ss:$16 sps:$4 sm:$0xff]  }
  0x45   : > { %2082 = vmatpush2.bf16.msra.mxu0 %v5002_v10  ;;  %v5065_v10 = vld [vmem:[%s7421_s1 + $0xfe0] ss:$16 sps:$4 sm:$0xff]  }
  0x46   : > { %2123 = vmatpush2.bf16.msra.mxu1 %v5003_v11  ;;  %2083 = vmatprep.subr.bf16.mxu0 %v5004_v12  ;;  %v6088_v11 = vor.u32 %v763_v7, %v759_v62  ;;  %v5070_v12 = vld [vmem:[%s7421_s1 + $0xdc4] ss:$16 sps:$4 sm:$0xff]   ;;  %v5120_v62 = vld [vmem:[%s7421_s1 + $0x8c8] ss:$16 sps:$4 sm:$0xff]  }
  0x47   : > { %2124 = vmatprep.subr.bf16.mxu1 %v5006_v13  ;;  %v5073_v13 = vld [vmem:[%s7421_s1 + $0xfc4] ss:$16 sps:$4 sm:$0xff]   ;;  %v5129_v7 = vld [vmem:[%s7421_s1 + $0xaa8] ss:$16 sps:$4 sm:$0xff]  }
  0x49   : > { %2084 = vmatpush2.bf16.msra.mxu0 %v5008_v18  ;;  %v5074_v18 = vld [vmem:[%s7421_s1 + $0xda0] ss:$16 sps:$4 sm:$0xff]  }
  0x4a   : > { %2125 = vmatpush2.bf16.msra.mxu1 %v5009_v19  ;;  %2135 = vmatprep.subr.bf16.mxu0 %v5016_v20  ;;  %v5077_v19 = vld [vmem:[%s7421_s1 + $0xfa0] ss:$16 sps:$4 sm:$0xff]   ;;  %v5082_v20 = vld [vmem:[%s7421_s1 + $0xd84] ss:$16 sps:$4 sm:$0xff]  }
  0x4b   : > { %2176 = vmatprep.subr.bf16.mxu1 %v5019_v21  ;;  %v5085_v21 = vld [vmem:[%s7421_s1 + $0xf84] ss:$16 sps:$4 sm:$0xff]  }
  0x4c   : > { %2086 = vmatmul.mubr.bf16.vlgmr.msra.gmra.mxu0 %v5960_v22 }
  0x4d   : > { %2127 = vmatmul.mubr.bf16.vlgmr.msra.gmra.mxu1 %v5962_v23  ;;  %2136 = vmatpush1.bf16.msra.mxu0 %v5014_v24  ;;  %v5080_v24 = vld [vmem:[%s7421_s1 + $0xd80] ss:$16 sps:$4 sm:$0xff]  }
  0x4e   : > { %2177 = vmatpush1.bf16.msra.mxu1 %v5017_v25  ;;  %2137 = vmatprep.subr.bf16.mxu0 %v5022_v26  ;;  %v5083_v25 = vld [vmem:[%s7421_s1 + $0xf80] ss:$16 sps:$4 sm:$0xff]   ;;  %v5088_v26 = vld [vmem:[%s7421_s1 + $0xd64] ss:$16 sps:$4 sm:$0xff]  }
  0x4f   : > { %2178 = vmatprep.subr.bf16.mxu1 %v5025_v27  ;;  %2167 = vmatprep.mubr.bf16.mxu0 %v6080_v8  ;;  %v5091_v27 = vld [vmem:[%s7421_s1 + $0xf64] ss:$16 sps:$4 sm:$0xff]  }
  0x50   : > { %2208 = vmatprep.mubr.bf16.mxu1 %v6088_v11 }
  0x51   : > { %2138 = vmatpush1.bf16.msra.mxu0 %v5020_v28  ;;  %v5086_v28 = vld [vmem:[%s7421_s1 + $0xd60] ss:$16 sps:$4 sm:$0xff]  }
  0x52   : > { %2179 = vmatpush1.bf16.msra.mxu1 %v5023_v29  ;;  %2139 = vmatprep.subr.bf16.mxu0 %v5028_v30  ;;  %v5089_v29 = vld [vmem:[%s7421_s1 + $0xf60] ss:$16 sps:$4 sm:$0xff]   ;;  %v5094_v30 = vld [vmem:[%s7421_s1 + $0xd44] ss:$16 sps:$4 sm:$0xff]  }
  0x53   : > { %2180 = vmatprep.subr.bf16.mxu1 %v5031_v31  ;;  %v5097_v31 = vld [vmem:[%s7421_s1 + $0xf44] ss:$16 sps:$4 sm:$0xff]  }
  0x55   : > { %2140 = vmatpush1.bf16.msra.mxu0 %v5026_v32  ;;  %v5092_v32 = vld [vmem:[%s7421_s1 + $0xd40] ss:$16 sps:$4 sm:$0xff]  }
  0x56   : > { %2181 = vmatpush1.bf16.msra.mxu1 %v5029_v33  ;;  %2141 = vmatprep.subr.bf16.mxu0 %v5034_v34  ;;  %v5095_v33 = vld [vmem:[%s7421_s1 + $0xf40] ss:$16 sps:$4 sm:$0xff]   ;;  %v6154_v34 = vcombine.low %v6045_v51, %v6045_v51  ;;  %v5116_v51 = vld [vmem:[%s7421_s1 + $0x8ec] ss:$16 sps:$4 sm:$0xff]  }
  0x57   : > { %2182 = vmatprep.subr.bf16.mxu1 %v5037_v35  ;;  %v6158_v35 = vcombine.low %v6048_v53, %v6048_v53  ;;  %v5119_v53 = vld [vmem:[%s7421_s1 + $0xaec] ss:$16 sps:$4 sm:$0xff]  }
  0x59   : > { %2142 = vmatpush1.bf16.msra.mxu0 %v5032_v36  ;;  %v5100_v36 = vld [vmem:[%s7421_s1 + $0xd24] ss:$16 sps:$4 sm:$0xff]  }
  0x5a   : > { %2183 = vmatpush1.bf16.msra.mxu1 %v5035_v37  ;;  %2143 = vmatprep.subr.bf16.mxu0 %v5040_v38  ;;  %v5103_v37 = vld [vmem:[%s7421_s1 + $0xf24] ss:$16 sps:$4 sm:$0xff]   ;;  %v5098_v38 = vld [vmem:[%s7421_s1 + $0xd20] ss:$16 sps:$4 sm:$0xff]  }
  0x5b   : > { %2184 = vmatprep.subr.bf16.mxu1 %v5043_v39  ;;  %v5101_v39 = vld [vmem:[%s7421_s1 + $0xf20] ss:$16 sps:$4 sm:$0xff]  }
  0x5d   : > { %2144 = vmatpush1.bf16.msra.mxu0 %v5038_v40  ;;  %v740_v40 = vshll.u32 %v6154_v34, 16 }
  0x5e   : > { %2185 = vmatpush1.bf16.msra.mxu1 %v5041_v41  ;;  %2145 = vmatprep.subr.bf16.mxu0 %v5046_v42  ;;  %v754_v41 = vshll.u32 %v6158_v35, 16  ;;  %v5106_v42 = vld [vmem:[%s7421_s1 + $0xd04] ss:$16 sps:$4 sm:$0xff]  }
  0x5f   : > { %2186 = vmatprep.subr.bf16.mxu1 %v5049_v43  ;;  %v5109_v43 = vld [vmem:[%s7421_s1 + $0xf04] ss:$16 sps:$4 sm:$0xff]  }
  0x61   : > { %2146 = vmatpush1.bf16.msra.mxu0 %v5044_v44  ;;  %v5104_v44 = vld [vmem:[%s7421_s1 + $0xd00] ss:$16 sps:$4 sm:$0xff]  }
  0x62   : > { %2187 = vmatpush1.bf16.msra.mxu1 %v5047_v45  ;;  %2147 = vmatprep.subr.bf16.mxu0 %v5052_v46  ;;  %v5107_v45 = vld [vmem:[%s7421_s1 + $0xf00] ss:$16 sps:$4 sm:$0xff]   ;;  %v738_v46 = vshrl.u32 %v6154_v34, 16 }
  0x63   : > { %2188 = vmatprep.subr.bf16.mxu1 %v5055_v47  ;;  %v742_v47 = vrot.slane %v740_v40, 1  ;;  %v5176_v40 = vld [vmem:[%s7421_s1 + $0x9ac] ss:$16 sps:$4 sm:$0xff]  }
  0x65   : > { %2148 = vmatpush1.bf16.msra.mxu0 %v5050_v49  ;;  %v752_v49 = vshrl.u32 %v6158_v35, 16 }
  0x66   : > { %2189 = vmatpush1.bf16.msra.mxu1 %v5053_v50  ;;  %2149 = vmatprep.subr.bf16.mxu0 %v5058_v54  ;;  %v756_v50 = vrot.slane %v754_v41, 1  ;;  %v6194_v54 = vor.u32 %v742_v47, %v738_v46  ;;  %v5179_v41 = vld [vmem:[%s7421_s1 + $0xbac] ss:$16 sps:$4 sm:$0xff]   ;;  %v5180_v46 = vld [vmem:[%s7421_s1 + $0x988] ss:$16 sps:$4 sm:$0xff]  }
  0x67   : > { %2190 = vmatprep.subr.bf16.mxu1 %v5061_v56  ;;  %v5183_v47 = vld [vmem:[%s7421_s1 + $0xb88] ss:$16 sps:$4 sm:$0xff]  }
  0x68   : > { %v6196_v56 = vor.u32 %v756_v50, %v752_v49  ;;  %v5188_v49 = vld [vmem:[%s7421_s1 + $0x96c] ss:$16 sps:$4 sm:$0xff]  }
  0x69   : > { %2150 = vmatpush1.bf16.msra.mxu0 %v5056_v60  ;;  %v5122_v60 = vld [vmem:[%s7421_s1 + $0x8cc] ss:$16 sps:$4 sm:$0xff]  }
  0x6a   : > { %2191 = vmatpush1.bf16.msra.mxu1 %v5059_v61  ;;  %2151 = vmatprep.subr.bf16.mxu0 %v5064_v4  ;;  %v5125_v61 = vld [vmem:[%s7421_s1 + $0xacc] ss:$16 sps:$4 sm:$0xff]  }
  0x6b   : > { %2192 = vmatprep.subr.bf16.mxu1 %v5067_v6  ;;  %v5128_v4 = vld [vmem:[%s7421_s1 + $0x8ac] ss:$16 sps:$4 sm:$0xff]   ;;  %v5126_v6 = vld [vmem:[%s7421_s1 + $0x8a8] ss:$16 sps:$4 sm:$0xff]  }
  0x6c   : > { %v5191_v50 = vld [vmem:[%s7421_s1 + $0xb6c] ss:$16 sps:$4 sm:$0xff]  }
  0x6d   : > { %2152 = vmatpush2.bf16.msra.mxu0 %v5062_v9  ;;  %v5134_v9 = vld [vmem:[%s7421_s1 + $0x88c] ss:$16 sps:$4 sm:$0xff]  }
  0x6e   : > { %2193 = vmatpush2.bf16.msra.mxu1 %v5065_v10  ;;  %2153 = vmatprep.subr.bf16.mxu0 %v5070_v12  ;;  %v5135_v10 = vld [vmem:[%s7421_s1 + $0xa88] ss:$16 sps:$4 sm:$0xff]   ;;  %v5140_v12 = vld [vmem:[%s7421_s1 + $0x86c] ss:$16 sps:$4 sm:$0xff]  }
  0x6f   : > { %2194 = vmatprep.subr.bf16.mxu1 %v5073_v13  ;;  %v5143_v13 = vld [vmem:[%s7421_s1 + $0xa6c] ss:$16 sps:$4 sm:$0xff]  }
  0x71   : > { %2154 = vmatpush2.bf16.msra.mxu0 %v5068_v14  ;;  %v5138_v14 = vld [vmem:[%s7421_s1 + $0x868] ss:$16 sps:$4 sm:$0xff]  }
  0x72   : > { %2195 = vmatpush2.bf16.msra.mxu1 %v5071_v15  ;;  %2155 = vmatprep.subr.bf16.mxu0 %v5076_v16  ;;  %v5141_v15 = vld [vmem:[%s7421_s1 + $0xa68] ss:$16 sps:$4 sm:$0xff]   ;;  %v5146_v16 = vld [vmem:[%s7421_s1 + $0x84c] ss:$16 sps:$4 sm:$0xff]  }
  0x73   : > { %2196 = vmatprep.subr.bf16.mxu1 %v5079_v17  ;;  %v5149_v17 = vld [vmem:[%s7421_s1 + $0xa4c] ss:$16 sps:$4 sm:$0xff]  }
  0x75   : > { %2156 = vmatpush2.bf16.msra.mxu0 %v5074_v18  ;;  %v5144_v18 = vld [vmem:[%s7421_s1 + $0x848] ss:$16 sps:$4 sm:$0xff]  }
  0x76   : > { %2197 = vmatpush2.bf16.msra.mxu1 %v5077_v19  ;;  %2157 = vmatprep.subr.bf16.mxu0 %v5082_v20  ;;  %v5147_v19 = vld [vmem:[%s7421_s1 + $0xa48] ss:$16 sps:$4 sm:$0xff]   ;;  %v5152_v20 = vld [vmem:[%s7421_s1 + $0x82c] ss:$16 sps:$4 sm:$0xff]  }
  0x77   : > { %2198 = vmatprep.subr.bf16.mxu1 %v5085_v21  ;;  %v5155_v21 = vld [vmem:[%s7421_s1 + $0xa2c] ss:$16 sps:$4 sm:$0xff]  }
  0x79   : > { %2158 = vmatpush2.bf16.msra.mxu0 %v5080_v24  ;;  %v5150_v24 = vld [vmem:[%s7421_s1 + $0x828] ss:$16 sps:$4 sm:$0xff]  }
  0x7a   : > { %2199 = vmatpush2.bf16.msra.mxu1 %v5083_v25  ;;  %2159 = vmatprep.subr.bf16.mxu0 %v5088_v26  ;;  %v5153_v25 = vld [vmem:[%s7421_s1 + $0xa28] ss:$16 sps:$4 sm:$0xff]   ;;  %v5158_v26 = vld [vmem:[%s7421_s1 + $0x80c] ss:$16 sps:$4 sm:$0xff]  }
  0x7b   : > { %2200 = vmatprep.subr.bf16.mxu1 %v5091_v27  ;;  %v5161_v27 = vld [vmem:[%s7421_s1 + $0xa0c] ss:$16 sps:$4 sm:$0xff]  }
  0x7d   : > { %2160 = vmatpush2.bf16.msra.mxu0 %v5086_v28  ;;  %v5156_v28 = vld [vmem:[%s7421_s1 + $0x808] ss:$16 sps:$4 sm:$0xff]  }
  0x7e   : > { %2201 = vmatpush2.bf16.msra.mxu1 %v5089_v29  ;;  %2161 = vmatprep.subr.bf16.mxu0 %v5094_v30  ;;  %v5159_v29 = vld [vmem:[%s7421_s1 + $0xa08] ss:$16 sps:$4 sm:$0xff]   ;;  %v5164_v30 = vld [vmem:[%s7421_s1 + $0x9ec] ss:$16 sps:$4 sm:$0xff]  }
  0x7f   : > { %2202 = vmatprep.subr.bf16.mxu1 %v5097_v31  ;;  %v5167_v31 = vld [vmem:[%s7421_s1 + $0xbec] ss:$16 sps:$4 sm:$0xff]  }
  0x81   : > { %2162 = vmatpush2.bf16.msra.mxu0 %v5092_v32  ;;  %v5162_v32 = vld [vmem:[%s7421_s1 + $0x9e8] ss:$16 sps:$4 sm:$0xff]  }
  0x82   : > { %2203 = vmatpush2.bf16.msra.mxu1 %v5095_v33  ;;  %2163 = vmatprep.subr.bf16.mxu0 %v5100_v36  ;;  %v5165_v33 = vld [vmem:[%s7421_s1 + $0xbe8] ss:$16 sps:$4 sm:$0xff]   ;;  %v5170_v36 = vld [vmem:[%s7421_s1 + $0x9cc] ss:$16 sps:$4 sm:$0xff]  }
  0x83   : > { %2204 = vmatprep.subr.bf16.mxu1 %v5103_v37  ;;  %v5173_v37 = vld [vmem:[%s7421_s1 + $0xbcc] ss:$16 sps:$4 sm:$0xff]  }
  0x85   : > { %2164 = vmatpush2.bf16.msra.mxu0 %v5098_v38  ;;  %v5168_v38 = vld [vmem:[%s7421_s1 + $0x9c8] ss:$16 sps:$4 sm:$0xff]  }
  0x86   : > { %2205 = vmatpush2.bf16.msra.mxu1 %v5101_v39  ;;  %2165 = vmatprep.subr.bf16.mxu0 %v5106_v42  ;;  %v5171_v39 = vld [vmem:[%s7421_s1 + $0xbc8] ss:$16 sps:$4 sm:$0xff]  }
  0x87   : > { %2206 = vmatprep.subr.bf16.mxu1 %v5109_v43  ;;  %v5174_v42 = vld [vmem:[%s7421_s1 + $0x9a8] ss:$16 sps:$4 sm:$0xff]  }
  0x88   : > { %v5177_v43 = vld [vmem:[%s7421_s1 + $0xba8] ss:$16 sps:$4 sm:$0xff]  }
  0x89   : > { %2166 = vmatpush2.bf16.msra.mxu0 %v5104_v44  ;;  %v5182_v44 = vld [vmem:[%s7421_s1 + $0x98c] ss:$16 sps:$4 sm:$0xff]  }
  0x8a   : > { %2207 = vmatpush2.bf16.msra.mxu1 %v5107_v45  ;;  %2217 = vmatprep.subr.bf16.mxu0 %v5116_v51  ;;  %v5185_v45 = vld [vmem:[%s7421_s1 + $0xb8c] ss:$16 sps:$4 sm:$0xff]   ;;  %v5186_v51 = vld [vmem:[%s7421_s1 + $0x968] ss:$16 sps:$4 sm:$0xff]  }
  0x8b   : > { %2258 = vmatprep.subr.bf16.mxu1 %v5119_v53  ;;  %v5189_v53 = vld [vmem:[%s7421_s1 + $0xb68] ss:$16 sps:$4 sm:$0xff]  }
  0x8c   : > { %2168 = vmatmul.mubr.bf16.vlgmr.msra.gmra.mxu0 %v6194_v54 }
  0x8d   : > { %2209 = vmatmul.mubr.bf16.vlgmr.msra.gmra.mxu1 %v6196_v56  ;;  %2218 = vmatpush1.bf16.msra.mxu0 %v5114_v58  ;;  %v5194_v58 = vld [vmem:[%s7421_s1 + $0x94c] ss:$16 sps:$4 sm:$0xff]  }
  0x8e   : > { %2259 = vmatpush1.bf16.msra.mxu1 %v5117_v59  ;;  %2219 = vmatprep.subr.bf16.mxu0 %v5122_v60  ;;  %v5197_v59 = vld [vmem:[%s7421_s1 + $0xb4c] ss:$16 sps:$4 sm:$0xff]   ;;  %v5192_v60 = vld [vmem:[%s7421_s1 + $0x948] ss:$16 sps:$4 sm:$0xff]  }
  0x8f   : > { %2260 = vmatprep.subr.bf16.mxu1 %v5125_v61  ;;  %2249 = vmatprep.mubr.bf16.mxu0 %v5910_v0  ;;  %v5137_v0 = vld [vmem:[%s7421_s1 + $0xa8c] ss:$16 sps:$4 sm:$0xff]   ;;  %v5195_v61 = vld [vmem:[%s7421_s1 + $0xb48] ss:$16 sps:$4 sm:$0xff]  }
  0x90   : > { %2290 = vmatprep.mubr.bf16.mxu1 %v5912_v1  ;;  %v5132_v1 = vld [vmem:[%s7421_s1 + $0x888] ss:$16 sps:$4 sm:$0xff]  }
  0x91   : > { %2220 = vmatpush1.bf16.msra.mxu0 %v5120_v62  ;;  %v5200_v62 = vld [vmem:[%s7421_s1 + $0x92c] ss:$16 sps:$4 sm:$0xff]  }
  0x92   : > { %2261 = vmatpush1.bf16.msra.mxu1 %v5123_v63  ;;  %2221 = vmatprep.subr.bf16.mxu0 %v5128_v4  ;;  %v5203_v63 = vld [vmem:[%s7421_s1 + $0xb2c] ss:$16 sps:$4 sm:$0xff]   ;;  %v5198_v4 = vld [vmem:[%s7421_s1 + $0x928] ss:$16 sps:$4 sm:$0xff]  }
  0x93   : > { %2262 = vmatprep.subr.bf16.mxu1 %v5131_v5  ;;  %v5201_v5 = vld [vmem:[%s7421_s1 + $0xb28] ss:$16 sps:$4 sm:$0xff]  }
  0x95   : > { %2222 = vmatpush1.bf16.msra.mxu0 %v5126_v6  ;;  %v5206_v6 = vld [vmem:[%s7421_s1 + $0x90c] ss:$16 sps:$4 sm:$0xff]  }
  0x96   : > { %2263 = vmatpush1.bf16.msra.mxu1 %v5129_v7  ;;  %2223 = vmatprep.subr.bf16.mxu0 %v5134_v9  ;;  %v5209_v7 = vld [vmem:[%s7421_s1 + $0xb0c] ss:$16 sps:$4 sm:$0xff]   ;;  %v5204_v9 = vld [vmem:[%s7421_s1 + $0x908] ss:$16 sps:$4 sm:$0xff]  }
  0x97   : > { %2264 = vmatprep.subr.bf16.mxu1 %v5137_v0  ;;  %v5207_v0 = vld [vmem:[%s7421_s1 + $0xb08] ss:$16 sps:$4 sm:$0xff]  }
  0x99   : > { %2224 = vmatpush1.bf16.msra.mxu0 %v5132_v1  ;;  %v5212_v1 = vld [vmem:[%s7421_s1 + $0xcec] ss:$16 sps:$4 sm:$0xff]  }
  0x9a   : > { %2265 = vmatpush1.bf16.msra.mxu1 %v5135_v10  ;;  %2225 = vmatprep.subr.bf16.mxu0 %v5140_v12  ;;  %v5215_v10 = vld [vmem:[%s7421_s1 + $0xeec] ss:$16 sps:$4 sm:$0xff]   ;;  %v5210_v12 = vld [vmem:[%s7421_s1 + $0xce8] ss:$16 sps:$4 sm:$0xff]  }
  0x9b   : > { %2266 = vmatprep.subr.bf16.mxu1 %v5143_v13  ;;  %v5213_v13 = vld [vmem:[%s7421_s1 + $0xee8] ss:$16 sps:$4 sm:$0xff]  }
  0x9d   : > { %2226 = vmatpush1.bf16.msra.mxu0 %v5138_v14  ;;  %v5218_v14 = vld [vmem:[%s7421_s1 + $0xccc] ss:$16 sps:$4 sm:$0xff]  }
  0x9e   : > { %2267 = vmatpush1.bf16.msra.mxu1 %v5141_v15  ;;  %2227 = vmatprep.subr.bf16.mxu0 %v5146_v16  ;;  %v5221_v15 = vld [vmem:[%s7421_s1 + $0xecc] ss:$16 sps:$4 sm:$0xff]   ;;  %v5216_v16 = vld [vmem:[%s7421_s1 + $0xcc8] ss:$16 sps:$4 sm:$0xff]  }
  0x9f   : > { %2268 = vmatprep.subr.bf16.mxu1 %v5149_v17  ;;  %v5219_v17 = vld [vmem:[%s7421_s1 + $0xec8] ss:$16 sps:$4 sm:$0xff]  }
  0xa1   : > { %2228 = vmatpush1.bf16.msra.mxu0 %v5144_v18  ;;  %v5224_v18 = vld [vmem:[%s7421_s1 + $0xcac] ss:$16 sps:$4 sm:$0xff]  }
  0xa2   : > { %2269 = vmatpush1.bf16.msra.mxu1 %v5147_v19  ;;  %2229 = vmatprep.subr.bf16.mxu0 %v5152_v20  ;;  %v5225_v19 = vld [vmem:[%s7421_s1 + $0xea8] ss:$16 sps:$4 sm:$0xff]   ;;  %v5230_v20 = vld [vmem:[%s7421_s1 + $0xc8c] ss:$16 sps:$4 sm:$0xff]  }
  0xa3   : > { %2270 = vmatprep.subr.bf16.mxu1 %v5155_v21  ;;  %v5231_v21 = vld [vmem:[%s7421_s1 + $0xe88] ss:$16 sps:$4 sm:$0xff]  }
  0xa5   : > { %2230 = vmatpush1.bf16.msra.mxu0 %v5150_v24  ;;  %v5236_v24 = vld [vmem:[%s7421_s1 + $0xc6c] ss:$16 sps:$4 sm:$0xff]  }
  0xa6   : > { %2271 = vmatpush1.bf16.msra.mxu1 %v5153_v25  ;;  %2231 = vmatprep.subr.bf16.mxu0 %v5158_v26  ;;  %v5239_v25 = vld [vmem:[%s7421_s1 + $0xe6c] ss:$16 sps:$4 sm:$0xff]   ;;  %v5234_v26 = vld [vmem:[%s7421_s1 + $0xc68] ss:$16 sps:$4 sm:$0xff]  }
  0xa7   : > { %2272 = vmatprep.subr.bf16.mxu1 %v5161_v27  ;;  %v5237_v27 = vld [vmem:[%s7421_s1 + $0xe68] ss:$16 sps:$4 sm:$0xff]  }
  0xa9   : > { %2232 = vmatpush1.bf16.msra.mxu0 %v5156_v28  ;;  %v5242_v28 = vld [vmem:[%s7421_s1 + $0xc4c] ss:$16 sps:$4 sm:$0xff]  }
  0xaa   : > { %2273 = vmatpush1.bf16.msra.mxu1 %v5159_v29  ;;  %2233 = vmatprep.subr.bf16.mxu0 %v5164_v30  ;;  %v5245_v29 = vld [vmem:[%s7421_s1 + $0xe4c] ss:$16 sps:$4 sm:$0xff]   ;;  %v5240_v30 = vld [vmem:[%s7421_s1 + $0xc48] ss:$16 sps:$4 sm:$0xff]  }
  0xab   : > { %2274 = vmatprep.subr.bf16.mxu1 %v5167_v31  ;;  %v5243_v31 = vld [vmem:[%s7421_s1 + $0xe48] ss:$16 sps:$4 sm:$0xff]  }
  0xad   : > { %2234 = vmatpush2.bf16.msra.mxu0 %v5162_v32  ;;  %v5248_v32 = vld [vmem:[%s7421_s1 + $0xc2c] ss:$16 sps:$4 sm:$0xff]  }
  0xae   : > { %2275 = vmatpush2.bf16.msra.mxu1 %v5165_v33  ;;  %2235 = vmatprep.subr.bf16.mxu0 %v5170_v36  ;;  %v5251_v33 = vld [vmem:[%s7421_s1 + $0xe2c] ss:$16 sps:$4 sm:$0xff]   ;;  %v5246_v36 = vld [vmem:[%s7421_s1 + $0xc28] ss:$16 sps:$4 sm:$0xff]  }
  0xaf   : > { %2276 = vmatprep.subr.bf16.mxu1 %v5173_v37  ;;  %v5249_v37 = vld [vmem:[%s7421_s1 + $0xe28] ss:$16 sps:$4 sm:$0xff]  }
  0xb1   : > { %2236 = vmatpush2.bf16.msra.mxu0 %v5168_v38  ;;  %v5254_v38 = vld [vmem:[%s7421_s1 + $0xc0c] ss:$16 sps:$4 sm:$0xff]  }
  0xb2   : > { %2277 = vmatpush2.bf16.msra.mxu1 %v5171_v39  ;;  %2237 = vmatprep.subr.bf16.mxu0 %v5176_v40  ;;  %v5257_v39 = vld [vmem:[%s7421_s1 + $0xe0c] ss:$16 sps:$4 sm:$0xff]   ;;  %v5252_v40 = vld [vmem:[%s7421_s1 + $0xc08] ss:$16 sps:$4 sm:$0xff]  }
  0xb3   : > { %2278 = vmatprep.subr.bf16.mxu1 %v5179_v41  ;;  %v5255_v41 = vld [vmem:[%s7421_s1 + $0xe08] ss:$16 sps:$4 sm:$0xff]  }
  0xb5   : > { %2238 = vmatpush2.bf16.msra.mxu0 %v5174_v42  ;;  %v5260_v42 = vld [vmem:[%s7421_s1 + $0xdec] ss:$16 sps:$4 sm:$0xff]  }
  0xb6   : > { %2279 = vmatpush2.bf16.msra.mxu1 %v5177_v43  ;;  %2239 = vmatprep.subr.bf16.mxu0 %v5182_v44  ;;  %v5263_v43 = vld [vmem:[%s7421_s1 + $0xfec] ss:$16 sps:$4 sm:$0xff]   ;;  %v5258_v44 = vld [vmem:[%s7421_s1 + $0xde8] ss:$16 sps:$4 sm:$0xff]  }
  0xb7   : > { %2280 = vmatprep.subr.bf16.mxu1 %v5185_v45  ;;  %v5261_v45 = vld [vmem:[%s7421_s1 + $0xfe8] ss:$16 sps:$4 sm:$0xff]  }
  0xb9   : > { %2240 = vmatpush2.bf16.msra.mxu0 %v5180_v46  ;;  %v5266_v46 = vld [vmem:[%s7421_s1 + $0xdcc] ss:$16 sps:$4 sm:$0xff]  }
  0xba   : > { %2281 = vmatpush2.bf16.msra.mxu1 %v5183_v47  ;;  %2241 = vmatprep.subr.bf16.mxu0 %v5188_v49  ;;  %v5269_v47 = vld [vmem:[%s7421_s1 + $0xfcc] ss:$16 sps:$4 sm:$0xff]   ;;  %v5264_v49 = vld [vmem:[%s7421_s1 + $0xdc8] ss:$16 sps:$4 sm:$0xff]  }
  0xbb   : > { %2282 = vmatprep.subr.bf16.mxu1 %v5191_v50  ;;  %v5267_v50 = vld [vmem:[%s7421_s1 + $0xfc8] ss:$16 sps:$4 sm:$0xff]  }
  0xbd   : > { %2242 = vmatpush2.bf16.msra.mxu0 %v5186_v51  ;;  %v5272_v51 = vld [vmem:[%s7421_s1 + $0xdac] ss:$16 sps:$4 sm:$0xff]  }
  0xbe   : > { %2283 = vmatpush2.bf16.msra.mxu1 %v5189_v53  ;;  %2243 = vmatprep.subr.bf16.mxu0 %v5194_v58  ;;  %v5275_v53 = vld [vmem:[%s7421_s1 + $0xfac] ss:$16 sps:$4 sm:$0xff]   ;;  %v5270_v58 = vld [vmem:[%s7421_s1 + $0xda8] ss:$16 sps:$4 sm:$0xff]  }
  0xbf   : > { %2284 = vmatprep.subr.bf16.mxu1 %v5197_v59  ;;  %v5273_v59 = vld [vmem:[%s7421_s1 + $0xfa8] ss:$16 sps:$4 sm:$0xff]  }
  0xc1   : > { %2244 = vmatpush2.bf16.msra.mxu0 %v5192_v60  ;;  %v5278_v60 = vld [vmem:[%s7421_s1 + $0xd8c] ss:$16 sps:$4 sm:$0xff]  }
  0xc2   : > { %2285 = vmatpush2.bf16.msra.mxu1 %v5195_v61  ;;  %2245 = vmatprep.subr.bf16.mxu0 %v5200_v62  ;;  %v5281_v61 = vld [vmem:[%s7421_s1 + $0xf8c] ss:$16 sps:$4 sm:$0xff]   ;;  %v5276_v62 = vld [vmem:[%s7421_s1 + $0xd88] ss:$16 sps:$4 sm:$0xff]  }
  0xc3   : > { %2286 = vmatprep.subr.bf16.mxu1 %v5203_v63  ;;  %v5279_v63 = vld [vmem:[%s7421_s1 + $0xf88] ss:$16 sps:$4 sm:$0xff]  }
  0xc5   : > { %2246 = vmatpush2.bf16.msra.mxu0 %v5198_v4  ;;  %v5284_v4 = vld [vmem:[%s7421_s1 + $0xd6c] ss:$16 sps:$4 sm:$0xff]  }
  0xc6   : > { %2287 = vmatpush2.bf16.msra.mxu1 %v5201_v5  ;;  %2247 = vmatprep.subr.bf16.mxu0 %v5206_v6  ;;  %v5287_v5 = vld [vmem:[%s7421_s1 + $0xf6c] ss:$16 sps:$4 sm:$0xff]   ;;  %v5282_v6 = vld [vmem:[%s7421_s1 + $0xd68] ss:$16 sps:$4 sm:$0xff]  }
  0xc7   : > { %2288 = vmatprep.subr.bf16.mxu1 %v5209_v7  ;;  %v5285_v7 = vld [vmem:[%s7421_s1 + $0xf68] ss:$16 sps:$4 sm:$0xff]  }
  0xc9   : > { %2248 = vmatpush2.bf16.msra.mxu0 %v5204_v9  ;;  %v5290_v9 = vld [vmem:[%s7421_s1 + $0xd4c] ss:$16 sps:$4 sm:$0xff]  }
  0xca   : > { %2289 = vmatpush2.bf16.msra.mxu1 %v5207_v0  ;;  %2299 = vmatprep.subr.bf16.mxu0 %v5212_v1  ;;  %v5293_v0 = vld [vmem:[%s7421_s1 + $0xf4c] ss:$16 sps:$4 sm:$0xff]   ;;  %v5288_v1 = vld [vmem:[%s7421_s1 + $0xd48] ss:$16 sps:$4 sm:$0xff]  }
  0xcb   : > { %2340 = vmatprep.subr.bf16.mxu1 %v5215_v10  ;;  %v5291_v10 = vld [vmem:[%s7421_s1 + $0xf48] ss:$16 sps:$4 sm:$0xff]  }
  0xcc   : > { %2250 = vmatmul.mubr.bf16.vlgmr.msra.gmra.mxu0 %v5960_v22  ;;  %v5227_v22 = vld [vmem:[%s7421_s1 + $0xeac] ss:$16 sps:$4 sm:$0xff]  }
  0xcd   : > { %2291 = vmatmul.mubr.bf16.vlgmr.msra.gmra.mxu1 %v5962_v23  ;;  %2300 = vmatpush1.bf16.msra.mxu0 %v5210_v12  ;;  %v5222_v23 = vld [vmem:[%s7421_s1 + $0xca8] ss:$16 sps:$4 sm:$0xff]   ;;  %v5296_v12 = vld [vmem:[%s7421_s1 + $0xd2c] ss:$16 sps:$4 sm:$0xff]  }
  0xce   : > { %2341 = vmatpush1.bf16.msra.mxu1 %v5213_v13  ;;  %2301 = vmatprep.subr.bf16.mxu0 %v5218_v14  ;;  %v5299_v13 = vld [vmem:[%s7421_s1 + $0xf2c] ss:$16 sps:$4 sm:$0xff]   ;;  %v5294_v14 = vld [vmem:[%s7421_s1 + $0xd28] ss:$16 sps:$4 sm:$0xff]  }
  0xcf   : > { %2342 = vmatprep.subr.bf16.mxu1 %v5221_v15  ;;  %2331 = vmatprep.mubr.bf16.mxu0 %v6080_v8  ;;  %v5233_v8 = vld [vmem:[%s7421_s1 + $0xe8c] ss:$16 sps:$4 sm:$0xff]   ;;  %v5297_v15 = vld [vmem:[%s7421_s1 + $0xf28] ss:$16 sps:$4 sm:$0xff]  }
  0xd0   : > { %2372 = vmatprep.mubr.bf16.mxu1 %v6088_v11  ;;  %v5228_v11 = vld [vmem:[%s7421_s1 + $0xc88] ss:$16 sps:$4 sm:$0xff]  }
  0xd1   : > { %2302 = vmatpush1.bf16.msra.mxu0 %v5216_v16  ;;  %v5302_v16 = vld [vmem:[%s7421_s1 + $0xd0c] ss:$16 sps:$4 sm:$0xff]  }
  0xd2   : > { %2343 = vmatpush1.bf16.msra.mxu1 %v5219_v17  ;;  %2303 = vmatprep.subr.bf16.mxu0 %v5224_v18  ;;  %v5305_v17 = vld [vmem:[%s7421_s1 + $0xf0c] ss:$16 sps:$4 sm:$0xff]   ;;  %v5300_v18 = vld [vmem:[%s7421_s1 + $0xd08] ss:$16 sps:$4 sm:$0xff]  }
  0xd3   : > { %2344 = vmatprep.subr.bf16.mxu1 %v5227_v22  ;;  %v5303_v22 = vld [vmem:[%s7421_s1 + $0xf08] ss:$16 sps:$4 sm:$0xff]  }
  0xd5   : > { %2304 = vmatpush1.bf16.msra.mxu0 %v5222_v23  ;;  %v5308_v23 = vld [vmem:[%s7421_s1 + $0xe4] ss:$16 sps:$4 sm:$0xff]  }
  0xd6   : > { %2345 = vmatpush1.bf16.msra.mxu1 %v5225_v19  ;;  %2305 = vmatprep.subr.bf16.mxu0 %v5230_v20  ;;  %v5311_v19 = vld [vmem:[%s7421_s1 + $0x2e4] ss:$16 sps:$4 sm:$0xff]   ;;  %v5306_v20 = vld [vmem:[%s7421_s1 + $0xe0] ss:$16 sps:$4 sm:$0xff]  }
  0xd7   : > { %2346 = vmatprep.subr.bf16.mxu1 %v5233_v8  ;;  %v5309_v8 = vld [vmem:[%s7421_s1 + $0x2e0] ss:$16 sps:$4 sm:$0xff]  }
  0xd9   : > { %2306 = vmatpush1.bf16.msra.mxu0 %v5228_v11  ;;  %v5314_v11 = vld [vmem:[%s7421_s1 + $0xc4] ss:$16 sps:$4 sm:$0xff]  }
  0xda   : > { %2347 = vmatpush1.bf16.msra.mxu1 %v5231_v21  ;;  %2307 = vmatprep.subr.bf16.mxu0 %v5236_v24  ;;  %v5317_v21 = vld [vmem:[%s7421_s1 + $0x2c4] ss:$16 sps:$4 sm:$0xff]  }
  0xdb   : > { %2348 = vmatprep.subr.bf16.mxu1 %v5239_v25 }
  0xdd   : > { %2308 = vmatpush1.bf16.msra.mxu0 %v5234_v26  ;;  %v5312_v26 = vld [vmem:[%s7421_s1 + $0xc0] ss:$16 sps:$4 sm:$0xff]  }
  0xde   : > { %2349 = vmatpush1.bf16.msra.mxu1 %v5237_v27  ;;  %2309 = vmatprep.subr.bf16.mxu0 %v5242_v28  ;;  %v5315_v27 = vld [vmem:[%s7421_s1 + $0x2c0] ss:$16 sps:$4 sm:$0xff]  }
  0xdf   : > { %2350 = vmatprep.subr.bf16.mxu1 %v5245_v29  ;;  %v5320_v29 = vld [vmem:[%s7421_s1 + $0xa4] ss:$16 sps:$4 sm:$0xff]  }
  0xe1   : > { %2310 = vmatpush1.bf16.msra.mxu0 %v5240_v30 }
  0xe2   : > { %2351 = vmatpush1.bf16.msra.mxu1 %v5243_v31  ;;  %2311 = vmatprep.subr.bf16.mxu0 %v5248_v32 }
  0xe3   : > { %2352 = vmatprep.subr.bf16.mxu1 %v5251_v33 }
  0xe5   : > { %2312 = vmatpush1.bf16.msra.mxu0 %v5246_v36  ;;  %v5318_v36 = vld [vmem:[%s7421_s1 + $0xa0] ss:$16 sps:$4 sm:$0xff]  }
  0xe6   : > { %2353 = vmatpush1.bf16.msra.mxu1 %v5249_v37  ;;  %2313 = vmatprep.subr.bf16.mxu0 %v5254_v38  ;;  %v5321_v37 = vld [vmem:[%s7421_s1 + $0x2a0] ss:$16 sps:$4 sm:$0xff]   ;;  %v5326_v38 = vld [vmem:[%s7421_s1 + $0x84] ss:$16 sps:$4 sm:$0xff]  }
  0xe7   : > { %2354 = vmatprep.subr.bf16.mxu1 %v5257_v39 }
  0xe9   : > { %2314 = vmatpush1.bf16.msra.mxu0 %v5252_v40 }
  0xea   : > { %2355 = vmatpush1.bf16.msra.mxu1 %v5255_v41  ;;  %2315 = vmatprep.subr.bf16.mxu0 %v5260_v42  ;;  %v5329_v41 = vld [vmem:[%s7421_s1 + $0x284] ss:$16 sps:$4 sm:$0xff]   ;;  %v5324_v42 = vld [vmem:[%s7421_s1 + $0x80] ss:$16 sps:$4 sm:$0xff]  }
  0xeb   : > { %2356 = vmatprep.subr.bf16.mxu1 %v5263_v43  ;;  %v5327_v43 = vld [vmem:[%s7421_s1 + $0x280] ss:$16 sps:$4 sm:$0xff]  }
  0xed   : > { %2316 = vmatpush2.bf16.msra.mxu0 %v5258_v44  ;;  %v5332_v44 = vld [vmem:[%s7421_s1 + $0x64] ss:$16 sps:$4 sm:$0xff]  }
  0xee   : > { %2357 = vmatpush2.bf16.msra.mxu1 %v5261_v45  ;;  %2317 = vmatprep.subr.bf16.mxu0 %v5266_v46  ;;  %v5335_v45 = vld [vmem:[%s7421_s1 + $0x264] ss:$16 sps:$4 sm:$0xff]   ;;  %v5330_v46 = vld [vmem:[%s7421_s1 + $0x60] ss:$16 sps:$4 sm:$0xff]  }
  0xef   : > { %2358 = vmatprep.subr.bf16.mxu1 %v5269_v47  ;;  %v5333_v47 = vld [vmem:[%s7421_s1 + $0x260] ss:$16 sps:$4 sm:$0xff]  }
  0xf1   : > { %2318 = vmatpush2.bf16.msra.mxu0 %v5264_v49  ;;  %v5338_v49 = vld [vmem:[%s7421_s1 + $0x44] ss:$16 sps:$4 sm:$0xff]  }
  0xf2   : > { %2359 = vmatpush2.bf16.msra.mxu1 %v5267_v50  ;;  %2319 = vmatprep.subr.bf16.mxu0 %v5272_v51  ;;  %v5341_v50 = vld [vmem:[%s7421_s1 + $0x244] ss:$16 sps:$4 sm:$0xff]   ;;  %v5336_v51 = vld [vmem:[%s7421_s1 + $0x40] ss:$16 sps:$4 sm:$0xff]  }
  0xf3   : > { %2360 = vmatprep.subr.bf16.mxu1 %v5275_v53  ;;  %v5339_v53 = vld [vmem:[%s7421_s1 + $0x240] ss:$16 sps:$4 sm:$0xff]  }
  0xf5   : > { %2320 = vmatpush2.bf16.msra.mxu0 %v5270_v58  ;;  %v5344_v58 = vld [vmem:[%s7421_s1 + $0x24] ss:$16 sps:$4 sm:$0xff]  }
  0xf6   : > { %2361 = vmatpush2.bf16.msra.mxu1 %v5273_v59  ;;  %2321 = vmatprep.subr.bf16.mxu0 %v5278_v60  ;;  %v5347_v59 = vld [vmem:[%s7421_s1 + $0x224] ss:$16 sps:$4 sm:$0xff]   ;;  %v5342_v60 = vld [vmem:[%s7421_s1 + $0x20] ss:$16 sps:$4 sm:$0xff]  }
  0xf7   : > { %2362 = vmatprep.subr.bf16.mxu1 %v5281_v61  ;;  %v5345_v61 = vld [vmem:[%s7421_s1 + $0x220] ss:$16 sps:$4 sm:$0xff]  }
  0xf9   : > { %2322 = vmatpush2.bf16.msra.mxu0 %v5276_v62  ;;  %v5350_v62 = vld [vmem:[%s7421_s1 + $0x4] ss:$16 sps:$4 sm:$0xff]  }
  0xfa   : > { %2363 = vmatpush2.bf16.msra.mxu1 %v5279_v63  ;;  %2323 = vmatprep.subr.bf16.mxu0 %v5284_v4  ;;  %v5353_v63 = vld [vmem:[%s7421_s1 + $0x204] ss:$16 sps:$4 sm:$0xff]   ;;  %v5348_v4 = vld [vmem:[%s7421_s1] ss:$16 sps:$4 sm:$0xff]  }
  0xfb   : > { %2364 = vmatprep.subr.bf16.mxu1 %v5287_v5  ;;  %v5351_v5 = vld [vmem:[%s7421_s1 + $0x200] ss:$16 sps:$4 sm:$0xff]  }
  0xfd   : > { %2324 = vmatpush2.bf16.msra.mxu0 %v5282_v6  ;;  %v5356_v6 = vld [vmem:[%s7421_s1 + $0x1e4] ss:$16 sps:$4 sm:$0xff]  }
  0xfe   : > { %2365 = vmatpush2.bf16.msra.mxu1 %v5285_v7  ;;  %2325 = vmatprep.subr.bf16.mxu0 %v5290_v9  ;;  %v5359_v7 = vld [vmem:[%s7421_s1 + $0x3e4] ss:$16 sps:$4 sm:$0xff]   ;;  %v5354_v9 = vld [vmem:[%s7421_s1 + $0x1e0] ss:$16 sps:$4 sm:$0xff]  }
  0xff   : > { %2366 = vmatprep.subr.bf16.mxu1 %v5293_v0  ;;  %v5357_v0 = vld [vmem:[%s7421_s1 + $0x3e0] ss:$16 sps:$4 sm:$0xff]  }
 0x101   : > { %2326 = vmatpush2.bf16.msra.mxu0 %v5288_v1  ;;  %v5362_v1 = vld [vmem:[%s7421_s1 + $0x1c4] ss:$16 sps:$4 sm:$0xff]  }
 0x102   : > { %2367 = vmatpush2.bf16.msra.mxu1 %v5291_v10  ;;  %2327 = vmatprep.subr.bf16.mxu0 %v5296_v12  ;;  %v5365_v10 = vld [vmem:[%s7421_s1 + $0x3c4] ss:$16 sps:$4 sm:$0xff]   ;;  %v5360_v12 = vld [vmem:[%s7421_s1 + $0x1c0] ss:$16 sps:$4 sm:$0xff]  }
 0x103   : > { %2368 = vmatprep.subr.bf16.mxu1 %v5299_v13  ;;  %v5363_v13 = vld [vmem:[%s7421_s1 + $0x3c0] ss:$16 sps:$4 sm:$0xff]  }
 0x105   : > { %2328 = vmatpush2.bf16.msra.mxu0 %v5294_v14  ;;  %v5368_v14 = vld [vmem:[%s7421_s1 + $0x1a4] ss:$16 sps:$4 sm:$0xff]  }
 0x106   : > { %2369 = vmatpush2.bf16.msra.mxu1 %v5297_v15  ;;  %2329 = vmatprep.subr.bf16.mxu0 %v5302_v16  ;;  %v5371_v15 = vld [vmem:[%s7421_s1 + $0x3a4] ss:$16 sps:$4 sm:$0xff]   ;;  %v5366_v16 = vld [vmem:[%s7421_s1 + $0x1a0] ss:$16 sps:$4 sm:$0xff]  }
 0x107   : > { %2370 = vmatprep.subr.bf16.mxu1 %v5305_v17  ;;  %v5369_v17 = vld [vmem:[%s7421_s1 + $0x3a0] ss:$16 sps:$4 sm:$0xff]  }
 0x109   : > { %2330 = vmatpush2.bf16.msra.mxu0 %v5300_v18  ;;  %v5374_v18 = vld [vmem:[%s7421_s1 + $0x184] ss:$16 sps:$4 sm:$0xff]  }
 0x10a   : > { %2371 = vmatpush2.bf16.msra.mxu1 %v5303_v22  ;;  %3669 = vmatprep.subr.bf16.mxu0 %v5308_v23  ;;  %v5377_v22 = vld [vmem:[%s7421_s1 + $0x384] ss:$16 sps:$4 sm:$0xff]   ;;  %v5372_v23 = vld [vmem:[%s7421_s1 + $0x180] ss:$16 sps:$4 sm:$0xff]  }
 0x10b   : > { %3710 = vmatprep.subr.bf16.mxu1 %v5311_v19  ;;  %v5375_v19 = vld [vmem:[%s7421_s1 + $0x380] ss:$16 sps:$4 sm:$0xff]  }
 0x10c   : > { %v2087_v24 = vpop.f32.mrf.mxu0  ;;  %2332 = vmatmul.mubr.bf16.vlgmr.msra.gmra.mxu0 %v6194_v54 }
 0x10d   : > { %v2128_v25 = vpop.f32.mrf.mxu1  ;;  %2373 = vmatmul.mubr.bf16.vlgmr.msra.gmra.mxu1 %v6196_v56  ;;  %3670 = vmatpush1.bf16.msra.mxu0 %v5306_v20  ;;  %v5323_v56 = vld [vmem:[%s7421_s1 + $0x2a4] ss:$16 sps:$4 sm:$0xff]  }
 0x10e   : > { %v6610_v28 = vadd.f32 %v2128_v25, %v2087_v24  ;;  %3711 = vmatpush1.bf16.msra.mxu1 %v5309_v8  ;;  %v2089_v30 = vpop.f32.mrf.mxu0  ;;  %3671 = vmatprep.subr.bf16.mxu0 %v5314_v11  ;;  %v5380_v20 = vld [vmem:[%s7421_s1 + $0x164] ss:$16 sps:$4 sm:$0xff]   ;;  %v5378_v11 = vld [vmem:[%s7421_s1 + $0x160] ss:$16 sps:$4 sm:$0xff]  }
 0x10f   : > { %v2130_v54 = vpop.f32.mrf.mxu1  ;;  %3712 = vmatprep.subr.bf16.mxu1 %v5317_v21  ;;  %3701 = vmatprep.mubr.bf16.mxu0 %v5880_v48  ;;  %v5383_v8 = vld [vmem:[%s7421_s1 + $0x364] ss:$16 sps:$4 sm:$0xff]   ;;  %v5381_v21 = vld [vmem:[%s7421_s1 + $0x360] ss:$16 sps:$4 sm:$0xff]  }
 0x110   : > { %v6618_v31 = vadd.f32 %v2130_v54, %v2089_v30  ;;  %3742 = vmatprep.mubr.bf16.mxu1 %v5889_v52  ;;  %v2091_v32 = vpop.f32.mrf.mxu0  ;;  %v5386_v24 = vld [vmem:[%s7421_s1 + $0x144] ss:$16 sps:$4 sm:$0xff]   ;;  %v5390_v54 = vld [vmem:[%s7421_s1 + $0x120] ss:$16 sps:$4 sm:$0xff]  }
 0x111   : > { %v2132_v33 = vpop.f32.mrf.mxu1  ;;  %3672 = vmatpush1.bf16.msra.mxu0 %v5312_v26  ;;  %v5389_v25 = vld [vmem:[%s7421_s1 + $0x344] ss:$16 sps:$4 sm:$0xff]   ;;  %v5384_v26 = vld [vmem:[%s7421_s1 + $0x140] ss:$16 sps:$4 sm:$0xff]  }
 0x112   : > { %3713 = vmatpush1.bf16.msra.mxu1 %v5315_v27  ;;  %v2092_v39 = vpop.f32.mrf.mxu0  ;;  %3673 = vmatprep.subr.bf16.mxu0 %v5320_v29  ;;  %v5387_v27 = vld [vmem:[%s7421_s1 + $0x340] ss:$16 sps:$4 sm:$0xff]   ;;  %v5392_v29 = vld [vmem:[%s7421_s1 + $0x124] ss:$16 sps:$4 sm:$0xff]  }
 0x113   : > { %v2133_v40 = vpop.f32.mrf.mxu1  ;;  %3714 = vmatprep.subr.bf16.mxu1 %v5323_v56  ;;  %v5395_v30 = vld [vmem:[%s7421_s1 + $0x324] ss:$16 sps:$4 sm:$0xff]   ;;  %v5393_v56 = vld [vmem:[%s7421_s1 + $0x320] ss:$16 sps:$4 sm:$0xff]  }
 0x114   : > { %v5398_v32 = vld [vmem:[%s7421_s1 + $0x104] ss:$16 sps:$4 sm:$0xff]   ;;  %v5402_v40 = vld [vmem:[%s7421_s1 + $0x4e0] ss:$16 sps:$4 sm:$0xff]  }
 0x115   : > { %3674 = vmatpush1.bf16.msra.mxu0 %v5318_v36  ;;  %v5401_v33 = vld [vmem:[%s7421_s1 + $0x304] ss:$16 sps:$4 sm:$0xff]   ;;  %v5396_v36 = vld [vmem:[%s7421_s1 + $0x100] ss:$16 sps:$4 sm:$0xff]  }
 0x116   : > { %3715 = vmatpush1.bf16.msra.mxu1 %v5321_v37  ;;  %3675 = vmatprep.subr.bf16.mxu0 %v5326_v38  ;;  %v5399_v37 = vld [vmem:[%s7421_s1 + $0x300] ss:$16 sps:$4 sm:$0xff]   ;;  %v5404_v38 = vld [vmem:[%s7421_s1 + $0x4e4] ss:$16 sps:$4 sm:$0xff]  }
 0x117   : > { %3716 = vmatprep.subr.bf16.mxu1 %v5329_v41  ;;  %v5407_v39 = vld [vmem:[%s7421_s1 + $0x6e4] ss:$16 sps:$4 sm:$0xff]   ;;  %v5405_v41 = vld [vmem:[%s7421_s1 + $0x6e0] ss:$16 sps:$4 sm:$0xff]  }
 0x119   : > { %3676 = vmatpush1.bf16.msra.mxu0 %v5324_v42  ;;  %v5410_v42 = vld [vmem:[%s7421_s1 + $0x4c4] ss:$16 sps:$4 sm:$0xff]  }
 0x11a   : > { %3717 = vmatpush1.bf16.msra.mxu1 %v5327_v43  ;;  %3677 = vmatprep.subr.bf16.mxu0 %v5332_v44  ;;  %v5413_v43 = vld [vmem:[%s7421_s1 + $0x6c4] ss:$16 sps:$4 sm:$0xff]   ;;  %v5408_v44 = vld [vmem:[%s7421_s1 + $0x4c0] ss:$16 sps:$4 sm:$0xff]  }
 0x11b   : > { %3718 = vmatprep.subr.bf16.mxu1 %v5335_v45  ;;  %v5411_v45 = vld [vmem:[%s7421_s1 + $0x6c0] ss:$16 sps:$4 sm:$0xff]  }
 0x11d   : > { %3678 = vmatpush1.bf16.msra.mxu0 %v5330_v46 }
 0x11e   : > { %3719 = vmatpush1.bf16.msra.mxu1 %v5333_v47  ;;  %3679 = vmatprep.subr.bf16.mxu0 %v5338_v49 }
 0x11f   : > { %3720 = vmatprep.subr.bf16.mxu1 %v5341_v50 }
 0x121   : > { %3680 = vmatpush1.bf16.msra.mxu0 %v5336_v51 }
 0x122   : > { %3721 = vmatpush1.bf16.msra.mxu1 %v5339_v53  ;;  %3681 = vmatprep.subr.bf16.mxu0 %v5344_v58  ;;  %v5416_v53 = vld [vmem:[%s7421_s1 + $0x4a4] ss:$16 sps:$4 sm:$0xff]  }
 0x123   : > { %3722 = vmatprep.subr.bf16.mxu1 %v5347_v59  ;;  %v5419_v58 = vld [vmem:[%s7421_s1 + $0x6a4] ss:$16 sps:$4 sm:$0xff]  }
 0x125   : > { %3682 = vmatpush1.bf16.msra.mxu0 %v5342_v60 }
 0x126   : > { %3723 = vmatpush1.bf16.msra.mxu1 %v5345_v61  ;;  %3683 = vmatprep.subr.bf16.mxu0 %v5350_v62 }
 0x127   : > { %3724 = vmatprep.subr.bf16.mxu1 %v5353_v63  ;;  %v5414_v63 = vld [vmem:[%s7421_s1 + $0x4a0] ss:$16 sps:$4 sm:$0xff]  }
 0x129   : > { %3684 = vmatpush1.bf16.msra.mxu0 %v5348_v4  ;;  %v5417_v4 = vld [vmem:[%s7421_s1 + $0x6a0] ss:$16 sps:$4 sm:$0xff]  }
 0x12a   : > { %3725 = vmatpush1.bf16.msra.mxu1 %v5351_v5  ;;  %3685 = vmatprep.subr.bf16.mxu0 %v5356_v6  ;;  %v5422_v6 = vld [vmem:[%s7421_s1 + $0x484] ss:$16 sps:$4 sm:$0xff]  }
 0x12b   : > { %3726 = vmatprep.subr.bf16.mxu1 %v5359_v7  ;;  %v5425_v7 = vld [vmem:[%s7421_s1 + $0x684] ss:$16 sps:$4 sm:$0xff]  }
 0x12d   : > { %3686 = vmatpush2.bf16.msra.mxu0 %v5354_v9  ;;  %v5420_v9 = vld [vmem:[%s7421_s1 + $0x480] ss:$16 sps:$4 sm:$0xff]  }
 0x12e   : > { %3727 = vmatpush2.bf16.msra.mxu1 %v5357_v0  ;;  %3687 = vmatprep.subr.bf16.mxu0 %v5362_v1  ;;  %v5423_v0 = vld [vmem:[%s7421_s1 + $0x680] ss:$16 sps:$4 sm:$0xff]   ;;  %v5428_v1 = vld [vmem:[%s7421_s1 + $0x464] ss:$16 sps:$4 sm:$0xff]  }
 0x12f   : > { %3728 = vmatprep.subr.bf16.mxu1 %v5365_v10  ;;  %v5431_v10 = vld [vmem:[%s7421_s1 + $0x664] ss:$16 sps:$4 sm:$0xff]  }
 0x131   : > { %3688 = vmatpush2.bf16.msra.mxu0 %v5360_v12  ;;  %v5426_v12 = vld [vmem:[%s7421_s1 + $0x460] ss:$16 sps:$4 sm:$0xff]  }
 0x132   : > { %3729 = vmatpush2.bf16.msra.mxu1 %v5363_v13  ;;  %3689 = vmatprep.subr.bf16.mxu0 %v5368_v14  ;;  %v5429_v13 = vld [vmem:[%s7421_s1 + $0x660] ss:$16 sps:$4 sm:$0xff]   ;;  %v5434_v14 = vld [vmem:[%s7421_s1 + $0x444] ss:$16 sps:$4 sm:$0xff]  }
 0x133   : > { %3730 = vmatprep.subr.bf16.mxu1 %v5371_v15  ;;  %v5437_v15 = vld [vmem:[%s7421_s1 + $0x644] ss:$16 sps:$4 sm:$0xff]  }
 0x135   : > { %3690 = vmatpush2.bf16.msra.mxu0 %v5366_v16  ;;  %v5432_v16 = vld [vmem:[%s7421_s1 + $0x440] ss:$16 sps:$4 sm:$0xff]  }
 0x136   : > { %3731 = vmatpush2.bf16.msra.mxu1 %v5369_v17  ;;  %3691 = vmatprep.subr.bf16.mxu0 %v5374_v18  ;;  %v5435_v17 = vld [vmem:[%s7421_s1 + $0x640] ss:$16 sps:$4 sm:$0xff]   ;;  %v5440_v18 = vld [vmem:[%s7421_s1 + $0x424] ss:$16 sps:$4 sm:$0xff]  }
 0x137   : > { %3732 = vmatprep.subr.bf16.mxu1 %v5377_v22  ;;  %v5443_v22 = vld [vmem:[%s7421_s1 + $0x624] ss:$16 sps:$4 sm:$0xff]  }
 0x139   : > { %3692 = vmatpush2.bf16.msra.mxu0 %v5372_v23  ;;  %v5438_v23 = vld [vmem:[%s7421_s1 + $0x420] ss:$16 sps:$4 sm:$0xff]  }
 0x13a   : > { %3733 = vmatpush2.bf16.msra.mxu1 %v5375_v19  ;;  %3693 = vmatprep.subr.bf16.mxu0 %v5380_v20  ;;  %v5441_v19 = vld [vmem:[%s7421_s1 + $0x620] ss:$16 sps:$4 sm:$0xff]   ;;  %v5446_v20 = vld [vmem:[%s7421_s1 + $0x404] ss:$16 sps:$4 sm:$0xff]  }
 0x13b   : > { %3734 = vmatprep.subr.bf16.mxu1 %v5383_v8  ;;  %v5449_v8 = vld [vmem:[%s7421_s1 + $0x604] ss:$16 sps:$4 sm:$0xff]  }
 0x13d   : > { %3694 = vmatpush2.bf16.msra.mxu0 %v5378_v11  ;;  %v5444_v11 = vld [vmem:[%s7421_s1 + $0x400] ss:$16 sps:$4 sm:$0xff]  }
 0x13e   : > { %3735 = vmatpush2.bf16.msra.mxu1 %v5381_v21  ;;  %3695 = vmatprep.subr.bf16.mxu0 %v5386_v24  ;;  %v5447_v21 = vld [vmem:[%s7421_s1 + $0x600] ss:$16 sps:$4 sm:$0xff]   ;;  %v5452_v24 = vld [vmem:[%s7421_s1 + $0x5e4] ss:$16 sps:$4 sm:$0xff]  }
 0x13f   : > { %3736 = vmatprep.subr.bf16.mxu1 %v5389_v25  ;;  %v5455_v25 = vld [vmem:[%s7421_s1 + $0x7e4] ss:$16 sps:$4 sm:$0xff]  }
 0x141   : > { %3696 = vmatpush2.bf16.msra.mxu0 %v5384_v26  ;;  %v5450_v26 = vld [vmem:[%s7421_s1 + $0x5e0] ss:$16 sps:$4 sm:$0xff]  }
 0x142   : > { %3737 = vmatpush2.bf16.msra.mxu1 %v5387_v27  ;;  %3697 = vmatprep.subr.bf16.mxu0 %v5392_v29  ;;  %v5453_v27 = vld [vmem:[%s7421_s1 + $0x7e0] ss:$16 sps:$4 sm:$0xff]   ;;  %v5458_v29 = vld [vmem:[%s7421_s1 + $0x5c4] ss:$16 sps:$4 sm:$0xff]  }
 0x143   : > { %3738 = vmatprep.subr.bf16.mxu1 %v5395_v30  ;;  %v5461_v30 = vld [vmem:[%s7421_s1 + $0x7c4] ss:$16 sps:$4 sm:$0xff]  }
 0x145   : > { %3698 = vmatpush2.bf16.msra.mxu0 %v5390_v54  ;;  %v5456_v54 = vld [vmem:[%s7421_s1 + $0x5c0] ss:$16 sps:$4 sm:$0xff]  }
 0x146   : > { %3739 = vmatpush2.bf16.msra.mxu1 %v5393_v56  ;;  %3699 = vmatprep.subr.bf16.mxu0 %v5398_v32  ;;  %v5459_v56 = vld [vmem:[%s7421_s1 + $0x7c0] ss:$16 sps:$4 sm:$0xff]   ;;  %v5464_v32 = vld [vmem:[%s7421_s1 + $0x5a4] ss:$16 sps:$4 sm:$0xff]  }
 0x147   : > { %3740 = vmatprep.subr.bf16.mxu1 %v5401_v33  ;;  %v5467_v33 = vld [vmem:[%s7421_s1 + $0x7a4] ss:$16 sps:$4 sm:$0xff]  }
 0x149   : > { %3700 = vmatpush2.bf16.msra.mxu0 %v5396_v36  ;;  %v5462_v36 = vld [vmem:[%s7421_s1 + $0x5a0] ss:$16 sps:$4 sm:$0xff]  }
 0x14a   : > { %3741 = vmatpush2.bf16.msra.mxu1 %v5399_v37  ;;  %3751 = vmatprep.subr.bf16.mxu0 %v5404_v38  ;;  %v5465_v37 = vld [vmem:[%s7421_s1 + $0x7a0] ss:$16 sps:$4 sm:$0xff]   ;;  %v5470_v38 = vld [vmem:[%s7421_s1 + $0x584] ss:$16 sps:$4 sm:$0xff]  }
 0x14b   : > { %3792 = vmatprep.subr.bf16.mxu1 %v5407_v39  ;;  %v5473_v39 = vld [vmem:[%s7421_s1 + $0x784] ss:$16 sps:$4 sm:$0xff]  }
 0x14c   : > { %v2169_v46 = vpop.f32.mrf.mxu0  ;;  %3702 = vmatmul.mubr.bf16.vlgmr.msra.gmra.mxu0 %v5914_v2 }
 0x14d   : > { %v2210_v47 = vpop.f32.mrf.mxu1  ;;  %3743 = vmatmul.mubr.bf16.vlgmr.msra.gmra.mxu1 %v5917_v3  ;;  %v2170_v49 = vadd.f32 %v2169_v46, %v6610_v28  ;;  %3752 = vmatpush1.bf16.msra.mxu0 %v5402_v40  ;;  %v5468_v40 = vld [vmem:[%s7421_s1 + $0x580] ss:$16 sps:$4 sm:$0xff]   ;;  %v5482_v46 = vld [vmem:[%s7421_s1 + $0x544] ss:$16 sps:$4 sm:$0xff]  }
 0x14e   : > { %3793 = vmatpush1.bf16.msra.mxu1 %v5405_v41  ;;  %v2171_v50 = vpop.f32.mrf.mxu0  ;;  %3753 = vmatprep.subr.bf16.mxu0 %v5410_v42  ;;  %v5471_v41 = vld [vmem:[%s7421_s1 + $0x780] ss:$16 sps:$4 sm:$0xff]   ;;  %v5476_v42 = vld [vmem:[%s7421_s1 + $0x564] ss:$16 sps:$4 sm:$0xff]  }
 0x14f   : > { %v2212_v51 = vpop.f32.mrf.mxu1  ;;  %3794 = vmatprep.subr.bf16.mxu1 %v5413_v43  ;;  %v6817_v59 = vadd.f32 %v2210_v47, %v2170_v49  ;;  %v2172_v60 = vadd.f32 %v2171_v50, %v6618_v31  ;;  %3783 = vmatprep.mubr.bf16.mxu0 %v6055_v55  ;;  %v5479_v43 = vld [vmem:[%s7421_s1 + $0x764] ss:$16 sps:$4 sm:$0xff]   ;;  %v5480_v49 = vld [vmem:[%s7421_s1 + $0x540] ss:$16 sps:$4 sm:$0xff]  }
 0x150   : > { %3824 = vmatprep.mubr.bf16.mxu1 %v6062_v57  ;;  %v2173_v28 = vpop.f32.mrf.mxu0  ;;  %v5485_v47 = vld [vmem:[%s7421_s1 + $0x744] ss:$16 sps:$4 sm:$0xff]   ;;  %v5483_v50 = vld [vmem:[%s7421_s1 + $0x740] ss:$16 sps:$4 sm:$0xff]  }
 0x151   : > { %v2214_v61 = vpop.f32.mrf.mxu1  ;;  %v6822_v62 = vadd.f32 %v2212_v51, %v2172_v60  ;;  %3754 = vmatpush1.bf16.msra.mxu0 %v5408_v44  ;;  %v5474_v44 = vld [vmem:[%s7421_s1 + $0x560] ss:$16 sps:$4 sm:$0xff]   ;;  %v5488_v51 = vld [vmem:[%s7421_s1 + $0x524] ss:$16 sps:$4 sm:$0xff]  }
 0x152   : > { %3795 = vmatpush1.bf16.msra.mxu1 %v5411_v45  ;;  %v2174_v5 = vpop.f32.mrf.mxu0  ;;  %3755 = vmatprep.subr.bf16.mxu0 %v5416_v53  ;;  %v5477_v45 = vld [vmem:[%s7421_s1 + $0x760] ss:$16 sps:$4 sm:$0xff]   ;;  %v5491_v53 = vld [vmem:[%s7421_s1 + $0x724] ss:$16 sps:$4 sm:$0xff]  }
 0x153   : > { %v2215_v31 = vpop.f32.mrf.mxu1  ;;  %3796 = vmatprep.subr.bf16.mxu1 %v5419_v58  ;;  %v5486_v58 = vld [vmem:[%s7421_s1 + $0x520] ss:$16 sps:$4 sm:$0xff]   ;;  %v5494_v28 = vld [vmem:[%s7421_s1 + $0x504] ss:$16 sps:$4 sm:$0xff]   ;;  %v5500_v5 = vld [vmem:[%s7421_s1 + $0xec] ss:$16 sps:$4 sm:$0xff]  }
 0x154   : > { %v5489_v60 = vld [vmem:[%s7421_s1 + $0x720] ss:$16 sps:$4 sm:$0xff]   ;;  %v5497_v61 = vld [vmem:[%s7421_s1 + $0x704] ss:$16 sps:$4 sm:$0xff]   ;;  %v5503_v31 = vld [vmem:[%s7421_s1 + $0x2ec] ss:$16 sps:$4 sm:$0xff]  }
 0x155   : > { %3756 = vmatpush1.bf16.msra.mxu0 %v5414_v63  ;;  %v5492_v63 = vld [vmem:[%s7421_s1 + $0x500] ss:$16 sps:$4 sm:$0xff]  }
 0x156   : > { %3797 = vmatpush1.bf16.msra.mxu1 %v5417_v4  ;;  %3757 = vmatprep.subr.bf16.mxu0 %v5422_v6  ;;  %v5495_v4 = vld [vmem:[%s7421_s1 + $0x700] ss:$16 sps:$4 sm:$0xff]   ;;  %v5498_v6 = vld [vmem:[%s7421_s1 + $0xe8] ss:$16 sps:$4 sm:$0xff]  }
 0x157   : > { %3798 = vmatprep.subr.bf16.mxu1 %v5425_v7  ;;  %v5501_v7 = vld [vmem:[%s7421_s1 + $0x2e8] ss:$16 sps:$4 sm:$0xff]  }
 0x159   : > { %3758 = vmatpush1.bf16.msra.mxu0 %v5420_v9  ;;  %v5506_v9 = vld [vmem:[%s7421_s1 + $0xcc] ss:$16 sps:$4 sm:$0xff]  }
 0x15a   : > { %3799 = vmatpush1.bf16.msra.mxu1 %v5423_v0  ;;  %3759 = vmatprep.subr.bf16.mxu0 %v5428_v1  ;;  %v5509_v0 = vld [vmem:[%s7421_s1 + $0x2cc] ss:$16 sps:$4 sm:$0xff]  }
 0x15b   : > { %3800 = vmatprep.subr.bf16.mxu1 %v5431_v10 }
 0x15d   : > { %3760 = vmatpush1.bf16.msra.mxu0 %v5426_v12 }
 0x15e   : > { %3801 = vmatpush1.bf16.msra.mxu1 %v5429_v13  ;;  %3761 = vmatprep.subr.bf16.mxu0 %v5434_v14  ;;  %v5504_v13 = vld [vmem:[%s7421_s1 + $0xc8] ss:$16 sps:$4 sm:$0xff]  }
 0x15f   : > { %3802 = vmatprep.subr.bf16.mxu1 %v5437_v15  ;;  %v5507_v14 = vld [vmem:[%s7421_s1 + $0x2c8] ss:$16 sps:$4 sm:$0xff]  }
 0x161   : > { %3762 = vmatpush1.bf16.msra.mxu0 %v5432_v16 }
 0x162   : > { %3803 = vmatpush1.bf16.msra.mxu1 %v5435_v17  ;;  %3763 = vmatprep.subr.bf16.mxu0 %v5440_v18  ;;  %v5512_v17 = vld [vmem:[%s7421_s1 + $0xac] ss:$16 sps:$4 sm:$0xff]  }
 0x163   : > { %3804 = vmatprep.subr.bf16.mxu1 %v5443_v22  ;;  %v5515_v18 = vld [vmem:[%s7421_s1 + $0x2ac] ss:$16 sps:$4 sm:$0xff]  }
 0x165   : > { %3764 = vmatpush1.bf16.msra.mxu0 %v5438_v23 }
 0x166   : > { %3805 = vmatpush1.bf16.msra.mxu1 %v5441_v19  ;;  %3765 = vmatprep.subr.bf16.mxu0 %v5446_v20  ;;  %v5510_v20 = vld [vmem:[%s7421_s1 + $0xa8] ss:$16 sps:$4 sm:$0xff]  }
 0x167   : > { %3806 = vmatprep.subr.bf16.mxu1 %v5449_v8  ;;  %v5513_v8 = vld [vmem:[%s7421_s1 + $0x2a8] ss:$16 sps:$4 sm:$0xff]  }
 0x169   : > { %3766 = vmatpush1.bf16.msra.mxu0 %v5444_v11 }
 0x16a   : > { %3807 = vmatpush1.bf16.msra.mxu1 %v5447_v21  ;;  %3767 = vmatprep.subr.bf16.mxu0 %v5452_v24  ;;  %v5516_v24 = vld [vmem:[%s7421_s1 + $0x88] ss:$16 sps:$4 sm:$0xff]  }
 0x16b   : > { %3808 = vmatprep.subr.bf16.mxu1 %v5455_v25  ;;  %v5519_v25 = vld [vmem:[%s7421_s1 + $0x288] ss:$16 sps:$4 sm:$0xff]  }
 0x16d   : > { %3768 = vmatpush2.bf16.msra.mxu0 %v5450_v26  ;;  %v5524_v26 = vld [vmem:[%s7421_s1 + $0x6c] ss:$16 sps:$4 sm:$0xff]  }
 0x16e   : > { %3809 = vmatpush2.bf16.msra.mxu1 %v5453_v27  ;;  %3769 = vmatprep.subr.bf16.mxu0 %v5458_v29  ;;  %v5527_v27 = vld [vmem:[%s7421_s1 + $0x26c] ss:$16 sps:$4 sm:$0xff]   ;;  %v5522_v29 = vld [vmem:[%s7421_s1 + $0x68] ss:$16 sps:$4 sm:$0xff]  }
 0x16f   : > { %3810 = vmatprep.subr.bf16.mxu1 %v5461_v30  ;;  %v5525_v30 = vld [vmem:[%s7421_s1 + $0x268] ss:$16 sps:$4 sm:$0xff]  }
 0x171   : > { %3770 = vmatpush2.bf16.msra.mxu0 %v5456_v54  ;;  %v5530_v54 = vld [vmem:[%s7421_s1 + $0x4c] ss:$16 sps:$4 sm:$0xff]  }
 0x172   : > { %3811 = vmatpush2.bf16.msra.mxu1 %v5459_v56  ;;  %3771 = vmatprep.subr.bf16.mxu0 %v5464_v32  ;;  %v5533_v56 = vld [vmem:[%s7421_s1 + $0x24c] ss:$16 sps:$4 sm:$0xff]   ;;  %v5528_v32 = vld [vmem:[%s7421_s1 + $0x48] ss:$16 sps:$4 sm:$0xff]  }
 0x173   : > { %3812 = vmatprep.subr.bf16.mxu1 %v5467_v33  ;;  %v5531_v33 = vld [vmem:[%s7421_s1 + $0x248] ss:$16 sps:$4 sm:$0xff]  }
 0x175   : > { %3772 = vmatpush2.bf16.msra.mxu0 %v5462_v36  ;;  %v5536_v36 = vld [vmem:[%s7421_s1 + $0x2c] ss:$16 sps:$4 sm:$0xff]  }
 0x176   : > { %3813 = vmatpush2.bf16.msra.mxu1 %v5465_v37  ;;  %3773 = vmatprep.subr.bf16.mxu0 %v5470_v38  ;;  %v5539_v37 = vld [vmem:[%s7421_s1 + $0x22c] ss:$16 sps:$4 sm:$0xff]   ;;  %v5534_v38 = vld [vmem:[%s7421_s1 + $0x28] ss:$16 sps:$4 sm:$0xff]  }
 0x177   : > { %3814 = vmatprep.subr.bf16.mxu1 %v5473_v39  ;;  %v5537_v39 = vld [vmem:[%s7421_s1 + $0x228] ss:$16 sps:$4 sm:$0xff]  }
 0x179   : > { %3774 = vmatpush2.bf16.msra.mxu0 %v5468_v40  ;;  %v5542_v40 = vld [vmem:[%s7421_s1 + $0xc] ss:$16 sps:$4 sm:$0xff]  }
 0x17a   : > { %3815 = vmatpush2.bf16.msra.mxu1 %v5471_v41  ;;  %3775 = vmatprep.subr.bf16.mxu0 %v5476_v42  ;;  %v5545_v41 = vld [vmem:[%s7421_s1 + $0x20c] ss:$16 sps:$4 sm:$0xff]   ;;  %v5540_v42 = vld [vmem:[%s7421_s1 + $0x8] ss:$16 sps:$4 sm:$0xff]  }
 0x17b   : > { %3816 = vmatprep.subr.bf16.mxu1 %v5479_v43  ;;  %v5543_v43 = vld [vmem:[%s7421_s1 + $0x208] ss:$16 sps:$4 sm:$0xff]  }
 0x17d   : > { %3776 = vmatpush2.bf16.msra.mxu0 %v5474_v44  ;;  %v5548_v44 = vld [vmem:[%s7421_s1 + $0x1ec] ss:$16 sps:$4 sm:$0xff]  }
 0x17e   : > { %3817 = vmatpush2.bf16.msra.mxu1 %v5477_v45  ;;  %3777 = vmatprep.subr.bf16.mxu0 %v5482_v46  ;;  %v5551_v45 = vld [vmem:[%s7421_s1 + $0x3ec] ss:$16 sps:$4 sm:$0xff]   ;;  %v5546_v46 = vld [vmem:[%s7421_s1 + $0x1e8] ss:$16 sps:$4 sm:$0xff]  }
 0x17f   : > { %3818 = vmatprep.subr.bf16.mxu1 %v5485_v47  ;;  %v5549_v47 = vld [vmem:[%s7421_s1 + $0x3e8] ss:$16 sps:$4 sm:$0xff]  }
 0x181   : > { %3778 = vmatpush2.bf16.msra.mxu0 %v5480_v49  ;;  %v5554_v49 = vld [vmem:[%s7421_s1 + $0x1cc] ss:$16 sps:$4 sm:$0xff]  }
 0x182   : > { %3819 = vmatpush2.bf16.msra.mxu1 %v5483_v50  ;;  %3779 = vmatprep.subr.bf16.mxu0 %v5488_v51  ;;  %v5557_v50 = vld [vmem:[%s7421_s1 + $0x3cc] ss:$16 sps:$4 sm:$0xff]   ;;  %v5552_v51 = vld [vmem:[%s7421_s1 + $0x1c8] ss:$16 sps:$4 sm:$0xff]  }
 0x183   : > { %3820 = vmatprep.subr.bf16.mxu1 %v5491_v53  ;;  %v5555_v53 = vld [vmem:[%s7421_s1 + $0x3c8] ss:$16 sps:$4 sm:$0xff]  }
 0x185   : > { %3780 = vmatpush2.bf16.msra.mxu0 %v5486_v58  ;;  %v5560_v58 = vld [vmem:[%s7421_s1 + $0x1ac] ss:$16 sps:$4 sm:$0xff]  }
 0x186   : > { %3821 = vmatpush2.bf16.msra.mxu1 %v5489_v60  ;;  %3781 = vmatprep.subr.bf16.mxu0 %v5494_v28  ;;  %v5563_v60 = vld [vmem:[%s7421_s1 + $0x3ac] ss:$16 sps:$4 sm:$0xff]   ;;  %v5558_v28 = vld [vmem:[%s7421_s1 + $0x1a8] ss:$16 sps:$4 sm:$0xff]  }
 0x187   : > { %3822 = vmatprep.subr.bf16.mxu1 %v5497_v61  ;;  %v5561_v61 = vld [vmem:[%s7421_s1 + $0x3a8] ss:$16 sps:$4 sm:$0xff]  }
 0x189   : > { %3782 = vmatpush2.bf16.msra.mxu0 %v5492_v63  ;;  %v5566_v63 = vld [vmem:[%s7421_s1 + $0x18c] ss:$16 sps:$4 sm:$0xff]  }
 0x18a   : > { %3823 = vmatpush2.bf16.msra.mxu1 %v5495_v4  ;;  %3833 = vmatprep.subr.bf16.mxu0 %v5500_v5  ;;  %v5569_v4 = vld [vmem:[%s7421_s1 + $0x38c] ss:$16 sps:$4 sm:$0xff]   ;;  %v5564_v5 = vld [vmem:[%s7421_s1 + $0x188] ss:$16 sps:$4 sm:$0xff]  }
 0x18b   : > { %3874 = vmatprep.subr.bf16.mxu1 %v5503_v31  ;;  %v5567_v31 = vld [vmem:[%s7421_s1 + $0x388] ss:$16 sps:$4 sm:$0xff]  }
 0x18c   : > { %v2251_v1 = vpop.f32.mrf.mxu0  ;;  %3784 = vmatmul.mubr.bf16.vlgmr.msra.gmra.mxu0 %v6154_v34 }
 0x18d   : > { %v2292_v10 = vpop.f32.mrf.mxu1  ;;  %3825 = vmatmul.mubr.bf16.vlgmr.msra.gmra.mxu1 %v6158_v35  ;;  %3834 = vmatpush1.bf16.msra.mxu0 %v5498_v6  ;;  %v5572_v6 = vld [vmem:[%s7421_s1 + $0x16c] ss:$16 sps:$4 sm:$0xff]  }
 0x18e   : > { %v7006_v12 = vadd.f32 %v2292_v10, %v2251_v1  ;;  %3875 = vmatpush1.bf16.msra.mxu1 %v5501_v7  ;;  %v2253_v15 = vpop.f32.mrf.mxu0  ;;  %3835 = vmatprep.subr.bf16.mxu0 %v5506_v9  ;;  %v5575_v7 = vld [vmem:[%s7421_s1 + $0x36c] ss:$16 sps:$4 sm:$0xff]   ;;  %v5570_v9 = vld [vmem:[%s7421_s1 + $0x168] ss:$16 sps:$4 sm:$0xff]  }
 0x18f   : > { %v2294_v16 = vpop.f32.mrf.mxu1  ;;  %3876 = vmatprep.subr.bf16.mxu1 %v5509_v0  ;;  %3865 = vmatprep.mubr.bf16.mxu0 %v5880_v48  ;;  %v5518_v48 = vld [vmem:[%s7421_s1 + $0x8c] ss:$16 sps:$4 sm:$0xff]   ;;  %v5573_v0 = vld [vmem:[%s7421_s1 + $0x368] ss:$16 sps:$4 sm:$0xff]  }
 0x190   : > { %v7020_v22 = vadd.f32 %v2294_v16, %v2253_v15  ;;  %3906 = vmatprep.mubr.bf16.mxu1 %v5889_v52  ;;  %v2255_v23 = vpop.f32.mrf.mxu0  ;;  %v5521_v52 = vld [vmem:[%s7421_s1 + $0x28c] ss:$16 sps:$4 sm:$0xff]  }
 0x191   : > { %v2296_v19 = vpop.f32.mrf.mxu1  ;;  %3836 = vmatpush1.bf16.msra.mxu0 %v5504_v13  ;;  %v5578_v1 = vld [vmem:[%s7421_s1 + $0x14c] ss:$16 sps:$4 sm:$0xff]   ;;  %v5576_v13 = vld [vmem:[%s7421_s1 + $0x148] ss:$16 sps:$4 sm:$0xff]  }
 0x192   : > { %3877 = vmatpush1.bf16.msra.mxu1 %v5507_v14  ;;  %v2256_v11 = vpop.f32.mrf.mxu0  ;;  %3837 = vmatprep.subr.bf16.mxu0 %v5512_v17  ;;  %v5581_v10 = vld [vmem:[%s7421_s1 + $0x34c] ss:$16 sps:$4 sm:$0xff]   ;;  %v5579_v14 = vld [vmem:[%s7421_s1 + $0x348] ss:$16 sps:$4 sm:$0xff]  }
 0x193   : > { %v2297_v21 = vpop.f32.mrf.mxu1  ;;  %3878 = vmatprep.subr.bf16.mxu1 %v5515_v18  ;;  %v5584_v15 = vld [vmem:[%s7421_s1 + $0x12c] ss:$16 sps:$4 sm:$0xff]   ;;  %v5582_v17 = vld [vmem:[%s7421_s1 + $0x128] ss:$16 sps:$4 sm:$0xff]  }
 0x194   : > { %v5587_v16 = vld [vmem:[%s7421_s1 + $0x32c] ss:$16 sps:$4 sm:$0xff]   ;;  %v5585_v18 = vld [vmem:[%s7421_s1 + $0x328] ss:$16 sps:$4 sm:$0xff]  }
 0x195   : > { %3838 = vmatpush1.bf16.msra.mxu0 %v5510_v20  ;;  %v5590_v23 = vld [vmem:[%s7421_s1 + $0x10c] ss:$16 sps:$4 sm:$0xff]   ;;  %v5588_v20 = vld [vmem:[%s7421_s1 + $0x108] ss:$16 sps:$4 sm:$0xff]  }
 0x196   : > { %3879 = vmatpush1.bf16.msra.mxu1 %v5513_v8  ;;  %3839 = vmatprep.subr.bf16.mxu0 %v5518_v48  ;;  %v5593_v19 = vld [vmem:[%s7421_s1 + $0x30c] ss:$16 sps:$4 sm:$0xff]   ;;  %v5591_v8 = vld [vmem:[%s7421_s1 + $0x308] ss:$16 sps:$4 sm:$0xff]  }
 0x197   : > { %3880 = vmatprep.subr.bf16.mxu1 %v5521_v52  ;;  %v5596_v11 = vld [vmem:[%s7421_s1 + $0x4ec] ss:$16 sps:$4 sm:$0xff]   ;;  %v5594_v48 = vld [vmem:[%s7421_s1 + $0x4e8] ss:$16 sps:$4 sm:$0xff]  }
 0x198   : > { %v5599_v21 = vld [vmem:[%s7421_s1 + $0x6ec] ss:$16 sps:$4 sm:$0xff]   ;;  %v5597_v52 = vld [vmem:[%s7421_s1 + $0x6e8] ss:$16 sps:$4 sm:$0xff]  }
 0x199   : > { %3840 = vmatpush1.bf16.msra.mxu0 %v5516_v24  ;;  %v5602_v24 = vld [vmem:[%s7421_s1 + $0x4cc] ss:$16 sps:$4 sm:$0xff]  }
 0x19a   : > { %3881 = vmatpush1.bf16.msra.mxu1 %v5519_v25  ;;  %3841 = vmatprep.subr.bf16.mxu0 %v5524_v26  ;;  %v5605_v25 = vld [vmem:[%s7421_s1 + $0x6cc] ss:$16 sps:$4 sm:$0xff]  }
 0x19b   : > { %3882 = vmatprep.subr.bf16.mxu1 %v5527_v27 }
 0x19d   : > { %3842 = vmatpush1.bf16.msra.mxu0 %v5522_v29 }
 0x19e   : > { %3883 = vmatpush1.bf16.msra.mxu1 %v5525_v30  ;;  %3843 = vmatprep.subr.bf16.mxu0 %v5530_v54  ;;  %v5600_v30 = vld [vmem:[%s7421_s1 + $0x4c8] ss:$16 sps:$4 sm:$0xff]  }
 0x19f   : > { %3884 = vmatprep.subr.bf16.mxu1 %v5533_v56  ;;  %v5603_v54 = vld [vmem:[%s7421_s1 + $0x6c8] ss:$16 sps:$4 sm:$0xff]  }
 0x1a1   : > { %3844 = vmatpush1.bf16.msra.mxu0 %v5528_v32 }
 0x1a2   : > { %3885 = vmatpush1.bf16.msra.mxu1 %v5531_v33  ;;  %3845 = vmatprep.subr.bf16.mxu0 %v5536_v36 }
 0x1a3   : > { %3886 = vmatprep.subr.bf16.mxu1 %v5539_v37 }
 0x1a5   : > { %3846 = vmatpush1.bf16.msra.mxu0 %v5534_v38 }
 0x1a6   : > { %3887 = vmatpush1.bf16.msra.mxu1 %v5537_v39  ;;  %3847 = vmatprep.subr.bf16.mxu0 %v5542_v40  ;;  %v5606_v39 = vld [vmem:[%s7421_s1 + $0x4a8] ss:$16 sps:$4 sm:$0xff]  }
 0x1a7   : > { %3888 = vmatprep.subr.bf16.mxu1 %v5545_v41  ;;  %v5609_v40 = vld [vmem:[%s7421_s1 + $0x6a8] ss:$16 sps:$4 sm:$0xff]  }
 0x1a9   : > { %3848 = vmatpush1.bf16.msra.mxu0 %v5540_v42  ;;  %v5612_v42 = vld [vmem:[%s7421_s1 + $0x488] ss:$16 sps:$4 sm:$0xff]  }
 0x1aa   : > { %3889 = vmatpush1.bf16.msra.mxu1 %v5543_v43  ;;  %3849 = vmatprep.subr.bf16.mxu0 %v5548_v44  ;;  %v5615_v43 = vld [vmem:[%s7421_s1 + $0x688] ss:$16 sps:$4 sm:$0xff]   ;;  %v5620_v44 = vld [vmem:[%s7421_s1 + $0x46c] ss:$16 sps:$4 sm:$0xff]  }
 0x1ab   : > { %3890 = vmatprep.subr.bf16.mxu1 %v5551_v45  ;;  %v5623_v45 = vld [vmem:[%s7421_s1 + $0x66c] ss:$16 sps:$4 sm:$0xff]  }
 0x1ad   : > { %3850 = vmatpush2.bf16.msra.mxu0 %v5546_v46  ;;  %v5618_v46 = vld [vmem:[%s7421_s1 + $0x468] ss:$16 sps:$4 sm:$0xff]  }
 0x1ae   : > { %3891 = vmatpush2.bf16.msra.mxu1 %v5549_v47  ;;  %3851 = vmatprep.subr.bf16.mxu0 %v5554_v49  ;;  %v5621_v47 = vld [vmem:[%s7421_s1 + $0x668] ss:$16 sps:$4 sm:$0xff]   ;;  %v5626_v49 = vld [vmem:[%s7421_s1 + $0x44c] ss:$16 sps:$4 sm:$0xff]  }
 0x1af   : > { %3892 = vmatprep.subr.bf16.mxu1 %v5557_v50  ;;  %v5629_v50 = vld [vmem:[%s7421_s1 + $0x64c] ss:$16 sps:$4 sm:$0xff]  }
 0x1b1   : > { %3852 = vmatpush2.bf16.msra.mxu0 %v5552_v51  ;;  %v5624_v51 = vld [vmem:[%s7421_s1 + $0x448] ss:$16 sps:$4 sm:$0xff]  }
 0x1b2   : > { %3893 = vmatpush2.bf16.msra.mxu1 %v5555_v53  ;;  %3853 = vmatprep.subr.bf16.mxu0 %v5560_v58  ;;  %v5627_v53 = vld [vmem:[%s7421_s1 + $0x648] ss:$16 sps:$4 sm:$0xff]   ;;  %v5632_v58 = vld [vmem:[%s7421_s1 + $0x42c] ss:$16 sps:$4 sm:$0xff]  }
 0x1b3   : > { %3894 = vmatprep.subr.bf16.mxu1 %v5563_v60  ;;  %v5635_v60 = vld [vmem:[%s7421_s1 + $0x62c] ss:$16 sps:$4 sm:$0xff]  }
 0x1b5   : > { %3854 = vmatpush2.bf16.msra.mxu0 %v5558_v28  ;;  %v5630_v28 = vld [vmem:[%s7421_s1 + $0x428] ss:$16 sps:$4 sm:$0xff]  }
 0x1b6   : > { %3895 = vmatpush2.bf16.msra.mxu1 %v5561_v61  ;;  %3855 = vmatprep.subr.bf16.mxu0 %v5566_v63  ;;  %v5633_v61 = vld [vmem:[%s7421_s1 + $0x628] ss:$16 sps:$4 sm:$0xff]   ;;  %v5638_v63 = vld [vmem:[%s7421_s1 + $0x40c] ss:$16 sps:$4 sm:$0xff]  }
 0x1b7   : > { %3896 = vmatprep.subr.bf16.mxu1 %v5569_v4  ;;  %v5641_v4 = vld [vmem:[%s7421_s1 + $0x60c] ss:$16 sps:$4 sm:$0xff]  }
 0x1b9   : > { %3856 = vmatpush2.bf16.msra.mxu0 %v5564_v5  ;;  %v5636_v5 = vld [vmem:[%s7421_s1 + $0x408] ss:$16 sps:$4 sm:$0xff]  }
 0x1ba   : > { %3897 = vmatpush2.bf16.msra.mxu1 %v5567_v31  ;;  %3857 = vmatprep.subr.bf16.mxu0 %v5572_v6  ;;  %v5639_v31 = vld [vmem:[%s7421_s1 + $0x608] ss:$16 sps:$4 sm:$0xff]   ;;  %v5644_v6 = vld [vmem:[%s7421_s1 + $0x5ec] ss:$16 sps:$4 sm:$0xff]  }
 0x1bb   : > { %3898 = vmatprep.subr.bf16.mxu1 %v5575_v7  ;;  %v5647_v7 = vld [vmem:[%s7421_s1 + $0x7ec] ss:$16 sps:$4 sm:$0xff]  }
 0x1bd   : > { %3858 = vmatpush2.bf16.msra.mxu0 %v5570_v9  ;;  %v5642_v9 = vld [vmem:[%s7421_s1 + $0x5e8] ss:$16 sps:$4 sm:$0xff]  }
 0x1be   : > { %3899 = vmatpush2.bf16.msra.mxu1 %v5573_v0  ;;  %3859 = vmatprep.subr.bf16.mxu0 %v5578_v1  ;;  %v5645_v0 = vld [vmem:[%s7421_s1 + $0x7e8] ss:$16 sps:$4 sm:$0xff]   ;;  %v5650_v1 = vld [vmem:[%s7421_s1 + $0x5cc] ss:$16 sps:$4 sm:$0xff]  }
 0x1bf   : > { %3900 = vmatprep.subr.bf16.mxu1 %v5581_v10  ;;  %v5653_v10 = vld [vmem:[%s7421_s1 + $0x7cc] ss:$16 sps:$4 sm:$0xff]  }
 0x1c1   : > { %3860 = vmatpush2.bf16.msra.mxu0 %v5576_v13  ;;  %v5648_v13 = vld [vmem:[%s7421_s1 + $0x5c8] ss:$16 sps:$4 sm:$0xff]  }
 0x1c2   : > { %3901 = vmatpush2.bf16.msra.mxu1 %v5579_v14  ;;  %3861 = vmatprep.subr.bf16.mxu0 %v5584_v15  ;;  %v5651_v14 = vld [vmem:[%s7421_s1 + $0x7c8] ss:$16 sps:$4 sm:$0xff]   ;;  %v5656_v15 = vld [vmem:[%s7421_s1 + $0x5ac] ss:$16 sps:$4 sm:$0xff]  }
 0x1c3   : > { %3902 = vmatprep.subr.bf16.mxu1 %v5587_v16  ;;  %v5659_v16 = vld [vmem:[%s7421_s1 + $0x7ac] ss:$16 sps:$4 sm:$0xff]  }
 0x1c5   : > { %3862 = vmatpush2.bf16.msra.mxu0 %v5582_v17  ;;  %v5654_v17 = vld [vmem:[%s7421_s1 + $0x5a8] ss:$16 sps:$4 sm:$0xff]  }
 0x1c6   : > { %3903 = vmatpush2.bf16.msra.mxu1 %v5585_v18  ;;  %3863 = vmatprep.subr.bf16.mxu0 %v5590_v23  ;;  %v5657_v18 = vld [vmem:[%s7421_s1 + $0x7a8] ss:$16 sps:$4 sm:$0xff]   ;;  %v5662_v23 = vld [vmem:[%s7421_s1 + $0x58c] ss:$16 sps:$4 sm:$0xff]  }
 0x1c7   : > { %3904 = vmatprep.subr.bf16.mxu1 %v5593_v19  ;;  %v5665_v19 = vld [vmem:[%s7421_s1 + $0x78c] ss:$16 sps:$4 sm:$0xff]  }
 0x1c9   : > { %3864 = vmatpush2.bf16.msra.mxu0 %v5588_v20  ;;  %v5660_v20 = vld [vmem:[%s7421_s1 + $0x588] ss:$16 sps:$4 sm:$0xff]  }
 0x1ca   : > { %3905 = vmatpush2.bf16.msra.mxu1 %v5591_v8  ;;  %3915 = vmatprep.subr.bf16.mxu0 %v5596_v11  ;;  %v5663_v8 = vld [vmem:[%s7421_s1 + $0x788] ss:$16 sps:$4 sm:$0xff]   ;;  %v5668_v11 = vld [vmem:[%s7421_s1 + $0x56c] ss:$16 sps:$4 sm:$0xff]  }
 0x1cb   : > { %3956 = vmatprep.subr.bf16.mxu1 %v5599_v21  ;;  %v5671_v21 = vld [vmem:[%s7421_s1 + $0x76c] ss:$16 sps:$4 sm:$0xff]  }
 0x1cc   : > { %v2333_v26 = vpop.f32.mrf.mxu0  ;;  %3866 = vmatmul.mubr.bf16.vlgmr.msra.gmra.mxu0 %v5914_v2  ;;  %v5608_v2 = vld [vmem:[%s7421_s1 + $0x4ac] ss:$16 sps:$4 sm:$0xff]  }
 0x1cd   : > { %v2374_v27 = vpop.f32.mrf.mxu1  ;;  %3907 = vmatmul.mubr.bf16.vlgmr.msra.gmra.mxu1 %v5917_v3  ;;  %v2334_v29 = vadd.f32 %v2333_v26, %v7006_v12  ;;  %3916 = vmatpush1.bf16.msra.mxu0 %v5594_v48  ;;  %v5611_v3 = vld [vmem:[%s7421_s1 + $0x6ac] ss:$16 sps:$4 sm:$0xff]   ;;  %v5666_v48 = vld [vmem:[%s7421_s1 + $0x568] ss:$16 sps:$4 sm:$0xff]  }
 0x1ce   : > { %3957 = vmatpush1.bf16.msra.mxu1 %v5597_v52  ;;  %v2335_v56 = vpop.f32.mrf.mxu0  ;;  %3917 = vmatprep.subr.bf16.mxu0 %v5602_v24  ;;  %v5669_v52 = vld [vmem:[%s7421_s1 + $0x768] ss:$16 sps:$4 sm:$0xff]   ;;  %v5674_v24 = vld [vmem:[%s7421_s1 + $0x54c] ss:$16 sps:$4 sm:$0xff]  }
 0x1cf   : > { %v2376_v32 = vpop.f32.mrf.mxu1  ;;  %3958 = vmatprep.subr.bf16.mxu1 %v5605_v25  ;;  %v7219_v12 = vadd.f32 %v2374_v27, %v2334_v29  ;;  %v2336_v33 = vadd.f32 %v2335_v56, %v7020_v22  ;;  %3947 = vmatprep.mubr.bf16.mxu0 %v6055_v55  ;;  %v5614_v55 = vld [vmem:[%s7421_s1 + $0x48c] ss:$16 sps:$4 sm:$0xff]   ;;  %v5672_v26 = vld [vmem:[%s7421_s1 + $0x548] ss:$16 sps:$4 sm:$0xff]  }
 0x1d0   : > { %3988 = vmatprep.mubr.bf16.mxu1 %v6062_v57  ;;  %v2337_v36 = vpop.f32.mrf.mxu0  ;;  %v5617_v57 = vld [vmem:[%s7421_s1 + $0x68c] ss:$16 sps:$4 sm:$0xff]   ;;  %v5675_v27 = vld [vmem:[%s7421_s1 + $0x748] ss:$16 sps:$4 sm:$0xff]  }
 0x1d1   : > { %v2378_v37 = vpop.f32.mrf.mxu1  ;;  %v7224_v38 = vadd.f32 %v2376_v32, %v2336_v33  ;;  %3918 = vmatpush1.bf16.msra.mxu0 %v5600_v30  ;;  %v5677_v25 = vld [vmem:[%s7421_s1 + $0x74c] ss:$16 sps:$4 sm:$0xff]   ;;  %v5681_v56 = vld [vmem:[%s7421_s1 + $0x728] ss:$16 sps:$4 sm:$0xff]  }
 0x1d2   : > { %3959 = vmatpush1.bf16.msra.mxu1 %v5603_v54  ;;  %v2338_v41 = vpop.f32.mrf.mxu0  ;;  %3919 = vmatprep.subr.bf16.mxu0 %v5608_v2  ;;  %v5680_v29 = vld [vmem:[%s7421_s1 + $0x52c] ss:$16 sps:$4 sm:$0xff]   ;;  %v5678_v54 = vld [vmem:[%s7421_s1 + $0x528] ss:$16 sps:$4 sm:$0xff]  }
 0x1d3   : > { %v2379_v22 = vpop.f32.mrf.mxu1  ;;  %3960 = vmatprep.subr.bf16.mxu1 %v5611_v3  ;;  %v5683_v30 = vld [vmem:[%s7421_s1 + $0x72c] ss:$16 sps:$4 sm:$0xff]   ;;  %v5684_v3 = vld [vmem:[%s7421_s1 + $0x508] ss:$16 sps:$4 sm:$0xff]  }
 0x1d4   : > { %v5686_v32 = vld [vmem:[%s7421_s1 + $0x50c] ss:$16 sps:$4 sm:$0xff]   ;;  %v5687_v33 = vld [vmem:[%s7421_s1 + $0x708] ss:$16 sps:$4 sm:$0xff]  }
 0x1d5   : > { %3920 = vmatpush1.bf16.msra.mxu0 %v5606_v39  ;;  %v5689_v2 = vld [vmem:[%s7421_s1 + $0x70c] ss:$16 sps:$4 sm:$0xff]  }
 0x1d6   : > { %3961 = vmatpush1.bf16.msra.mxu1 %v5609_v40  ;;  %3921 = vmatprep.subr.bf16.mxu0 %v5614_v55 }
 0x1d7   : > { %3962 = vmatprep.subr.bf16.mxu1 %v5617_v57 }
 0x1d9   : > { %3922 = vmatpush1.bf16.msra.mxu0 %v5612_v42 }
 0x1da   : > { %3963 = vmatpush1.bf16.msra.mxu1 %v5615_v43  ;;  %3923 = vmatprep.subr.bf16.mxu0 %v5620_v44  ;;  %v3998_v44 = vlaneseq }
 0x1db   : > { %3964 = vmatprep.subr.bf16.mxu1 %v5623_v45 }
 0x1dc   : > { %v3999_v45 = vshrl.u32 %v3998_v44, 7 }
 0x1dd   : > { %3924 = vmatpush1.bf16.msra.mxu0 %v5618_v46 }
 0x1de   : > { %3965 = vmatpush1.bf16.msra.mxu1 %v5621_v47  ;;  %3925 = vmatprep.subr.bf16.mxu0 %v5626_v49  ;;  %v4000_v47 = vsub.s32 0, %v3999_v45 }
 0x1df   : > { %3966 = vmatprep.subr.bf16.mxu1 %v5629_v50 }
 0x1e1   : > { %3926 = vmatpush1.bf16.msra.mxu0 %v5624_v51 }
 0x1e2   : > { %3967 = vmatpush1.bf16.msra.mxu1 %v5627_v53  ;;  %3927 = vmatprep.subr.bf16.mxu0 %v5632_v58 }
 0x1e3   : > { %3968 = vmatprep.subr.bf16.mxu1 %v5635_v60 }
 0x1e5   : > { %3928 = vmatpush1.bf16.msra.mxu0 %v5630_v28 }
 0x1e6   : > { %3969 = vmatpush1.bf16.msra.mxu1 %v5633_v61  ;;  %3929 = vmatprep.subr.bf16.mxu0 %v5638_v63 }
 0x1e7   : > { %3970 = vmatprep.subr.bf16.mxu1 %v5641_v4 }
 0x1e9   : > { %3930 = vmatpush1.bf16.msra.mxu0 %v5636_v5 }
 0x1ea   : > { %3971 = vmatpush1.bf16.msra.mxu1 %v5639_v31  ;;  %3931 = vmatprep.subr.bf16.mxu0 %v5644_v6 }
 0x1eb   : > { %3972 = vmatprep.subr.bf16.mxu1 %v5647_v7 }
 0x1ed   : > { %3932 = vmatpush2.bf16.msra.mxu0 %v5642_v9 }
 0x1ee   : > { %3973 = vmatpush2.bf16.msra.mxu1 %v5645_v0  ;;  %3933 = vmatprep.subr.bf16.mxu0 %v5650_v1 }
 0x1ef   : > { %3974 = vmatprep.subr.bf16.mxu1 %v5653_v10 }
 0x1f1   : > { %3934 = vmatpush2.bf16.msra.mxu0 %v5648_v13  ;;  %v4049_v13 = vld [vmem:[%s7403_s25] sm:$0xff] }
 0x1f2   : > { %3975 = vmatpush2.bf16.msra.mxu1 %v5651_v14  ;;  %3935 = vmatprep.subr.bf16.mxu0 %v5656_v15 }
 0x1f3   : > { %3976 = vmatprep.subr.bf16.mxu1 %v5659_v16 }
 0x1f5   : > { %3936 = vmatpush2.bf16.msra.mxu0 %v5654_v17 }
 0x1f6   : > { %3977 = vmatpush2.bf16.msra.mxu1 %v5657_v18  ;;  %3937 = vmatprep.subr.bf16.mxu0 %v5662_v23 }
 0x1f7   : > { %3978 = vmatprep.subr.bf16.mxu1 %v5665_v19 }
 0x1f9   : > { %3938 = vmatpush2.bf16.msra.mxu0 %v5660_v20 }
 0x1fa   : > { %3979 = vmatpush2.bf16.msra.mxu1 %v5663_v8  ;;  %3939 = vmatprep.subr.bf16.mxu0 %v5668_v11 }
 0x1fb   : > { %3980 = vmatprep.subr.bf16.mxu1 %v5671_v21 }
 0x1fd   : > { %3940 = vmatpush2.bf16.msra.mxu0 %v5666_v48 }
 0x1fe   : > { %3981 = vmatpush2.bf16.msra.mxu1 %v5669_v52  ;;  %3941 = vmatprep.subr.bf16.mxu0 %v5674_v24  ;;  %v4008_v24 = vsub.s32 2, %v3999_v45 }
 0x1ff   : > { %3982 = vmatprep.subr.bf16.mxu1 %v5677_v25  ;;  %v4012_v25 = vsub.s32 3, %v3999_v45 }
 0x201   : > { %3942 = vmatpush2.bf16.msra.mxu0 %v5672_v26 }
 0x202   : > { %3983 = vmatpush2.bf16.msra.mxu1 %v5675_v27  ;;  %3943 = vmatprep.subr.bf16.mxu0 %v5680_v29 }
 0x203   : > { %3984 = vmatprep.subr.bf16.mxu1 %v5683_v30 }
 0x205   : > { %3944 = vmatpush2.bf16.msra.mxu0 %v5678_v54 }
 0x206   : > { %3985 = vmatpush2.bf16.msra.mxu1 %v5681_v56  ;;  %3945 = vmatprep.subr.bf16.mxu0 %v5686_v32 }
 0x207   : > { %3986 = vmatprep.subr.bf16.mxu1 %v5689_v2 }
 0x209   : > { %3946 = vmatpush2.bf16.msra.mxu0 %v5684_v3 }
 0x20a   : > { %3987 = vmatpush2.bf16.msra.mxu1 %v5687_v33 }
 0x20c   : > { %v3703_v36 = vpop.f32.mrf.mxu0  ;;  %3948 = vmatmul.mubr.bf16.vlgmr.msra.gmra.mxu0 %v6154_v34  ;;  %v171_v34 = vld [vmem:[%s7422_s2] sm:$0xf] }
 0x20d   : > { %v3744_v37 = vpop.f32.mrf.mxu1  ;;  %3989 = vmatmul.mubr.bf16.vlgmr.msra.gmra.mxu1 %v6158_v35  ;;  %v3704_v39 = vadd.f32 %v3703_v36, %v6817_v59  ;;  %v4004_v35 = vsub.s32 1, %v3999_v45  ;;  %v4001_v53 = vrot.slane %v171_v34, %v4000_v47  ;;  %v4009_v54 = vrot.slane %v171_v34, %v4008_v24 }
 0x20e   : > { %v3705_v40 = vpop.f32.mrf.mxu0  ;;  %v4013_v3 = vrot.slane %v171_v34, %v4012_v25 }
 0x20f   : > { %v3746_v41 = vpop.f32.mrf.mxu1  ;;  %v3745_v22 = vadd.f32 %v3744_v37, %v3704_v39  ;;  %v3706_v46 = vadd.f32 %v3705_v40, %v6822_v62  ;;  %v4005_v28 = vrot.slane %v171_v34, %v4004_v35 }
 0x210   : > { %v3707_v55 = vpop.f32.mrf.mxu0 }
 0x211   : > { %v3748_v57 = vpop.f32.mrf.mxu1  ;;  %v3747_v50 = vadd.f32 %v3746_v41, %v3706_v46 }
 0x212   : > { %v3708_v42 = vpop.f32.mrf.mxu0  ;;  %v4055_v57 = vld [vmem:[%s7403_s25 + $0x8] sm:$0xff] }
 0x213   : > { %v3749_v43 = vpop.f32.mrf.mxu1 }
 0x24c   : > { %v3785_v49 = vpop.f32.mrf.mxu0 }
 0x24d   : > { %v3826_v59 = vpop.f32.mrf.mxu1  ;;  %v3786_v51 = vadd.f32 %v3785_v49, %v3745_v22 }
 0x24e   : > { %v3787_v58 = vpop.f32.mrf.mxu0 }
 0x24f   : > { %v3828_v60 = vpop.f32.mrf.mxu1  ;;  %v3827_v61 = vadd.f32 %v3826_v59, %v3786_v51  ;;  %v3788_v63 = vadd.f32 %v3787_v58, %v3747_v50 }
 0x250   : > { %v3789_v62 = vpop.f32.mrf.mxu0 }
 0x251   : > { %v3830_v4 = vpop.f32.mrf.mxu1  ;;  %v4018_v5 = vadd.f32 %v4001_v53, %v3827_v61  ;;  %v3829_v31 = vadd.f32 %v3828_v60, %v3788_v63 }
 0x252   : > { %v3790_v7 = vpop.f32.mrf.mxu0 }
 0x253   : > { %v3831_v9 = vpop.f32.mrf.mxu1  ;;  %v4019_v0 = vadd.f32 %v4005_v28, %v3829_v31  ;;  %v4022_v1 = vmax.f32 %v4018_v5, 0.0 }
 0x255   : > { %v4023_v10 = vmax.f32 %v4019_v0, 0.0 }
 0x257   : > { %v4904_v14 = vpack.c.bf16 %v4023_v10, %v4022_v1 }
 0x259   : > { %v4050_v15 = vsel %vm4048_vm6, %v4904_v14, %v4049_v13 }
 0x25a   : > { %4051 = vst [vmem:[%s7403_s25] sm:$0xff] %v4050_v15 }
 0x28c   : > { %v3867_v16 = vpop.f32.mrf.mxu0 }
 0x28d   : > { %v3908_v17 = vpop.f32.mrf.mxu1  ;;  %v3868_v18 = vadd.f32 %v3867_v16, %v7219_v12 }
 0x28e   : > { %v3869_v23 = vpop.f32.mrf.mxu0 }
 0x28f   : > { %v3910_v19 = vpop.f32.mrf.mxu1  ;;  %v3909_v20 = vadd.f32 %v3908_v17, %v3868_v18  ;;  %v3870_v52 = vadd.f32 %v3869_v23, %v7224_v38 }
 0x290   : > { %v3871_v8 = vpop.f32.mrf.mxu0 }
 0x291   : > { %v3912_v11 = vpop.f32.mrf.mxu1  ;;  %v3911_v29 = vadd.f32 %v3910_v19, %v3870_v52 }
 0x292   : > { %v3872_v21 = vpop.f32.mrf.mxu0 }
 0x293   : > { %v3913_v48 = vpop.f32.mrf.mxu1 }
 0x2cc   : > { %v3949_v26 = vpop.f32.mrf.mxu0 }
 0x2cd   : > { %v3990_v27 = vpop.f32.mrf.mxu1  ;;  %v3950_v30 = vadd.f32 %v3949_v26, %v3909_v20 }
 0x2ce   : > { %v3951_v56 = vpop.f32.mrf.mxu0 }
 0x2cf   : > { %v3992_v32 = vpop.f32.mrf.mxu1  ;;  %v3991_v12 = vadd.f32 %v3990_v27, %v3950_v30  ;;  %v3952_v2 = vadd.f32 %v3951_v56, %v3911_v29 }
 0x2d0   : > { %v3953_v33 = vpop.f32.mrf.mxu0 }
 0x2d1   : > { %v3994_v36 = vpop.f32.mrf.mxu1  ;;  %v4020_v37 = vadd.f32 %v4009_v54, %v3991_v12  ;;  %v3993_v39 = vadd.f32 %v3992_v32, %v3952_v2 }
 0x2d2   : > { %v3954_v38 = vpop.f32.mrf.mxu0 }
 0x2d3   : > { %v3995_v40 = vpop.f32.mrf.mxu1  ;;  %v4021_v41 = vadd.f32 %v4013_v3, %v3993_v39  ;;  %v4024_v22 = vmax.f32 %v4020_v37, 0.0 }
 0x2d5   : > { %v4025_v55 = vmax.f32 %v4021_v41, 0.0 }
 0x2d7   : > { %v4905_v42 = vpack.c.bf16 %v4025_v55, %v4024_v22 }
 0x2d9   : > { %v4056_v43 = vsel %vm4054_vm9, %v4905_v42, %v4055_v57 }
 0x2da   : > { %4057 = vst [vmem:[%s7403_s25 + $0x8] sm:$0xff] %v4056_v43 }
 0x2db PF: > { %s13_s12 = sadd.s32 1, %s5696_s12  }
 0x2dc   : > { %p10_p4 = scmp.ge.s32.totalorder %s13_s12, 4  }
 0x2de   :  { %12 = sbr.rel (!%p10_p4) target bundleno = 1 (0x1), region = 63 }

// kernel: vae_forward.8
= control target key start
LH: loop header
LB: loop body
LE: loop exit
PB: predicated region body
PF: predicated region fallthrough
CT: control target
= control target key end

     0   :  { %v2995_v21 = vmov 1966171168   ;;  %v426_v23 = vlaneseq  ;;  %vm2997_vm0 = vmmov 0   ;;  %vm1783_vm1 = vcmask 523264   ;;  %s3660_s1 = inlined_call_operand.vmem [shape: bf16[3136,40], index: 1, kind: input, shape index: {}]   ;;  %s3661_s0 = inlined_call_operand.vmem [shape: bf16[2,3136], index: 0, kind: input, shape index: {}]   ;;  %s3662_s2 = inlined_call_operand.vmem [shape: f32[1,40], index: 2, kind: input, shape index: {}]   ;;  %s3663_s3 = inlined_call_operand.vmem [shape: f32[2,40], index: 3, kind: output, shape index: {}]  }
   0x1   :  { %v2796_v0 = vld [vmem:[%s3660_s1 + $0x78] sm:$0xff]   ;;  %v2800_v4 = vld [vmem:[%s3660_s1 + $0x70] sm:$0xff]   ;;  %v2804_v8 = vld [vmem:[%s3660_s1 + $0x68] sm:$0xff]   ;;  %v424_v22 = vunpack.c.l.s4 %v2995_v21  ;;  %vm2307_vm2 = vcmask 320512  }
   0x2   :  { %v2797_v1 = vld [vmem:[%s3660_s1 + $0x38] sm:$0xff]   ;;  %2512 = vmatprep.subr.bf16.mxu0 %v2796_v0  ;;  %v2801_v5 = vld [vmem:[%s3660_s1 + $0x30] sm:$0xff]   ;;  %v2805_v9 = vld [vmem:[%s3660_s1 + $0x28] sm:$0xff]   ;;  %v427_v29 = vshrl.u32 %v426_v23, 7 }
   0x3   :  { %v2798_v2 = vld [vmem:[%s3660_s1 + $0xf8] sm:$0xff]   ;;  %2513 = vmatpush3.bf16.msra.mxu0 %v2797_v1  ;;  %v2802_v6 = vld [vmem:[%s3660_s1 + $0xf0] sm:$0xff]   ;;  %v2806_v10 = vld [vmem:[%s3660_s1 + $0xe8] sm:$0xff]   ;;  %v425_v28 = vunpack.c.0.s8 %v424_v22 }
   0x4   :  { %v2799_v3 = vld [vmem:[%s3660_s1 + $0xb8] sm:$0xff]   ;;  %2534 = vmatprep.subr.bf16.mxu1 %v2798_v2  ;;  %2514 = vmatprep.subr.bf16.mxu0 %v2800_v4  ;;  %v2803_v7 = vld [vmem:[%s3660_s1 + $0xb0] sm:$0xff]   ;;  %v2807_v11 = vld [vmem:[%s3660_s1 + $0xa8] sm:$0xff]  }
   0x5   :  { %2535 = vmatpush3.bf16.msra.mxu1 %v2799_v3  ;;  %v2808_v12 = vld [vmem:[%s3660_s1 + $0x60] sm:$0xff]   ;;  %v2812_v16 = vld [vmem:[%s3660_s1 + $0x58] sm:$0xff]   ;;  %v2816_v20 = vld [vmem:[%s3660_s1 + $0x50] sm:$0xff]   ;;  %v3105_v34 = vsub.s32 %v425_v28, %v427_v29 }
   0x6   :  { %2536 = vmatprep.subr.bf16.mxu1 %v2802_v6  ;;  %v2809_v13 = vld [vmem:[%s3660_s1 + $0x20] sm:$0xff]   ;;  %v2813_v17 = vld [vmem:[%s3660_s1 + $0x18] sm:$0xff]   ;;  %v2817_v24 = vld [vmem:[%s3660_s1 + $0x10] sm:$0xff]  }
   0x7   :  { %2515 = vmatpush3.bf16.msra.mxu0 %v2801_v5  ;;  %v2810_v14 = vld [vmem:[%s3660_s1 + $0xe0] sm:$0xff]   ;;  %v2814_v18 = vld [vmem:[%s3660_s1 + $0xd8] sm:$0xff]   ;;  %v2818_v25 = vld [vmem:[%s3660_s1 + $0xd0] sm:$0xff]  }
   0x8   :  { %2516 = vmatprep.subr.bf16.mxu0 %v2804_v8  ;;  %v2811_v15 = vld [vmem:[%s3660_s1 + $0xa0] sm:$0xff]   ;;  %v2815_v19 = vld [vmem:[%s3660_s1 + $0x98] sm:$0xff]   ;;  %v2819_v26 = vld [vmem:[%s3660_s1 + $0x90] sm:$0xff]  }
   0x9   :  { %2537 = vmatpush3.bf16.msra.mxu1 %v2803_v7  ;;  %v2820_v27 = vld [vmem:[%s3660_s1 + $0x48] sm:$0xff]   ;;  %v2824_v33 = vld [vmem:[%s3660_s1 + $0x40] sm:$0xff]   ;;  %v2829_v41 = vld [vmem:[%s3660_s1 + $0x178] sm:$0xff]  }
   0xa   :  { %2538 = vmatprep.subr.bf16.mxu1 %v2806_v10  ;;  %v2821_v30 = vld [vmem:[%s3660_s1 + $0x8] sm:$0xff]   ;;  %v2825_v35 = vld [vmem:[%s3660_s1] sm:$0xff]   ;;  %v2831_v45 = vld [vmem:[%s3660_s1 + $0x1f8] sm:$0xff]  }
   0xb   :  { %2517 = vmatpush3.bf16.msra.mxu0 %v2805_v9  ;;  %v2822_v31 = vld [vmem:[%s3660_s1 + $0xc8] sm:$0xff]   ;;  %v2826_v36 = vld [vmem:[%s3660_s1 + $0xc0] sm:$0xff]   ;;  %v2830_v47 = vld [vmem:[%s3660_s1 + $0x138] sm:$0xff]  }
   0xc   :  { %2518 = vmatprep.subr.bf16.mxu0 %v2808_v12  ;;  %v2823_v32 = vld [vmem:[%s3660_s1 + $0x88] sm:$0xff]   ;;  %v15_v37 = vld [vmem:[%s3661_s0] sm:$0xff]  ;;  %v2833_v50 = vld [vmem:[%s3660_s1 + $0x170] sm:$0xff]  }
   0xd   :  { %2539 = vmatpush3.bf16.msra.mxu1 %v2807_v11  ;;  %v422_v38 = vcombine.high %v15_v37, %v15_v37  ;;  %v429_v39 = vrot.slane %v15_v37, %v3105_v34  ;;  %v2828_v40 = vld [vmem:[%s3660_s1 + $0x80] sm:$0xff]   ;;  %v2832_v52 = vld [vmem:[%s3660_s1 + $0x1b8] sm:$0xff]   ;;  %v2835_v54 = vld [vmem:[%s3660_s1 + $0x1f0] sm:$0xff]  }
   0xe   :  { %2540 = vmatprep.subr.bf16.mxu1 %v2810_v14  ;;  %v2834_v55 = vld [vmem:[%s3660_s1 + $0x130] sm:$0xff]   ;;  %v2837_v57 = vld [vmem:[%s3660_s1 + $0x168] sm:$0xff]   ;;  %v2841_v61 = vld [vmem:[%s3660_s1 + $0x160] sm:$0xff]  }
   0xf   :  { %2519 = vmatpush3.bf16.msra.mxu0 %v2809_v13  ;;  %v437_v42 = vcombine.high %v429_v39, %v429_v39  ;;  %v445_v43 = vrot.slane %v429_v39, %v3105_v34  ;;  %v3125_v44 = vrot.slane %v422_v38, %v3105_v34  ;;  %v2836_v58 = vld [vmem:[%s3660_s1 + $0x1b0] sm:$0xff]   ;;  %v2839_v59 = vld [vmem:[%s3660_s1 + $0x1e8] sm:$0xff]   ;;  %v2843_v63 = vld [vmem:[%s3660_s1 + $0x1e0] sm:$0xff]  }
  0x10   :  { %2520 = vmatprep.subr.bf16.mxu0 %v2812_v16  ;;  %v2838_v60 = vld [vmem:[%s3660_s1 + $0x128] sm:$0xff]   ;;  %v2842_v0 = vld [vmem:[%s3660_s1 + $0x120] sm:$0xff]   ;;  %v2845_v1 = vld [vmem:[%s3660_s1 + $0x158] sm:$0xff]  }
  0x11   :  { %2541 = vmatpush3.bf16.msra.mxu1 %v2811_v15  ;;  %v459_v46 = vrot.slane %v437_v42, %v3105_v34  ;;  %v438_v48 = vcombine.high %v3125_v44, %v3125_v44  ;;  %v467_v49 = vcombine.high %v445_v43, %v445_v43  ;;  %v2840_v62 = vld [vmem:[%s3660_s1 + $0x1a8] sm:$0xff]   ;;  %v2844_v2 = vld [vmem:[%s3660_s1 + $0x1a0] sm:$0xff]   ;;  %v2847_v3 = vld [vmem:[%s3660_s1 + $0x1d8] sm:$0xff]  }
  0x12   :  { %2542 = vmatprep.subr.bf16.mxu1 %v2814_v18  ;;  %v2846_v4 = vld [vmem:[%s3660_s1 + $0x118] sm:$0xff]   ;;  %v2849_v5 = vld [vmem:[%s3660_s1 + $0x150] sm:$0xff]   ;;  %v2853_v9 = vld [vmem:[%s3660_s1 + $0x148] sm:$0xff]  }
  0x13   :  { %2521 = vmatpush3.bf16.msra.mxu0 %v2813_v17  ;;  %1819 = vmatprep.mubr.bf16.mxu0 %v459_v46  ;;  %v469_v51 = vcombine.high %v459_v46, %v459_v46  ;;  %v466_v53 = vrot.slane %v438_v48, %v3105_v34  ;;  %v2848_v6 = vld [vmem:[%s3660_s1 + $0x198] sm:$0xff]   ;;  %v2851_v7 = vld [vmem:[%s3660_s1 + $0x1d0] sm:$0xff]   ;;  %v2855_v11 = vld [vmem:[%s3660_s1 + $0x1c8] sm:$0xff]   ;;  %v452_v17 = vrot.slane %v3125_v44, %v3105_v34 }
  0x14   :  { %2522 = vmatprep.subr.bf16.mxu0 %v2816_v20  ;;  %v2850_v8 = vld [vmem:[%s3660_s1 + $0x110] sm:$0xff]   ;;  %v2854_v12 = vld [vmem:[%s3660_s1 + $0x108] sm:$0xff]   ;;  %v2857_v13 = vld [vmem:[%s3660_s1 + $0x140] sm:$0xff]  }
  0x15   :  { %2543 = vmatpush3.bf16.msra.mxu1 %v2815_v19  ;;  %1859 = vmatprep.mubr.bf16.mxu1 %v469_v51  ;;  %v470_v56 = vcombine.high %v466_v53, %v466_v53  ;;  %v2852_v10 = vld [vmem:[%s3660_s1 + $0x190] sm:$0xff]   ;;  %v2856_v14 = vld [vmem:[%s3660_s1 + $0x188] sm:$0xff]   ;;  %v2859_v15 = vld [vmem:[%s3660_s1 + $0x1c0] sm:$0xff]   ;;  %v468_v22 = vcombine.high %v452_v17, %v452_v17 }
  0x16   :  { %2544 = vmatprep.subr.bf16.mxu1 %v2818_v25  ;;  %v2858_v16 = vld [vmem:[%s3660_s1 + $0x100] sm:$0xff]   ;;  %v2861_v18 = vld [vmem:[%s3660_s1 + $0x278] sm:$0xff]   ;;  %v2865_v23 = vld [vmem:[%s3660_s1 + $0x270] sm:$0xff]  }
  0x17   :  { %2523 = vmatpush3.bf16.msra.mxu0 %v2817_v24  ;;  %v2860_v19 = vld [vmem:[%s3660_s1 + $0x180] sm:$0xff]   ;;  %v2863_v20 = vld [vmem:[%s3660_s1 + $0x2f8] sm:$0xff]   ;;  %v2867_v25 = vld [vmem:[%s3660_s1 + $0x2f0] sm:$0xff]  }
  0x18   :  { %2524 = vmatprep.subr.bf16.mxu0 %v2820_v27  ;;  %v2862_v21 = vld [vmem:[%s3660_s1 + $0x238] sm:$0xff]   ;;  %v2869_v27 = vld [vmem:[%s3660_s1 + $0x268] sm:$0xff]   ;;  %v2868_v28 = vld [vmem:[%s3660_s1 + $0x2b0] sm:$0xff]  }
  0x19   :  { %2545 = vmatpush3.bf16.msra.mxu1 %v2819_v26  ;;  %v2864_v24 = vld [vmem:[%s3660_s1 + $0x2b8] sm:$0xff]   ;;  %v2866_v26 = vld [vmem:[%s3660_s1 + $0x230] sm:$0xff]   ;;  %v2871_v29 = vld [vmem:[%s3660_s1 + $0x2e8] sm:$0xff]  }
  0x1a   :  { %2546 = vmatprep.subr.bf16.mxu1 %v2822_v31  ;;  %v2873_v31 = vld [vmem:[%s3660_s1 + $0x260] sm:$0xff]   ;;  %v2879_v38 = vld [vmem:[%s3660_s1 + $0x2d8] sm:$0xff]   ;;  %v2883_v42 = vld [vmem:[%s3660_s1 + $0x2d0] sm:$0xff]  }
  0x1b   :  { %2525 = vmatpush3.bf16.msra.mxu0 %v2821_v30  ;;  %v2870_v30 = vld [vmem:[%s3660_s1 + $0x228] sm:$0xff]   ;;  %v2876_v37 = vld [vmem:[%s3660_s1 + $0x2a0] sm:$0xff]   ;;  %v2878_v39 = vld [vmem:[%s3660_s1 + $0x218] sm:$0xff]  }
  0x1c   :  { %2526 = vmatprep.subr.bf16.mxu0 %v2824_v33  ;;  %v2875_v33 = vld [vmem:[%s3660_s1 + $0x2e0] sm:$0xff]   ;;  %v2885_v44 = vld [vmem:[%s3660_s1 + $0x248] sm:$0xff]  }
  0x1d   :  { %2547 = vmatpush3.bf16.msra.mxu1 %v2823_v32  ;;  %v2872_v32 = vld [vmem:[%s3660_s1 + $0x2a8] sm:$0xff]   ;;  %v2889_v48 = vld [vmem:[%s3660_s1 + $0x240] sm:$0xff]  }
  0x1e   :  { %2548 = vmatprep.subr.bf16.mxu1 %v2826_v36  ;;  %v2877_v36 = vld [vmem:[%s3660_s1 + $0x258] sm:$0xff]   ;;  %v2887_v46 = vld [vmem:[%s3660_s1 + $0x2c8] sm:$0xff]  }
  0x1f   :  { %2527 = vmatpush3.bf16.msra.mxu0 %v2825_v35  ;;  %v2874_v35 = vld [vmem:[%s3660_s1 + $0x220] sm:$0xff]   ;;  %v16_v51 = vld [vmem:[%s3661_s0 + $0x8] sm:$0xff] }
  0x20   :  { %2556 = vmatprep.subr.bf16.mxu0 %v2829_v41  ;;  %v2880_v41 = vld [vmem:[%s3660_s1 + $0x298] sm:$0xff]  }
  0x21   :  { %2549 = vmatpush3.bf16.msra.mxu1 %v2828_v40  ;;  %v2881_v40 = vld [vmem:[%s3660_s1 + $0x250] sm:$0xff]  }
  0x22   :  { %2578 = vmatprep.subr.bf16.mxu1 %v2831_v45  ;;  %1820 = vmatmul.mubr.bf16.vlgmr.msra.gmra.mxu0 %v445_v43  ;;  %v2882_v43 = vld [vmem:[%s3660_s1 + $0x210] sm:$0xff]  }
  0x23   :  { %2557 = vmatpush3.bf16.msra.mxu0 %v2830_v47  ;;  %1899 = vmatprep.mubr.bf16.mxu0 %v466_v53  ;;  %v2884_v45 = vld [vmem:[%s3660_s1 + $0x290] sm:$0xff]   ;;  %v2886_v47 = vld [vmem:[%s3660_s1 + $0x208] sm:$0xff]   ;;  %v478_v53 = vrot.slane %v16_v51, %v3105_v34 }
  0x24   :  { %1860 = vmatmul.mubr.bf16.vlgmr.msra.gmra.mxu1 %v467_v49  ;;  %2558 = vmatprep.subr.bf16.mxu0 %v2833_v50  ;;  %v2888_v49 = vld [vmem:[%s3660_s1 + $0x288] sm:$0xff]   ;;  %v2891_v50 = vld [vmem:[%s3660_s1 + $0x2c0] sm:$0xff]  }
  0x25   :  { %2579 = vmatpush3.bf16.msra.mxu1 %v2832_v52  ;;  %1939 = vmatprep.mubr.bf16.mxu1 %v470_v56  ;;  %v2890_v52 = vld [vmem:[%s3660_s1 + $0x200] sm:$0xff]   ;;  %v486_v56 = vcombine.high %v478_v53, %v478_v53 }
  0x26   :  { %2580 = vmatprep.subr.bf16.mxu1 %v2835_v54  ;;  %v471_v54 = vcombine.high %v16_v51, %v16_v51  ;;  %v2942_v51 = vld [vmem:[%s3660_s1 + $0x458] sm:$0xff]  }
  0x27   :  { %2559 = vmatpush3.bf16.msra.mxu0 %v2834_v55  ;;  %v2893_v55 = vld [vmem:[%s3660_s1 + $0x378] sm:$0xff]  }
  0x28   :  { %2560 = vmatprep.subr.bf16.mxu0 %v2837_v57  ;;  %v2892_v57 = vld [vmem:[%s3660_s1 + $0x280] sm:$0xff]  }
  0x29   :  { %2581 = vmatpush3.bf16.msra.mxu1 %v2836_v58  ;;  %v494_v58 = vrot.slane %v478_v53, %v3105_v34  ;;  %v2944_v53 = vld [vmem:[%s3660_s1 + $0x4d8] sm:$0xff]  }
  0x2a   :  { %2582 = vmatprep.subr.bf16.mxu1 %v2839_v59  ;;  %v3331_v59 = vrot.slane %v471_v54, %v3105_v34  ;;  %v2943_v54 = vld [vmem:[%s3660_s1 + $0x418] sm:$0xff]  }
  0x2b   :  { %2561 = vmatpush3.bf16.msra.mxu0 %v2838_v60  ;;  %v2895_v60 = vld [vmem:[%s3660_s1 + $0x3f8] sm:$0xff]  }
  0x2c   :  { %2562 = vmatprep.subr.bf16.mxu0 %v2841_v61  ;;  %v508_v61 = vrot.slane %v486_v56, %v3105_v34  ;;  %v2945_v56 = vld [vmem:[%s3660_s1 + $0x498] sm:$0xff]  }
  0x2d   :  { %2583 = vmatpush3.bf16.msra.mxu1 %v2840_v62  ;;  %v2894_v62 = vld [vmem:[%s3660_s1 + $0x338] sm:$0xff]  }
  0x2e   :  { %2584 = vmatprep.subr.bf16.mxu1 %v2843_v63  ;;  %v487_v63 = vcombine.high %v3331_v59, %v3331_v59 }
  0x2f   :  { %2563 = vmatpush3.bf16.msra.mxu0 %v2842_v0  ;;  %v516_v0 = vcombine.high %v494_v58, %v494_v58 }
  0x30   :  { %2564 = vmatprep.subr.bf16.mxu0 %v2845_v1  ;;  %v2897_v1 = vld [vmem:[%s3660_s1 + $0x370] sm:$0xff]  }
  0x31   :  { %2585 = vmatpush3.bf16.msra.mxu1 %v2844_v2  ;;  %v518_v2 = vcombine.high %v508_v61, %v508_v61 }
  0x32   :  { %2586 = vmatprep.subr.bf16.mxu1 %v2847_v3  ;;  %v2896_v3 = vld [vmem:[%s3660_s1 + $0x3b8] sm:$0xff]  }
  0x33   :  { %2565 = vmatpush3.bf16.msra.mxu0 %v2846_v4  ;;  %v515_v4 = vrot.slane %v487_v63, %v3105_v34  ;;  %v2954_v63 = vld [vmem:[%s3660_s1 + $0x440] sm:$0xff]  }
  0x34   :  { %2566 = vmatprep.subr.bf16.mxu0 %v2849_v5  ;;  %v2899_v5 = vld [vmem:[%s3660_s1 + $0x3f0] sm:$0xff]  }
  0x35   :  { %2587 = vmatpush3.bf16.msra.mxu1 %v2848_v6  ;;  %v2898_v6 = vld [vmem:[%s3660_s1 + $0x330] sm:$0xff]  }
  0x36   :  { %2588 = vmatprep.subr.bf16.mxu1 %v2851_v7  ;;  %v519_v7 = vcombine.high %v515_v4, %v515_v4 }
  0x37   :  { %2567 = vmatpush3.bf16.msra.mxu0 %v2850_v8  ;;  %v2901_v8 = vld [vmem:[%s3660_s1 + $0x368] sm:$0xff]  }
  0x38   :  { %2568 = vmatprep.subr.bf16.mxu0 %v2853_v9  ;;  %v2900_v9 = vld [vmem:[%s3660_s1 + $0x3b0] sm:$0xff]  }
  0x39   :  { %2589 = vmatpush3.bf16.msra.mxu1 %v2852_v10  ;;  %v2903_v10 = vld [vmem:[%s3660_s1 + $0x3e8] sm:$0xff]  }
  0x3a   :  { %2590 = vmatprep.subr.bf16.mxu1 %v2855_v11  ;;  %v2902_v11 = vld [vmem:[%s3660_s1 + $0x328] sm:$0xff]  }
  0x3b   :  { %2569 = vmatpush3.bf16.msra.mxu0 %v2854_v12  ;;  %v2905_v12 = vld [vmem:[%s3660_s1 + $0x360] sm:$0xff]  }
  0x3c   :  { %2570 = vmatprep.subr.bf16.mxu0 %v2857_v13  ;;  %v2904_v13 = vld [vmem:[%s3660_s1 + $0x3a8] sm:$0xff]  }
  0x3d   :  { %2591 = vmatpush3.bf16.msra.mxu1 %v2856_v14  ;;  %v2907_v14 = vld [vmem:[%s3660_s1 + $0x3e0] sm:$0xff]  }
  0x3e   :  { %2592 = vmatprep.subr.bf16.mxu1 %v2859_v15  ;;  %v2906_v15 = vld [vmem:[%s3660_s1 + $0x320] sm:$0xff]  }
  0x3f   :  { %2571 = vmatpush3.bf16.msra.mxu0 %v2858_v16  ;;  %v2909_v16 = vld [vmem:[%s3660_s1 + $0x358] sm:$0xff]  }
  0x40   :  { %2600 = vmatprep.subr.bf16.mxu0 %v2861_v18  ;;  %v2911_v18 = vld [vmem:[%s3660_s1 + $0x3d8] sm:$0xff]  }
  0x41   :  { %2593 = vmatpush3.bf16.msra.mxu1 %v2860_v19  ;;  %v2910_v19 = vld [vmem:[%s3660_s1 + $0x318] sm:$0xff]  }
  0x42   :  { %1900 = vmatmul.mubr.bf16.vlgmr.msra.gmra.mxu0 %v452_v17  ;;  %2622 = vmatprep.subr.bf16.mxu1 %v2863_v20  ;;  %v2908_v17 = vld [vmem:[%s3660_s1 + $0x3a0] sm:$0xff]   ;;  %v2913_v20 = vld [vmem:[%s3660_s1 + $0x350] sm:$0xff]  }
  0x43   :  { %2601 = vmatpush3.bf16.msra.mxu0 %v2862_v21  ;;  %1979 = vmatprep.mubr.bf16.mxu0 %v508_v61  ;;  %v2912_v21 = vld [vmem:[%s3660_s1 + $0x398] sm:$0xff]   ;;  %v2952_v61 = vld [vmem:[%s3660_s1 + $0x4c8] sm:$0xff]  }
  0x44   :  { %1940 = vmatmul.mubr.bf16.vlgmr.msra.gmra.mxu1 %v468_v22  ;;  %2602 = vmatprep.subr.bf16.mxu0 %v2865_v23  ;;  %v2915_v22 = vld [vmem:[%s3660_s1 + $0x3d0] sm:$0xff]  }
  0x45   :  { %2623 = vmatpush3.bf16.msra.mxu1 %v2864_v24  ;;  %2019 = vmatprep.mubr.bf16.mxu1 %v518_v2  ;;  %v2914_v23 = vld [vmem:[%s3660_s1 + $0x310] sm:$0xff]   ;;  %v2917_v24 = vld [vmem:[%s3660_s1 + $0x348] sm:$0xff]  }
  0x46   :  { %2624 = vmatprep.subr.bf16.mxu1 %v2867_v25  ;;  %v2916_v25 = vld [vmem:[%s3660_s1 + $0x390] sm:$0xff]  }
  0x47   :  { %2603 = vmatpush3.bf16.msra.mxu0 %v2866_v26  ;;  %v2919_v26 = vld [vmem:[%s3660_s1 + $0x3c8] sm:$0xff]   ;;  %v17_v2 = vld [vmem:[%s3661_s0 + $0x10] sm:$0xff] }
  0x48   :  { %2604 = vmatprep.subr.bf16.mxu0 %v2869_v27  ;;  %v2918_v27 = vld [vmem:[%s3660_s1 + $0x308] sm:$0xff]  }
  0x49   :  { %2625 = vmatpush3.bf16.msra.mxu1 %v2868_v28  ;;  %v2921_v28 = vld [vmem:[%s3660_s1 + $0x340] sm:$0xff]  }
  0x4a   :  { %2626 = vmatprep.subr.bf16.mxu1 %v2871_v29  ;;  %v2920_v29 = vld [vmem:[%s3660_s1 + $0x388] sm:$0xff]  }
  0x4b   :  { %2605 = vmatpush3.bf16.msra.mxu0 %v2870_v30  ;;  %v2923_v30 = vld [vmem:[%s3660_s1 + $0x3c0] sm:$0xff]  }
  0x4c   :  { %2606 = vmatprep.subr.bf16.mxu0 %v2873_v31  ;;  %v2922_v31 = vld [vmem:[%s3660_s1 + $0x300] sm:$0xff]  }
  0x4d   :  { %2627 = vmatpush3.bf16.msra.mxu1 %v2872_v32  ;;  %v501_v32 = vrot.slane %v3331_v59, %v3105_v34  ;;  %v2950_v59 = vld [vmem:[%s3660_s1 + $0x448] sm:$0xff]  }
  0x4e   :  { %2628 = vmatprep.subr.bf16.mxu1 %v2875_v33  ;;  %v2926_v33 = vld [vmem:[%s3660_s1 + $0x478] sm:$0xff]  }
  0x4f   :  { %2607 = vmatpush3.bf16.msra.mxu0 %v2874_v35  ;;  %v2925_v35 = vld [vmem:[%s3660_s1 + $0x380] sm:$0xff]  }
  0x50   :  { %2608 = vmatprep.subr.bf16.mxu0 %v2877_v36  ;;  %v2928_v36 = vld [vmem:[%s3660_s1 + $0x4f8] sm:$0xff]  }
  0x51   :  { %2629 = vmatpush3.bf16.msra.mxu1 %v2876_v37  ;;  %v2927_v37 = vld [vmem:[%s3660_s1 + $0x438] sm:$0xff]  }
  0x52   :  { %2630 = vmatprep.subr.bf16.mxu1 %v2879_v38  ;;  %v517_v38 = vcombine.high %v501_v32, %v501_v32 }
  0x53   :  { %2609 = vmatpush3.bf16.msra.mxu0 %v2878_v39  ;;  %v2930_v39 = vld [vmem:[%s3660_s1 + $0x470] sm:$0xff]  }
  0x54   :  { %2610 = vmatprep.subr.bf16.mxu0 %v2881_v40  ;;  %v2929_v40 = vld [vmem:[%s3660_s1 + $0x4b8] sm:$0xff]  }
  0x55   :  { %2631 = vmatpush3.bf16.msra.mxu1 %v2880_v41  ;;  %v2932_v41 = vld [vmem:[%s3660_s1 + $0x4f0] sm:$0xff]  }
  0x56   :  { %2632 = vmatprep.subr.bf16.mxu1 %v2883_v42  ;;  %v2931_v42 = vld [vmem:[%s3660_s1 + $0x430] sm:$0xff]  }
  0x57   :  { %2611 = vmatpush3.bf16.msra.mxu0 %v2882_v43  ;;  %v2934_v43 = vld [vmem:[%s3660_s1 + $0x468] sm:$0xff]  }
  0x58   :  { %2612 = vmatprep.subr.bf16.mxu0 %v2885_v44  ;;  %v2933_v44 = vld [vmem:[%s3660_s1 + $0x4b0] sm:$0xff]  }
  0x59   :  { %2633 = vmatpush3.bf16.msra.mxu1 %v2884_v45  ;;  %v2936_v45 = vld [vmem:[%s3660_s1 + $0x4e8] sm:$0xff]  }
  0x5a   :  { %2634 = vmatprep.subr.bf16.mxu1 %v2887_v46  ;;  %v2935_v46 = vld [vmem:[%s3660_s1 + $0x428] sm:$0xff]  }
  0x5b   :  { %2613 = vmatpush3.bf16.msra.mxu0 %v2886_v47  ;;  %v2938_v47 = vld [vmem:[%s3660_s1 + $0x460] sm:$0xff]  }
  0x5c   :  { %2614 = vmatprep.subr.bf16.mxu0 %v2889_v48  ;;  %v2937_v48 = vld [vmem:[%s3660_s1 + $0x4a8] sm:$0xff]  }
  0x5d   :  { %2635 = vmatpush3.bf16.msra.mxu1 %v2888_v49  ;;  %v2940_v49 = vld [vmem:[%s3660_s1 + $0x4e0] sm:$0xff]  }
  0x5e   :  { %2636 = vmatprep.subr.bf16.mxu1 %v2891_v50  ;;  %v2939_v50 = vld [vmem:[%s3660_s1 + $0x420] sm:$0xff]  }
  0x5f   :  { %2615 = vmatpush3.bf16.msra.mxu0 %v2890_v52  ;;  %v2941_v52 = vld [vmem:[%s3660_s1 + $0x4a0] sm:$0xff]  }
  0x60   :  { %2644 = vmatprep.subr.bf16.mxu0 %v2893_v55  ;;  %v2946_v55 = vld [vmem:[%s3660_s1 + $0x450] sm:$0xff]  }
  0x61   :  { %2637 = vmatpush3.bf16.msra.mxu1 %v2892_v57  ;;  %v2948_v57 = vld [vmem:[%s3660_s1 + $0x4d0] sm:$0xff]  }
  0x62   :  { %1980 = vmatmul.mubr.bf16.vlgmr.msra.gmra.mxu0 %v494_v58  ;;  %2666 = vmatprep.subr.bf16.mxu1 %v2895_v60  ;;  %v2947_v58 = vld [vmem:[%s3660_s1 + $0x410] sm:$0xff]  }
  0x63   :  { %2645 = vmatpush3.bf16.msra.mxu0 %v2894_v62  ;;  %2059 = vmatprep.mubr.bf16.mxu0 %v515_v4  ;;  %v2949_v60 = vld [vmem:[%s3660_s1 + $0x490] sm:$0xff]   ;;  %v2951_v62 = vld [vmem:[%s3660_s1 + $0x408] sm:$0xff]   ;;  %v527_v4 = vrot.slane %v17_v2, %v3105_v34 }
  0x64   :  { %2020 = vmatmul.mubr.bf16.vlgmr.msra.gmra.mxu1 %v516_v0  ;;  %2646 = vmatprep.subr.bf16.mxu0 %v2897_v1  ;;  %v2953_v0 = vld [vmem:[%s3660_s1 + $0x488] sm:$0xff]   ;;  %v2956_v1 = vld [vmem:[%s3660_s1 + $0x4c0] sm:$0xff]  }
  0x65   :  { %2667 = vmatpush3.bf16.msra.mxu1 %v2896_v3  ;;  %2099 = vmatprep.mubr.bf16.mxu1 %v519_v7  ;;  %v2955_v3 = vld [vmem:[%s3660_s1 + $0x400] sm:$0xff]   ;;  %v535_v7 = vcombine.high %v527_v4, %v527_v4 }
  0x66   :  { %2668 = vmatprep.subr.bf16.mxu1 %v2899_v5  ;;  %v520_v5 = vcombine.high %v17_v2, %v17_v2 }
  0x67   :  { %2647 = vmatpush3.bf16.msra.mxu0 %v2898_v6  ;;  %v2958_v6 = vld [vmem:[%s3660_s1 + $0x578] sm:$0xff]  }
  0x68   :  { %2648 = vmatprep.subr.bf16.mxu0 %v2901_v8  ;;  %v2957_v8 = vld [vmem:[%s3660_s1 + $0x480] sm:$0xff]  }
  0x69   :  { %2669 = vmatpush3.bf16.msra.mxu1 %v2900_v9  ;;  %v543_v9 = vrot.slane %v527_v4, %v3105_v34 }
  0x6a   :  { %2670 = vmatprep.subr.bf16.mxu1 %v2903_v10  ;;  %v3537_v10 = vrot.slane %v520_v5, %v3105_v34 }
  0x6b   :  { %2649 = vmatpush3.bf16.msra.mxu0 %v2902_v11  ;;  %v2960_v11 = vld [vmem:[%s3660_s1 + $0x5f8] sm:$0xff]  }
  0x6c   :  { %2650 = vmatprep.subr.bf16.mxu0 %v2905_v12  ;;  %v557_v12 = vrot.slane %v535_v7, %v3105_v34 }
  0x6d   :  { %2671 = vmatpush3.bf16.msra.mxu1 %v2904_v13  ;;  %v2959_v13 = vld [vmem:[%s3660_s1 + $0x538] sm:$0xff]  }
  0x6e   :  { %2672 = vmatprep.subr.bf16.mxu1 %v2907_v14  ;;  %v536_v14 = vcombine.high %v3537_v10, %v3537_v10 }
  0x6f   :  { %2651 = vmatpush3.bf16.msra.mxu0 %v2906_v15  ;;  %v565_v15 = vcombine.high %v543_v9, %v543_v9 }
  0x70   :  { %2652 = vmatprep.subr.bf16.mxu0 %v2909_v16  ;;  %v2962_v16 = vld [vmem:[%s3660_s1 + $0x570] sm:$0xff]  }
  0x71   :  { %2673 = vmatpush3.bf16.msra.mxu1 %v2908_v17  ;;  %v567_v17 = vcombine.high %v557_v12, %v557_v12 }
  0x72   :  { %2674 = vmatprep.subr.bf16.mxu1 %v2911_v18  ;;  %v2961_v18 = vld [vmem:[%s3660_s1 + $0x5b8] sm:$0xff]  }
  0x73   :  { %2653 = vmatpush3.bf16.msra.mxu0 %v2910_v19  ;;  %v564_v19 = vrot.slane %v536_v14, %v3105_v34 }
  0x74   :  { %2654 = vmatprep.subr.bf16.mxu0 %v2913_v20  ;;  %v2964_v20 = vld [vmem:[%s3660_s1 + $0x5f0] sm:$0xff]  }
  0x75   :  { %2675 = vmatpush3.bf16.msra.mxu1 %v2912_v21  ;;  %v2963_v21 = vld [vmem:[%s3660_s1 + $0x530] sm:$0xff]  }
  0x76   :  { %2676 = vmatprep.subr.bf16.mxu1 %v2915_v22  ;;  %v568_v22 = vcombine.high %v564_v19, %v564_v19 }
  0x77   :  { %2655 = vmatpush3.bf16.msra.mxu0 %v2914_v23  ;;  %v2966_v23 = vld [vmem:[%s3660_s1 + $0x568] sm:$0xff]  }
  0x78   :  { %2656 = vmatprep.subr.bf16.mxu0 %v2917_v24  ;;  %v2965_v24 = vld [vmem:[%s3660_s1 + $0x5b0] sm:$0xff]  }
  0x79   :  { %2677 = vmatpush3.bf16.msra.mxu1 %v2916_v25  ;;  %v2968_v25 = vld [vmem:[%s3660_s1 + $0x5e8] sm:$0xff]  }
  0x7a   :  { %2678 = vmatprep.subr.bf16.mxu1 %v2919_v26  ;;  %v2967_v26 = vld [vmem:[%s3660_s1 + $0x528] sm:$0xff]  }
  0x7b   :  { %2657 = vmatpush3.bf16.msra.mxu0 %v2918_v27  ;;  %v2970_v27 = vld [vmem:[%s3660_s1 + $0x560] sm:$0xff]  }
  0x7c   :  { %2658 = vmatprep.subr.bf16.mxu0 %v2921_v28  ;;  %v2969_v28 = vld [vmem:[%s3660_s1 + $0x5a8] sm:$0xff]  }
  0x7d   :  { %2679 = vmatpush3.bf16.msra.mxu1 %v2920_v29  ;;  %v2972_v29 = vld [vmem:[%s3660_s1 + $0x5e0] sm:$0xff]  }
  0x7e   :  { %2680 = vmatprep.subr.bf16.mxu1 %v2923_v30  ;;  %v2971_v30 = vld [vmem:[%s3660_s1 + $0x520] sm:$0xff]  }
  0x7f   :  { %2659 = vmatpush3.bf16.msra.mxu0 %v2922_v31  ;;  %v2974_v31 = vld [vmem:[%s3660_s1 + $0x558] sm:$0xff]  }
  0x80   :  { %2688 = vmatprep.subr.bf16.mxu0 %v2926_v33  ;;  %v2976_v33 = vld [vmem:[%s3660_s1 + $0x5d8] sm:$0xff]  }
  0x81   :  { %2681 = vmatpush3.bf16.msra.mxu1 %v2925_v35  ;;  %v2975_v35 = vld [vmem:[%s3660_s1 + $0x518] sm:$0xff]  }
  0x82   :  { %2060 = vmatmul.mubr.bf16.vlgmr.msra.gmra.mxu0 %v501_v32  ;;  %2710 = vmatprep.subr.bf16.mxu1 %v2928_v36  ;;  %v2973_v32 = vld [vmem:[%s3660_s1 + $0x5a0] sm:$0xff]   ;;  %v2978_v36 = vld [vmem:[%s3660_s1 + $0x550] sm:$0xff]  }
  0x83   :  { %2689 = vmatpush3.bf16.msra.mxu0 %v2927_v37  ;;  %2139 = vmatprep.mubr.bf16.mxu0 %v557_v12  ;;  %v2977_v37 = vld [vmem:[%s3660_s1 + $0x598] sm:$0xff]  }
  0x84   :  { %2100 = vmatmul.mubr.bf16.vlgmr.msra.gmra.mxu1 %v517_v38  ;;  %2690 = vmatprep.subr.bf16.mxu0 %v2930_v39  ;;  %v2980_v38 = vld [vmem:[%s3660_s1 + $0x5d0] sm:$0xff]  }
  0x85   :  { %2711 = vmatpush3.bf16.msra.mxu1 %v2929_v40  ;;  %2179 = vmatprep.mubr.bf16.mxu1 %v567_v17  ;;  %v2979_v39 = vld [vmem:[%s3660_s1 + $0x510] sm:$0xff]   ;;  %v2982_v40 = vld [vmem:[%s3660_s1 + $0x548] sm:$0xff]  }
  0x86   :  { %2712 = vmatprep.subr.bf16.mxu1 %v2932_v41  ;;  %v2981_v41 = vld [vmem:[%s3660_s1 + $0x590] sm:$0xff]  }
  0x87   :  { %2691 = vmatpush3.bf16.msra.mxu0 %v2931_v42  ;;  %v2984_v42 = vld [vmem:[%s3660_s1 + $0x5c8] sm:$0xff]  }
  0x88   :  { %2692 = vmatprep.subr.bf16.mxu0 %v2934_v43  ;;  %v2983_v43 = vld [vmem:[%s3660_s1 + $0x508] sm:$0xff]  }
  0x89   :  { %2713 = vmatpush3.bf16.msra.mxu1 %v2933_v44  ;;  %v2986_v44 = vld [vmem:[%s3660_s1 + $0x540] sm:$0xff]  }
  0x8a   :  { %2714 = vmatprep.subr.bf16.mxu1 %v2936_v45  ;;  %v2985_v45 = vld [vmem:[%s3660_s1 + $0x588] sm:$0xff]  }
  0x8b   :  { %2693 = vmatpush3.bf16.msra.mxu0 %v2935_v46  ;;  %v2988_v46 = vld [vmem:[%s3660_s1 + $0x5c0] sm:$0xff]  }
  0x8c   :  { %2694 = vmatprep.subr.bf16.mxu0 %v2938_v47  ;;  %v2987_v47 = vld [vmem:[%s3660_s1 + $0x500] sm:$0xff]  }
  0x8d   :  { %2715 = vmatpush3.bf16.msra.mxu1 %v2937_v48  ;;  %v550_v48 = vrot.slane %v3537_v10, %v3105_v34 }
  0x8e   :  { %2716 = vmatprep.subr.bf16.mxu1 %v2940_v49  ;;  %v2990_v49 = vld [vmem:[%s3660_s1 + $0x580] sm:$0xff]  }
  0x8f   :  { %2695 = vmatpush3.bf16.msra.mxu0 %v2939_v50  ;;  %v2991_v50 = vld [vmem:[%s3660_s1 + $0x618] sm:$0xff]  }
  0x90   :  { %2696 = vmatprep.subr.bf16.mxu0 %v2942_v51  ;;  %v2996_v51 = vmov 0.0  }
  0x91   :  { %2717 = vmatpush3.bf16.msra.mxu1 %v2941_v52  ;;  %v566_v52 = vcombine.high %v550_v48, %v550_v48 }
  0x92   :  { %2718 = vmatprep.subr.bf16.mxu1 %v2944_v53  ;;  %v2992_v53 = vld [vmem:[%s3660_s1 + $0x610] sm:$0xff]  }
  0x93   :  { %2697 = vmatpush3.bf16.msra.mxu0 %v2943_v54  ;;  %v2993_v54 = vld [vmem:[%s3660_s1 + $0x608] sm:$0xff]  }
  0x94   :  { %2698 = vmatprep.subr.bf16.mxu0 %v2946_v55  ;;  %v2994_v55 = vld [vmem:[%s3660_s1 + $0x600] sm:$0xff]  }
  0x95   :  { %2719 = vmatpush3.bf16.msra.mxu1 %v2945_v56  ;;  %v2314_v56 = vld.sshfl [vmem:[%s3661_s0 + $0x18] sm:$0x1 pattern:$0x75316420] }
  0x96   :  { %2720 = vmatprep.subr.bf16.mxu1 %v2948_v57  ;;  %v582_v57 = vrot.slane %v2314_v56, %v3105_v34 }
  0x97   :  { %2699 = vmatpush3.bf16.msra.mxu0 %v2947_v58 }
  0x98   :  { %2700 = vmatprep.subr.bf16.mxu0 %v2950_v59  ;;  %v2313_v59 = vld [vmem:[%s3662_s2] ss:$0 sm:$0xff] }
  0x99   :  { %2721 = vmatpush3.bf16.msra.mxu1 %v2949_v60 }
  0x9a   :  { %2722 = vmatprep.subr.bf16.mxu1 %v2952_v61 }
  0x9b   :  { %2701 = vmatpush3.bf16.msra.mxu0 %v2951_v62 }
  0x9c   :  { %2702 = vmatprep.subr.bf16.mxu0 %v2954_v63 }
  0x9d   :  { %2723 = vmatpush3.bf16.msra.mxu1 %v2953_v0 }
  0x9e   :  { %2724 = vmatprep.subr.bf16.mxu1 %v2956_v1 }
  0x9f   :  { %2703 = vmatpush3.bf16.msra.mxu0 %v2955_v3 }
  0xa0   :  { %2732 = vmatprep.subr.bf16.mxu0 %v2958_v6 }
  0xa1   :  { %2725 = vmatpush3.bf16.msra.mxu1 %v2957_v8 }
  0xa2   :  { %2140 = vmatmul.mubr.bf16.vlgmr.msra.gmra.mxu0 %v543_v9  ;;  %2754 = vmatprep.subr.bf16.mxu1 %v2960_v11 }
  0xa3   :  { %2733 = vmatpush3.bf16.msra.mxu0 %v2959_v13  ;;  %2219 = vmatprep.mubr.bf16.mxu0 %v564_v19 }
  0xa4   :  { %2180 = vmatmul.mubr.bf16.vlgmr.msra.gmra.mxu1 %v565_v15  ;;  %2734 = vmatprep.subr.bf16.mxu0 %v2962_v16 }
  0xa5   :  { %2755 = vmatpush3.bf16.msra.mxu1 %v2961_v18  ;;  %2259 = vmatprep.mubr.bf16.mxu1 %v568_v22 }
  0xa6   :  { %2756 = vmatprep.subr.bf16.mxu1 %v2964_v20 }
  0xa7   :  { %2735 = vmatpush3.bf16.msra.mxu0 %v2963_v21 }
  0xa8   :  { %2736 = vmatprep.subr.bf16.mxu0 %v2966_v23 }
  0xa9   :  { %2757 = vmatpush3.bf16.msra.mxu1 %v2965_v24 }
  0xaa   :  { %2758 = vmatprep.subr.bf16.mxu1 %v2968_v25 }
  0xab   :  { %2737 = vmatpush3.bf16.msra.mxu0 %v2967_v26 }
  0xac   :  { %2738 = vmatprep.subr.bf16.mxu0 %v2970_v27 }
  0xad   :  { %2759 = vmatpush3.bf16.msra.mxu1 %v2969_v28 }
  0xae   :  { %2760 = vmatprep.subr.bf16.mxu1 %v2972_v29 }
  0xaf   :  { %2739 = vmatpush3.bf16.msra.mxu0 %v2971_v30 }
  0xb0   :  { %2740 = vmatprep.subr.bf16.mxu0 %v2974_v31 }
  0xb1   :  { %2761 = vmatpush3.bf16.msra.mxu1 %v2973_v32 }
  0xb2   :  { %2762 = vmatprep.subr.bf16.mxu1 %v2976_v33 }
  0xb3   :  { %2741 = vmatpush3.bf16.msra.mxu0 %v2975_v35 }
  0xb4   :  { %2742 = vmatprep.subr.bf16.mxu0 %v2978_v36 }
  0xb5   :  { %2763 = vmatpush3.bf16.msra.mxu1 %v2977_v37 }
  0xb6   :  { %2764 = vmatprep.subr.bf16.mxu1 %v2980_v38 }
  0xb7   :  { %2743 = vmatpush3.bf16.msra.mxu0 %v2979_v39 }
  0xb8   :  { %2744 = vmatprep.subr.bf16.mxu0 %v2982_v40 }
  0xb9   :  { %2765 = vmatpush3.bf16.msra.mxu1 %v2981_v41 }
  0xba   :  { %2766 = vmatprep.subr.bf16.mxu1 %v2984_v42 }
  0xbb   :  { %2745 = vmatpush3.bf16.msra.mxu0 %v2983_v43 }
  0xbc   :  { %2746 = vmatprep.subr.bf16.mxu0 %v2986_v44 }
  0xbd   :  { %2767 = vmatpush3.bf16.msra.mxu1 %v2985_v45 }
  0xbe   :  { %2768 = vmatprep.subr.bf16.mxu1 %v2988_v46 }
  0xbf   :  { %2747 = vmatpush3.bf16.msra.mxu0 %v2987_v47 }
  0xc0   :  { %2781 = vmatprep.subr.bf16.mxu0 %v2996_v51 }
  0xc1   :  { %2769 = vmatpush3.bf16.msra.mxu1 %v2990_v49 }
  0xc2   :  { %2220 = vmatmul.mubr.bf16.vlgmr.msra.gmra.mxu0 %v550_v48 }
  0xc3   :  { %2782 = vmatpush3.bf16.msra.mxu0 %v2991_v50  ;;  %2789 = vmatprep.mubr.msk.bf16.mxu0 %vm2997_vm0, %v2996_v51 }
  0xc4   :  { %2260 = vmatmul.mubr.bf16.vlgmr.msra.gmra.mxu1 %v566_v52  ;;  %2783 = vmatprep.subr.bf16.mxu0 %v2996_v51 }
  0xc7   :  { %2784 = vmatpush3.bf16.msra.mxu0 %v2992_v53 }
  0xc8   :  { %2785 = vmatprep.subr.bf16.mxu0 %v2996_v51 }
  0xcb   :  { %2786 = vmatpush3.bf16.msra.mxu0 %v2993_v54 }
  0xcc   :  { %2787 = vmatprep.subr.bf16.mxu0 %v2996_v51 }
  0xcf   :  { %2788 = vmatpush3.bf16.msra.mxu0 %v2994_v55 }
  0xd2   :  { %2790 = vmatmul.mubr.msk.bf16.vlgmr.msra.gmra.mxu0 %vm1783_vm1, %v582_v57 }
  0xe2   :  { %v2528_v58 = vpop.f32.mrf.mxu0 }
  0xe4   :  { %v2529_v60 = vpop.f32.mrf.mxu0  ;;  %v2550_v61 = vpop.f32.mrf.mxu1 }
  0xe5   :  { %v2530_v62 = vadd.f32 %v2529_v60, %v2528_v58 }
  0xe6   :  { %v2531_v63 = vpop.f32.mrf.mxu0  ;;  %v2551_v0 = vpop.f32.mrf.mxu1 }
  0xe7   :  { %v1822_v1 = vadd.f32 %v2530_v62, %v2313_v59  ;;  %v2552_v2 = vadd.f32 %v2551_v0, %v2550_v61 }
  0xe8   :  { %v2532_v3 = vpop.f32.mrf.mxu0  ;;  %v2553_v4 = vpop.f32.mrf.mxu1 }
  0xe9   :  { %v1862_v5 = vadd.f32 %v2552_v2, %v1822_v1 }
  0xea   :  { %v2554_v6 = vpop.f32.mrf.mxu1 }
 0x102   :  { %v2572_v34 = vpop.f32.mrf.mxu0 }
 0x104   :  { %v2573_v7 = vpop.f32.mrf.mxu0  ;;  %v2594_v8 = vpop.f32.mrf.mxu1 }
 0x105   :  { %v2574_v9 = vadd.f32 %v2573_v7, %v2572_v34 }
 0x106   :  { %v2575_v10 = vpop.f32.mrf.mxu0  ;;  %v2595_v11 = vpop.f32.mrf.mxu1 }
 0x107   :  { %v1902_v12 = vadd.f32 %v2574_v9, %v1862_v5  ;;  %v2596_v13 = vadd.f32 %v2595_v11, %v2594_v8 }
 0x108   :  { %v2576_v14 = vpop.f32.mrf.mxu0  ;;  %v2597_v15 = vpop.f32.mrf.mxu1 }
 0x109   :  { %v1942_v16 = vadd.f32 %v2596_v13, %v1902_v12 }
 0x10a   :  { %v2598_v17 = vpop.f32.mrf.mxu1 }
 0x122   :  { %v2616_v18 = vpop.f32.mrf.mxu0 }
 0x124   :  { %v2617_v19 = vpop.f32.mrf.mxu0  ;;  %v2638_v20 = vpop.f32.mrf.mxu1 }
 0x125   :  { %v2618_v21 = vadd.f32 %v2617_v19, %v2616_v18 }
 0x126   :  { %v2619_v22 = vpop.f32.mrf.mxu0  ;;  %v2639_v23 = vpop.f32.mrf.mxu1 }
 0x127   :  { %v1982_v24 = vadd.f32 %v2618_v21, %v1942_v16  ;;  %v2640_v25 = vadd.f32 %v2639_v23, %v2638_v20 }
 0x128   :  { %v2620_v26 = vpop.f32.mrf.mxu0  ;;  %v2641_v27 = vpop.f32.mrf.mxu1 }
 0x129   :  { %v2022_v28 = vadd.f32 %v2640_v25, %v1982_v24 }
 0x12a   :  { %v2642_v29 = vpop.f32.mrf.mxu1 }
 0x142   :  { %v2660_v30 = vpop.f32.mrf.mxu0 }
 0x144   :  { %v2661_v31 = vpop.f32.mrf.mxu0  ;;  %v2682_v32 = vpop.f32.mrf.mxu1 }
 0x145   :  { %v2662_v33 = vadd.f32 %v2661_v31, %v2660_v30 }
 0x146   :  { %v2663_v35 = vpop.f32.mrf.mxu0  ;;  %v2683_v36 = vpop.f32.mrf.mxu1 }
 0x147   :  { %v2062_v37 = vadd.f32 %v2662_v33, %v2022_v28  ;;  %v2684_v38 = vadd.f32 %v2683_v36, %v2682_v32 }
 0x148   :  { %v2664_v39 = vpop.f32.mrf.mxu0  ;;  %v2685_v40 = vpop.f32.mrf.mxu1 }
 0x149   :  { %v2102_v41 = vadd.f32 %v2684_v38, %v2062_v37 }
 0x14a   :  { %v2686_v42 = vpop.f32.mrf.mxu1 }
 0x162   :  { %v2704_v43 = vpop.f32.mrf.mxu0 }
 0x164   :  { %v2705_v44 = vpop.f32.mrf.mxu0  ;;  %v2726_v45 = vpop.f32.mrf.mxu1 }
 0x165   :  { %v2706_v52 = vadd.f32 %v2705_v44, %v2704_v43 }
 0x166   :  { %v2707_v46 = vpop.f32.mrf.mxu0  ;;  %v2727_v47 = vpop.f32.mrf.mxu1 }
 0x167   :  { %v2142_v57 = vadd.f32 %v2706_v52, %v2102_v41  ;;  %v2728_v58 = vadd.f32 %v2727_v47, %v2726_v45 }
 0x168   :  { %v2708_v48 = vpop.f32.mrf.mxu0  ;;  %v2729_v49 = vpop.f32.mrf.mxu1 }
 0x169   :  { %v2182_v63 = vadd.f32 %v2728_v58, %v2142_v57 }
 0x16a   :  { %v2730_v50 = vpop.f32.mrf.mxu1 }
 0x182   :  { %v2748_v51 = vpop.f32.mrf.mxu0 }
 0x184   :  { %v2749_v53 = vpop.f32.mrf.mxu0  ;;  %v2770_v54 = vpop.f32.mrf.mxu1 }
 0x185   :  { %v2750_v61 = vadd.f32 %v2749_v53, %v2748_v51 }
 0x186   :  { %v2751_v55 = vpop.f32.mrf.mxu0  ;;  %v2771_v56 = vpop.f32.mrf.mxu1 }
 0x187   :  { %v2222_v0 = vadd.f32 %v2750_v61, %v2182_v63  ;;  %v2772_v1 = vadd.f32 %v2771_v56, %v2770_v54 }
 0x188   :  { %v2752_v59 = vpop.f32.mrf.mxu0  ;;  %v2773_v60 = vpop.f32.mrf.mxu1 }
 0x189   :  { %v2262_v2 = vadd.f32 %v2772_v1, %v2222_v0 }
 0x18a   :  { %v2774_v62 = vpop.f32.mrf.mxu1 }
 0x192   :  { %v2301_v3 = vpop.f32.mrf.mxu0 }
 0x193   :  { %v2302_v4 = vadd.f32 %v2301_v3, %v2262_v2 }
 0x194   :  { %v2791_v5 = vpop.f32.mrf.mxu0 }
 0x195   :  { %2308 = vst.msk [vmem:[%s3663_s3] sm:$0x3] %vm2307_vm2, %v2302_v4 }
 0x196   :  { %v2304_v6 = vpop.f32.mrf.mxu0 }
 0x198   :  { %v2792_v34 = vpop.f32.mrf.mxu0 }

// kernel: vae_forward.9
= control target key start
LH: loop header
LB: loop body
LE: loop exit
PB: predicated region body
PF: predicated region fallthrough
CT: control target
= control target key end

     0   :  { %vm381_vm0 = vcmask 1041408   ;;  %v1403_v2 = vmov 0   ;;  %vm377_vm1 = vcmask 162816   ;;  %vm1405_vm2 = vmmov 0   ;;  %s1695_s1 = inlined_call_operand.vmem [shape: bf16[20,3136], index: 1, kind: input, shape index: {}]   ;;  %s1696_s0 = inlined_call_operand.vmem [shape: bf16[2,20], index: 0, kind: input, shape index: {}]   ;;  %s1697_s2 = inlined_call_operand.vmem [shape: f32[1,3136], index: 2, kind: input, shape index: {}]   ;;  %s1698_s3 = inlined_call_operand.vmem [shape: bf16[2,3136], index: 3, kind: output, shape index: {}]  }
   0x1   :  { %v42_v0 = vld [vmem:[%s1695_s1 + $0xc8] sm:$0x33]  ;;  %v43_v1 = vld [vmem:[%s1695_s1 + $0xd0] sm:$0x33]  ;;  %489 = vmatprep.mubr.bf16.mxu0 %v1403_v2  ;;  %530 = vmatprep.mubr.bf16.mxu1 %v1403_v2  ;;  %v1349_v11 = vld [vmem:[%s1695_s1] ss:$100 sps:$4 sm:$0xff]  }
   0x2   :  { %v1265_v3 = vcombine.high %v42_v0, %v42_v0  ;;  %v1267_v4 = vcombine.high %v43_v1, %v43_v1  ;;  %v1264_v5 = vcombine.low %v42_v0, %v42_v0  ;;  %v1266_v6 = vcombine.low %v43_v1, %v43_v1  ;;  %v1345_v7 = vld [vmem:[%s1695_s1 + $0x4] ss:$100 sps:$4 sm:$0xff]   ;;  %v1347_v8 = vld [vmem:[%s1695_s1 + $0xc] ss:$100 sps:$4 sm:$0xff]   ;;  %v44_v13 = vld [vmem:[%s1695_s1 + $0xd8] sm:$0x33] }
   0x3   :  { %v1350_v12 = vld [vmem:[%s1695_s1 + $0x8] ss:$100 sps:$4 sm:$0xff]   ;;  %v45_v14 = vld [vmem:[%s1695_s1 + $0xe0] sm:$0x33]  ;;  %v1269_v15 = vcombine.high %v44_v13, %v44_v13  ;;  %v1268_v17 = vcombine.low %v44_v13, %v44_v13  ;;  %v1357_v20 = vld [vmem:[%s1695_s1 + $0x14] ss:$100 sps:$4 sm:$0xff]  }
   0x4   :  { %1289 = vmatprep.subr.msk.bf16.mxu0 %vm381_vm0, %v1265_v3  ;;  %1291 = vmatprep.subr.msk.bf16.mxu1 %vm381_vm0, %v1267_v4  ;;  %v383_v9 = vsel %vm381_vm0, %v1264_v5, 0  ;;  %v389_v10 = vsel %vm381_vm0, %v1266_v6, 0  ;;  %v1271_v16 = vcombine.high %v45_v14, %v45_v14  ;;  %v1270_v18 = vcombine.low %v45_v14, %v45_v14  ;;  %v1460_v19 = vld [vmem:[%s1696_s0] sm:$0x1]  ;;  %v46_v24 = vld [vmem:[%s1695_s1 + $0xe8] sm:$0x33] }
   0x5   :  { %470 = vmatpush1.bf16.msra.mxu0 %v383_v9  ;;  %511 = vmatpush1.bf16.msra.mxu1 %v389_v10  ;;  %v1360_v21 = vld [vmem:[%s1695_s1 + $0x1c] ss:$100 sps:$4 sm:$0xff]   ;;  %v395_v22 = vsel %vm381_vm0, %v1268_v17, 0  ;;  %v47_v25 = vld [vmem:[%s1695_s1 + $0xf0] sm:$0x33]  ;;  %v1272_v28 = vcombine.low %v46_v24, %v46_v24  ;;  %v1273_v29 = vcombine.high %v46_v24, %v46_v24  ;;  %vm1232_vm3 = vcmask 516096  }
   0x6   :  { %471 = vmatprep.subr.bf16.mxu0 %v1345_v7  ;;  %512 = vmatprep.subr.bf16.mxu1 %v1347_v8  ;;  %v401_v23 = vsel %vm381_vm0, %v1270_v18, 0  ;;  %v1355_v26 = vld [vmem:[%s1695_s1 + $0x10] ss:$100 sps:$4 sm:$0xff]   ;;  %v1358_v27 = vld [vmem:[%s1695_s1 + $0x18] ss:$100 sps:$4 sm:$0xff]   ;;  %v1275_v30 = vcombine.high %v47_v25, %v47_v25  ;;  %v1274_v31 = vcombine.low %v47_v25, %v47_v25 }
   0x7   :  { %v407_v32 = vsel %vm381_vm0, %v1272_v28, 0  ;;  %v1367_v33 = vld [vmem:[%s1695_s1 + $0x24] ss:$100 sps:$4 sm:$0xff]   ;;  %v1370_v35 = vld [vmem:[%s1695_s1 + $0x2c] ss:$100 sps:$4 sm:$0xff]  }
   0x8   :  { %v413_v34 = vsel %vm381_vm0, %v1274_v31, 0  ;;  %v48_v36 = vld [vmem:[%s1695_s1 + $0xf8] sm:$0x33]  ;;  %v49_v37 = vld [vmem:[%s1695_s1 + $0x100] sm:$0x33] }
   0x9   :  { %472 = vmatpush1.bf16.msra.mxu0 %v1349_v11  ;;  %513 = vmatpush1.bf16.msra.mxu1 %v1350_v12  ;;  %v1365_v38 = vld [vmem:[%s1695_s1 + $0x20] ss:$100 sps:$4 sm:$0xff]   ;;  %v1368_v39 = vld [vmem:[%s1695_s1 + $0x28] ss:$100 sps:$4 sm:$0xff]   ;;  %v1277_v40 = vcombine.high %v48_v36, %v48_v36  ;;  %v1279_v41 = vcombine.high %v49_v37, %v49_v37  ;;  %v1276_v42 = vcombine.low %v48_v36, %v48_v36  ;;  %v1377_v44 = vld [vmem:[%s1695_s1 + $0x34] ss:$100 sps:$4 sm:$0xff]  }
   0xa   :  { %1293 = vmatprep.subr.msk.bf16.mxu0 %vm381_vm0, %v1269_v15  ;;  %1295 = vmatprep.subr.msk.bf16.mxu1 %vm381_vm0, %v1271_v16  ;;  %v1278_v43 = vcombine.low %v49_v37, %v49_v37  ;;  %v1380_v47 = vld [vmem:[%s1695_s1 + $0x3c] ss:$100 sps:$4 sm:$0xff]   ;;  %v50_v48 = vld [vmem:[%s1695_s1 + $0x108] sm:$0x33]  ;;  %v51_v49 = vld [vmem:[%s1695_s1 + $0x110] sm:$0x33] }
   0xb   :  { %v419_v45 = vsel %vm381_vm0, %v1276_v42, 0  ;;  %v1375_v50 = vld [vmem:[%s1695_s1 + $0x30] ss:$100 sps:$4 sm:$0xff]   ;;  %v1378_v51 = vld [vmem:[%s1695_s1 + $0x38] ss:$100 sps:$4 sm:$0xff]   ;;  %v1281_v52 = vcombine.high %v50_v48, %v50_v48  ;;  %v1283_v53 = vcombine.high %v51_v49, %v51_v49  ;;  %v1280_v54 = vcombine.low %v50_v48, %v50_v48 }
   0xc   :  { %1290 = vmatmul.mubr.msk.bf16.vlgmr.msra.gmra.mxu0 %vm377_vm1, %v1460_v19  ;;  %1292 = vmatmul.mubr.msk.bf16.vlgmr.msra.gmra.mxu1 %vm377_vm1, %v1460_v19  ;;  %v425_v46 = vsel %vm381_vm0, %v1278_v43, 0  ;;  %v1282_v55 = vcombine.low %v51_v49, %v51_v49  ;;  %v1387_v56 = vld [vmem:[%s1695_s1 + $0x44] ss:$100 sps:$4 sm:$0xff]   ;;  %v1390_v59 = vld [vmem:[%s1695_s1 + $0x4c] ss:$100 sps:$4 sm:$0xff]   ;;  %v1404_v12 = vmov 0.0  }
   0xd   :  { %552 = vmatpush1.bf16.msra.mxu0 %v395_v22  ;;  %593 = vmatpush1.bf16.msra.mxu1 %v401_v23  ;;  %v431_v57 = vsel %vm381_vm0, %v1280_v54, 0  ;;  %v52_v60 = vld [vmem:[%s1695_s1 + $0x118] sm:$0x33]  ;;  %v53_v61 = vld [vmem:[%s1695_s1 + $0x120] sm:$0x33] }
   0xe   :  { %553 = vmatprep.subr.bf16.mxu0 %v1357_v20  ;;  %594 = vmatprep.subr.bf16.mxu1 %v1360_v21  ;;  %v437_v58 = vsel %vm381_vm0, %v1282_v55, 0  ;;  %v1385_v62 = vld [vmem:[%s1695_s1 + $0x40] ss:$100 sps:$4 sm:$0xff]   ;;  %v1388_v63 = vld [vmem:[%s1695_s1 + $0x48] ss:$100 sps:$4 sm:$0xff]   ;;  %v1285_v0 = vcombine.high %v52_v60, %v52_v60  ;;  %v1287_v1 = vcombine.high %v53_v61, %v53_v61  ;;  %v1284_v3 = vcombine.low %v52_v60, %v52_v60 }
   0xf   :  { %571 = vmatprep.mubr.bf16.mxu0 %v1403_v2  ;;  %612 = vmatprep.mubr.bf16.mxu1 %v1403_v2  ;;  %v1286_v4 = vcombine.low %v53_v61, %v53_v61  ;;  %v1397_v7 = vld [vmem:[%s1695_s1 + $0x54] ss:$100 sps:$4 sm:$0xff]   ;;  %v1400_v8 = vld [vmem:[%s1695_s1 + $0x5c] ss:$100 sps:$4 sm:$0xff]   ;;  %v1406_v31 = vmov 1966171168  }
  0x10   :  { %v443_v5 = vsel %vm381_vm0, %v1284_v3, 0  ;;  %v1395_v9 = vld [vmem:[%s1695_s1 + $0x50] ss:$100 sps:$4 sm:$0xff]   ;;  %v1398_v10 = vld [vmem:[%s1695_s1 + $0x58] ss:$100 sps:$4 sm:$0xff]   ;;  %v55_v21 = vld [vmem:[%s1697_s2] sm:$0xff] }
  0x11   :  { %554 = vmatpush1.bf16.msra.mxu0 %v1355_v26  ;;  %595 = vmatpush1.bf16.msra.mxu1 %v1358_v27  ;;  %v449_v6 = vsel %vm381_vm0, %v1286_v4, 0  ;;  %v1401_v11 = vld [vmem:[%s1695_s1 + $0x128] ss:$0 sps:$4 sm:$0x33]   ;;  %v1402_v14 = vld [vmem:[%s1695_s1 + $0x60] ss:$100 sps:$4 sm:$0xff]  }
  0x12   :  { %1297 = vmatprep.subr.msk.bf16.mxu0 %vm381_vm0, %v1273_v29  ;;  %1299 = vmatprep.subr.msk.bf16.mxu1 %vm381_vm0, %v1275_v30  ;;  %v455_v13 = vsel %vm381_vm0, %v1401_v11, 0  ;;  %v56_v3 = vld [vmem:[%s1697_s2 + $0x8] sm:$0xff] }
  0x14   :  { %1294 = vmatmul.mubr.msk.bf16.vlgmr.msra.gmra.mxu0 %vm377_vm1, %v1460_v19  ;;  %1296 = vmatmul.mubr.msk.bf16.vlgmr.msra.gmra.mxu1 %vm377_vm1, %v1460_v19 }
  0x15   :  { %634 = vmatpush1.bf16.msra.mxu0 %v407_v32  ;;  %675 = vmatpush1.bf16.msra.mxu1 %v413_v34  ;;  %v1069_v32 = vunpack.c.l.s4 %v1406_v31 }
  0x16   :  { %635 = vmatprep.subr.bf16.mxu0 %v1367_v33  ;;  %676 = vmatprep.subr.bf16.mxu1 %v1370_v35 }
  0x17   :  { %653 = vmatprep.mubr.bf16.mxu0 %v1403_v2  ;;  %694 = vmatprep.mubr.bf16.mxu1 %v1403_v2 }
  0x19   :  { %636 = vmatpush1.bf16.msra.mxu0 %v1365_v38  ;;  %677 = vmatpush1.bf16.msra.mxu1 %v1368_v39 }
  0x1a   :  { %1301 = vmatprep.subr.msk.bf16.mxu0 %vm381_vm0, %v1277_v40  ;;  %1303 = vmatprep.subr.msk.bf16.mxu1 %vm381_vm0, %v1279_v41 }
  0x1c   :  { %1298 = vmatmul.mubr.msk.bf16.vlgmr.msra.gmra.mxu0 %vm377_vm1, %v1460_v19  ;;  %1300 = vmatmul.mubr.msk.bf16.vlgmr.msra.gmra.mxu1 %vm377_vm1, %v1460_v19 }
  0x1d   :  { %716 = vmatpush1.bf16.msra.mxu0 %v419_v45  ;;  %757 = vmatpush1.bf16.msra.mxu1 %v425_v46  ;;  %v1070_v45 = vunpack.c.0.s8 %v1069_v32 }
  0x1e   :  { %717 = vmatprep.subr.bf16.mxu0 %v1377_v44  ;;  %758 = vmatprep.subr.bf16.mxu1 %v1380_v47 }
  0x1f   :  { %735 = vmatprep.mubr.bf16.mxu0 %v1403_v2  ;;  %776 = vmatprep.mubr.bf16.mxu1 %v1403_v2 }
  0x21   :  { %718 = vmatpush1.bf16.msra.mxu0 %v1375_v50  ;;  %759 = vmatpush1.bf16.msra.mxu1 %v1378_v51 }
  0x22   :  { %1305 = vmatprep.subr.msk.bf16.mxu0 %vm381_vm0, %v1281_v52  ;;  %1307 = vmatprep.subr.msk.bf16.mxu1 %vm381_vm0, %v1283_v53 }
  0x24   :  { %1302 = vmatmul.mubr.msk.bf16.vlgmr.msra.gmra.mxu0 %vm377_vm1, %v1460_v19  ;;  %1304 = vmatmul.mubr.msk.bf16.vlgmr.msra.gmra.mxu1 %vm377_vm1, %v1460_v19 }
  0x25   :  { %798 = vmatpush1.bf16.msra.mxu0 %v431_v57  ;;  %839 = vmatpush1.bf16.msra.mxu1 %v437_v58 }
  0x26   :  { %799 = vmatprep.subr.bf16.mxu0 %v1387_v56  ;;  %840 = vmatprep.subr.bf16.mxu1 %v1390_v59 }
  0x27   :  { %817 = vmatprep.mubr.bf16.mxu0 %v1403_v2  ;;  %858 = vmatprep.mubr.bf16.mxu1 %v1403_v2 }
  0x29   :  { %800 = vmatpush1.bf16.msra.mxu0 %v1385_v62  ;;  %841 = vmatpush1.bf16.msra.mxu1 %v1388_v63 }
  0x2a   :  { %1309 = vmatprep.subr.msk.bf16.mxu0 %vm381_vm0, %v1285_v0  ;;  %1311 = vmatprep.subr.msk.bf16.mxu1 %vm381_vm0, %v1287_v1 }
  0x2c   :  { %1306 = vmatmul.mubr.msk.bf16.vlgmr.msra.gmra.mxu0 %vm377_vm1, %v1460_v19  ;;  %1308 = vmatmul.mubr.msk.bf16.vlgmr.msra.gmra.mxu1 %vm377_vm1, %v1460_v19 }
  0x2d   :  { %880 = vmatpush1.bf16.msra.mxu0 %v443_v5  ;;  %921 = vmatpush1.bf16.msra.mxu1 %v449_v6 }
  0x2e   :  { %881 = vmatprep.subr.bf16.mxu0 %v1397_v7  ;;  %922 = vmatprep.subr.bf16.mxu1 %v1400_v8 }
  0x2f   :  { %899 = vmatprep.mubr.bf16.mxu0 %v1403_v2  ;;  %940 = vmatprep.mubr.bf16.mxu1 %v1403_v2  ;;  %v63_v2 = vlaneseq }
  0x31   :  { %882 = vmatpush1.bf16.msra.mxu0 %v1395_v9  ;;  %923 = vmatpush1.bf16.msra.mxu1 %v1398_v10  ;;  %v64_v15 = vshrl.u32 %v63_v2, 7 }
  0x32   :  { %1329 = vmatprep.subr.bf16.mxu0 %v1404_v12 }
  0x33   :  { %v1609_v16 = vsub.s32 2, %v64_v15  ;;  %v1611_v17 = vsub.s32 1, %v64_v15  ;;  %v1613_v18 = vsub.s32 3, %v64_v15  ;;  %v1615_v20 = vsub.s32 0, %v64_v15 }
  0x34   :  { %1310 = vmatmul.mubr.msk.bf16.vlgmr.msra.gmra.mxu0 %vm377_vm1, %v1460_v19  ;;  %1312 = vmatmul.mubr.msk.bf16.vlgmr.msra.gmra.mxu1 %vm377_vm1, %v1460_v19  ;;  %v1624_v27 = vsub.s32 4, %v64_v15  ;;  %v1626_v28 = vsub.s32 6, %v64_v15  ;;  %v1628_v36 = vsub.s32 5, %v64_v15  ;;  %v1630_v40 = vsub.s32 7, %v64_v15 }
  0x35   :  { %1330 = vmatpush3.bf16.msra.mxu0 %v455_v13  ;;  %1333 = vmatprep.mubr.msk.bf16.mxu0 %vm1405_vm2, %v1404_v12  ;;  %v74_v22 = vrot.slane %v55_v21, %v1609_v16  ;;  %v70_v23 = vrot.slane %v55_v21, %v1611_v17  ;;  %v66_v24 = vrot.slane %v55_v21, %v1615_v20 }
  0x36   :  { %1331 = vmatprep.subr.bf16.mxu0 %v1404_v12  ;;  %v82_v41 = vrot.slane %v55_v21, %v1624_v27  ;;  %v90_v42 = vrot.slane %v55_v21, %v1626_v28  ;;  %v86_v49 = vrot.slane %v55_v21, %v1628_v36  ;;  %v94_v53 = vrot.slane %v55_v21, %v1630_v40 }
  0x37   :  { %v1636_v57 = vsub.s32 %v1070_v45, %v64_v15  ;;  %v106_v6 = vrot.slane %v56_v3, %v1609_v16  ;;  %v98_v13 = vrot.slane %v56_v3, %v1615_v20  ;;  %v110_v2 = vrot.slane %v56_v3, %v1613_v18 }
  0x39   :  { %1332 = vmatpush3.bf16.msra.mxu0 %v1402_v14  ;;  %v102_v14 = vrot.slane %v56_v3, %v1611_v17 }
  0x3c   :  { %1334 = vmatmul.mubr.msk.bf16.vlgmr.msra.gmra.mxu0 %vm377_vm1, %v1460_v19  ;;  %v78_v19 = vrot.slane %v55_v21, %v1613_v18 }
  0xcc   :  { %v491_v25 = vpop.f32.mrf.mxu0  ;;  %v532_v26 = vpop.f32.mrf.mxu1 }
  0xcd   :  { %v533_v29 = vadd.f32 %v532_v26, %v74_v22  ;;  %v492_v37 = vadd.f32 %v491_v25, %v66_v24 }
  0xce   :  { %v493_v30 = vpop.f32.mrf.mxu0  ;;  %v534_v33 = vpop.f32.mrf.mxu1 }
  0xcf   :  { %v494_v34 = vadd.f32 %v493_v30, %v70_v23  ;;  %v535_v35 = vadd.f32 %v534_v33, %v78_v19  ;;  %v991_v43 = vmax.f32 %v533_v29, 0.0  ;;  %v989_v50 = vmax.f32 %v492_v37, 0.0 }
  0xd0   :  { %v495_v38 = vpop.f32.mrf.mxu0  ;;  %v536_v39 = vpop.f32.mrf.mxu1  ;;  %v114_v37 = vrot.slane %v56_v3, %v1624_v27 }
  0xd1   :  { %v990_v44 = vmax.f32 %v494_v34, 0.0  ;;  %v992_v46 = vmax.f32 %v535_v35, 0.0 }
  0xd2   :  { %v496_v47 = vpop.f32.mrf.mxu0  ;;  %v537_v48 = vpop.f32.mrf.mxu1 }
  0xd3   :  { %v1314_v56 = vpack.c.bf16 %v990_v44, %v989_v50  ;;  %v1315_v58 = vpack.c.bf16 %v992_v46, %v991_v43  ;;  %v118_v48 = vrot.slane %v56_v3, %v1628_v36 }
  0xd4   :  { %v573_v51 = vpop.f32.mrf.mxu0  ;;  %v614_v52 = vpop.f32.mrf.mxu1 }
  0xd5   :  { %v574_v54 = vadd.f32 %v573_v51, %v82_v41  ;;  %v615_v55 = vadd.f32 %v614_v52, %v90_v42  ;;  %v1074_v7 = vrot.slane %v1314_v56, %v1636_v57  ;;  %v1081_v8 = vrot.slane %v1315_v58, %v1636_v57 }
  0xd6   :  { %v575_v59 = vpop.f32.mrf.mxu0  ;;  %v616_v60 = vpop.f32.mrf.mxu1  ;;  %v122_v42 = vrot.slane %v56_v3, %v1626_v28  ;;  %v126_v52 = vrot.slane %v56_v3, %v1630_v40 }
  0xd7   :  { %v576_v61 = vadd.f32 %v575_v59, %v86_v49  ;;  %v995_v62 = vmax.f32 %v615_v55, 0.0  ;;  %v617_v63 = vadd.f32 %v616_v60, %v94_v53  ;;  %v993_v4 = vmax.f32 %v574_v54, 0.0 }
  0xd8   :  { %v577_v0 = vpop.f32.mrf.mxu0  ;;  %v618_v1 = vpop.f32.mrf.mxu1  ;;  %v1096_v24 = vcombine.low %v1074_v7, %v1081_v8 }
  0xd9   :  { %v994_v5 = vmax.f32 %v576_v61, 0.0  ;;  %v996_v9 = vmax.f32 %v617_v63, 0.0 }
  0xda   :  { %v578_v10 = vpop.f32.mrf.mxu0  ;;  %v619_v11 = vpop.f32.mrf.mxu1  ;;  %v1104_v43 = vrot.slane %v1096_v24, %v1636_v57 }
  0xdb   :  { %v1316_v12 = vpack.c.bf16 %v994_v5, %v993_v4  ;;  %v1317_v15 = vpack.c.bf16 %v996_v9, %v995_v62 }
  0xdc   :  { %v655_v21 = vpop.f32.mrf.mxu0  ;;  %v696_v22 = vpop.f32.mrf.mxu1 }
  0xdd   :  { %v1088_v23 = vrot.slane %v1316_v12, %v1636_v57  ;;  %v697_v19 = vadd.f32 %v696_v22, %v106_v6  ;;  %v1095_v25 = vrot.slane %v1317_v15, %v1636_v57  ;;  %v656_v30 = vadd.f32 %v655_v21, %v98_v13  ;;  %v57_v6 = vld [vmem:[%s1697_s2 + $0x10] sm:$0xff] }
  0xde   :  { %v657_v26 = vpop.f32.mrf.mxu0  ;;  %v698_v29 = vpop.f32.mrf.mxu1  ;;  %v138_v10 = vrot.slane %v57_v6, %v1609_v16  ;;  %v134_v12 = vrot.slane %v57_v6, %v1611_v17  ;;  %v142_v13 = vrot.slane %v57_v6, %v1613_v18 }
  0xdf   :  { %v658_v31 = vadd.f32 %v657_v26, %v102_v14  ;;  %v699_v32 = vadd.f32 %v698_v29, %v110_v2  ;;  %v1097_v33 = vcombine.low %v1088_v23, %v1095_v25  ;;  %v999_v38 = vmax.f32 %v697_v19, 0.0 }
  0xe0   :  { %v659_v34 = vpop.f32.mrf.mxu0  ;;  %v700_v35 = vpop.f32.mrf.mxu1  ;;  %v997_v47 = vmax.f32 %v656_v30, 0.0  ;;  %v130_v2 = vrot.slane %v57_v6, %v1615_v20  ;;  %v146_v20 = vrot.slane %v57_v6, %v1624_v27 }
  0xe1   :  { %v998_v39 = vmax.f32 %v658_v31, 0.0  ;;  %v1000_v41 = vmax.f32 %v699_v32, 0.0  ;;  %v1111_v44 = vrot.slane %v1097_v33, %v1636_v57  ;;  %v154_v33 = vrot.slane %v57_v6, %v1626_v28 }
  0xe2   :  { %v660_v45 = vpop.f32.mrf.mxu0  ;;  %v701_v46 = vpop.f32.mrf.mxu1 }
  0xe3   :  { %v1112_v49 = vcombine.low %v1104_v43, %v1111_v44  ;;  %v1318_v53 = vpack.c.bf16 %v998_v39, %v997_v47  ;;  %v1319_v54 = vpack.c.bf16 %v1000_v41, %v999_v38  ;;  %v158_v47 = vrot.slane %v57_v6, %v1630_v40 }
  0xe4   :  { %v737_v50 = vpop.f32.mrf.mxu0  ;;  %v778_v51 = vpop.f32.mrf.mxu1 }
  0xe5   :  { %v738_v55 = vadd.f32 %v737_v50, %v114_v37  ;;  %v779_v56 = vadd.f32 %v778_v51, %v122_v42  ;;  %1229 = vst [vmem:[%s1698_s3] sm:$0xff] %v1112_v49  ;;  %v1123_v1 = vrot.slane %v1318_v53, %v1636_v57  ;;  %v1130_v4 = vrot.slane %v1319_v54, %v1636_v57 }
  0xe6   :  { %v739_v58 = vpop.f32.mrf.mxu0  ;;  %v780_v59 = vpop.f32.mrf.mxu1  ;;  %v150_v42 = vrot.slane %v57_v6, %v1628_v36 }
  0xe7   :  { %v740_v60 = vadd.f32 %v739_v58, %v118_v48  ;;  %v1003_v61 = vmax.f32 %v779_v56, 0.0  ;;  %v781_v62 = vadd.f32 %v780_v59, %v126_v52  ;;  %v1001_v3 = vmax.f32 %v738_v55, 0.0 }
  0xe8   :  { %v741_v63 = vpop.f32.mrf.mxu0  ;;  %v782_v0 = vpop.f32.mrf.mxu1  ;;  %v1145_v22 = vcombine.low %v1123_v1, %v1130_v4 }
  0xe9   :  { %v1002_v5 = vmax.f32 %v740_v60, 0.0  ;;  %v1004_v7 = vmax.f32 %v781_v62, 0.0  ;;  %v1238_v63 = vld [vmem:[%s1697_s2 + $0x18] ss:$0 sm:$0xff] }
  0xea   :  { %v742_v8 = vpop.f32.mrf.mxu0  ;;  %v783_v9 = vpop.f32.mrf.mxu1  ;;  %v1153_v18 = vrot.slane %v1145_v22, %v1636_v57 }
  0xeb   :  { %v1320_v11 = vpack.c.bf16 %v1002_v5, %v1001_v3  ;;  %v1321_v14 = vpack.c.bf16 %v1004_v7, %v1003_v61 }
  0xec   :  { %v819_v15 = vpop.f32.mrf.mxu0  ;;  %v860_v21 = vpop.f32.mrf.mxu1 }
  0xed   :  { %v1137_v23 = vrot.slane %v1320_v11, %v1636_v57  ;;  %v1144_v19 = vrot.slane %v1321_v14, %v1636_v57  ;;  %v861_v24 = vadd.f32 %v860_v21, %v138_v10  ;;  %v820_v31 = vadd.f32 %v819_v15, %v130_v2 }
  0xee   :  { %v821_v25 = vpop.f32.mrf.mxu0  ;;  %v862_v26 = vpop.f32.mrf.mxu1 }
  0xef   :  { %v822_v29 = vadd.f32 %v821_v25, %v134_v12  ;;  %v863_v16 = vadd.f32 %v862_v26, %v142_v13  ;;  %v1146_v30 = vcombine.low %v1137_v23, %v1144_v19  ;;  %v1007_v35 = vmax.f32 %v861_v24, 0.0 }
  0xf0   :  { %v823_v17 = vpop.f32.mrf.mxu0  ;;  %v864_v32 = vpop.f32.mrf.mxu1  ;;  %v1005_v44 = vmax.f32 %v820_v31, 0.0 }
  0xf1   :  { %v1160_v34 = vrot.slane %v1146_v30, %v1636_v57  ;;  %v1006_v37 = vmax.f32 %v822_v29, 0.0  ;;  %v1008_v38 = vmax.f32 %v863_v16, 0.0 }
  0xf2   :  { %v824_v39 = vpop.f32.mrf.mxu0  ;;  %v865_v41 = vpop.f32.mrf.mxu1 }
  0xf3   :  { %v1161_v43 = vcombine.low %v1153_v18, %v1160_v34  ;;  %v1322_v27 = vpack.c.bf16 %v1006_v37, %v1005_v44  ;;  %v1323_v28 = vpack.c.bf16 %v1008_v38, %v1007_v35 }
  0xf4   :  { %v901_v45 = vpop.f32.mrf.mxu0  ;;  %v942_v46 = vpop.f32.mrf.mxu1 }
  0xf5   :  { %v902_v48 = vadd.f32 %v901_v45, %v146_v20  ;;  %v943_v49 = vadd.f32 %v942_v46, %v154_v33  ;;  %1230 = vst [vmem:[%s1698_s3 + $0x8] sm:$0xff] %v1161_v43  ;;  %v1172_v59 = vrot.slane %v1322_v27, %v1636_v57  ;;  %v1179_v40 = vrot.slane %v1323_v28, %v1636_v57 }
  0xf6   :  { %v903_v50 = vpop.f32.mrf.mxu0  ;;  %v944_v51 = vpop.f32.mrf.mxu1 }
  0xf7   :  { %v904_v52 = vadd.f32 %v903_v50, %v150_v42  ;;  %v1011_v53 = vmax.f32 %v943_v49, 0.0  ;;  %v945_v54 = vadd.f32 %v944_v51, %v158_v47  ;;  %v1009_v56 = vmax.f32 %v902_v48, 0.0 }
  0xf8   :  { %v905_v36 = vpop.f32.mrf.mxu0  ;;  %v946_v55 = vpop.f32.mrf.mxu1  ;;  %v1194_v6 = vcombine.low %v1172_v59, %v1179_v40 }
  0xf9   :  { %v1010_v58 = vmax.f32 %v904_v52, 0.0  ;;  %v1012_v60 = vmax.f32 %v945_v54, 0.0 }
  0xfa   :  { %v906_v61 = vpop.f32.mrf.mxu0  ;;  %v947_v62 = vpop.f32.mrf.mxu1  ;;  %v1202_v13 = vrot.slane %v1194_v6, %v1636_v57 }
  0xfb   :  { %v1324_v0 = vpack.c.bf16 %v1010_v58, %v1009_v56  ;;  %v1325_v1 = vpack.c.bf16 %v1012_v60, %v1011_v53 }
  0xfc   :  { %v983_v4 = vpop.f32.mrf.mxu0 }
  0xfd   :  { %v1186_v3 = vrot.slane %v1324_v0, %v1636_v57  ;;  %v984_v5 = vadd.f32 %v1238_v63, %v983_v4  ;;  %v1193_v7 = vrot.slane %v1325_v1, %v1636_v57 }
  0xfe   :  { %v1335_v8 = vpop.f32.mrf.mxu0 }
  0xff   :  { %v1013_v9 = vmax.f32 %v984_v5, 0.0  ;;  %v1195_v10 = vcombine.low %v1186_v3, %v1193_v7 }
 0x100   :  { %v986_v11 = vpop.f32.mrf.mxu0 }
 0x101   :  { %v1038_v12 = vpack.c.bf16 %v1013_v9, %v1013_v9  ;;  %v1209_v14 = vrot.slane %v1195_v10, %v1636_v57 }
 0x102   :  { %v1336_v2 = vpop.f32.mrf.mxu0 }
 0x103   :  { %v1217_v15 = vrot.slane %v1038_v12, %v1636_v57  ;;  %v1210_v21 = vcombine.low %v1202_v13, %v1209_v14 }
 0x105   :  { %v1224_v22 = vrot.slane %v1217_v15, %v1636_v57  ;;  %1231 = vst [vmem:[%s1698_s3 + $0x10] sm:$0xff] %v1210_v21 }
 0x107   :  { %1233 = vst.msk [vmem:[%s1698_s3 + $0x18] sm:$0x1] %vm1232_vm3, %v1224_v22 }

// kernel: vae_forward.11
= control target key start
LH: loop header
LB: loop body
LE: loop exit
PB: predicated region body
PF: predicated region fallthrough
CT: control target
= control target key end

     0   :  { %s1884_s12 = smov 0   ;;  %s2234_s0 = inlined_call_operand.vmem [shape: bf16[2,16,512], index: 0, kind: input, shape index: {}]   ;;  %s2235_s1 = inlined_call_operand.vmem [shape: bf16[3,512,56], index: 1, kind: input, shape index: {}]   ;;  %s2236_s2 = inlined_call_operand.vmem [shape: f32[1,56], index: 2, kind: input, shape index: {}]   ;;  %s2237_s3 = inlined_call_operand.vmem [shape: f32[2,14,56], index: 3, kind: output, shape index: {}]  }
   0x1 LB: > { %s1354_s13 = sadd.s32 4294967295, %s1862_s12   ;;  %p1358_p0 = scmp.ge.s32.totalorder %s1862_s12, 1  ;;  %s1862_s12 = sphi %s1884_s12, %s13_s12  }
   0x2   : > { %p137_p1 = scmp.lt.s32.totalorder %s1862_s12, 3 }
   0x4   : > { %p138_p2 = pnand %p1358_p0, %p137_p1 }
   0x5   : > { %p161_p3 = scmp.lt.s32.totalorder (!%p138_p2), %s1354_s13, 1 }
   0x6   : > { %141 = sbr.rel (%p138_p2) target bundleno = 338 (0x152), region = 32 }
   0xb   : > { %v1744_v0 = vld [vmem:[%s2235_s1 + $0x178] sm:$0xff]   ;;  %v1748_v4 = vld [vmem:[%s2235_s1 + $0x170] sm:$0xff]   ;;  %v1752_v8 = vld [vmem:[%s2235_s1 + $0x168] sm:$0xff]   ;;  %s2239_s13 = smov (!%p161_p3, %s1354_s13), 1  ;;  %vm1295_vm0 = vcmask 457728   ;;  %vm1297_vm1 = vcmask 455680  }
   0xc   : > { %v1745_v1 = vld [vmem:[%s2235_s1 + $0x1f8] sm:$0xff]   ;;  %1604 = vmatprep.subr.bf16.mxu0 %v1744_v0  ;;  %v1749_v5 = vld [vmem:[%s2235_s1 + $0x1f0] sm:$0xff]   ;;  %v1753_v9 = vld [vmem:[%s2235_s1 + $0x1e8] sm:$0xff]   ;;  %s1602_s18 = sshll.u32 %s2239_s13, 5  ;;  %s1603_s16 = sshll.u32 %s2239_s13, 4 }
   0xd   : > { %v1746_v2 = vld [vmem:[%s2235_s1 + $0x138] sm:$0xff]   ;;  %1626 = vmatprep.subr.bf16.mxu1 %v1745_v1  ;;  %v1750_v6 = vld [vmem:[%s2235_s1 + $0x130] sm:$0xff]   ;;  %v1754_v10 = vld [vmem:[%s2235_s1 + $0x128] sm:$0xff]   ;;  %s1992_s27 = scalar_lea.vmem %s2234_s0, %s1602_s18  ;;  %s170_s19 = scalar_lea.vmem %s2237_s3, %s1603_s16 }
   0xe   : > { %v1747_v3 = vld [vmem:[%s2235_s1 + $0x1b8] sm:$0xff]   ;;  %1605 = vmatpush3.bf16.msra.mxu0 %v1746_v2  ;;  %v1751_v7 = vld [vmem:[%s2235_s1 + $0x1b0] sm:$0xff]   ;;  %v1755_v11 = vld [vmem:[%s2235_s1 + $0x1a8] sm:$0xff]  }
   0xf   : > { %1627 = vmatpush3.bf16.msra.mxu1 %v1747_v3  ;;  %1606 = vmatprep.subr.bf16.mxu0 %v1748_v4  ;;  %v1756_v12 = vld [vmem:[%s2235_s1 + $0x160] sm:$0xff]   ;;  %v1760_v16 = vld [vmem:[%s2235_s1 + $0x158] sm:$0xff]   ;;  %v1764_v20 = vld [vmem:[%s2235_s1 + $0x150] sm:$0xff]  }
  0x10   : > { %1628 = vmatprep.subr.bf16.mxu1 %v1749_v5  ;;  %v1757_v13 = vld [vmem:[%s2235_s1 + $0x1e0] sm:$0xff]   ;;  %v1761_v17 = vld [vmem:[%s2235_s1 + $0x1d8] sm:$0xff]   ;;  %v1765_v21 = vld [vmem:[%s2235_s1 + $0x1d0] sm:$0xff]  }
  0x11   : > { %v1758_v14 = vld [vmem:[%s2235_s1 + $0x120] sm:$0xff]   ;;  %v1762_v18 = vld [vmem:[%s2235_s1 + $0x118] sm:$0xff]   ;;  %v1766_v22 = vld [vmem:[%s2235_s1 + $0x110] sm:$0xff]  }
  0x12   : > { %1607 = vmatpush3.bf16.msra.mxu0 %v1750_v6  ;;  %v1759_v15 = vld [vmem:[%s2235_s1 + $0x1a0] sm:$0xff]   ;;  %v1763_v19 = vld [vmem:[%s2235_s1 + $0x198] sm:$0xff]   ;;  %v1767_v23 = vld [vmem:[%s2235_s1 + $0x190] sm:$0xff]  }
  0x13   : > { %1629 = vmatpush3.bf16.msra.mxu1 %v1751_v7  ;;  %1608 = vmatprep.subr.bf16.mxu0 %v1752_v8  ;;  %v1768_v24 = vld [vmem:[%s2235_s1 + $0x148] sm:$0xff]   ;;  %v1772_v28 = vld [vmem:[%s2235_s1 + $0x140] sm:$0xff]   ;;  %v2004_v33 = vld [vmem:[%s1992_s27 + $0x10] sm:$0xff] }
  0x14   : > { %1630 = vmatprep.subr.bf16.mxu1 %v1753_v9  ;;  %v1769_v25 = vld [vmem:[%s2235_s1 + $0x1c8] sm:$0xff]   ;;  %v1773_v29 = vld [vmem:[%s2235_s1 + $0x1c0] sm:$0xff]   ;;  %v2012_v36 = vld [vmem:[%s1992_s27 + $0x18] sm:$0xff] }
  0x15   : > { %v1770_v26 = vld [vmem:[%s2235_s1 + $0x108] sm:$0xff]   ;;  %v1774_v30 = vld [vmem:[%s2235_s1 + $0x100] sm:$0xff]   ;;  %v1780_v40 = vld [vmem:[%s2235_s1 + $0x78] sm:$0xff]  }
  0x16   : > { %1609 = vmatpush3.bf16.msra.mxu0 %v1754_v10  ;;  %v1771_v27 = vld [vmem:[%s2235_s1 + $0x188] sm:$0xff]   ;;  %v1775_v31 = vld [vmem:[%s2235_s1 + $0x180] sm:$0xff]   ;;  %v1781_v45 = vld [vmem:[%s2235_s1 + $0xf8] sm:$0xff]  }
  0x17   : > { %1631 = vmatpush3.bf16.msra.mxu1 %v1755_v11  ;;  %1610 = vmatprep.subr.bf16.mxu0 %v1756_v12  ;;  %v2001_v32 = vld [vmem:[%s1992_s27] sm:$0xff]  ;;  %v2007_v34 = vld [vmem:[%s1992_s27 + $0x8] sm:$0xff]  ;;  %v1782_v52 = vld [vmem:[%s2235_s1 + $0x38] sm:$0xff]  }
  0x18   : > { %1632 = vmatprep.subr.bf16.mxu1 %v1757_v13  ;;  %v1428_v35 = vcombine.high %v2001_v32, %v2004_v33  ;;  %v1427_v37 = vcombine.low %v2001_v32, %v2004_v33  ;;  %v1430_v38 = vcombine.high %v2007_v34, %v2012_v36  ;;  %v1429_v39 = vcombine.low %v2007_v34, %v2012_v36  ;;  %v1783_v55 = vld [vmem:[%s2235_s1 + $0xb8] sm:$0xff]   ;;  %v1784_v56 = vld [vmem:[%s2235_s1 + $0x70] sm:$0xff]   ;;  %v1788_v0 = vld [vmem:[%s2235_s1 + $0x68] sm:$0xff]  }
  0x19   : > { %v1785_v61 = vld [vmem:[%s2235_s1 + $0xf0] sm:$0xff]   ;;  %v1789_v1 = vld [vmem:[%s2235_s1 + $0xe8] sm:$0xff]   ;;  %v1792_v4 = vld [vmem:[%s2235_s1 + $0x60] sm:$0xff]  }
  0x1a   : > { %1611 = vmatpush3.bf16.msra.mxu0 %v1758_v14  ;;  %v332_v41 = vshrl.u32 %v1428_v35, 16  ;;  %v334_v42 = vshll.u32 %v1428_v35, 16  ;;  %v325_v43 = vshrl.u32 %v1427_v37, 16  ;;  %v327_v44 = vshll.u32 %v1427_v37, 16  ;;  %v1786_v62 = vld [vmem:[%s2235_s1 + $0x30] sm:$0xff]   ;;  %v1790_v2 = vld [vmem:[%s2235_s1 + $0x28] sm:$0xff]  }
  0x1b   : > { %1633 = vmatpush3.bf16.msra.mxu1 %v1759_v15  ;;  %1612 = vmatprep.subr.bf16.mxu0 %v1760_v16  ;;  %v346_v46 = vshrl.u32 %v1430_v38, 16  ;;  %v348_v47 = vshll.u32 %v1430_v38, 16  ;;  %v339_v48 = vshrl.u32 %v1429_v39, 16  ;;  %v341_v49 = vshll.u32 %v1429_v39, 16  ;;  %v1787_v63 = vld [vmem:[%s2235_s1 + $0xb0] sm:$0xff]   ;;  %v1791_v3 = vld [vmem:[%s2235_s1 + $0xa8] sm:$0xff]  }
  0x1c   : > { %1634 = vmatprep.subr.bf16.mxu1 %v1761_v17  ;;  %v336_v50 = vrot.slane %v334_v42, 1  ;;  %v329_v51 = vrot.slane %v327_v44, 1  ;;  %v1793_v5 = vld [vmem:[%s2235_s1 + $0xe0] sm:$0xff]   ;;  %v1796_v8 = vld [vmem:[%s2235_s1 + $0x58] sm:$0xff]   ;;  %v1800_v12 = vld [vmem:[%s2235_s1 + $0x50] sm:$0xff]  }
  0x1d   : > { %v350_v53 = vrot.slane %v348_v47, 1  ;;  %v343_v54 = vrot.slane %v341_v49, 1  ;;  %v1794_v6 = vld [vmem:[%s2235_s1 + $0x20] sm:$0xff]   ;;  %v1797_v9 = vld [vmem:[%s2235_s1 + $0xd8] sm:$0xff]   ;;  %v1801_v13 = vld [vmem:[%s2235_s1 + $0xd0] sm:$0xff]  }
  0x1e   : > { %1613 = vmatpush3.bf16.msra.mxu0 %v1762_v18  ;;  %v337_v57 = vor.u32 %v336_v50, %v332_v41  ;;  %v330_v58 = vor.u32 %v329_v51, %v325_v43  ;;  %v1795_v7 = vld [vmem:[%s2235_s1 + $0xa0] sm:$0xff]   ;;  %v1798_v10 = vld [vmem:[%s2235_s1 + $0x18] sm:$0xff]   ;;  %v1802_v14 = vld [vmem:[%s2235_s1 + $0x10] sm:$0xff]  }
  0x1f   : > { %1635 = vmatpush3.bf16.msra.mxu1 %v1763_v19  ;;  %1614 = vmatprep.subr.bf16.mxu0 %v1764_v20  ;;  %v351_v59 = vor.u32 %v350_v53, %v346_v46  ;;  %v344_v60 = vor.u32 %v343_v54, %v339_v48  ;;  %v1799_v11 = vld [vmem:[%s2235_s1 + $0x98] sm:$0xff]   ;;  %v1803_v15 = vld [vmem:[%s2235_s1 + $0x90] sm:$0xff]   ;;  %v1804_v16 = vld [vmem:[%s2235_s1 + $0x48] sm:$0xff]  }
  0x20   : > { %1636 = vmatprep.subr.bf16.mxu1 %v1765_v21  ;;  %580 = vmatprep.mubr.bf16.mxu0 %v337_v57  ;;  %v1805_v17 = vld [vmem:[%s2235_s1 + $0xc8] sm:$0xff]   ;;  %v1808_v20 = vld [vmem:[%s2235_s1 + $0x40] sm:$0xff]   ;;  %v1819_v37 = vld [vmem:[%s2235_s1 + $0x2b8] sm:$0xff]  }
  0x21   : > { %621 = vmatprep.mubr.bf16.mxu1 %v351_v59  ;;  %v1806_v18 = vld [vmem:[%s2235_s1 + $0x8] sm:$0xff]   ;;  %v1809_v21 = vld [vmem:[%s2235_s1 + $0xc0] sm:$0xff]   ;;  %v1820_v38 = vld [vmem:[%s2235_s1 + $0x270] sm:$0xff]  }
  0x22   : > { %1615 = vmatpush3.bf16.msra.mxu0 %v1766_v22  ;;  %v1807_v19 = vld [vmem:[%s2235_s1 + $0x88] sm:$0xff]   ;;  %v1810_v22 = vld [vmem:[%s2235_s1] sm:$0xff]   ;;  %v1823_v39 = vld [vmem:[%s2235_s1 + $0x2b0] sm:$0xff]  }
  0x23   : > { %1637 = vmatpush3.bf16.msra.mxu1 %v1767_v23  ;;  %1616 = vmatprep.subr.bf16.mxu0 %v1768_v24  ;;  %v1811_v23 = vld [vmem:[%s2235_s1 + $0x80] sm:$0xff]   ;;  %v175_v24 = vld [vmem:[%s1992_s27 + $0x10] sm:$0x77]  ;;  %v1825_v41 = vld [vmem:[%s2235_s1 + $0x2e8] sm:$0xff]  }
  0x24   : > { %1638 = vmatprep.subr.bf16.mxu1 %v1769_v25  ;;  %v1464_v25 = vcombine.high %v2001_v32, %v175_v24  ;;  %v1826_v42 = vld [vmem:[%s2235_s1 + $0x228] sm:$0xff]   ;;  %v1828_v44 = vld [vmem:[%s2235_s1 + $0x260] sm:$0xff]   ;;  %v1832_v48 = vld [vmem:[%s2235_s1 + $0x258] sm:$0xff]  }
  0x25   : > { %v1827_v43 = vld [vmem:[%s2235_s1 + $0x2a8] sm:$0xff]   ;;  %v1830_v46 = vld [vmem:[%s2235_s1 + $0x220] sm:$0xff]   ;;  %v1833_v49 = vld [vmem:[%s2235_s1 + $0x2d8] sm:$0xff]  }
  0x26   : > { %1617 = vmatpush3.bf16.msra.mxu0 %v1770_v26  ;;  %v176_v26 = vld [vmem:[%s1992_s27 + $0x18] sm:$0x77]  ;;  %v1831_v47 = vld [vmem:[%s2235_s1 + $0x2a0] sm:$0xff]   ;;  %v1837_v53 = vld [vmem:[%s2235_s1 + $0x2d0] sm:$0xff]  }
  0x27   : > { %1639 = vmatpush3.bf16.msra.mxu1 %v1771_v27  ;;  %1618 = vmatprep.subr.bf16.mxu0 %v1772_v28  ;;  %v1466_v27 = vcombine.high %v2007_v34, %v176_v26  ;;  %v1816_v28 = vld [vmem:[%s2235_s1 + $0x278] sm:$0xff]   ;;  %v1465_v35 = vcombine.low %v2007_v34, %v176_v26  ;;  %v1822_v34 = vld [vmem:[%s2235_s1 + $0x230] sm:$0xff]   ;;  %v1841_v57 = vld [vmem:[%s2235_s1 + $0x2c8] sm:$0xff]  }
  0x28   : > { %1640 = vmatprep.subr.bf16.mxu1 %v1773_v29  ;;  %v1817_v29 = vld [vmem:[%s2235_s1 + $0x2f8] sm:$0xff]   ;;  %v1838_v54 = vld [vmem:[%s2235_s1 + $0x210] sm:$0xff]   ;;  %v1843_v59 = vld [vmem:[%s2235_s1 + $0x288] sm:$0xff]  }
  0x29   : > { %v1834_v50 = vld [vmem:[%s2235_s1 + $0x218] sm:$0xff]  }
  0x2a   : > { %1619 = vmatpush3.bf16.msra.mxu0 %v1774_v30  ;;  %v1463_v30 = vcombine.low %v2001_v32, %v175_v24  ;;  %v1821_v32 = vld [vmem:[%s2235_s1 + $0x2f0] sm:$0xff]   ;;  %v1835_v51 = vld [vmem:[%s2235_s1 + $0x298] sm:$0xff]  }
  0x2b   : > { %1641 = vmatpush3.bf16.msra.mxu1 %v1775_v31  ;;  %1648 = vmatprep.subr.bf16.mxu0 %v1780_v40  ;;  %v1818_v31 = vld [vmem:[%s2235_s1 + $0x238] sm:$0xff]   ;;  %v1824_v40 = vld [vmem:[%s2235_s1 + $0x268] sm:$0xff]  }
  0x2c   : > { %1670 = vmatprep.subr.bf16.mxu1 %v1781_v45  ;;  %v1829_v45 = vld [vmem:[%s2235_s1 + $0x2e0] sm:$0xff]  }
  0x2d   : > { %581 = vmatmul.mubr.bf16.vlgmr.msra.gmra.mxu0 %v330_v58  ;;  %v1842_v58 = vld [vmem:[%s2235_s1 + $0x208] sm:$0xff]  }
  0x2e   : > { %622 = vmatmul.mubr.bf16.vlgmr.msra.gmra.mxu1 %v344_v60  ;;  %1649 = vmatpush3.bf16.msra.mxu0 %v1782_v52  ;;  %v1836_v52 = vld [vmem:[%s2235_s1 + $0x250] sm:$0xff]   ;;  %v1844_v60 = vld [vmem:[%s2235_s1 + $0x240] sm:$0xff]  }
  0x2f   : > { %1671 = vmatpush3.bf16.msra.mxu1 %v1783_v55  ;;  %1650 = vmatprep.subr.bf16.mxu0 %v1784_v56  ;;  %v1839_v55 = vld [vmem:[%s2235_s1 + $0x290] sm:$0xff]   ;;  %v1840_v56 = vld [vmem:[%s2235_s1 + $0x248] sm:$0xff]  }
  0x30   : > { %1672 = vmatprep.subr.bf16.mxu1 %v1785_v61  ;;  %868 = vmatprep.mubr.bf16.mxu0 %v1464_v25  ;;  %v1845_v61 = vld [vmem:[%s2235_s1 + $0x2c0] sm:$0xff]  }
  0x31   : > { %909 = vmatprep.mubr.bf16.mxu1 %v1466_v27 }
  0x32   : > { %1651 = vmatpush3.bf16.msra.mxu0 %v1786_v62  ;;  %v1846_v62 = vld [vmem:[%s2235_s1 + $0x200] sm:$0xff]  }
  0x33   : > { %1673 = vmatpush3.bf16.msra.mxu1 %v1787_v63  ;;  %1652 = vmatprep.subr.bf16.mxu0 %v1788_v0  ;;  %v918_v63 = vld [vmem:[%s1992_s27] sm:$0xee]  ;;  %v919_v0 = vld [vmem:[%s1992_s27 + $0x8] sm:$0xee] }
  0x34   : > { %1674 = vmatprep.subr.bf16.mxu1 %v1789_v1  ;;  %v1847_v1 = vld [vmem:[%s2235_s1 + $0x280] sm:$0xff]  }
  0x36   : > { %1653 = vmatpush3.bf16.msra.mxu0 %v1790_v2  ;;  %v1563_v2 = vcombine.low %v918_v63, %v2004_v33 }
  0x37   : > { %1675 = vmatpush3.bf16.msra.mxu1 %v1791_v3  ;;  %1654 = vmatprep.subr.bf16.mxu0 %v1792_v4  ;;  %v1564_v3 = vcombine.high %v918_v63, %v2004_v33  ;;  %v1565_v4 = vcombine.low %v919_v0, %v2012_v36 }
  0x38   : > { %1676 = vmatprep.subr.bf16.mxu1 %v1793_v5  ;;  %v1566_v5 = vcombine.high %v919_v0, %v2012_v36 }
  0x3a   : > { %1655 = vmatpush3.bf16.msra.mxu0 %v1794_v6  ;;  %v995_v6 = vrot.slane %v1563_v2, 1 }
  0x3b   : > { %1677 = vmatpush3.bf16.msra.mxu1 %v1795_v7  ;;  %1656 = vmatprep.subr.bf16.mxu0 %v1796_v8  ;;  %v996_v7 = vrot.slane %v1564_v3, 1  ;;  %v997_v8 = vrot.slane %v1565_v4, 1 }
  0x3c   : > { %1678 = vmatprep.subr.bf16.mxu1 %v1797_v9  ;;  %v998_v9 = vrot.slane %v1566_v5, 1 }
  0x3e   : > { %1657 = vmatpush3.bf16.msra.mxu0 %v1798_v10 }
  0x3f   : > { %1679 = vmatpush3.bf16.msra.mxu1 %v1799_v11  ;;  %1658 = vmatprep.subr.bf16.mxu0 %v1800_v12 }
  0x40   : > { %1680 = vmatprep.subr.bf16.mxu1 %v1801_v13 }
  0x42   : > { %1659 = vmatpush3.bf16.msra.mxu0 %v1802_v14 }
  0x43   : > { %1681 = vmatpush3.bf16.msra.mxu1 %v1803_v15  ;;  %1660 = vmatprep.subr.bf16.mxu0 %v1804_v16 }
  0x44   : > { %1682 = vmatprep.subr.bf16.mxu1 %v1805_v17 }
  0x46   : > { %1661 = vmatpush3.bf16.msra.mxu0 %v1806_v18 }
  0x47   : > { %1683 = vmatpush3.bf16.msra.mxu1 %v1807_v19  ;;  %1662 = vmatprep.subr.bf16.mxu0 %v1808_v20 }
  0x48   : > { %1684 = vmatprep.subr.bf16.mxu1 %v1809_v21 }
  0x4a   : > { %1663 = vmatpush3.bf16.msra.mxu0 %v1810_v22 }
  0x4b   : > { %1685 = vmatpush3.bf16.msra.mxu1 %v1811_v23  ;;  %1692 = vmatprep.subr.bf16.mxu0 %v1816_v28 }
  0x4c   : > { %1714 = vmatprep.subr.bf16.mxu1 %v1817_v29 }
  0x4d   : > { %869 = vmatmul.mubr.bf16.vlgmr.msra.gmra.mxu0 %v1463_v30 }
  0x4e   : > { %910 = vmatmul.mubr.bf16.vlgmr.msra.gmra.mxu1 %v1465_v35  ;;  %1693 = vmatpush3.bf16.msra.mxu0 %v1818_v31 }
  0x4f   : > { %1715 = vmatpush3.bf16.msra.mxu1 %v1819_v37  ;;  %1694 = vmatprep.subr.bf16.mxu0 %v1820_v38 }
  0x50   : > { %1716 = vmatprep.subr.bf16.mxu1 %v1821_v32  ;;  %1227 = vmatprep.mubr.bf16.mxu0 %v996_v7 }
  0x51   : > { %1268 = vmatprep.mubr.bf16.mxu1 %v998_v9 }
  0x52   : > { %1695 = vmatpush3.bf16.msra.mxu0 %v1822_v34 }
  0x53   : > { %1717 = vmatpush3.bf16.msra.mxu1 %v1823_v39  ;;  %1696 = vmatprep.subr.bf16.mxu0 %v1824_v40 }
  0x54   : > { %1718 = vmatprep.subr.bf16.mxu1 %v1825_v41 }
  0x56   : > { %1697 = vmatpush3.bf16.msra.mxu0 %v1826_v42 }
  0x57   : > { %1719 = vmatpush3.bf16.msra.mxu1 %v1827_v43  ;;  %1698 = vmatprep.subr.bf16.mxu0 %v1828_v44 }
  0x58   : > { %1720 = vmatprep.subr.bf16.mxu1 %v1829_v45 }
  0x5a   : > { %1699 = vmatpush3.bf16.msra.mxu0 %v1830_v46 }
  0x5b   : > { %1721 = vmatpush3.bf16.msra.mxu1 %v1831_v47  ;;  %1700 = vmatprep.subr.bf16.mxu0 %v1832_v48  ;;  %v1599_v48 = vld [vmem:[%s2236_s2] ss:$0 sm:$0xff] }
  0x5c   : > { %1722 = vmatprep.subr.bf16.mxu1 %v1833_v49 }
  0x5e   : > { %1701 = vmatpush3.bf16.msra.mxu0 %v1834_v50 }
  0x5f   : > { %1723 = vmatpush3.bf16.msra.mxu1 %v1835_v51  ;;  %1702 = vmatprep.subr.bf16.mxu0 %v1836_v52 }
  0x60   : > { %1724 = vmatprep.subr.bf16.mxu1 %v1837_v53 }
  0x62   : > { %1703 = vmatpush3.bf16.msra.mxu0 %v1838_v54 }
  0x63   : > { %1725 = vmatpush3.bf16.msra.mxu1 %v1839_v55  ;;  %1704 = vmatprep.subr.bf16.mxu0 %v1840_v56 }
  0x64   : > { %1726 = vmatprep.subr.bf16.mxu1 %v1841_v57 }
  0x66   : > { %1705 = vmatpush3.bf16.msra.mxu0 %v1842_v58 }
  0x67   : > { %1727 = vmatpush3.bf16.msra.mxu1 %v1843_v59  ;;  %1706 = vmatprep.subr.bf16.mxu0 %v1844_v60 }
  0x68   : > { %1728 = vmatprep.subr.bf16.mxu1 %v1845_v61 }
  0x6a   : > { %1707 = vmatpush3.bf16.msra.mxu0 %v1846_v62 }
  0x6b   : > { %1729 = vmatpush3.bf16.msra.mxu1 %v1847_v1 }
  0x6d   : > { %1228 = vmatmul.mubr.bf16.vlgmr.msra.gmra.mxu0 %v995_v6 }
  0x6e   : > { %1269 = vmatmul.mubr.bf16.vlgmr.msra.gmra.mxu1 %v997_v8 }
  0xed   : > { %v1620_v10 = vpop.f32.mrf.mxu0 }
  0xee   : > { %v1642_v11 = vpop.f32.mrf.mxu1 }
  0xef   : > { %v1621_v12 = vpop.f32.mrf.mxu0 }
  0xf0   : > { %v1643_v13 = vpop.f32.mrf.mxu1  ;;  %v1622_v22 = vadd.f32 %v1621_v12, %v1620_v10 }
  0xf1   : > { %v1623_v33 = vpop.f32.mrf.mxu0  ;;  %v1644_v23 = vadd.f32 %v1643_v13, %v1642_v11 }
  0xf2   : > { %v1645_v14 = vpop.f32.mrf.mxu1 }
  0xf3   : > { %v1624_v15 = vpop.f32.mrf.mxu0  ;;  %v624_v27 = vadd.f32 %v1644_v23, %v1622_v22 }
  0xf4   : > { %v1646_v16 = vpop.f32.mrf.mxu1  ;;  %v1625_v28 = vadd.f32 %v1624_v15, %v1623_v33 }
  0xf5   : > { %v1647_v29 = vadd.f32 %v1646_v16, %v1645_v14 }
  0xf7   : > { %v627_v39 = vadd.f32 %v1647_v29, %v1625_v28 }
 0x10d   : > { %v1664_v17 = vpop.f32.mrf.mxu0 }
 0x10e   : > { %v1686_v36 = vpop.f32.mrf.mxu1 }
 0x10f   : > { %v1665_v18 = vpop.f32.mrf.mxu0 }
 0x110   : > { %v1687_v19 = vpop.f32.mrf.mxu1  ;;  %v1666_v24 = vadd.f32 %v1665_v18, %v1664_v17 }
 0x111   : > { %v1667_v20 = vpop.f32.mrf.mxu0  ;;  %v1688_v40 = vadd.f32 %v1687_v19, %v1686_v36 }
 0x112   : > { %v1689_v21 = vpop.f32.mrf.mxu1  ;;  %v871_v35 = vadd.f32 %v1666_v24, %v624_v27 }
 0x113   : > { %v1668_v25 = vpop.f32.mrf.mxu0 }
 0x114   : > { %v1690_v26 = vpop.f32.mrf.mxu1  ;;  %v1669_v37 = vadd.f32 %v1668_v25, %v1667_v20  ;;  %v912_v44 = vadd.f32 %v1688_v40, %v871_v35 }
 0x115   : > { %v1691_v51 = vadd.f32 %v1690_v26, %v1689_v21 }
 0x116   : > { %v874_v45 = vadd.f32 %v1669_v37, %v627_v39 }
 0x118   : > { %v915_v54 = vadd.f32 %v1691_v51, %v874_v45 }
 0x12d   : > { %v1708_v30 = vpop.f32.mrf.mxu0 }
 0x12e   : > { %v1730_v31 = vpop.f32.mrf.mxu1 }
 0x12f   : > { %v1709_v38 = vpop.f32.mrf.mxu0 }
 0x130   : > { %v1710_v32 = vadd.f32 %v1709_v38, %v1708_v30  ;;  %v1731_v34 = vpop.f32.mrf.mxu1 }
 0x131   : > { %v1732_v41 = vadd.f32 %v1731_v34, %v1730_v31  ;;  %v1711_v42 = vpop.f32.mrf.mxu0 }
 0x132   : > { %v1733_v43 = vpop.f32.mrf.mxu1 }
 0x133   : > { %v1271_v46 = vadd.f32 %v1732_v41, %v1710_v32  ;;  %v1712_v47 = vpop.f32.mrf.mxu0 }
 0x134   : > { %v1713_v49 = vadd.f32 %v1712_v47, %v1711_v42  ;;  %v1734_v50 = vpop.f32.mrf.mxu1 }
 0x135   : > { %v1277_v52 = vadd.f32 %v1271_v46, %v912_v44  ;;  %v1735_v53 = vadd.f32 %v1734_v50, %v1733_v43 }
 0x137   : > { %v1285_v55 = vadd.f32 %v1599_v48, %v1277_v52  ;;  %v1274_v56 = vadd.f32 %v1735_v53, %v1713_v49 }
 0x139   : > { %v1287_v57 = vmul.f32 0.5, %v1285_v55  ;;  %v1278_v58 = vadd.f32 %v1274_v56, %v915_v54 }
 0x13b   : > { %1852 = vtanh.f32 %v1287_v57  ;;  %v1286_v59 = vadd.f32 %v1599_v48, %v1278_v58 }
 0x13d   : > { %v1288_v60 = vmul.f32 0.5, %v1286_v59 }
 0x13f   : > { %1854 = vtanh.f32 %v1288_v60 }
 0x148   : > { %v1853_v61 = vpop.eup %1852 }
 0x149   : > { %v1291_v62 = vadd.f32 1.0, %v1853_v61 }
 0x14b   : > { %v1293_v63 = vmul.f32 0.5, %v1291_v62 }
 0x14c   : > { %v1855_v0 = vpop.eup %1854 }
 0x14d   : > { %1296 = vst.msk [vmem:[%s170_s19] sm:$0xff] %vm1295_vm0, %v1293_v63  ;;  %v1292_v1 = vadd.f32 1.0, %v1855_v0 }
 0x14f   : > { %v1294_v2 = vmul.f32 0.5, %v1292_v1 }
 0x151   : > { %1298 = vst.msk [vmem:[%s170_s19 + $0x8] sm:$0x3f] %vm1297_vm1, %v1294_v2 }
 0x152 PF: > { %s13_s12 = sadd.s32 1, %s1862_s12  }
 0x153   : > { %p10_p4 = scmp.ge.s32.totalorder %s13_s12, 4  }
 0x155   :  { %12 = sbr.rel (!%p10_p4) target bundleno = 1 (0x1), region = 64 }

// kernel: vae_forward.10
= control target key start
LH: loop header
LB: loop body
LE: loop exit
PB: predicated region body
PF: predicated region fallthrough
CT: control target
= control target key end

     0   :  { %s9350_s12 = smov 0   ;;  %s11885_s0 = inlined_call_operand.vmem [shape: bf16[2,9,576], index: 0, kind: input, shape index: {}]   ;;  %s11886_s1 = inlined_call_operand.vmem [shape: bf16[3,576,896], index: 1, kind: input, shape index: {}]   ;;  %s11887_s2 = inlined_call_operand.vmem [shape: f32[1,896], index: 2, kind: input, shape index: {}]   ;;  %s11888_s3 = inlined_call_operand.vmem [shape: bf16[2,7,896], index: 3, kind: output, shape index: {}]  }
   0x1 LB: > { %s6658_s13 = sadd.s32 4294967295, %s9325_s12   ;;  %p6662_p0 = scmp.ge.s32.totalorder %s9325_s12, 1  ;;  %s9325_s12 = sphi %s9350_s12, %s13_s12  }
   0x2   : > { %p137_p1 = scmp.lt.s32.totalorder %s9325_s12, 3 }
   0x4   : > { %p138_p2 = pnand %p6662_p0, %p137_p1 }
   0x5   : > { %p161_p3 = scmp.lt.s32.totalorder (!%p138_p2), %s6658_s13, 1 }
   0x6   : > { %141 = sbr.rel (%p138_p2) target bundleno = 992 (0x3e0), region = 32 }
   0xb   : > { %v8225_v0 = vld [vmem:[%s11886_s1 + $0x96c] ss:$28 sps:$4 sm:$0xff]   ;;  %v8231_v4 = vld [vmem:[%s11886_s1 + $0x934] ss:$28 sps:$4 sm:$0xff]   ;;  %v8237_v8 = vld [vmem:[%s11886_s1 + $0x8fc] ss:$28 sps:$4 sm:$0xff]  }
   0xc   : > { %v8227_v1 = vld [vmem:[%s11886_s1 + $0xcec] ss:$28 sps:$4 sm:$0xff]   ;;  %2105 = vmatprep.subr.bf16.mxu0 %v8225_v0  ;;  %v8233_v5 = vld [vmem:[%s11886_s1 + $0xcb4] ss:$28 sps:$4 sm:$0xff]   ;;  %v8239_v9 = vld [vmem:[%s11886_s1 + $0xc7c] ss:$28 sps:$4 sm:$0xff]  }
   0xd   : > { %v8229_v2 = vld [vmem:[%s11886_s1 + $0x968] ss:$28 sps:$4 sm:$0xff]   ;;  %2146 = vmatprep.subr.bf16.mxu1 %v8227_v1  ;;  %v8235_v6 = vld [vmem:[%s11886_s1 + $0x930] ss:$28 sps:$4 sm:$0xff]   ;;  %v8241_v10 = vld [vmem:[%s11886_s1 + $0x8f8] ss:$28 sps:$4 sm:$0xff]  }
   0xe   : > { %v8230_v3 = vld [vmem:[%s11886_s1 + $0xce8] ss:$28 sps:$4 sm:$0xff]   ;;  %2106 = vmatpush1.bf16.msra.mxu0 %v8229_v2  ;;  %v8236_v7 = vld [vmem:[%s11886_s1 + $0xcb0] ss:$28 sps:$4 sm:$0xff]   ;;  %v8242_v11 = vld [vmem:[%s11886_s1 + $0xc78] ss:$28 sps:$4 sm:$0xff]  }
   0xf   : > { %2147 = vmatpush1.bf16.msra.mxu1 %v8230_v3  ;;  %2107 = vmatprep.subr.bf16.mxu0 %v8231_v4  ;;  %v8243_v12 = vld [vmem:[%s11886_s1 + $0x8c4] ss:$28 sps:$4 sm:$0xff]   ;;  %v8249_v16 = vld [vmem:[%s11886_s1 + $0x88c] ss:$28 sps:$4 sm:$0xff]   ;;  %v8255_v20 = vld [vmem:[%s11886_s1 + $0x854] ss:$28 sps:$4 sm:$0xff]  }
  0x10   : > { %2148 = vmatprep.subr.bf16.mxu1 %v8233_v5  ;;  %v8245_v13 = vld [vmem:[%s11886_s1 + $0xc44] ss:$28 sps:$4 sm:$0xff]   ;;  %v8251_v17 = vld [vmem:[%s11886_s1 + $0xc0c] ss:$28 sps:$4 sm:$0xff]   ;;  %v8257_v21 = vld [vmem:[%s11886_s1 + $0xbd4] ss:$28 sps:$4 sm:$0xff]  }
  0x11   : > { %v8247_v14 = vld [vmem:[%s11886_s1 + $0x8c0] ss:$28 sps:$4 sm:$0xff]   ;;  %v8253_v18 = vld [vmem:[%s11886_s1 + $0x888] ss:$28 sps:$4 sm:$0xff]   ;;  %v8259_v22 = vld [vmem:[%s11886_s1 + $0x850] ss:$28 sps:$4 sm:$0xff]  }
  0x12   : > { %2108 = vmatpush1.bf16.msra.mxu0 %v8235_v6  ;;  %v8248_v15 = vld [vmem:[%s11886_s1 + $0xc40] ss:$28 sps:$4 sm:$0xff]   ;;  %v8254_v19 = vld [vmem:[%s11886_s1 + $0xc08] ss:$28 sps:$4 sm:$0xff]   ;;  %v8260_v23 = vld [vmem:[%s11886_s1 + $0xbd0] ss:$28 sps:$4 sm:$0xff]  }
  0x13   : > { %2149 = vmatpush1.bf16.msra.mxu1 %v8236_v7  ;;  %2109 = vmatprep.subr.bf16.mxu0 %v8237_v8  ;;  %v8261_v24 = vld [vmem:[%s11886_s1 + $0x81c] ss:$28 sps:$4 sm:$0xff]   ;;  %v8267_v28 = vld [vmem:[%s11886_s1 + $0x7e4] ss:$28 sps:$4 sm:$0xff]   ;;  %v8273_v32 = vld [vmem:[%s11886_s1 + $0xb2c] ss:$28 sps:$4 sm:$0xff]  }
  0x14   : > { %2150 = vmatprep.subr.bf16.mxu1 %v8239_v9  ;;  %v8263_v25 = vld [vmem:[%s11886_s1 + $0xb9c] ss:$28 sps:$4 sm:$0xff]   ;;  %v8269_v29 = vld [vmem:[%s11886_s1 + $0xb64] ss:$28 sps:$4 sm:$0xff]   ;;  %v8275_v33 = vld [vmem:[%s11886_s1 + $0xeac] ss:$28 sps:$4 sm:$0xff]  }
  0x15   : > { %v8265_v26 = vld [vmem:[%s11886_s1 + $0x818] ss:$28 sps:$4 sm:$0xff]   ;;  %v8271_v30 = vld [vmem:[%s11886_s1 + $0x7e0] ss:$28 sps:$4 sm:$0xff]   ;;  %v8277_v34 = vld [vmem:[%s11886_s1 + $0xb28] ss:$28 sps:$4 sm:$0xff]  }
  0x16   : > { %2110 = vmatpush1.bf16.msra.mxu0 %v8241_v10  ;;  %v8266_v27 = vld [vmem:[%s11886_s1 + $0xb98] ss:$28 sps:$4 sm:$0xff]   ;;  %v8272_v31 = vld [vmem:[%s11886_s1 + $0xb60] ss:$28 sps:$4 sm:$0xff]   ;;  %v8278_v35 = vld [vmem:[%s11886_s1 + $0xea8] ss:$28 sps:$4 sm:$0xff]  }
  0x17   : > { %2151 = vmatpush1.bf16.msra.mxu1 %v8242_v11  ;;  %2111 = vmatprep.subr.bf16.mxu0 %v8243_v12  ;;  %s11894_s13 = smov (!%p161_p3, %s6658_s13), 1  ;;  %v8279_v36 = vld [vmem:[%s11886_s1 + $0xaf4] ss:$28 sps:$4 sm:$0xff]   ;;  %v8285_v40 = vld [vmem:[%s11886_s1 + $0xabc] ss:$28 sps:$4 sm:$0xff]   ;;  %vm2101_vm0 = vcmask 523264  }
  0x18   : > { %2152 = vmatprep.subr.bf16.mxu1 %v8245_v13  ;;  %v8281_v37 = vld [vmem:[%s11886_s1 + $0xe74] ss:$28 sps:$4 sm:$0xff]   ;;  %s8212_s17 = smul.u32 40, %s11894_s13  ;;  %v8287_v41 = vld [vmem:[%s11886_s1 + $0xe3c] ss:$28 sps:$4 sm:$0xff]   ;;  %vm9329_vm1 = vmmov 0  }
  0x19   : > { %v8283_v38 = vld [vmem:[%s11886_s1 + $0xaf0] ss:$28 sps:$4 sm:$0xff]   ;;  %v8289_v42 = vld [vmem:[%s11886_s1 + $0xab8] ss:$28 sps:$4 sm:$0xff]   ;;  %v8291_v44 = vld [vmem:[%s11886_s1 + $0xa84] ss:$28 sps:$4 sm:$0xff]  }
  0x1a   : > { %2112 = vmatpush1.bf16.msra.mxu0 %v8247_v14  ;;  %v8284_v39 = vld [vmem:[%s11886_s1 + $0xe70] ss:$28 sps:$4 sm:$0xff]   ;;  %v8290_v43 = vld [vmem:[%s11886_s1 + $0xe38] ss:$28 sps:$4 sm:$0xff]   ;;  %s9500_s30 = scalar_lea.vmem %s11885_s0, %s8212_s17  ;;  %v8293_v45 = vld [vmem:[%s11886_s1 + $0xe04] ss:$28 sps:$4 sm:$0xff]  }
  0x1b   : > { %2153 = vmatpush1.bf16.msra.mxu1 %v8248_v15  ;;  %2113 = vmatprep.subr.bf16.mxu0 %v8249_v16  ;;  %v8295_v46 = vld [vmem:[%s11886_s1 + $0xa80] ss:$28 sps:$4 sm:$0xff]   ;;  %v174_v49 = vld [vmem:[%s9500_s30 + $0x8] sm:$0xff]  ;;  %v8303_v62 = vld [vmem:[%s11886_s1 + $0xa14] ss:$28 sps:$4 sm:$0xff]   ;;  %s8213_s26 = smul.u32 28, %s11894_s13 }
  0x1c   : > { %2154 = vmatprep.subr.bf16.mxu1 %v8251_v17  ;;  %v173_v47 = vld [vmem:[%s9500_s30] sm:$0xff]  ;;  %v8297_v51 = vld [vmem:[%s11886_s1 + $0xa4c] ss:$28 sps:$4 sm:$0xff]   ;;  %v9521_v52 = vcombine.high %v174_v49, %v174_v49  ;;  %v8305_v63 = vld [vmem:[%s11886_s1 + $0xd94] ss:$28 sps:$4 sm:$0xff]   ;;  %v9549_v3 = vcombine.low %v174_v49, %v174_v49  ;;  %vm6584_vm2 = vcmask 1043456  }
  0x1d   : > { %v9512_v48 = vcombine.high %v173_v47, %v173_v47  ;;  %v8296_v50 = vld [vmem:[%s11886_s1 + $0xe00] ss:$28 sps:$4 sm:$0xff]   ;;  %v8299_v53 = vld [vmem:[%s11886_s1 + $0xdcc] ss:$28 sps:$4 sm:$0xff]   ;;  %v9547_v2 = vcombine.low %v173_v47, %v173_v47  ;;  %v8313_v8 = vld [vmem:[%s11886_s1 + $0x9d8] ss:$28 sps:$4 sm:$0xff]   ;;  %s11843_s29 = scalar_lea.vmem %s11888_s3, %s8213_s26 }
  0x1e   : > { %2114 = vmatpush1.bf16.msra.mxu0 %v8253_v18  ;;  %v788_v56 = vshrl.u32 %v9521_v52, 16  ;;  %v790_v57 = vshll.u32 %v9521_v52, 16  ;;  %v8301_v59 = vld [vmem:[%s11886_s1 + $0xa48] ss:$28 sps:$4 sm:$0xff]   ;;  %v8307_v4 = vld [vmem:[%s11886_s1 + $0xa10] ss:$28 sps:$4 sm:$0xff]  }
  0x1f   : > { %2155 = vmatpush1.bf16.msra.mxu1 %v8254_v19  ;;  %2115 = vmatprep.subr.bf16.mxu0 %v8255_v20  ;;  %v774_v54 = vshrl.u32 %v9512_v48, 16  ;;  %v776_v55 = vshll.u32 %v9512_v48, 16  ;;  %v8302_v60 = vld [vmem:[%s11886_s1 + $0xdc8] ss:$28 sps:$4 sm:$0xff]   ;;  %v8308_v5 = vld [vmem:[%s11886_s1 + $0xd90] ss:$28 sps:$4 sm:$0xff]  }
  0x20   : > { %2156 = vmatprep.subr.bf16.mxu1 %v8257_v21  ;;  %v792_v61 = vrot.slane %v790_v57, 1  ;;  %v8309_v6 = vld [vmem:[%s11886_s1 + $0x9dc] ss:$28 sps:$4 sm:$0xff]   ;;  %v769_v10 = vshll.u32 %v9547_v2, 16  ;;  %v783_v11 = vshll.u32 %v9549_v3, 16  ;;  %v767_v16 = vshrl.u32 %v9547_v2, 16 }
  0x21   : > { %v778_v58 = vrot.slane %v776_v55, 1  ;;  %v8311_v7 = vld [vmem:[%s11886_s1 + $0xd5c] ss:$28 sps:$4 sm:$0xff]   ;;  %v8315_v12 = vld [vmem:[%s11886_s1 + $0x9a4] ss:$28 sps:$4 sm:$0xff]   ;;  %v781_v18 = vshrl.u32 %v9549_v3, 16 }
  0x22   : > { %2116 = vmatpush1.bf16.msra.mxu0 %v8259_v22  ;;  %v9544_v1 = vor.u32 %v792_v61, %v788_v56  ;;  %v8314_v9 = vld [vmem:[%s11886_s1 + $0xd58] ss:$28 sps:$4 sm:$0xff]   ;;  %v8317_v13 = vld [vmem:[%s11886_s1 + $0xd24] ss:$28 sps:$4 sm:$0xff]   ;;  %v771_v17 = vrot.slane %v769_v10, 1  ;;  %v785_v19 = vrot.slane %v783_v11, 1 }
  0x23   : > { %2157 = vmatpush1.bf16.msra.mxu1 %v8260_v23  ;;  %2117 = vmatprep.subr.bf16.mxu0 %v8261_v24  ;;  %v9542_v0 = vor.u32 %v778_v58, %v774_v54  ;;  %v8319_v14 = vld [vmem:[%s11886_s1 + $0x9a0] ss:$28 sps:$4 sm:$0xff]   ;;  %v8327_v20 = vld [vmem:[%s11886_s1 + $0xf8c] ss:$28 sps:$4 sm:$0xff]   ;;  %v8330_v21 = vld [vmem:[%s11886_s1 + $0x974] ss:$28 sps:$4 sm:$0xff]  }
  0x24   : > { %2158 = vmatprep.subr.bf16.mxu1 %v8263_v25  ;;  %2178 = vmatprep.mubr.bf16.mxu1 %v9544_v1  ;;  %v8320_v15 = vld [vmem:[%s11886_s1 + $0xd20] ss:$28 sps:$4 sm:$0xff]   ;;  %v9592_v22 = vor.u32 %v771_v17, %v767_v16  ;;  %v9594_v23 = vor.u32 %v785_v19, %v781_v18  ;;  %v8325_v24 = vld [vmem:[%s11886_s1 + $0xf88] ss:$28 sps:$4 sm:$0xff]   ;;  %v8328_v25 = vld [vmem:[%s11886_s1 + $0x970] ss:$28 sps:$4 sm:$0xff]  }
  0x25   : > { %2137 = vmatprep.mubr.bf16.mxu0 %v9542_v0  ;;  %v8353_v47 = vld [vmem:[%s11886_s1 + $0xcf0] ss:$28 sps:$4 sm:$0xff]   ;;  %v8358_v49 = vld [vmem:[%s11886_s1 + $0x85c] ss:$28 sps:$4 sm:$0xff]   ;;  %v8364_v54 = vld [vmem:[%s11886_s1 + $0x824] ss:$28 sps:$4 sm:$0xff]  }
  0x26   : > { %2118 = vmatpush1.bf16.msra.mxu0 %v8265_v26  ;;  %v8333_v26 = vld [vmem:[%s11886_s1 + $0xf54] ss:$28 sps:$4 sm:$0xff]   ;;  %v8367_v55 = vld [vmem:[%s11886_s1 + $0xc84] ss:$28 sps:$4 sm:$0xff]   ;;  %v8370_v58 = vld [vmem:[%s11886_s1 + $0x7ec] ss:$28 sps:$4 sm:$0xff]  }
  0x27   : > { %2159 = vmatpush1.bf16.msra.mxu1 %v8266_v27  ;;  %2119 = vmatprep.subr.bf16.mxu0 %v8267_v28  ;;  %v8336_v27 = vld [vmem:[%s11886_s1 + $0x93c] ss:$28 sps:$4 sm:$0xff]   ;;  %v8331_v28 = vld [vmem:[%s11886_s1 + $0xf50] ss:$28 sps:$4 sm:$0xff]   ;;  %v8371_v61 = vld [vmem:[%s11886_s1 + $0xc48] ss:$28 sps:$4 sm:$0xff]  }
  0x28   : > { %2160 = vmatprep.subr.bf16.mxu1 %v8269_v29  ;;  %v8334_v29 = vld [vmem:[%s11886_s1 + $0x938] ss:$28 sps:$4 sm:$0xff]   ;;  %v8362_v56 = vld [vmem:[%s11886_s1 + $0x820] ss:$28 sps:$4 sm:$0xff]   ;;  %v8392_v16 = vld [vmem:[%s11886_s1 + $0xa88] ss:$28 sps:$4 sm:$0xff]  }
  0x29   : > { %v8365_v57 = vld [vmem:[%s11886_s1 + $0xc80] ss:$28 sps:$4 sm:$0xff]   ;;  %v8395_v17 = vld [vmem:[%s11886_s1 + $0xb68] ss:$28 sps:$4 sm:$0xff]   ;;  %v8400_v18 = vld [vmem:[%s11886_s1 + $0xa54] ss:$28 sps:$4 sm:$0xff]  }
  0x2a   : > { %2120 = vmatpush1.bf16.msra.mxu0 %v8271_v30  ;;  %v8349_v30 = vld [vmem:[%s9500_s30 + $0x10] ss:$0 sps:$4 sm:$0xff]   ;;  %v8388_v10 = vld [vmem:[%s11886_s1 + $0xac4] ss:$28 sps:$4 sm:$0xff]   ;;  %vm6585_vm3 = vsmask.f32 3328 }
  0x2b   : > { %2161 = vmatpush1.bf16.msra.mxu1 %v8272_v31  ;;  %2121 = vmatprep.subr.bf16.mxu0 %v8273_v32  ;;  %v8339_v31 = vld [vmem:[%s11886_s1 + $0xf1c] ss:$28 sps:$4 sm:$0xff]   ;;  %v8342_v32 = vld [vmem:[%s11886_s1 + $0x904] ss:$28 sps:$4 sm:$0xff]   ;;  %v8403_v19 = vld [vmem:[%s11886_s1 + $0xeb4] ss:$28 sps:$4 sm:$0xff]  }
  0x2c   : > { %2162 = vmatprep.subr.bf16.mxu1 %v8275_v33  ;;  %v9327_v33 = vmov 0   ;;  %v8391_v11 = vld [vmem:[%s11886_s1 + $0xba4] ss:$28 sps:$4 sm:$0xff]   ;;  %vm6587_vm4 = vcmask 1047556   ;;  %vm6588_vm5 = vsmask.f32 7424  ;;  %vm11836_vm6 = vmand %vm6584_vm2, %vm6585_vm3 }
  0x2d   : > { %vm6589_vm7 = vmand %vm6587_vm4, %vm6588_vm5 }
  0x2e   : > { %2122 = vmatpush2.bf16.msra.mxu0 %v8277_v34  ;;  %v8337_v34 = vld [vmem:[%s11886_s1 + $0xf18] ss:$28 sps:$4 sm:$0xff]   ;;  %vm11847_vm8 = vmor %vm6589_vm7, %vm11836_vm6 }
  0x2f   : > { %2163 = vmatpush2.bf16.msra.mxu1 %v8278_v35  ;;  %2123 = vmatprep.subr.bf16.mxu0 %v8279_v36  ;;  %v8340_v35 = vld [vmem:[%s11886_s1 + $0x900] ss:$28 sps:$4 sm:$0xff]   ;;  %v797_v36 = vshll.u32 %v8349_v30, 16 }
  0x30   : > { %2164 = vmatprep.subr.bf16.mxu1 %v8281_v37  ;;  %v8345_v37 = vld [vmem:[%s11886_s1 + $0xee4] ss:$28 sps:$4 sm:$0xff]  }
  0x32   : > { %2124 = vmatpush2.bf16.msra.mxu0 %v8283_v38  ;;  %v8348_v38 = vld [vmem:[%s11886_s1 + $0x8cc] ss:$28 sps:$4 sm:$0xff]  }
  0x33   : > { %2165 = vmatpush2.bf16.msra.mxu1 %v8284_v39  ;;  %2125 = vmatprep.subr.bf16.mxu0 %v8285_v40  ;;  %v8343_v39 = vld [vmem:[%s11886_s1 + $0xee0] ss:$28 sps:$4 sm:$0xff]   ;;  %v8346_v40 = vld [vmem:[%s11886_s1 + $0x8c8] ss:$28 sps:$4 sm:$0xff]  }
  0x34   : > { %2166 = vmatprep.subr.bf16.mxu1 %v8287_v41  ;;  %v795_v41 = vshrl.u32 %v8349_v30, 16  ;;  %v8410_v30 = vld [vmem:[%s11886_s1 + $0x9e0] ss:$28 sps:$4 sm:$0xff]  }
  0x36   : > { %2126 = vmatpush2.bf16.msra.mxu0 %v8289_v42  ;;  %v799_v42 = vrot.slane %v797_v36, 1  ;;  %v8419_v36 = vld [vmem:[%s11886_s1 + $0xe08] ss:$28 sps:$4 sm:$0xff]  }
  0x37   : > { %2167 = vmatpush2.bf16.msra.mxu1 %v8290_v43  ;;  %2127 = vmatprep.subr.bf16.mxu0 %v8291_v44  ;;  %v8352_v43 = vld [vmem:[%s11886_s1 + $0x894] ss:$28 sps:$4 sm:$0xff]  }
  0x38   : > { %2168 = vmatprep.subr.bf16.mxu1 %v8293_v45  ;;  %v8355_v44 = vld [vmem:[%s11886_s1 + $0xcf4] ss:$28 sps:$4 sm:$0xff]   ;;  %v9649_v45 = vor.u32 %v799_v42, %v795_v41  ;;  %v8430_v41 = vld [vmem:[%s11886_s1 + $0xd9c] ss:$28 sps:$4 sm:$0xff]  }
  0x39   : > { %v8433_v42 = vld [vmem:[%s11886_s1 + $0xf5c] ss:$28 sps:$4 sm:$0xff]  }
  0x3a   : > { %2128 = vmatpush2.bf16.msra.mxu0 %v8295_v46  ;;  %v8350_v46 = vld [vmem:[%s11886_s1 + $0x890] ss:$28 sps:$4 sm:$0xff]  }
  0x3b   : > { %2169 = vmatpush2.bf16.msra.mxu1 %v8296_v50  ;;  %2129 = vmatprep.subr.bf16.mxu0 %v8297_v51  ;;  %v8361_v50 = vld [vmem:[%s11886_s1 + $0xcbc] ss:$28 sps:$4 sm:$0xff]  }
  0x3c   : > { %2170 = vmatprep.subr.bf16.mxu1 %v8299_v53  ;;  %v8356_v51 = vld [vmem:[%s11886_s1 + $0x858] ss:$28 sps:$4 sm:$0xff]  }
  0x3d   : > { %v8359_v53 = vld [vmem:[%s11886_s1 + $0xcb8] ss:$28 sps:$4 sm:$0xff]  }
  0x3e   : > { %2130 = vmatpush2.bf16.msra.mxu0 %v8301_v59  ;;  %v8373_v59 = vld [vmem:[%s11886_s1 + $0xc4c] ss:$28 sps:$4 sm:$0xff]  }
  0x3f   : > { %2171 = vmatpush2.bf16.msra.mxu1 %v8302_v60  ;;  %2131 = vmatprep.subr.bf16.mxu0 %v8303_v62  ;;  %v8368_v60 = vld [vmem:[%s11886_s1 + $0x7e8] ss:$28 sps:$4 sm:$0xff]   ;;  %v8376_v62 = vld [vmem:[%s11886_s1 + $0xb34] ss:$28 sps:$4 sm:$0xff]  }
  0x40   : > { %2172 = vmatprep.subr.bf16.mxu1 %v8305_v63  ;;  %v8379_v63 = vld [vmem:[%s11886_s1 + $0xc14] ss:$28 sps:$4 sm:$0xff]  }
  0x42   : > { %2132 = vmatpush2.bf16.msra.mxu0 %v8307_v4  ;;  %v8374_v4 = vld [vmem:[%s11886_s1 + $0xb30] ss:$28 sps:$4 sm:$0xff]  }
  0x43   : > { %2173 = vmatpush2.bf16.msra.mxu1 %v8308_v5  ;;  %2133 = vmatprep.subr.bf16.mxu0 %v8309_v6  ;;  %v8377_v5 = vld [vmem:[%s11886_s1 + $0xc10] ss:$28 sps:$4 sm:$0xff]   ;;  %v8382_v6 = vld [vmem:[%s11886_s1 + $0xafc] ss:$28 sps:$4 sm:$0xff]  }
  0x44   : > { %2174 = vmatprep.subr.bf16.mxu1 %v8311_v7  ;;  %v8385_v7 = vld [vmem:[%s11886_s1 + $0xbdc] ss:$28 sps:$4 sm:$0xff]  }
  0x46   : > { %2134 = vmatpush2.bf16.msra.mxu0 %v8313_v8  ;;  %v8380_v8 = vld [vmem:[%s11886_s1 + $0xaf8] ss:$28 sps:$4 sm:$0xff]  }
  0x47   : > { %2175 = vmatpush2.bf16.msra.mxu1 %v8314_v9  ;;  %2135 = vmatprep.subr.bf16.mxu0 %v8315_v12  ;;  %v8383_v9 = vld [vmem:[%s11886_s1 + $0xbd8] ss:$28 sps:$4 sm:$0xff]   ;;  %v8386_v12 = vld [vmem:[%s11886_s1 + $0xac0] ss:$28 sps:$4 sm:$0xff]  }
  0x48   : > { %2176 = vmatprep.subr.bf16.mxu1 %v8317_v13  ;;  %v8389_v13 = vld [vmem:[%s11886_s1 + $0xba0] ss:$28 sps:$4 sm:$0xff]  }
  0x4a   : > { %2136 = vmatpush2.bf16.msra.mxu0 %v8319_v14  ;;  %v8394_v14 = vld [vmem:[%s11886_s1 + $0xa8c] ss:$28 sps:$4 sm:$0xff]  }
  0x4b   : > { %2177 = vmatpush2.bf16.msra.mxu1 %v8320_v15  ;;  %2195 = vmatprep.subr.bf16.mxu0 %v8327_v20  ;;  %v8397_v15 = vld [vmem:[%s11886_s1 + $0xb6c] ss:$28 sps:$4 sm:$0xff]  }
  0x4c   : > { %2228 = vmatprep.subr.bf16.mxu1 %v8330_v21  ;;  %v8398_v20 = vld [vmem:[%s11886_s1 + $0xa50] ss:$28 sps:$4 sm:$0xff]  }
  0x4d   : > { %2138 = vmatmul.mubr.bf16.vlgmr.msra.gmra.mxu0 %v9592_v22  ;;  %v8401_v21 = vld [vmem:[%s11886_s1 + $0xeb0] ss:$28 sps:$4 sm:$0xff]  }
  0x4e   : > { %2179 = vmatmul.mubr.bf16.vlgmr.msra.gmra.mxu1 %v9594_v23  ;;  %2196 = vmatpush1.bf16.msra.mxu0 %v8325_v24  ;;  %v8406_v24 = vld [vmem:[%s11886_s1 + $0xa1c] ss:$28 sps:$4 sm:$0xff]  }
  0x4f   : > { %2229 = vmatpush1.bf16.msra.mxu1 %v8328_v25  ;;  %2197 = vmatprep.subr.bf16.mxu0 %v8333_v26  ;;  %v8409_v25 = vld [vmem:[%s11886_s1 + $0xe7c] ss:$28 sps:$4 sm:$0xff]  }
  0x50   : > { %2230 = vmatprep.subr.bf16.mxu1 %v8336_v27  ;;  %2219 = vmatprep.mubr.bf16.mxu0 %v9327_v33  ;;  %v8404_v26 = vld [vmem:[%s11886_s1 + $0xa18] ss:$28 sps:$4 sm:$0xff]  }
  0x51   : > { %2260 = vmatprep.mubr.bf16.mxu1 %v9542_v0  ;;  %v8407_v27 = vld [vmem:[%s11886_s1 + $0xe78] ss:$28 sps:$4 sm:$0xff]  }
  0x52   : > { %2198 = vmatpush1.bf16.msra.mxu0 %v8331_v28  ;;  %v8412_v28 = vld [vmem:[%s11886_s1 + $0x9e4] ss:$28 sps:$4 sm:$0xff]  }
  0x53   : > { %2231 = vmatpush1.bf16.msra.mxu1 %v8334_v29  ;;  %2199 = vmatprep.subr.bf16.mxu0 %v8339_v31  ;;  %v8415_v29 = vld [vmem:[%s11886_s1 + $0xe44] ss:$28 sps:$4 sm:$0xff]  }
  0x54   : > { %2232 = vmatprep.subr.bf16.mxu1 %v8342_v32  ;;  %v8413_v31 = vld [vmem:[%s11886_s1 + $0xe40] ss:$28 sps:$4 sm:$0xff]   ;;  %v8418_v32 = vld [vmem:[%s11886_s1 + $0x9ac] ss:$28 sps:$4 sm:$0xff]  }
  0x56   : > { %2200 = vmatpush1.bf16.msra.mxu0 %v8337_v34  ;;  %v8421_v34 = vld [vmem:[%s11886_s1 + $0xe0c] ss:$28 sps:$4 sm:$0xff]  }
  0x57   : > { %2233 = vmatpush1.bf16.msra.mxu1 %v8340_v35  ;;  %2201 = vmatprep.subr.bf16.mxu0 %v8345_v37  ;;  %v8416_v35 = vld [vmem:[%s11886_s1 + $0x9a8] ss:$28 sps:$4 sm:$0xff]   ;;  %v8424_v37 = vld [vmem:[%s11886_s1 + $0xdd4] ss:$28 sps:$4 sm:$0xff]  }
  0x58   : > { %2234 = vmatprep.subr.bf16.mxu1 %v8348_v38  ;;  %v8427_v38 = vld [vmem:[%s11886_s1 + $0xf94] ss:$28 sps:$4 sm:$0xff]  }
  0x5a   : > { %2202 = vmatpush1.bf16.msra.mxu0 %v8343_v39  ;;  %v8422_v39 = vld [vmem:[%s11886_s1 + $0xdd0] ss:$28 sps:$4 sm:$0xff]  }
  0x5b   : > { %2235 = vmatpush1.bf16.msra.mxu1 %v8346_v40  ;;  %2269 = vmatprep.subr.bf16.mxu0 %v8355_v44  ;;  %v8425_v40 = vld [vmem:[%s11886_s1 + $0xf90] ss:$28 sps:$4 sm:$0xff]   ;;  %v8431_v44 = vld [vmem:[%s11886_s1 + $0xf58] ss:$28 sps:$4 sm:$0xff]  }
  0x5c   : > { %2236 = vmatprep.subr.bf16.mxu1 %v8352_v43  ;;  %v8428_v43 = vld [vmem:[%s11886_s1 + $0xd98] ss:$28 sps:$4 sm:$0xff]  }
  0x5d   : > { %7210 = vmatmul.mubr.msk.bf16.vlgmr.msra.gmra.mxu0 %vm2101_vm0, %v9649_v45 }
  0x5e   : > { %2270 = vmatpush1.bf16.msra.mxu0 %v8353_v47  ;;  %2301 = vmatprep.mubr.bf16.mxu0 %v9544_v1  ;;  %v8439_v47 = vld [vmem:[%s11886_s1 + $0xf24] ss:$28 sps:$4 sm:$0xff]  }
  0x5f   : > { %2237 = vmatpush1.bf16.msra.mxu1 %v8350_v46  ;;  %2271 = vmatprep.subr.bf16.mxu0 %v8361_v50  ;;  %v8436_v46 = vld [vmem:[%s11886_s1 + $0xd64] ss:$28 sps:$4 sm:$0xff]  }
  0x60   : > { %2238 = vmatprep.subr.bf16.mxu1 %v8358_v49  ;;  %v8434_v49 = vld [vmem:[%s11886_s1 + $0xd60] ss:$28 sps:$4 sm:$0xff]  }
  0x61   : > { %v8437_v50 = vld [vmem:[%s11886_s1 + $0xf20] ss:$28 sps:$4 sm:$0xff]  }
  0x62   : > { %2272 = vmatpush1.bf16.msra.mxu0 %v8359_v53  ;;  %v8445_v53 = vld [vmem:[%s11886_s1 + $0xeec] ss:$28 sps:$4 sm:$0xff]  }
  0x63   : > { %2239 = vmatpush1.bf16.msra.mxu1 %v8356_v51  ;;  %2273 = vmatprep.subr.bf16.mxu0 %v8367_v55  ;;  %v8442_v51 = vld [vmem:[%s11886_s1 + $0xd2c] ss:$28 sps:$4 sm:$0xff]  }
  0x64   : > { %2240 = vmatprep.subr.bf16.mxu1 %v8364_v54  ;;  %v8440_v54 = vld [vmem:[%s11886_s1 + $0xd28] ss:$28 sps:$4 sm:$0xff]  }
  0x65   : > { %v8443_v55 = vld [vmem:[%s11886_s1 + $0xee8] ss:$28 sps:$4 sm:$0xff]  }
  0x66   : > { %2274 = vmatpush1.bf16.msra.mxu0 %v8365_v57  ;;  %v8451_v57 = vld [vmem:[%s11886_s1 + $0xcfc] ss:$28 sps:$4 sm:$0xff]  }
  0x67   : > { %2241 = vmatpush1.bf16.msra.mxu1 %v8362_v56  ;;  %2275 = vmatprep.subr.bf16.mxu0 %v8373_v59  ;;  %v8448_v56 = vld [vmem:[%s11886_s1 + $0x97c] ss:$28 sps:$4 sm:$0xff]  }
  0x68   : > { %2242 = vmatprep.subr.bf16.mxu1 %v8370_v58  ;;  %v8446_v58 = vld [vmem:[%s11886_s1 + $0x978] ss:$28 sps:$4 sm:$0xff]  }
  0x69   : > { %v8449_v59 = vld [vmem:[%s11886_s1 + $0xcf8] ss:$28 sps:$4 sm:$0xff]  }
  0x6a   : > { %2276 = vmatpush1.bf16.msra.mxu0 %v8371_v61  ;;  %v8457_v61 = vld [vmem:[%s11886_s1 + $0xcc4] ss:$28 sps:$4 sm:$0xff]  }
  0x6b   : > { %2243 = vmatpush1.bf16.msra.mxu1 %v8368_v60  ;;  %2277 = vmatprep.subr.bf16.mxu0 %v8379_v63  ;;  %v8454_v60 = vld [vmem:[%s11886_s1 + $0x944] ss:$28 sps:$4 sm:$0xff]  }
  0x6c   : > { %2244 = vmatprep.subr.bf16.mxu1 %v8376_v62  ;;  %v8452_v62 = vld [vmem:[%s11886_s1 + $0x940] ss:$28 sps:$4 sm:$0xff]  }
  0x6d   : > { %v8455_v63 = vld [vmem:[%s11886_s1 + $0xcc0] ss:$28 sps:$4 sm:$0xff]  }
  0x6e   : > { %2278 = vmatpush1.bf16.msra.mxu0 %v8377_v5  ;;  %v8463_v5 = vld [vmem:[%s11886_s1 + $0xc8c] ss:$28 sps:$4 sm:$0xff]  }
  0x6f   : > { %2245 = vmatpush2.bf16.msra.mxu1 %v8374_v4  ;;  %2279 = vmatprep.subr.bf16.mxu0 %v8385_v7  ;;  %v8460_v4 = vld [vmem:[%s11886_s1 + $0x90c] ss:$28 sps:$4 sm:$0xff]  }
  0x70   : > { %2246 = vmatprep.subr.bf16.mxu1 %v8382_v6  ;;  %v8458_v6 = vld [vmem:[%s11886_s1 + $0x908] ss:$28 sps:$4 sm:$0xff]  }
  0x71   : > { %v8461_v7 = vld [vmem:[%s11886_s1 + $0xc88] ss:$28 sps:$4 sm:$0xff]  }
  0x72   : > { %2280 = vmatpush1.bf16.msra.mxu0 %v8383_v9  ;;  %v8469_v9 = vld [vmem:[%s11886_s1 + $0xc54] ss:$28 sps:$4 sm:$0xff]  }
  0x73   : > { %2247 = vmatpush2.bf16.msra.mxu1 %v8380_v8  ;;  %2281 = vmatprep.subr.bf16.mxu0 %v8391_v11  ;;  %v8466_v8 = vld [vmem:[%s11886_s1 + $0x8d4] ss:$28 sps:$4 sm:$0xff]  }
  0x74   : > { %2248 = vmatprep.subr.bf16.mxu1 %v8388_v10  ;;  %v8464_v10 = vld [vmem:[%s11886_s1 + $0x8d0] ss:$28 sps:$4 sm:$0xff]  }
  0x75   : > { %v8467_v11 = vld [vmem:[%s11886_s1 + $0xc50] ss:$28 sps:$4 sm:$0xff]  }
  0x76   : > { %2282 = vmatpush1.bf16.msra.mxu0 %v8389_v13  ;;  %v8475_v13 = vld [vmem:[%s11886_s1 + $0xc1c] ss:$28 sps:$4 sm:$0xff]  }
  0x77   : > { %2249 = vmatpush2.bf16.msra.mxu1 %v8386_v12  ;;  %2283 = vmatprep.subr.bf16.mxu0 %v8397_v15  ;;  %v8472_v12 = vld [vmem:[%s11886_s1 + $0x89c] ss:$28 sps:$4 sm:$0xff]  }
  0x78   : > { %2250 = vmatprep.subr.bf16.mxu1 %v8394_v14  ;;  %v8470_v14 = vld [vmem:[%s11886_s1 + $0x898] ss:$28 sps:$4 sm:$0xff]  }
  0x79   : > { %v8473_v15 = vld [vmem:[%s11886_s1 + $0xc18] ss:$28 sps:$4 sm:$0xff]  }
  0x7a   : > { %2284 = vmatpush1.bf16.msra.mxu0 %v8395_v17  ;;  %v8481_v17 = vld [vmem:[%s11886_s1 + $0xbe4] ss:$28 sps:$4 sm:$0xff]  }
  0x7b   : > { %2251 = vmatpush2.bf16.msra.mxu1 %v8392_v16  ;;  %2285 = vmatprep.subr.bf16.mxu0 %v8403_v19  ;;  %v8478_v16 = vld [vmem:[%s11886_s1 + $0x864] ss:$28 sps:$4 sm:$0xff]  }
  0x7c   : > { %2252 = vmatprep.subr.bf16.mxu1 %v8400_v18  ;;  %v8476_v18 = vld [vmem:[%s11886_s1 + $0x860] ss:$28 sps:$4 sm:$0xff]  }
  0x7d   : > { %v8479_v19 = vld [vmem:[%s11886_s1 + $0xbe0] ss:$28 sps:$4 sm:$0xff]  }
  0x7e   : > { %2286 = vmatpush2.bf16.msra.mxu0 %v8401_v21  ;;  %v8487_v21 = vld [vmem:[%s11886_s1 + $0xbac] ss:$28 sps:$4 sm:$0xff]  }
  0x7f   : > { %2253 = vmatpush2.bf16.msra.mxu1 %v8398_v20  ;;  %2287 = vmatprep.subr.bf16.mxu0 %v8409_v25  ;;  %v8484_v20 = vld [vmem:[%s11886_s1 + $0x82c] ss:$28 sps:$4 sm:$0xff]  }
  0x80   : > { %2254 = vmatprep.subr.bf16.mxu1 %v8406_v24  ;;  %v8482_v24 = vld [vmem:[%s11886_s1 + $0x828] ss:$28 sps:$4 sm:$0xff]  }
  0x81   : > { %v8485_v25 = vld [vmem:[%s11886_s1 + $0xba8] ss:$28 sps:$4 sm:$0xff]  }
  0x82   : > { %2288 = vmatpush2.bf16.msra.mxu0 %v8407_v27  ;;  %v8493_v27 = vld [vmem:[%s11886_s1 + $0xb74] ss:$28 sps:$4 sm:$0xff]  }
  0x83   : > { %2255 = vmatpush2.bf16.msra.mxu1 %v8404_v26  ;;  %2289 = vmatprep.subr.bf16.mxu0 %v8415_v29  ;;  %v8490_v26 = vld [vmem:[%s11886_s1 + $0x7f4] ss:$28 sps:$4 sm:$0xff]  }
  0x84   : > { %2256 = vmatprep.subr.bf16.mxu1 %v8412_v28  ;;  %v8488_v28 = vld [vmem:[%s11886_s1 + $0x7f0] ss:$28 sps:$4 sm:$0xff]  }
  0x85   : > { %v8491_v29 = vld [vmem:[%s11886_s1 + $0xb70] ss:$28 sps:$4 sm:$0xff]  }
  0x86   : > { %2290 = vmatpush2.bf16.msra.mxu0 %v8413_v31  ;;  %v8499_v31 = vld [vmem:[%s11886_s1 + $0xebc] ss:$28 sps:$4 sm:$0xff]  }
  0x87   : > { %2257 = vmatpush2.bf16.msra.mxu1 %v8410_v30  ;;  %2291 = vmatprep.subr.bf16.mxu0 %v8421_v34  ;;  %v8496_v30 = vld [vmem:[%s11886_s1 + $0xb3c] ss:$28 sps:$4 sm:$0xff]  }
  0x88   : > { %2258 = vmatprep.subr.bf16.mxu1 %v8418_v32  ;;  %v8494_v32 = vld [vmem:[%s11886_s1 + $0xb38] ss:$28 sps:$4 sm:$0xff]  }
  0x89   : > { %v8497_v34 = vld [vmem:[%s11886_s1 + $0xeb8] ss:$28 sps:$4 sm:$0xff]  }
  0x8a   : > { %2292 = vmatpush2.bf16.msra.mxu0 %v8419_v36  ;;  %v8505_v36 = vld [vmem:[%s11886_s1 + $0xe84] ss:$28 sps:$4 sm:$0xff]  }
  0x8b   : > { %2259 = vmatpush2.bf16.msra.mxu1 %v8416_v35  ;;  %2293 = vmatprep.subr.bf16.mxu0 %v8424_v37  ;;  %v8502_v35 = vld [vmem:[%s11886_s1 + $0xb04] ss:$28 sps:$4 sm:$0xff]  }
  0x8c   : > { %2318 = vmatprep.subr.bf16.mxu1 %v8427_v38  ;;  %v8500_v37 = vld [vmem:[%s11886_s1 + $0xb00] ss:$28 sps:$4 sm:$0xff]  }
  0x8d   : > { %v8503_v38 = vld [vmem:[%s11886_s1 + $0xe80] ss:$28 sps:$4 sm:$0xff]  }
  0x8e   : > { %2261 = vmatmul.mubr.bf16.vlgmr.msra.gmra.mxu1 %v9592_v22  ;;  %2294 = vmatpush2.bf16.msra.mxu0 %v8422_v39  ;;  %v8508_v39 = vld [vmem:[%s11886_s1 + $0xacc] ss:$28 sps:$4 sm:$0xff]  }
  0x8f   : > { %2319 = vmatpush1.bf16.msra.mxu1 %v8425_v40  ;;  %2295 = vmatprep.subr.bf16.mxu0 %v8430_v41  ;;  %v8511_v40 = vld [vmem:[%s11886_s1 + $0xe4c] ss:$28 sps:$4 sm:$0xff]  }
  0x90   : > { %2320 = vmatprep.subr.bf16.mxu1 %v8433_v42  ;;  %2342 = vmatprep.mubr.bf16.mxu1 %v9327_v33  ;;  %v8506_v41 = vld [vmem:[%s11886_s1 + $0xac8] ss:$28 sps:$4 sm:$0xff]  }
  0x91   : > { %v8509_v42 = vld [vmem:[%s11886_s1 + $0xe48] ss:$28 sps:$4 sm:$0xff]  }
  0x92   : > { %2296 = vmatpush2.bf16.msra.mxu0 %v8428_v43  ;;  %v8514_v43 = vld [vmem:[%s11886_s1 + $0xa94] ss:$28 sps:$4 sm:$0xff]  }
  0x93   : > { %2321 = vmatpush1.bf16.msra.mxu1 %v8431_v44  ;;  %2297 = vmatprep.subr.bf16.mxu0 %v8436_v46  ;;  %v8517_v44 = vld [vmem:[%s11886_s1 + $0xe14] ss:$28 sps:$4 sm:$0xff]  }
  0x94   : > { %2322 = vmatprep.subr.bf16.mxu1 %v8439_v47  ;;  %v8512_v46 = vld [vmem:[%s11886_s1 + $0xa90] ss:$28 sps:$4 sm:$0xff]  }
  0x95   : > { %v8515_v47 = vld [vmem:[%s11886_s1 + $0xe10] ss:$28 sps:$4 sm:$0xff]  }
  0x96   : > { %2298 = vmatpush2.bf16.msra.mxu0 %v8434_v49  ;;  %v8520_v49 = vld [vmem:[%s11886_s1 + $0xa5c] ss:$28 sps:$4 sm:$0xff]  }
  0x97   : > { %2323 = vmatpush1.bf16.msra.mxu1 %v8437_v50  ;;  %2299 = vmatprep.subr.bf16.mxu0 %v8442_v51  ;;  %v8523_v50 = vld [vmem:[%s11886_s1 + $0xddc] ss:$28 sps:$4 sm:$0xff]  }
  0x98   : > { %2324 = vmatprep.subr.bf16.mxu1 %v8445_v53  ;;  %v8518_v51 = vld [vmem:[%s11886_s1 + $0xa58] ss:$28 sps:$4 sm:$0xff]  }
  0x99   : > { %v8521_v53 = vld [vmem:[%s11886_s1 + $0xdd8] ss:$28 sps:$4 sm:$0xff]  }
  0x9a   : > { %2300 = vmatpush2.bf16.msra.mxu0 %v8440_v54  ;;  %v8526_v54 = vld [vmem:[%s11886_s1 + $0xa24] ss:$28 sps:$4 sm:$0xff]  }
  0x9b   : > { %2325 = vmatpush1.bf16.msra.mxu1 %v8443_v55  ;;  %2351 = vmatprep.subr.bf16.mxu0 %v8448_v56  ;;  %v8529_v55 = vld [vmem:[%s11886_s1 + $0xda4] ss:$28 sps:$4 sm:$0xff]  }
  0x9c   : > { %2392 = vmatprep.subr.bf16.mxu1 %v8451_v57  ;;  %v8524_v56 = vld [vmem:[%s11886_s1 + $0xa20] ss:$28 sps:$4 sm:$0xff]  }
  0x9d   : > { %2302 = vmatmul.mubr.bf16.vlgmr.msra.gmra.mxu0 %v9594_v23  ;;  %v8527_v57 = vld [vmem:[%s11886_s1 + $0xda0] ss:$28 sps:$4 sm:$0xff]  }
  0x9e   : > { %7211 = vmatmul.mubr.msk.bf16.vlgmr.msra.gmra.mxu1 %vm2101_vm0, %v9649_v45  ;;  %2352 = vmatpush1.bf16.msra.mxu0 %v8446_v58  ;;  %v8532_v58 = vld [vmem:[%s11886_s1 + $0x9ec] ss:$28 sps:$4 sm:$0xff]  }
  0x9f   : > { %2393 = vmatpush1.bf16.msra.mxu1 %v8449_v59  ;;  %2353 = vmatprep.subr.bf16.mxu0 %v8454_v60  ;;  %v8535_v59 = vld [vmem:[%s11886_s1 + $0xd6c] ss:$28 sps:$4 sm:$0xff]  }
  0xa0   : > { %2394 = vmatprep.subr.bf16.mxu1 %v8457_v61  ;;  %2383 = vmatprep.mubr.bf16.mxu0 %v9542_v0  ;;  %v8530_v60 = vld [vmem:[%s11886_s1 + $0x9e8] ss:$28 sps:$4 sm:$0xff]  }
  0xa1   : > { %2424 = vmatprep.mubr.bf16.mxu1 %v9544_v1  ;;  %v8533_v61 = vld [vmem:[%s11886_s1 + $0xd68] ss:$28 sps:$4 sm:$0xff]  }
  0xa2   : > { %2354 = vmatpush1.bf16.msra.mxu0 %v8452_v62  ;;  %v8538_v62 = vld [vmem:[%s11886_s1 + $0x9b4] ss:$28 sps:$4 sm:$0xff]  }
  0xa3   : > { %2395 = vmatpush1.bf16.msra.mxu1 %v8455_v63  ;;  %2355 = vmatprep.subr.bf16.mxu0 %v8460_v4  ;;  %v8541_v63 = vld [vmem:[%s11886_s1 + $0xd34] ss:$28 sps:$4 sm:$0xff]  }
  0xa4   : > { %2396 = vmatprep.subr.bf16.mxu1 %v8463_v5  ;;  %v8536_v4 = vld [vmem:[%s11886_s1 + $0x9b0] ss:$28 sps:$4 sm:$0xff]  }
  0xa5   : > { %v8539_v5 = vld [vmem:[%s11886_s1 + $0xd30] ss:$28 sps:$4 sm:$0xff]  }
  0xa6   : > { %2356 = vmatpush1.bf16.msra.mxu0 %v8458_v6  ;;  %v8544_v6 = vld [vmem:[%s11886_s1 + $0xf9c] ss:$28 sps:$4 sm:$0xff]  }
  0xa7   : > { %2397 = vmatpush1.bf16.msra.mxu1 %v8461_v7  ;;  %2357 = vmatprep.subr.bf16.mxu0 %v8466_v8  ;;  %v8545_v7 = vld [vmem:[%s11886_s1 + $0xb40] ss:$28 sps:$4 sm:$0xff]   ;;  %v8542_v8 = vld [vmem:[%s11886_s1 + $0xf98] ss:$28 sps:$4 sm:$0xff]  }
  0xa8   : > { %2398 = vmatprep.subr.bf16.mxu1 %v8469_v9  ;;  %v8546_v9 = vld [vmem:[%s11886_s1 + $0x980] ss:$28 sps:$4 sm:$0xff]  }
  0xaa   : > { %2358 = vmatpush1.bf16.msra.mxu0 %v8464_v10  ;;  %v8549_v10 = vld [vmem:[%s11886_s1 + $0xf64] ss:$28 sps:$4 sm:$0xff]  }
  0xab   : > { %2399 = vmatpush1.bf16.msra.mxu1 %v8467_v11  ;;  %2359 = vmatprep.subr.bf16.mxu0 %v8472_v12  ;;  %v8550_v11 = vld [vmem:[%s11886_s1 + $0xb08] ss:$28 sps:$4 sm:$0xff]   ;;  %v8547_v12 = vld [vmem:[%s11886_s1 + $0xf60] ss:$28 sps:$4 sm:$0xff]  }
  0xac   : > { %2400 = vmatprep.subr.bf16.mxu1 %v8475_v13  ;;  %v8551_v13 = vld [vmem:[%s11886_s1 + $0x948] ss:$28 sps:$4 sm:$0xff]  }
  0xae   : > { %2360 = vmatpush1.bf16.msra.mxu0 %v8470_v14  ;;  %v8554_v14 = vld [vmem:[%s11886_s1 + $0xf2c] ss:$28 sps:$4 sm:$0xff]  }
  0xaf   : > { %2401 = vmatpush1.bf16.msra.mxu1 %v8473_v15  ;;  %2361 = vmatprep.subr.bf16.mxu0 %v8478_v16  ;;  %v8555_v15 = vld [vmem:[%s11886_s1 + $0xad0] ss:$28 sps:$4 sm:$0xff]   ;;  %v8552_v16 = vld [vmem:[%s11886_s1 + $0xf28] ss:$28 sps:$4 sm:$0xff]  }
  0xb0   : > { %2402 = vmatprep.subr.bf16.mxu1 %v8481_v17  ;;  %v8556_v17 = vld [vmem:[%s11886_s1 + $0x910] ss:$28 sps:$4 sm:$0xff]  }
  0xb2   : > { %2362 = vmatpush1.bf16.msra.mxu0 %v8476_v18  ;;  %v8559_v18 = vld [vmem:[%s11886_s1 + $0xef4] ss:$28 sps:$4 sm:$0xff]  }
  0xb3   : > { %2403 = vmatpush1.bf16.msra.mxu1 %v8479_v19  ;;  %2363 = vmatprep.subr.bf16.mxu0 %v8484_v20  ;;  %v8557_v19 = vld [vmem:[%s11886_s1 + $0xef0] ss:$28 sps:$4 sm:$0xff]   ;;  %v8561_v20 = vld [vmem:[%s11886_s1 + $0x8d8] ss:$28 sps:$4 sm:$0xff]  }
  0xb4   : > { %2404 = vmatprep.subr.bf16.mxu1 %v8487_v21  ;;  %v8562_v21 = vld [vmem:[%s11886_s1 + $0xa60] ss:$28 sps:$4 sm:$0xff]  }
  0xb6   : > { %2364 = vmatpush1.bf16.msra.mxu0 %v8482_v24  ;;  %v8563_v24 = vld [vmem:[%s11886_s1 + $0xec0] ss:$28 sps:$4 sm:$0xff]  }
  0xb7   : > { %2405 = vmatpush1.bf16.msra.mxu1 %v8485_v25  ;;  %2365 = vmatprep.subr.bf16.mxu0 %v8490_v26  ;;  %v8564_v25 = vld [vmem:[%s11886_s1 + $0x8a0] ss:$28 sps:$4 sm:$0xff]  }
  0xb8   : > { %2406 = vmatprep.subr.bf16.mxu1 %v8493_v27  ;;  %v8565_v26 = vld [vmem:[%s11886_s1 + $0xd00] ss:$28 sps:$4 sm:$0xff]   ;;  %v8566_v27 = vld [vmem:[%s11886_s1 + $0xa28] ss:$28 sps:$4 sm:$0xff]  }
  0xba   : > { %2366 = vmatpush1.bf16.msra.mxu0 %v8488_v28  ;;  %v8567_v28 = vld [vmem:[%s11886_s1 + $0xe88] ss:$28 sps:$4 sm:$0xff]  }
  0xbb   : > { %2407 = vmatpush1.bf16.msra.mxu1 %v8491_v29  ;;  %2367 = vmatprep.subr.bf16.mxu0 %v8496_v30  ;;  %v8568_v29 = vld [vmem:[%s11886_s1 + $0x868] ss:$28 sps:$4 sm:$0xff]  }
  0xbc   : > { %2408 = vmatprep.subr.bf16.mxu1 %v8499_v31  ;;  %v8569_v30 = vld [vmem:[%s11886_s1 + $0xcc8] ss:$28 sps:$4 sm:$0xff]   ;;  %v8570_v31 = vld [vmem:[%s11886_s1 + $0x9f0] ss:$28 sps:$4 sm:$0xff]  }
  0xbe   : > { %2368 = vmatpush2.bf16.msra.mxu0 %v8494_v32  ;;  %v8571_v32 = vld [vmem:[%s11886_s1 + $0xe50] ss:$28 sps:$4 sm:$0xff]  }
  0xbf   : > { %2409 = vmatpush2.bf16.msra.mxu1 %v8497_v34  ;;  %2369 = vmatprep.subr.bf16.mxu0 %v8502_v35  ;;  %v8572_v34 = vld [vmem:[%s11886_s1 + $0x830] ss:$28 sps:$4 sm:$0xff]  }
  0xc0   : > { %2410 = vmatprep.subr.bf16.mxu1 %v8505_v36  ;;  %v8573_v35 = vld [vmem:[%s11886_s1 + $0xc90] ss:$28 sps:$4 sm:$0xff]   ;;  %v8574_v36 = vld [vmem:[%s11886_s1 + $0x9b8] ss:$28 sps:$4 sm:$0xff]  }
  0xc2   : > { %2370 = vmatpush2.bf16.msra.mxu0 %v8500_v37  ;;  %v8576_v37 = vld [vmem:[%s11886_s1 + $0x7f8] ss:$28 sps:$4 sm:$0xff]  }
  0xc3   : > { %2411 = vmatpush2.bf16.msra.mxu1 %v8503_v38  ;;  %2371 = vmatprep.subr.bf16.mxu0 %v8508_v39  ;;  %v8577_v38 = vld [vmem:[%s11886_s1 + $0xc58] ss:$28 sps:$4 sm:$0xff]   ;;  %v8578_v39 = vld [vmem:[%s11886_s1 + $0xde0] ss:$28 sps:$4 sm:$0xff]  }
  0xc4   : > { %2412 = vmatprep.subr.bf16.mxu1 %v8511_v40  ;;  %v8579_v40 = vld [vmem:[%s11886_s1 + $0xc20] ss:$28 sps:$4 sm:$0xff]  }
  0xc6   : > { %2372 = vmatpush2.bf16.msra.mxu0 %v8506_v41  ;;  %v8580_v41 = vld [vmem:[%s11886_s1 + $0xfa0] ss:$28 sps:$4 sm:$0xff]  }
  0xc7   : > { %2413 = vmatpush2.bf16.msra.mxu1 %v8509_v42  ;;  %2373 = vmatprep.subr.bf16.mxu0 %v8514_v43  ;;  %v9328_v42 = vmov 0.0   ;;  %v8581_v43 = vld [vmem:[%s11886_s1 + $0xda8] ss:$28 sps:$4 sm:$0xff]  }
  0xc8   : > { %2414 = vmatprep.subr.bf16.mxu1 %v8517_v44  ;;  %v8582_v44 = vld [vmem:[%s11886_s1 + $0xbe8] ss:$28 sps:$4 sm:$0xff]  }
  0xca   : > { %2374 = vmatpush2.bf16.msra.mxu0 %v8512_v46  ;;  %v8583_v46 = vld [vmem:[%s11886_s1 + $0xf68] ss:$28 sps:$4 sm:$0xff]  }
  0xcb   : > { %2415 = vmatpush2.bf16.msra.mxu1 %v8515_v47  ;;  %2375 = vmatprep.subr.bf16.mxu0 %v8520_v49  ;;  %v8584_v47 = vld [vmem:[%s11886_s1 + $0xd70] ss:$28 sps:$4 sm:$0xff]  }
  0xcc   : > { %2416 = vmatprep.subr.bf16.mxu1 %v8523_v50  ;;  %v8586_v49 = vld [vmem:[%s11886_s1 + $0xf30] ss:$28 sps:$4 sm:$0xff]   ;;  %v8587_v50 = vld [vmem:[%s11886_s1 + $0xd38] ss:$28 sps:$4 sm:$0xff]  }
  0xce   : > { %2376 = vmatpush2.bf16.msra.mxu0 %v8518_v51  ;;  %v8588_v51 = vld [vmem:[%s11886_s1 + $0xb78] ss:$28 sps:$4 sm:$0xff]  }
  0xcf   : > { %2417 = vmatpush2.bf16.msra.mxu1 %v8521_v53  ;;  %2377 = vmatprep.subr.bf16.mxu0 %v8526_v54  ;;  %v8589_v53 = vld [vmem:[%s11886_s1 + $0xef8] ss:$28 sps:$4 sm:$0xff]   ;;  %v8592_v54 = vld [vmem:[%s11886_s1 + $0x18c] ss:$28 sps:$4 sm:$0xff]  }
  0xd0   : > { %2418 = vmatprep.subr.bf16.mxu1 %v8529_v55  ;;  %v8595_v55 = vld [vmem:[%s11886_s1 + $0x50c] ss:$28 sps:$4 sm:$0xff]  }
  0xd2   : > { %2378 = vmatpush2.bf16.msra.mxu0 %v8524_v56  ;;  %v8590_v56 = vld [vmem:[%s11886_s1 + $0x188] ss:$28 sps:$4 sm:$0xff]  }
  0xd3   : > { %2419 = vmatpush2.bf16.msra.mxu1 %v8527_v57  ;;  %2379 = vmatprep.subr.bf16.mxu0 %v8532_v58  ;;  %v8593_v57 = vld [vmem:[%s11886_s1 + $0x508] ss:$28 sps:$4 sm:$0xff]   ;;  %v8598_v58 = vld [vmem:[%s11886_s1 + $0x154] ss:$28 sps:$4 sm:$0xff]  }
  0xd4   : > { %2420 = vmatprep.subr.bf16.mxu1 %v8535_v59  ;;  %v8601_v59 = vld [vmem:[%s11886_s1 + $0x4d4] ss:$28 sps:$4 sm:$0xff]  }
  0xd6   : > { %2380 = vmatpush2.bf16.msra.mxu0 %v8530_v60 }
  0xd7   : > { %2421 = vmatpush2.bf16.msra.mxu1 %v8533_v61  ;;  %2381 = vmatprep.subr.bf16.mxu0 %v8538_v62  ;;  %v8596_v62 = vld [vmem:[%s11886_s1 + $0x150] ss:$28 sps:$4 sm:$0xff]  }
  0xd8   : > { %2422 = vmatprep.subr.bf16.mxu1 %v8541_v63  ;;  %v8599_v63 = vld [vmem:[%s11886_s1 + $0x4d0] ss:$28 sps:$4 sm:$0xff]  }
  0xda   : > { %2382 = vmatpush2.bf16.msra.mxu0 %v8536_v4 }
  0xdb   : > { %2423 = vmatpush2.bf16.msra.mxu1 %v8539_v5  ;;  %2441 = vmatprep.subr.bf16.mxu0 %v8544_v6  ;;  %v8604_v5 = vld [vmem:[%s11886_s1 + $0x11c] ss:$28 sps:$4 sm:$0xff]  }
  0xdc   : > { %8029 = vmatprep.subr.bf16.mxu1 %v8545_v7 }
  0xdd   : > { %2384 = vmatmul.mubr.bf16.vlgmr.msra.gmra.mxu0 %v9592_v22 }
  0xde   : > { %2425 = vmatmul.mubr.bf16.vlgmr.msra.gmra.mxu1 %v9594_v23  ;;  %2442 = vmatpush1.bf16.msra.mxu0 %v8542_v8 }
  0xdf   : > { %8030 = vmatpush3.bf16.msra.mxu1 %v8546_v9  ;;  %2443 = vmatprep.subr.bf16.mxu0 %v8549_v10  ;;  %v8602_v10 = vld [vmem:[%s11886_s1 + $0x118] ss:$28 sps:$4 sm:$0xff]  }
  0xe0   : > { %8031 = vmatprep.subr.bf16.mxu1 %v8550_v11  ;;  %2465 = vmatprep.mubr.bf16.mxu0 %v9327_v33  ;;  %v8605_v11 = vld [vmem:[%s11886_s1 + $0x498] ss:$28 sps:$4 sm:$0xff]  }
  0xe1   : > { %2506 = vmatprep.mubr.bf16.mxu1 %v9542_v0  ;;  %v8560_v0 = vld [vmem:[%s11886_s1 + $0xa98] ss:$28 sps:$4 sm:$0xff]  }
  0xe2   : > { %2444 = vmatpush1.bf16.msra.mxu0 %v8547_v12  ;;  %v8610_v12 = vld [vmem:[%s11886_s1 + $0xe4] ss:$28 sps:$4 sm:$0xff]  }
  0xe3   : > { %8032 = vmatpush3.bf16.msra.mxu1 %v8551_v13  ;;  %2445 = vmatprep.subr.bf16.mxu0 %v8554_v14 }
  0xe4   : > { %8033 = vmatprep.subr.bf16.mxu1 %v8555_v15  ;;  %v8613_v15 = vld [vmem:[%s11886_s1 + $0x464] ss:$28 sps:$4 sm:$0xff]  }
  0xe6   : > { %2446 = vmatpush1.bf16.msra.mxu0 %v8552_v16  ;;  %v8608_v16 = vld [vmem:[%s11886_s1 + $0xe0] ss:$28 sps:$4 sm:$0xff]  }
  0xe7   : > { %8034 = vmatpush3.bf16.msra.mxu1 %v8556_v17  ;;  %2447 = vmatprep.subr.bf16.mxu0 %v8559_v18  ;;  %v8611_v17 = vld [vmem:[%s11886_s1 + $0x460] ss:$28 sps:$4 sm:$0xff]   ;;  %v8616_v18 = vld [vmem:[%s11886_s1 + $0xac] ss:$28 sps:$4 sm:$0xff]  }
  0xe8   : > { %8035 = vmatprep.subr.bf16.mxu1 %v8560_v0  ;;  %v8619_v0 = vld [vmem:[%s11886_s1 + $0x42c] ss:$28 sps:$4 sm:$0xff]  }
  0xea   : > { %2448 = vmatpush1.bf16.msra.mxu0 %v8557_v19  ;;  %v8614_v19 = vld [vmem:[%s11886_s1 + $0xa8] ss:$28 sps:$4 sm:$0xff]  }
  0xeb   : > { %8036 = vmatpush3.bf16.msra.mxu1 %v8561_v20  ;;  %8051 = vmatprep.subr.bf16.mxu0 %v8563_v24  ;;  %v8617_v20 = vld [vmem:[%s11886_s1 + $0x428] ss:$28 sps:$4 sm:$0xff]   ;;  %v8625_v24 = vld [vmem:[%s11886_s1 + $0x3f4] ss:$28 sps:$4 sm:$0xff]  }
  0xec   : > { %8037 = vmatprep.subr.bf16.mxu1 %v8562_v21  ;;  %v8622_v21 = vld [vmem:[%s11886_s1 + $0x74] ss:$28 sps:$4 sm:$0xff]  }
  0xed   : > { %7212 = vmatmul.mubr.msk.bf16.vlgmr.msra.gmra.mxu0 %vm2101_vm0, %v9649_v45 }
  0xee   : > { %8052 = vmatpush3.bf16.msra.mxu0 %v8565_v26  ;;  %2546 = vmatprep.mubr.bf16.mxu0 %v9544_v1  ;;  %v8575_v1 = vld [vmem:[%s11886_s1 + $0xe18] ss:$28 sps:$4 sm:$0xff]   ;;  %v8620_v26 = vld [vmem:[%s11886_s1 + $0x70] ss:$28 sps:$4 sm:$0xff]  }
  0xef   : > { %8038 = vmatpush3.bf16.msra.mxu1 %v8564_v25  ;;  %8053 = vmatprep.subr.bf16.mxu0 %v8567_v28 }
  0xf0   : > { %8039 = vmatprep.subr.bf16.mxu1 %v8566_v27  ;;  %v8623_v27 = vld [vmem:[%s11886_s1 + $0x3f0] ss:$28 sps:$4 sm:$0xff]  }
  0xf2   : > { %8054 = vmatpush3.bf16.msra.mxu0 %v8569_v30 }
  0xf3   : > { %8040 = vmatpush3.bf16.msra.mxu1 %v8568_v29  ;;  %8055 = vmatprep.subr.bf16.mxu0 %v8571_v32  ;;  %v8628_v29 = vld [vmem:[%s11886_s1 + $0x3c] ss:$28 sps:$4 sm:$0xff]  }
  0xf4   : > { %8041 = vmatprep.subr.bf16.mxu1 %v8570_v31  ;;  %v8631_v31 = vld [vmem:[%s11886_s1 + $0x3bc] ss:$28 sps:$4 sm:$0xff]  }
  0xf6   : > { %8056 = vmatpush3.bf16.msra.mxu0 %v8573_v35  ;;  %v8626_v35 = vld [vmem:[%s11886_s1 + $0x38] ss:$28 sps:$4 sm:$0xff]  }
  0xf7   : > { %8042 = vmatpush3.bf16.msra.mxu1 %v8572_v34  ;;  %8057 = vmatprep.subr.bf16.mxu0 %v8575_v1  ;;  %v8634_v1 = vld [vmem:[%s11886_s1 + $0x4] ss:$28 sps:$4 sm:$0xff]  }
  0xf8   : > { %8043 = vmatprep.subr.bf16.mxu1 %v8574_v36  ;;  %v8629_v36 = vld [vmem:[%s11886_s1 + $0x3b8] ss:$28 sps:$4 sm:$0xff]  }
  0xfa   : > { %8058 = vmatpush3.bf16.msra.mxu0 %v8577_v38  ;;  %v8637_v38 = vld [vmem:[%s11886_s1 + $0x384] ss:$28 sps:$4 sm:$0xff]  }
  0xfb   : > { %8044 = vmatpush3.bf16.msra.mxu1 %v8576_v37  ;;  %8059 = vmatprep.subr.bf16.mxu0 %v8578_v39  ;;  %v8632_v39 = vld [vmem:[%s11886_s1] ss:$28 sps:$4 sm:$0xff]  }
  0xfc   : > { %8176 = vmatprep.subr.bf16.mxu1 %v9328_v42 }
  0xfe   : > { %2507 = vmatmul.mubr.bf16.vlgmr.msra.gmra.mxu1 %v9592_v22  ;;  %8060 = vmatpush3.bf16.msra.mxu0 %v8579_v40  ;;  %v8585_v22 = vld [vmem:[%s11886_s1 + $0xbb0] ss:$28 sps:$4 sm:$0xff]   ;;  %v8635_v40 = vld [vmem:[%s11886_s1 + $0x380] ss:$28 sps:$4 sm:$0xff]  }
  0xff   : > { %8177 = vmatpush3.bf16.msra.mxu1 %v8580_v41  ;;  %8061 = vmatprep.subr.bf16.mxu0 %v8581_v43  ;;  %v8640_v41 = vld [vmem:[%s11886_s1 + $0x34c] ss:$28 sps:$4 sm:$0xff]  }
 0x100   : > { %8178 = vmatprep.subr.bf16.mxu1 %v9328_v42  ;;  %8184 = vmatprep.mubr.msk.bf16.mxu1 %vm9329_vm1, %v9328_v42  ;;  %v8643_v43 = vld [vmem:[%s11886_s1 + $0x6cc] ss:$28 sps:$4 sm:$0xff]  }
 0x102   : > { %8062 = vmatpush3.bf16.msra.mxu0 %v8582_v44  ;;  %v8638_v44 = vld [vmem:[%s11886_s1 + $0x348] ss:$28 sps:$4 sm:$0xff]  }
 0x103   : > { %8179 = vmatpush3.bf16.msra.mxu1 %v8583_v46  ;;  %8063 = vmatprep.subr.bf16.mxu0 %v8584_v47  ;;  %v8641_v46 = vld [vmem:[%s11886_s1 + $0x6c8] ss:$28 sps:$4 sm:$0xff]   ;;  %v8646_v47 = vld [vmem:[%s11886_s1 + $0x314] ss:$28 sps:$4 sm:$0xff]  }
 0x104   : > { %8180 = vmatprep.subr.bf16.mxu1 %v9328_v42 }
 0x106   : > { %8064 = vmatpush3.bf16.msra.mxu0 %v8585_v22  ;;  %v8649_v22 = vld [vmem:[%s11886_s1 + $0x694] ss:$28 sps:$4 sm:$0xff]  }
 0x107   : > { %8181 = vmatpush3.bf16.msra.mxu1 %v8586_v49  ;;  %8065 = vmatprep.subr.bf16.mxu0 %v8587_v50  ;;  %v8644_v49 = vld [vmem:[%s11886_s1 + $0x310] ss:$28 sps:$4 sm:$0xff]  }
 0x108   : > { %8182 = vmatprep.subr.bf16.mxu1 %v9328_v42  ;;  %v8647_v50 = vld [vmem:[%s11886_s1 + $0x690] ss:$28 sps:$4 sm:$0xff]  }
 0x10a   : > { %8066 = vmatpush3.bf16.msra.mxu0 %v8588_v51  ;;  %v8652_v51 = vld [vmem:[%s11886_s1 + $0x2dc] ss:$28 sps:$4 sm:$0xff]  }
 0x10b   : > { %8183 = vmatpush3.bf16.msra.mxu1 %v8589_v53  ;;  %3896 = vmatprep.subr.bf16.mxu0 %v8592_v54  ;;  %v8655_v53 = vld [vmem:[%s11886_s1 + $0x65c] ss:$28 sps:$4 sm:$0xff]  }
 0x10c   : > { %3937 = vmatprep.subr.bf16.mxu1 %v8595_v55  ;;  %v8650_v54 = vld [vmem:[%s11886_s1 + $0x2d8] ss:$28 sps:$4 sm:$0xff]  }
 0x10d   : > { %v2139_v60 = vpop.f32.mrf.mxu0  ;;  %2547 = vmatmul.mubr.bf16.vlgmr.msra.gmra.mxu0 %v9594_v23  ;;  %v8653_v55 = vld [vmem:[%s11886_s1 + $0x658] ss:$28 sps:$4 sm:$0xff]  }
 0x10e   : > { %v2180_v61 = vpop.f32.mrf.mxu1  ;;  %8185 = vmatmul.mubr.msk.bf16.vlgmr.msra.gmra.mxu1 %vm2101_vm0, %v9649_v45  ;;  %3897 = vmatpush1.bf16.msra.mxu0 %v8590_v56  ;;  %v8607_v45 = vld [vmem:[%s11886_s1 + $0x49c] ss:$28 sps:$4 sm:$0xff]   ;;  %v8658_v56 = vld [vmem:[%s11886_s1 + $0x2a4] ss:$28 sps:$4 sm:$0xff]  }
 0x10f   : > { %v2181_v4 = vadd.f32 %v2180_v61, %v2139_v60  ;;  %3938 = vmatpush1.bf16.msra.mxu1 %v8593_v57  ;;  %v2141_v6 = vpop.f32.mrf.mxu0  ;;  %3898 = vmatprep.subr.bf16.mxu0 %v8598_v58  ;;  %v8661_v57 = vld [vmem:[%s11886_s1 + $0x624] ss:$28 sps:$4 sm:$0xff]   ;;  %v8664_v60 = vld [vmem:[%s11886_s1 + $0x26c] ss:$28 sps:$4 sm:$0xff]  }
 0x110   : > { %v2182_v23 = vpop.f32.mrf.mxu1  ;;  %3939 = vmatprep.subr.bf16.mxu1 %v8601_v59  ;;  %3928 = vmatprep.mubr.bf16.mxu0 %v9512_v48  ;;  %v8656_v58 = vld [vmem:[%s11886_s1 + $0x2a0] ss:$28 sps:$4 sm:$0xff]   ;;  %v8667_v61 = vld [vmem:[%s11886_s1 + $0x5ec] ss:$28 sps:$4 sm:$0xff]  }
 0x111   : > { %v2183_v7 = vadd.f32 %v2182_v23, %v2141_v6  ;;  %3969 = vmatprep.mubr.bf16.mxu1 %v9521_v52  ;;  %v2143_v8 = vpop.f32.mrf.mxu0  ;;  %v8659_v59 = vld [vmem:[%s11886_s1 + $0x620] ss:$28 sps:$4 sm:$0xff]   ;;  %v8668_v6 = vld [vmem:[%s11886_s1 + $0x230] ss:$28 sps:$4 sm:$0xff]  }
 0x112   : > { %v2184_v9 = vpop.f32.mrf.mxu1  ;;  %3899 = vmatpush1.bf16.msra.mxu0 %v8596_v62  ;;  %v8662_v62 = vld [vmem:[%s11886_s1 + $0x268] ss:$28 sps:$4 sm:$0xff]   ;;  %v8671_v23 = vld [vmem:[%s11886_s1 + $0x5b0] ss:$28 sps:$4 sm:$0xff]   ;;  %v8674_v8 = vld [vmem:[%s11886_s1 + $0x1f8] ss:$28 sps:$4 sm:$0xff]  }
 0x113   : > { %3940 = vmatpush1.bf16.msra.mxu1 %v8599_v63  ;;  %v2144_v13 = vpop.f32.mrf.mxu0  ;;  %3900 = vmatprep.subr.bf16.mxu0 %v8604_v5  ;;  %v8665_v63 = vld [vmem:[%s11886_s1 + $0x5e8] ss:$28 sps:$4 sm:$0xff]   ;;  %v8673_v5 = vld [vmem:[%s11886_s1 + $0x5b4] ss:$28 sps:$4 sm:$0xff]  }
 0x114   : > { %v2185_v14 = vpop.f32.mrf.mxu1  ;;  %3941 = vmatprep.subr.bf16.mxu1 %v8607_v45  ;;  %v8676_v45 = vld [vmem:[%s11886_s1 + $0x1fc] ss:$28 sps:$4 sm:$0xff]  }
 0x115   : > { %v8677_v9 = vld [vmem:[%s11886_s1 + $0x578] ss:$28 sps:$4 sm:$0xff]   ;;  %v8683_v13 = vld [vmem:[%s11886_s1 + $0x540] ss:$28 sps:$4 sm:$0xff]   ;;  %v8688_v14 = vld [vmem:[%s11886_s1 + $0x7ac] ss:$28 sps:$4 sm:$0xff]  }
 0x116   : > { %3901 = vmatpush1.bf16.msra.mxu0 %v8602_v10  ;;  %v8682_v10 = vld [vmem:[%s11886_s1 + $0x1c4] ss:$28 sps:$4 sm:$0xff]  }
 0x117   : > { %3942 = vmatpush1.bf16.msra.mxu1 %v8605_v11  ;;  %3902 = vmatprep.subr.bf16.mxu0 %v8610_v12  ;;  %v8685_v11 = vld [vmem:[%s11886_s1 + $0x544] ss:$28 sps:$4 sm:$0xff]  }
 0x118   : > { %3943 = vmatprep.subr.bf16.mxu1 %v8613_v15  ;;  %v8680_v12 = vld [vmem:[%s11886_s1 + $0x1c0] ss:$28 sps:$4 sm:$0xff]   ;;  %v8691_v15 = vld [vmem:[%s11886_s1 + $0x194] ss:$28 sps:$4 sm:$0xff]  }
 0x11a   : > { %3903 = vmatpush1.bf16.msra.mxu0 %v8608_v16  ;;  %v8686_v16 = vld [vmem:[%s11886_s1 + $0x7a8] ss:$28 sps:$4 sm:$0xff]  }
 0x11b   : > { %3944 = vmatpush1.bf16.msra.mxu1 %v8611_v17  ;;  %3904 = vmatprep.subr.bf16.mxu0 %v8616_v18  ;;  %v8689_v17 = vld [vmem:[%s11886_s1 + $0x190] ss:$28 sps:$4 sm:$0xff]  }
 0x11c   : > { %3945 = vmatprep.subr.bf16.mxu1 %v8619_v0  ;;  %v8694_v18 = vld [vmem:[%s11886_s1 + $0x774] ss:$28 sps:$4 sm:$0xff]   ;;  %v8697_v0 = vld [vmem:[%s11886_s1 + $0x15c] ss:$28 sps:$4 sm:$0xff]  }
 0x11d   : > { %v2221_v25 = vpop.f32.mrf.mxu0 }
 0x11e   : > { %v10262_v28 = vadd.f32 %v2221_v25, %v2181_v4  ;;  %3905 = vmatpush1.bf16.msra.mxu0 %v8614_v19  ;;  %v8670_v4 = vld [vmem:[%s11886_s1 + $0x234] ss:$28 sps:$4 sm:$0xff]   ;;  %v8700_v25 = vld [vmem:[%s11886_s1 + $0x73c] ss:$28 sps:$4 sm:$0xff]  }
 0x11f   : > { %3946 = vmatpush1.bf16.msra.mxu1 %v8617_v20  ;;  %v2223_v30 = vpop.f32.mrf.mxu0  ;;  %3906 = vmatprep.subr.bf16.mxu0 %v8622_v21  ;;  %v8692_v19 = vld [vmem:[%s11886_s1 + $0x770] ss:$28 sps:$4 sm:$0xff]   ;;  %v8695_v20 = vld [vmem:[%s11886_s1 + $0x158] ss:$28 sps:$4 sm:$0xff]  }
 0x120   : > { %3947 = vmatprep.subr.bf16.mxu1 %v8625_v24  ;;  %v10270_v32 = vadd.f32 %v2223_v30, %v2183_v7  ;;  %v8679_v7 = vld [vmem:[%s11886_s1 + $0x57c] ss:$28 sps:$4 sm:$0xff]  }
 0x121   : > { %v2225_v34 = vpop.f32.mrf.mxu0 }
 0x122   : > { %3907 = vmatpush1.bf16.msra.mxu0 %v8620_v26  ;;  %v8703_v26 = vld [vmem:[%s11886_s1 + $0x124] ss:$28 sps:$4 sm:$0xff]  }
 0x123   : > { %3948 = vmatpush1.bf16.msra.mxu1 %v8623_v27  ;;  %v2226_v37 = vpop.f32.mrf.mxu0  ;;  %3908 = vmatprep.subr.bf16.mxu0 %v8628_v29  ;;  %v8698_v27 = vld [vmem:[%s11886_s1 + $0x738] ss:$28 sps:$4 sm:$0xff]   ;;  %v8701_v29 = vld [vmem:[%s11886_s1 + $0x120] ss:$28 sps:$4 sm:$0xff]  }
 0x124   : > { %3949 = vmatprep.subr.bf16.mxu1 %v8631_v31  ;;  %v8706_v34 = vld [vmem:[%s11886_s1 + $0x704] ss:$28 sps:$4 sm:$0xff]   ;;  %v8712_v37 = vld [vmem:[%s11886_s1 + $0xb4] ss:$28 sps:$4 sm:$0xff]  }
 0x126   : > { %3909 = vmatpush1.bf16.msra.mxu0 %v8626_v35  ;;  %v8709_v35 = vld [vmem:[%s11886_s1 + $0xec] ss:$28 sps:$4 sm:$0xff]  }
 0x127   : > { %3950 = vmatpush1.bf16.msra.mxu1 %v8629_v36  ;;  %3910 = vmatprep.subr.bf16.mxu0 %v8634_v1  ;;  %v8704_v36 = vld [vmem:[%s11886_s1 + $0x700] ss:$28 sps:$4 sm:$0xff]   ;;  %v8707_v1 = vld [vmem:[%s11886_s1 + $0xe8] ss:$28 sps:$4 sm:$0xff]  }
 0x128   : > { %3951 = vmatprep.subr.bf16.mxu1 %v8637_v38  ;;  %v8715_v38 = vld [vmem:[%s11886_s1 + $0x514] ss:$28 sps:$4 sm:$0xff]  }
 0x12a   : > { %3911 = vmatpush1.bf16.msra.mxu0 %v8632_v39  ;;  %v8710_v39 = vld [vmem:[%s11886_s1 + $0xb0] ss:$28 sps:$4 sm:$0xff]  }
 0x12b   : > { %3952 = vmatpush1.bf16.msra.mxu1 %v8635_v40  ;;  %3912 = vmatprep.subr.bf16.mxu0 %v8640_v41  ;;  %v8713_v40 = vld [vmem:[%s11886_s1 + $0x510] ss:$28 sps:$4 sm:$0xff]   ;;  %v8718_v41 = vld [vmem:[%s11886_s1 + $0x7c] ss:$28 sps:$4 sm:$0xff]  }
 0x12c   : > { %3953 = vmatprep.subr.bf16.mxu1 %v8643_v43  ;;  %v8721_v43 = vld [vmem:[%s11886_s1 + $0x4dc] ss:$28 sps:$4 sm:$0xff]  }
 0x12e   : > { %3913 = vmatpush2.bf16.msra.mxu0 %v8638_v44  ;;  %v8716_v44 = vld [vmem:[%s11886_s1 + $0x78] ss:$28 sps:$4 sm:$0xff]  }
 0x12f   : > { %3954 = vmatpush2.bf16.msra.mxu1 %v8641_v46  ;;  %3914 = vmatprep.subr.bf16.mxu0 %v8646_v47  ;;  %v10460_v47 = vld [vmem:[%s9500_s30 + $0x10] ss:$0 sps:$4 sm:$0xff]  }
 0x130   : > { %3955 = vmatprep.subr.bf16.mxu1 %v8649_v22 }
 0x132   : > { %3915 = vmatpush2.bf16.msra.mxu0 %v8644_v49 }
 0x133   : > { %3956 = vmatpush2.bf16.msra.mxu1 %v8647_v50  ;;  %3916 = vmatprep.subr.bf16.mxu0 %v8652_v51  ;;  %v8719_v50 = vld [vmem:[%s11886_s1 + $0x4d8] ss:$28 sps:$4 sm:$0xff]   ;;  %v8724_v51 = vld [vmem:[%s11886_s1 + $0x44] ss:$28 sps:$4 sm:$0xff]  }
 0x134   : > { %3957 = vmatprep.subr.bf16.mxu1 %v8655_v53 }
 0x136   : > { %3917 = vmatpush2.bf16.msra.mxu0 %v8650_v54 }
 0x137   : > { %3958 = vmatpush2.bf16.msra.mxu1 %v8653_v55  ;;  %3918 = vmatprep.subr.bf16.mxu0 %v8658_v56  ;;  %v8727_v55 = vld [vmem:[%s11886_s1 + $0x4a4] ss:$28 sps:$4 sm:$0xff]  }
 0x138   : > { %3959 = vmatprep.subr.bf16.mxu1 %v8661_v57 }
 0x13a   : > { %3919 = vmatpush2.bf16.msra.mxu0 %v8656_v58  ;;  %v8722_v58 = vld [vmem:[%s11886_s1 + $0x40] ss:$28 sps:$4 sm:$0xff]  }
 0x13b   : > { %3960 = vmatpush2.bf16.msra.mxu1 %v8659_v59  ;;  %3920 = vmatprep.subr.bf16.mxu0 %v8664_v60 }
 0x13c   : > { %3961 = vmatprep.subr.bf16.mxu1 %v8667_v61 }
 0x13e   : > { %3921 = vmatpush2.bf16.msra.mxu0 %v8662_v62  ;;  %v8725_v62 = vld [vmem:[%s11886_s1 + $0x4a0] ss:$28 sps:$4 sm:$0xff]  }
 0x13f   : > { %3962 = vmatpush2.bf16.msra.mxu1 %v8665_v63  ;;  %3922 = vmatprep.subr.bf16.mxu0 %v8670_v4  ;;  %v8730_v63 = vld [vmem:[%s11886_s1 + $0xc] ss:$28 sps:$4 sm:$0xff]  }
 0x140   : > { %3963 = vmatprep.subr.bf16.mxu1 %v8673_v5 }
 0x142   : > { %3923 = vmatpush2.bf16.msra.mxu0 %v8668_v6  ;;  %v8733_v6 = vld [vmem:[%s11886_s1 + $0x46c] ss:$28 sps:$4 sm:$0xff]  }
 0x143   : > { %3964 = vmatpush2.bf16.msra.mxu1 %v8671_v23  ;;  %3924 = vmatprep.subr.bf16.mxu0 %v8676_v45  ;;  %v8728_v23 = vld [vmem:[%s11886_s1 + $0x8] ss:$28 sps:$4 sm:$0xff]  }
 0x144   : > { %3965 = vmatprep.subr.bf16.mxu1 %v8679_v7  ;;  %v8731_v45 = vld [vmem:[%s11886_s1 + $0x468] ss:$28 sps:$4 sm:$0xff]   ;;  %v8736_v7 = vld [vmem:[%s11886_s1 + $0x354] ss:$28 sps:$4 sm:$0xff]  }
 0x146   : > { %3925 = vmatpush2.bf16.msra.mxu0 %v8674_v8  ;;  %v8739_v8 = vld [vmem:[%s11886_s1 + $0x434] ss:$28 sps:$4 sm:$0xff]  }
 0x147   : > { %3966 = vmatpush2.bf16.msra.mxu1 %v8677_v9  ;;  %3926 = vmatprep.subr.bf16.mxu0 %v8682_v10  ;;  %v8734_v9 = vld [vmem:[%s11886_s1 + $0x350] ss:$28 sps:$4 sm:$0xff]  }
 0x148   : > { %3967 = vmatprep.subr.bf16.mxu1 %v8685_v11  ;;  %v8737_v10 = vld [vmem:[%s11886_s1 + $0x430] ss:$28 sps:$4 sm:$0xff]   ;;  %v8742_v11 = vld [vmem:[%s11886_s1 + $0x31c] ss:$28 sps:$4 sm:$0xff]  }
 0x14a   : > { %3927 = vmatpush2.bf16.msra.mxu0 %v8680_v12  ;;  %v8745_v12 = vld [vmem:[%s11886_s1 + $0x3fc] ss:$28 sps:$4 sm:$0xff]  }
 0x14b   : > { %3968 = vmatpush2.bf16.msra.mxu1 %v8683_v13  ;;  %3986 = vmatprep.subr.bf16.mxu0 %v8688_v14  ;;  %v8740_v13 = vld [vmem:[%s11886_s1 + $0x318] ss:$28 sps:$4 sm:$0xff]  }
 0x14c   : > { %4019 = vmatprep.subr.bf16.mxu1 %v8691_v15  ;;  %v8743_v14 = vld [vmem:[%s11886_s1 + $0x3f8] ss:$28 sps:$4 sm:$0xff]   ;;  %v8748_v15 = vld [vmem:[%s11886_s1 + $0x2e4] ss:$28 sps:$4 sm:$0xff]  }
 0x14d   : > { %3929 = vmatmul.mubr.bf16.vlgmr.msra.gmra.mxu0 %v9547_v2 }
 0x14e   : > { %v2262_v21 = vpop.f32.mrf.mxu1  ;;  %3970 = vmatmul.mubr.bf16.vlgmr.msra.gmra.mxu1 %v9549_v3  ;;  %3987 = vmatpush1.bf16.msra.mxu0 %v8686_v16  ;;  %v8751_v16 = vld [vmem:[%s11886_s1 + $0x3c4] ss:$28 sps:$4 sm:$0xff]  }
 0x14f   : > { %4020 = vmatpush1.bf16.msra.mxu1 %v8689_v17  ;;  %3988 = vmatprep.subr.bf16.mxu0 %v8694_v18  ;;  %v8746_v17 = vld [vmem:[%s11886_s1 + $0x2e0] ss:$28 sps:$4 sm:$0xff]  }
 0x150   : > { %v2264_v24 = vpop.f32.mrf.mxu1  ;;  %4021 = vmatprep.subr.bf16.mxu1 %v8697_v0  ;;  %4010 = vmatprep.mubr.bf16.mxu0 %v9327_v33  ;;  %v8749_v18 = vld [vmem:[%s11886_s1 + $0x3c0] ss:$28 sps:$4 sm:$0xff]   ;;  %v8754_v0 = vld [vmem:[%s11886_s1 + $0x2ac] ss:$28 sps:$4 sm:$0xff]  }
 0x151   : > { %4051 = vmatprep.mubr.bf16.mxu1 %v9512_v48 }
 0x152   : > { %v2266_v30 = vpop.f32.mrf.mxu1  ;;  %3989 = vmatpush1.bf16.msra.mxu0 %v8692_v19  ;;  %v8757_v19 = vld [vmem:[%s11886_s1 + $0x38c] ss:$28 sps:$4 sm:$0xff]  }
 0x153   : > { %4022 = vmatpush1.bf16.msra.mxu1 %v8695_v20  ;;  %3990 = vmatprep.subr.bf16.mxu0 %v8700_v25  ;;  %v8752_v20 = vld [vmem:[%s11886_s1 + $0x2a8] ss:$28 sps:$4 sm:$0xff]   ;;  %v8763_v25 = vld [vmem:[%s11886_s1 + $0x6d4] ss:$28 sps:$4 sm:$0xff]   ;;  %v8769_v30 = vld [vmem:[%s11886_s1 + $0x69c] ss:$28 sps:$4 sm:$0xff]  }
 0x154   : > { %v2267_v31 = vpop.f32.mrf.mxu1  ;;  %4023 = vmatprep.subr.bf16.mxu1 %v8703_v26  ;;  %v8758_v26 = vld [vmem:[%s11886_s1 + $0x270] ss:$28 sps:$4 sm:$0xff]  }
 0x155   : > { %v8764_v31 = vld [vmem:[%s11886_s1 + $0x238] ss:$28 sps:$4 sm:$0xff]  }
 0x156   : > { %3991 = vmatpush1.bf16.msra.mxu0 %v8698_v27  ;;  %v8761_v27 = vld [vmem:[%s11886_s1 + $0x6d0] ss:$28 sps:$4 sm:$0xff]  }
 0x157   : > { %4024 = vmatpush1.bf16.msra.mxu1 %v8701_v29  ;;  %3992 = vmatprep.subr.bf16.mxu0 %v8706_v34  ;;  %v8766_v29 = vld [vmem:[%s11886_s1 + $0x23c] ss:$28 sps:$4 sm:$0xff]  }
 0x158   : > { %4025 = vmatprep.subr.bf16.mxu1 %v8709_v35  ;;  %v8767_v34 = vld [vmem:[%s11886_s1 + $0x698] ss:$28 sps:$4 sm:$0xff]   ;;  %v8772_v35 = vld [vmem:[%s11886_s1 + $0x204] ss:$28 sps:$4 sm:$0xff]  }
 0x15a   : > { %3993 = vmatpush1.bf16.msra.mxu0 %v8704_v36  ;;  %v8775_v36 = vld [vmem:[%s11886_s1 + $0x664] ss:$28 sps:$4 sm:$0xff]  }
 0x15b   : > { %4026 = vmatpush1.bf16.msra.mxu1 %v8707_v1  ;;  %4060 = vmatprep.subr.bf16.mxu0 %v8715_v38  ;;  %v8770_v1 = vld [vmem:[%s11886_s1 + $0x200] ss:$28 sps:$4 sm:$0xff]   ;;  %v8778_v38 = vld [vmem:[%s11886_s1 + $0x1cc] ss:$28 sps:$4 sm:$0xff]  }
 0x15c   : > { %4027 = vmatprep.subr.bf16.mxu1 %v8712_v37  ;;  %v8773_v37 = vld [vmem:[%s11886_s1 + $0x660] ss:$28 sps:$4 sm:$0xff]  }
 0x15d   : > { %v2303_v46 = vpop.f32.mrf.mxu0  ;;  %7466 = vmatmul.mubr.msk.bf16.vlgmr.msra.gmra.mxu0 %vm2101_vm0, %v10460_v47 }
 0x15e   : > { %v2344_v22 = vpop.f32.mrf.mxu1  ;;  %v2304_v49 = vadd.f32 %v2303_v46, %v2262_v21  ;;  %4061 = vmatpush1.bf16.msra.mxu0 %v8713_v40  ;;  %4092 = vmatprep.mubr.bf16.mxu0 %v9521_v52  ;;  %v8755_v21 = vld [vmem:[%s11886_s1 + $0x388] ss:$28 sps:$4 sm:$0xff]   ;;  %v8782_v46 = vld [vmem:[%s11886_s1 + $0x5f0] ss:$28 sps:$4 sm:$0xff]  }
 0x15f   : > { %4028 = vmatpush1.bf16.msra.mxu1 %v8710_v39  ;;  %v2305_v53 = vpop.f32.mrf.mxu0  ;;  %4062 = vmatprep.subr.bf16.mxu0 %v8721_v43  ;;  %v8781_v39 = vld [vmem:[%s11886_s1 + $0x62c] ss:$28 sps:$4 sm:$0xff]   ;;  %v8784_v43 = vld [vmem:[%s11886_s1 + $0x5f4] ss:$28 sps:$4 sm:$0xff]  }
 0x160   : > { %v2346_v54 = vpop.f32.mrf.mxu1  ;;  %4029 = vmatprep.subr.bf16.mxu1 %v8718_v41  ;;  %v10473_v56 = vadd.f32 %v2344_v22, %v2304_v49  ;;  %v2306_v57 = vadd.f32 %v2305_v53, %v2264_v24  ;;  %v8760_v24 = vld [vmem:[%s11886_s1 + $0x274] ss:$28 sps:$4 sm:$0xff]   ;;  %v8776_v40 = vld [vmem:[%s11886_s1 + $0x1c8] ss:$28 sps:$4 sm:$0xff]   ;;  %v8790_v49 = vld [vmem:[%s11886_s1 + $0x5bc] ss:$28 sps:$4 sm:$0xff]  }
 0x161   : > { %v2307_v59 = vpop.f32.mrf.mxu0  ;;  %v8779_v41 = vld [vmem:[%s11886_s1 + $0x628] ss:$28 sps:$4 sm:$0xff]   ;;  %v8785_v22 = vld [vmem:[%s11886_s1 + $0x7b0] ss:$28 sps:$4 sm:$0xff]   ;;  %v8791_v53 = vld [vmem:[%s11886_s1 + $0x778] ss:$28 sps:$4 sm:$0xff]  }
 0x162   : > { %v2348_v60 = vpop.f32.mrf.mxu1  ;;  %v10479_v61 = vadd.f32 %v2346_v54, %v2306_v57  ;;  %4063 = vmatpush1.bf16.msra.mxu0 %v8719_v50  ;;  %v8793_v50 = vld [vmem:[%s11886_s1 + $0x77c] ss:$28 sps:$4 sm:$0xff]   ;;  %v8796_v54 = vld [vmem:[%s11886_s1 + $0x584] ss:$28 sps:$4 sm:$0xff]   ;;  %v8802_v59 = vld [vmem:[%s11886_s1 + $0x54c] ss:$28 sps:$4 sm:$0xff]  }
 0x163   : > { %4030 = vmatpush1.bf16.msra.mxu1 %v8716_v44  ;;  %v2308_v4 = vpop.f32.mrf.mxu0  ;;  %4064 = vmatprep.subr.bf16.mxu0 %v8727_v55  ;;  %v8787_v44 = vld [vmem:[%s11886_s1 + $0x7b4] ss:$28 sps:$4 sm:$0xff]   ;;  %v8799_v55 = vld [vmem:[%s11886_s1 + $0x744] ss:$28 sps:$4 sm:$0xff]   ;;  %v8805_v60 = vld [vmem:[%s11886_s1 + $0x70c] ss:$28 sps:$4 sm:$0xff]  }
 0x164   : > { %v2349_v5 = vpop.f32.mrf.mxu1  ;;  %4031 = vmatprep.subr.bf16.mxu1 %v8724_v51  ;;  %v8788_v51 = vld [vmem:[%s11886_s1 + $0x5b8] ss:$28 sps:$4 sm:$0xff]   ;;  %v8794_v57 = vld [vmem:[%s11886_s1 + $0x580] ss:$28 sps:$4 sm:$0xff]  }
 0x165   : > { %v8808_v4 = vld [vmem:[%s11886_s1 + $0x19c] ss:$28 sps:$4 sm:$0xff]  }
 0x166   : > { %4065 = vmatpush1.bf16.msra.mxu0 %v8725_v62  ;;  %v8800_v62 = vld [vmem:[%s11886_s1 + $0x548] ss:$28 sps:$4 sm:$0xff]   ;;  %v8811_v5 = vld [vmem:[%s11886_s1 + $0x51c] ss:$28 sps:$4 sm:$0xff]  }
 0x167   : > { %4032 = vmatpush1.bf16.msra.mxu1 %v8722_v58  ;;  %4066 = vmatprep.subr.bf16.mxu0 %v8733_v6  ;;  %v8797_v58 = vld [vmem:[%s11886_s1 + $0x740] ss:$28 sps:$4 sm:$0xff]   ;;  %v8806_v6 = vld [vmem:[%s11886_s1 + $0x198] ss:$28 sps:$4 sm:$0xff]  }
 0x168   : > { %4033 = vmatprep.subr.bf16.mxu1 %v8730_v63  ;;  %v8803_v63 = vld [vmem:[%s11886_s1 + $0x708] ss:$28 sps:$4 sm:$0xff]  }
 0x16a   : > { %4067 = vmatpush1.bf16.msra.mxu0 %v8731_v45  ;;  %v8814_v45 = vld [vmem:[%s11886_s1 + $0x164] ss:$28 sps:$4 sm:$0xff]  }
 0x16b   : > { %4034 = vmatpush1.bf16.msra.mxu1 %v8728_v23  ;;  %4068 = vmatprep.subr.bf16.mxu0 %v8739_v8  ;;  %v8809_v23 = vld [vmem:[%s11886_s1 + $0x518] ss:$28 sps:$4 sm:$0xff]   ;;  %v8812_v8 = vld [vmem:[%s11886_s1 + $0x160] ss:$28 sps:$4 sm:$0xff]  }
 0x16c   : > { %4035 = vmatprep.subr.bf16.mxu1 %v8736_v7  ;;  %v8817_v7 = vld [vmem:[%s11886_s1 + $0x4e4] ss:$28 sps:$4 sm:$0xff]  }
 0x16e   : > { %4069 = vmatpush1.bf16.msra.mxu0 %v8737_v10 }
 0x16f   : > { %4036 = vmatpush2.bf16.msra.mxu1 %v8734_v9  ;;  %4070 = vmatprep.subr.bf16.mxu0 %v8745_v12  ;;  %v8815_v9 = vld [vmem:[%s11886_s1 + $0x4e0] ss:$28 sps:$4 sm:$0xff]  }
 0x170   : > { %4037 = vmatprep.subr.bf16.mxu1 %v8742_v11 }
 0x172   : > { %4071 = vmatpush1.bf16.msra.mxu0 %v8743_v14 }
 0x173   : > { %4038 = vmatpush2.bf16.msra.mxu1 %v8740_v13  ;;  %4072 = vmatprep.subr.bf16.mxu0 %v8751_v16  ;;  %v8823_v16 = vld [vmem:[%s11886_s1 + $0x4ac] ss:$28 sps:$4 sm:$0xff]  }
 0x174   : > { %4039 = vmatprep.subr.bf16.mxu1 %v8748_v15  ;;  %v8820_v15 = vld [vmem:[%s11886_s1 + $0x12c] ss:$28 sps:$4 sm:$0xff]  }
 0x176   : > { %4073 = vmatpush1.bf16.msra.mxu0 %v8749_v18  ;;  %v8821_v18 = vld [vmem:[%s11886_s1 + $0x4a8] ss:$28 sps:$4 sm:$0xff]  }
 0x177   : > { %4040 = vmatpush2.bf16.msra.mxu1 %v8746_v17  ;;  %4074 = vmatprep.subr.bf16.mxu0 %v8757_v19 }
 0x178   : > { %4041 = vmatprep.subr.bf16.mxu1 %v8754_v0 }
 0x17a   : > { %4075 = vmatpush1.bf16.msra.mxu0 %v8755_v21 }
 0x17b   : > { %4042 = vmatpush2.bf16.msra.mxu1 %v8752_v20  ;;  %4076 = vmatprep.subr.bf16.mxu0 %v8763_v25  ;;  %v8829_v25 = vld [vmem:[%s11886_s1 + $0x474] ss:$28 sps:$4 sm:$0xff]  }
 0x17c   : > { %4043 = vmatprep.subr.bf16.mxu1 %v8760_v24  ;;  %v8826_v24 = vld [vmem:[%s11886_s1 + $0xf4] ss:$28 sps:$4 sm:$0xff]  }
 0x17e   : > { %4077 = vmatpush2.bf16.msra.mxu0 %v8761_v27  ;;  %v8827_v27 = vld [vmem:[%s11886_s1 + $0x470] ss:$28 sps:$4 sm:$0xff]  }
 0x17f   : > { %4044 = vmatpush2.bf16.msra.mxu1 %v8758_v26  ;;  %4078 = vmatprep.subr.bf16.mxu0 %v8769_v30  ;;  %v8824_v26 = vld [vmem:[%s11886_s1 + $0xf0] ss:$28 sps:$4 sm:$0xff]   ;;  %v8835_v30 = vld [vmem:[%s11886_s1 + $0x43c] ss:$28 sps:$4 sm:$0xff]  }
 0x180   : > { %4045 = vmatprep.subr.bf16.mxu1 %v8766_v29  ;;  %v8832_v29 = vld [vmem:[%s11886_s1 + $0xbc] ss:$28 sps:$4 sm:$0xff]  }
 0x182   : > { %4079 = vmatpush2.bf16.msra.mxu0 %v8767_v34  ;;  %v8833_v34 = vld [vmem:[%s11886_s1 + $0x438] ss:$28 sps:$4 sm:$0xff]  }
 0x183   : > { %4046 = vmatpush2.bf16.msra.mxu1 %v8764_v31  ;;  %4080 = vmatprep.subr.bf16.mxu0 %v8775_v36  ;;  %v8830_v31 = vld [vmem:[%s11886_s1 + $0xb8] ss:$28 sps:$4 sm:$0xff]   ;;  %v8841_v36 = vld [vmem:[%s11886_s1 + $0x404] ss:$28 sps:$4 sm:$0xff]  }
 0x184   : > { %4047 = vmatprep.subr.bf16.mxu1 %v8772_v35  ;;  %v8838_v35 = vld [vmem:[%s11886_s1 + $0x84] ss:$28 sps:$4 sm:$0xff]  }
 0x186   : > { %4081 = vmatpush2.bf16.msra.mxu0 %v8773_v37 }
 0x187   : > { %4048 = vmatpush2.bf16.msra.mxu1 %v8770_v1  ;;  %4082 = vmatprep.subr.bf16.mxu0 %v8781_v39  ;;  %v8839_v39 = vld [vmem:[%s11886_s1 + $0x400] ss:$28 sps:$4 sm:$0xff]  }
 0x188   : > { %4049 = vmatprep.subr.bf16.mxu1 %v8778_v38  ;;  %v8836_v38 = vld [vmem:[%s11886_s1 + $0x80] ss:$28 sps:$4 sm:$0xff]  }
 0x18a   : > { %4083 = vmatpush2.bf16.msra.mxu0 %v8779_v41  ;;  %v8844_v41 = vld [vmem:[%s11886_s1 + $0x4c] ss:$28 sps:$4 sm:$0xff]  }
 0x18b   : > { %4050 = vmatpush2.bf16.msra.mxu1 %v8776_v40  ;;  %4084 = vmatprep.subr.bf16.mxu0 %v8784_v43  ;;  %v8847_v43 = vld [vmem:[%s11886_s1 + $0x3cc] ss:$28 sps:$4 sm:$0xff]  }
 0x18c   : > { %4109 = vmatprep.subr.bf16.mxu1 %v8787_v44 }
 0x18e   : > { %4052 = vmatmul.mubr.bf16.vlgmr.msra.gmra.mxu1 %v9547_v2  ;;  %4085 = vmatpush2.bf16.msra.mxu0 %v8782_v46 }
 0x18f   : > { %4110 = vmatpush1.bf16.msra.mxu1 %v8785_v22  ;;  %4086 = vmatprep.subr.bf16.mxu0 %v8790_v49  ;;  %v8842_v22 = vld [vmem:[%s11886_s1 + $0x48] ss:$28 sps:$4 sm:$0xff]  }
 0x190   : > { %4111 = vmatprep.subr.bf16.mxu1 %v8793_v50  ;;  %4133 = vmatprep.mubr.bf16.mxu1 %v9327_v33  ;;  %v8845_v49 = vld [vmem:[%s11886_s1 + $0x3c8] ss:$28 sps:$4 sm:$0xff]  }
 0x192   : > { %4087 = vmatpush2.bf16.msra.mxu0 %v8788_v51  ;;  %v8850_v51 = vld [vmem:[%s11886_s1 + $0x14] ss:$28 sps:$4 sm:$0xff]  }
 0x193   : > { %4112 = vmatpush1.bf16.msra.mxu1 %v8791_v53  ;;  %4088 = vmatprep.subr.bf16.mxu0 %v8796_v54  ;;  %v8853_v53 = vld [vmem:[%s11886_s1 + $0x394] ss:$28 sps:$4 sm:$0xff]  }
 0x194   : > { %4113 = vmatprep.subr.bf16.mxu1 %v8799_v55  ;;  %v8848_v54 = vld [vmem:[%s11886_s1 + $0x10] ss:$28 sps:$4 sm:$0xff]  }
 0x195   : > { %v8851_v55 = vld [vmem:[%s11886_s1 + $0x390] ss:$28 sps:$4 sm:$0xff]  }
 0x196   : > { %4089 = vmatpush2.bf16.msra.mxu0 %v8794_v57  ;;  %v8856_v57 = vld [vmem:[%s11886_s1 + $0x35c] ss:$28 sps:$4 sm:$0xff]  }
 0x197   : > { %4114 = vmatpush1.bf16.msra.mxu1 %v8797_v58  ;;  %4090 = vmatprep.subr.bf16.mxu0 %v8802_v59  ;;  %v8859_v58 = vld [vmem:[%s11886_s1 + $0x6dc] ss:$28 sps:$4 sm:$0xff]  }
 0x198   : > { %4115 = vmatprep.subr.bf16.mxu1 %v8805_v60  ;;  %v8854_v59 = vld [vmem:[%s11886_s1 + $0x358] ss:$28 sps:$4 sm:$0xff]  }
 0x199   : > { %v8857_v60 = vld [vmem:[%s11886_s1 + $0x6d8] ss:$28 sps:$4 sm:$0xff]  }
 0x19a   : > { %4091 = vmatpush2.bf16.msra.mxu0 %v8800_v62  ;;  %v8862_v62 = vld [vmem:[%s11886_s1 + $0x324] ss:$28 sps:$4 sm:$0xff]  }
 0x19b   : > { %4116 = vmatpush1.bf16.msra.mxu1 %v8803_v63  ;;  %4142 = vmatprep.subr.bf16.mxu0 %v8808_v4  ;;  %v8865_v63 = vld [vmem:[%s11886_s1 + $0x6a4] ss:$28 sps:$4 sm:$0xff]  }
 0x19c   : > { %4183 = vmatprep.subr.bf16.mxu1 %v8811_v5  ;;  %v8860_v5 = vld [vmem:[%s11886_s1 + $0x320] ss:$28 sps:$4 sm:$0xff]  }
 0x19d   : > { %v2385_v10 = vpop.f32.mrf.mxu0  ;;  %4093 = vmatmul.mubr.bf16.vlgmr.msra.gmra.mxu0 %v9549_v3 }
 0x19e   : > { %v2426_v11 = vpop.f32.mrf.mxu1  ;;  %7467 = vmatmul.mubr.msk.bf16.vlgmr.msra.gmra.mxu1 %vm2101_vm0, %v10460_v47  ;;  %4143 = vmatpush1.bf16.msra.mxu0 %v8806_v6  ;;  %v8818_v47 = vld [vmem:[%s11886_s1 + $0x128] ss:$28 sps:$4 sm:$0xff]   ;;  %v8863_v6 = vld [vmem:[%s11886_s1 + $0x6a0] ss:$28 sps:$4 sm:$0xff]  }
 0x19f   : > { %v2427_v12 = vadd.f32 %v2426_v11, %v2385_v10  ;;  %4184 = vmatpush1.bf16.msra.mxu1 %v8809_v23  ;;  %v2387_v13 = vpop.f32.mrf.mxu0  ;;  %4144 = vmatprep.subr.bf16.mxu0 %v8814_v45  ;;  %v8868_v45 = vld [vmem:[%s11886_s1 + $0x2ec] ss:$28 sps:$4 sm:$0xff]  }
 0x1a0   : > { %v2428_v14 = vpop.f32.mrf.mxu1  ;;  %4185 = vmatprep.subr.bf16.mxu1 %v8817_v7  ;;  %4174 = vmatprep.mubr.bf16.mxu0 %v9512_v48  ;;  %v8871_v7 = vld [vmem:[%s11886_s1 + $0x66c] ss:$28 sps:$4 sm:$0xff]  }
 0x1a1   : > { %v2429_v17 = vadd.f32 %v2428_v14, %v2387_v13  ;;  %4215 = vmatprep.mubr.bf16.mxu1 %v9521_v52  ;;  %v2389_v0 = vpop.f32.mrf.mxu0  ;;  %v8866_v10 = vld [vmem:[%s11886_s1 + $0x2e8] ss:$28 sps:$4 sm:$0xff]   ;;  %v8874_v13 = vld [vmem:[%s11886_s1 + $0x2b4] ss:$28 sps:$4 sm:$0xff]  }
 0x1a2   : > { %v2430_v19 = vpop.f32.mrf.mxu1  ;;  %4145 = vmatpush1.bf16.msra.mxu0 %v8812_v8  ;;  %v8869_v11 = vld [vmem:[%s11886_s1 + $0x668] ss:$28 sps:$4 sm:$0xff]   ;;  %v8877_v14 = vld [vmem:[%s11886_s1 + $0x634] ss:$28 sps:$4 sm:$0xff]  }
 0x1a3   : > { %4186 = vmatpush1.bf16.msra.mxu1 %v8815_v9  ;;  %v2390_v20 = vpop.f32.mrf.mxu0  ;;  %4146 = vmatprep.subr.bf16.mxu0 %v8820_v15  ;;  %v8872_v15 = vld [vmem:[%s11886_s1 + $0x2b0] ss:$28 sps:$4 sm:$0xff]   ;;  %v8881_v0 = vld [vmem:[%s11886_s1 + $0x5f8] ss:$28 sps:$4 sm:$0xff]   ;;  %v8886_v19 = vld [vmem:[%s11886_s1 + $0x244] ss:$28 sps:$4 sm:$0xff]  }
 0x1a4   : > { %v2431_v21 = vpop.f32.mrf.mxu1  ;;  %4187 = vmatprep.subr.bf16.mxu1 %v8823_v16  ;;  %v8875_v16 = vld [vmem:[%s11886_s1 + $0x630] ss:$28 sps:$4 sm:$0xff]   ;;  %v8889_v20 = vld [vmem:[%s11886_s1 + $0x5c4] ss:$28 sps:$4 sm:$0xff]  }
 0x1a5   : > { %v8884_v21 = vld [vmem:[%s11886_s1 + $0x240] ss:$28 sps:$4 sm:$0xff]  }
 0x1a6   : > { %4147 = vmatpush1.bf16.msra.mxu0 %v8818_v47  ;;  %v8883_v47 = vld [vmem:[%s11886_s1 + $0x5fc] ss:$28 sps:$4 sm:$0xff]  }
 0x1a7   : > { %4188 = vmatpush1.bf16.msra.mxu1 %v8821_v18  ;;  %4148 = vmatprep.subr.bf16.mxu0 %v8826_v24  ;;  %v8878_v18 = vld [vmem:[%s11886_s1 + $0x278] ss:$28 sps:$4 sm:$0xff]   ;;  %v8887_v24 = vld [vmem:[%s11886_s1 + $0x5c0] ss:$28 sps:$4 sm:$0xff]  }
 0x1a8   : > { %4189 = vmatprep.subr.bf16.mxu1 %v8829_v25 }
 0x1aa   : > { %4149 = vmatpush1.bf16.msra.mxu0 %v8824_v26 }
 0x1ab   : > { %4190 = vmatpush1.bf16.msra.mxu1 %v8827_v27  ;;  %4150 = vmatprep.subr.bf16.mxu0 %v8832_v29 }
 0x1ac   : > { %4191 = vmatprep.subr.bf16.mxu1 %v8835_v30  ;;  %v8892_v30 = vld [vmem:[%s11886_s1 + $0x20c] ss:$28 sps:$4 sm:$0xff]  }
 0x1ad   : > { %v2467_v1 = vpop.f32.mrf.mxu0 }
 0x1ae   : > { %v10713_v37 = vadd.f32 %v2467_v1, %v2427_v12  ;;  %4151 = vmatpush1.bf16.msra.mxu0 %v8830_v31  ;;  %v8895_v31 = vld [vmem:[%s11886_s1 + $0x58c] ss:$28 sps:$4 sm:$0xff]  }
 0x1af   : > { %4192 = vmatpush1.bf16.msra.mxu1 %v8833_v34  ;;  %v2469_v40 = vpop.f32.mrf.mxu0  ;;  %4152 = vmatprep.subr.bf16.mxu0 %v8838_v35  ;;  %v8890_v35 = vld [vmem:[%s11886_s1 + $0x208] ss:$28 sps:$4 sm:$0xff]  }
 0x1b0   : > { %4193 = vmatprep.subr.bf16.mxu1 %v8841_v36  ;;  %v10727_v44 = vadd.f32 %v2469_v40, %v2429_v17  ;;  %v8880_v17 = vld [vmem:[%s11886_s1 + $0x27c] ss:$28 sps:$4 sm:$0xff]   ;;  %v8893_v36 = vld [vmem:[%s11886_s1 + $0x588] ss:$28 sps:$4 sm:$0xff]  }
 0x1b1   : > { %v2471_v46 = vpop.f32.mrf.mxu0 }
 0x1b2   : > { %4153 = vmatpush1.bf16.msra.mxu0 %v8836_v38  ;;  %v8901_v46 = vld [vmem:[%s11886_s1 + $0x554] ss:$28 sps:$4 sm:$0xff]  }
 0x1b3   : > { %4194 = vmatpush1.bf16.msra.mxu1 %v8839_v39  ;;  %v2472_v50 = vpop.f32.mrf.mxu0  ;;  %4154 = vmatprep.subr.bf16.mxu0 %v8844_v41 }
 0x1b4   : > { %4195 = vmatprep.subr.bf16.mxu1 %v8847_v43  ;;  %v8898_v43 = vld [vmem:[%s11886_s1 + $0x1d4] ss:$28 sps:$4 sm:$0xff]  }
 0x1b5   : > { %v8899_v50 = vld [vmem:[%s11886_s1 + $0x550] ss:$28 sps:$4 sm:$0xff]  }
 0x1b6   : > { %4155 = vmatpush1.bf16.msra.mxu0 %v8842_v22 }
 0x1b7   : > { %4196 = vmatpush1.bf16.msra.mxu1 %v8845_v49  ;;  %4156 = vmatprep.subr.bf16.mxu0 %v8850_v51  ;;  %v8896_v49 = vld [vmem:[%s11886_s1 + $0x1d0] ss:$28 sps:$4 sm:$0xff]   ;;  %v8904_v51 = vld [vmem:[%s11886_s1 + $0x7bc] ss:$28 sps:$4 sm:$0xff]  }
 0x1b8   : > { %4197 = vmatprep.subr.bf16.mxu1 %v8853_v53  ;;  %v8905_v53 = vld [vmem:[%s11886_s1 + $0x360] ss:$28 sps:$4 sm:$0xff]  }
 0x1ba   : > { %4157 = vmatpush1.bf16.msra.mxu0 %v8848_v54  ;;  %v8902_v54 = vld [vmem:[%s11886_s1 + $0x7b8] ss:$28 sps:$4 sm:$0xff]  }
 0x1bb   : > { %4198 = vmatpush1.bf16.msra.mxu1 %v8851_v55  ;;  %4158 = vmatprep.subr.bf16.mxu0 %v8856_v57  ;;  %v8906_v55 = vld [vmem:[%s11886_s1 + $0x1a0] ss:$28 sps:$4 sm:$0xff]  }
 0x1bc   : > { %4199 = vmatprep.subr.bf16.mxu1 %v8859_v58  ;;  %v8909_v57 = vld [vmem:[%s11886_s1 + $0x784] ss:$28 sps:$4 sm:$0xff]  }
 0x1bd   : > { %v8910_v58 = vld [vmem:[%s11886_s1 + $0x328] ss:$28 sps:$4 sm:$0xff]  }
 0x1be   : > { %v8045_v4 = vpop.f32.mrf.mxu1  ;;  %4159 = vmatpush2.bf16.msra.mxu0 %v8854_v59  ;;  %v8907_v59 = vld [vmem:[%s11886_s1 + $0x780] ss:$28 sps:$4 sm:$0xff]  }
 0x1bf   : > { %4200 = vmatpush2.bf16.msra.mxu1 %v8857_v60  ;;  %4160 = vmatprep.subr.bf16.mxu0 %v8862_v62  ;;  %v8911_v60 = vld [vmem:[%s11886_s1 + $0x168] ss:$28 sps:$4 sm:$0xff]  }
 0x1c0   : > { %v8046_v23 = vpop.f32.mrf.mxu1  ;;  %4201 = vmatprep.subr.bf16.mxu1 %v8865_v63  ;;  %v8914_v62 = vld [vmem:[%s11886_s1 + $0x74c] ss:$28 sps:$4 sm:$0xff]  }
 0x1c1   : > { %v8047_v8 = vadd.f32 %v8046_v23, %v8045_v4  ;;  %v8915_v63 = vld [vmem:[%s11886_s1 + $0x2f0] ss:$28 sps:$4 sm:$0xff]   ;;  %v8912_v4 = vld [vmem:[%s11886_s1 + $0x748] ss:$28 sps:$4 sm:$0xff]   ;;  %v8920_v23 = vld [vmem:[%s11886_s1 + $0x2b8] ss:$28 sps:$4 sm:$0xff]  }
 0x1c2   : > { %v8048_v9 = vpop.f32.mrf.mxu1  ;;  %4161 = vmatpush2.bf16.msra.mxu0 %v8860_v5  ;;  %v8916_v5 = vld [vmem:[%s11886_s1 + $0x130] ss:$28 sps:$4 sm:$0xff]  }
 0x1c3   : > { %4202 = vmatpush2.bf16.msra.mxu1 %v8863_v6  ;;  %4162 = vmatprep.subr.bf16.mxu0 %v8868_v45  ;;  %v8919_v6 = vld [vmem:[%s11886_s1 + $0x714] ss:$28 sps:$4 sm:$0xff]   ;;  %v8924_v9 = vld [vmem:[%s11886_s1 + $0xc0] ss:$28 sps:$4 sm:$0xff]  }
 0x1c4   : > { %v8049_v12 = vpop.f32.mrf.mxu1  ;;  %4203 = vmatprep.subr.bf16.mxu1 %v8871_v7  ;;  %v8917_v45 = vld [vmem:[%s11886_s1 + $0x710] ss:$28 sps:$4 sm:$0xff]   ;;  %v8922_v7 = vld [vmem:[%s11886_s1 + $0x280] ss:$28 sps:$4 sm:$0xff]  }
 0x1c5   : > { %v8927_v12 = vld [vmem:[%s11886_s1 + $0x6a8] ss:$28 sps:$4 sm:$0xff]  }
 0x1c6   : > { %4163 = vmatpush2.bf16.msra.mxu0 %v8866_v10  ;;  %v8925_v10 = vld [vmem:[%s11886_s1 + $0x520] ss:$28 sps:$4 sm:$0xff]  }
 0x1c7   : > { %4204 = vmatpush2.bf16.msra.mxu1 %v8869_v11  ;;  %4164 = vmatprep.subr.bf16.mxu0 %v8874_v13  ;;  %v8926_v11 = vld [vmem:[%s11886_s1 + $0x248] ss:$28 sps:$4 sm:$0xff]   ;;  %v10916_v13 = vld [vmem:[%s9500_s30 + $0x10] ss:$0 sps:$4 sm:$0xff]  }
 0x1c8   : > { %4205 = vmatprep.subr.bf16.mxu1 %v8877_v14  ;;  %v8928_v14 = vld [vmem:[%s11886_s1 + $0x88] ss:$28 sps:$4 sm:$0xff]  }
 0x1ca   : > { %4165 = vmatpush2.bf16.msra.mxu0 %v8872_v15  ;;  %v8929_v15 = vld [vmem:[%s11886_s1 + $0x4e8] ss:$28 sps:$4 sm:$0xff]  }
 0x1cb   : > { %4206 = vmatpush2.bf16.msra.mxu1 %v8875_v16  ;;  %4166 = vmatprep.subr.bf16.mxu0 %v8880_v17  ;;  %v8930_v16 = vld [vmem:[%s11886_s1 + $0x210] ss:$28 sps:$4 sm:$0xff]  }
 0x1cc   : > { %4207 = vmatprep.subr.bf16.mxu1 %v8883_v47  ;;  %v8931_v17 = vld [vmem:[%s11886_s1 + $0x670] ss:$28 sps:$4 sm:$0xff]  }
 0x1cd   : > { %v8067_v25 = vpop.f32.mrf.mxu0  ;;  %v8932_v47 = vld [vmem:[%s11886_s1 + $0x50] ss:$28 sps:$4 sm:$0xff]  }
 0x1ce   : > { %v2588_v26 = vpop.f32.mrf.mxu1  ;;  %4167 = vmatpush2.bf16.msra.mxu0 %v8878_v18  ;;  %v8933_v18 = vld [vmem:[%s11886_s1 + $0x4b0] ss:$28 sps:$4 sm:$0xff]  }
 0x1cf   : > { %4208 = vmatpush2.bf16.msra.mxu1 %v8881_v0  ;;  %v8068_v27 = vpop.f32.mrf.mxu0  ;;  %4168 = vmatprep.subr.bf16.mxu0 %v8886_v19  ;;  %v8934_v0 = vld [vmem:[%s11886_s1 + $0x1d8] ss:$28 sps:$4 sm:$0xff]  }
 0x1d0   : > { %v8186_v29 = vpop.f32.mrf.mxu1  ;;  %4209 = vmatprep.subr.bf16.mxu1 %v8889_v20  ;;  %v8069_v34 = vadd.f32 %v8068_v27, %v8067_v25  ;;  %v8936_v19 = vld [vmem:[%s11886_s1 + $0x18] ss:$28 sps:$4 sm:$0xff]   ;;  %v8940_v25 = vld [vmem:[%s11886_s1 + $0x7c0] ss:$28 sps:$4 sm:$0xff]   ;;  %v8942_v27 = vld [vmem:[%s11886_s1 + $0x408] ss:$28 sps:$4 sm:$0xff]  }
 0x1d1   : > { %v8070_v1 = vpop.f32.mrf.mxu0  ;;  %v8937_v20 = vld [vmem:[%s11886_s1 + $0x478] ss:$28 sps:$4 sm:$0xff]   ;;  %v8943_v29 = vld [vmem:[%s11886_s1 + $0x788] ss:$28 sps:$4 sm:$0xff]  }
 0x1d2   : > { %v2591_v38 = vpop.f32.mrf.mxu1  ;;  %v2549_v39 = vadd.f32 %v8069_v34, %v8047_v8  ;;  %4169 = vmatpush2.bf16.msra.mxu0 %v8884_v21  ;;  %v8923_v8 = vld [vmem:[%s11886_s1 + $0x6e0] ss:$28 sps:$4 sm:$0xff]   ;;  %v8947_v34 = vld [vmem:[%s11886_s1 + $0x558] ss:$28 sps:$4 sm:$0xff]   ;;  %v8952_v1 = vld [vmem:[%s11886_s1 + $0x114c] ss:$28 sps:$4 sm:$0xff]  }
 0x1d3   : > { %4210 = vmatpush2.bf16.msra.mxu1 %v8887_v24  ;;  %v8071_v40 = vpop.f32.mrf.mxu0  ;;  %4170 = vmatprep.subr.bf16.mxu0 %v8892_v30  ;;  %v8938_v21 = vld [vmem:[%s11886_s1 + $0x600] ss:$28 sps:$4 sm:$0xff]   ;;  %v8944_v30 = vld [vmem:[%s11886_s1 + $0x590] ss:$28 sps:$4 sm:$0xff]  }
 0x1d4   : > { %v8187_v41 = vpop.f32.mrf.mxu1  ;;  %4211 = vmatprep.subr.bf16.mxu1 %v8895_v31  ;;  %v10837_v22 = vadd.f32 %v2588_v26, %v2549_v39  ;;  %v8939_v24 = vld [vmem:[%s11886_s1 + $0x440] ss:$28 sps:$4 sm:$0xff]   ;;  %v8941_v26 = vld [vmem:[%s11886_s1 + $0x5c8] ss:$28 sps:$4 sm:$0xff]   ;;  %v8946_v31 = vld [vmem:[%s11886_s1 + $0x750] ss:$28 sps:$4 sm:$0xff]  }
 0x1d5   : > { %v8955_v38 = vld [vmem:[%s11886_s1 + $0x14cc] ss:$28 sps:$4 sm:$0xff]   ;;  %v9046_v39 = vld [vmem:[%s9500_s30 + $0x4] ss:$20 sps:$4 sm:$0x1e]  }
 0x1d6   : > { %4171 = vmatpush2.bf16.msra.mxu0 %v8890_v35  ;;  %v8948_v35 = vld [vmem:[%s11886_s1 + $0x398] ss:$28 sps:$4 sm:$0xff]   ;;  %v9048_v40 = vld [vmem:[%s9500_s30 + $0xc] ss:$20 sps:$4 sm:$0x1e]  }
 0x1d7   : > { %4212 = vmatpush2.bf16.msra.mxu1 %v8893_v36  ;;  %4172 = vmatprep.subr.bf16.mxu0 %v8898_v43  ;;  %v8949_v36 = vld [vmem:[%s11886_s1 + $0x718] ss:$28 sps:$4 sm:$0xff]   ;;  %v8950_v41 = vld [vmem:[%s11886_s1 + $0x1148] ss:$28 sps:$4 sm:$0xff]  }
 0x1d8   : > { %4213 = vmatprep.subr.bf16.mxu1 %v8901_v46  ;;  %v8953_v43 = vld [vmem:[%s11886_s1 + $0x14c8] ss:$28 sps:$4 sm:$0xff]   ;;  %v8958_v46 = vld [vmem:[%s11886_s1 + $0x1114] ss:$28 sps:$4 sm:$0xff]  }
 0x1da   : > { %4173 = vmatpush2.bf16.msra.mxu0 %v8896_v49  ;;  %v8961_v49 = vld [vmem:[%s11886_s1 + $0x1494] ss:$28 sps:$4 sm:$0xff]  }
 0x1db   : > { %4214 = vmatpush2.bf16.msra.mxu1 %v8899_v50  ;;  %4232 = vmatprep.subr.bf16.mxu0 %v8904_v51  ;;  %v11014_v50 = vrot.slane %v9046_v39, 1  ;;  %v11016_v51 = vrot.slane %v9048_v40, 1  ;;  %v9009_v39 = vld [vmem:[%s11886_s1 + $0x1654] ss:$28 sps:$4 sm:$0xff]  }
 0x1dc   : > { %8078 = vmatprep.subr.bf16.mxu1 %v8905_v53  ;;  %v9004_v40 = vld [vmem:[%s11886_s1 + $0x12d0] ss:$28 sps:$4 sm:$0xff]  }
 0x1dd   : > { %4175 = vmatmul.mubr.bf16.vlgmr.msra.gmra.mxu0 %v9547_v2 }
 0x1de   : > { %4216 = vmatmul.mubr.bf16.vlgmr.msra.gmra.mxu1 %v9549_v3  ;;  %4233 = vmatpush1.bf16.msra.mxu0 %v8902_v54 }
 0x1df   : > { %8079 = vmatpush3.bf16.msra.mxu1 %v8906_v55  ;;  %4234 = vmatprep.subr.bf16.mxu0 %v8909_v57  ;;  %v8956_v57 = vld [vmem:[%s11886_s1 + $0x1110] ss:$28 sps:$4 sm:$0xff]  }
 0x1e0   : > { %8080 = vmatprep.subr.bf16.mxu1 %v8910_v58  ;;  %4256 = vmatprep.mubr.bf16.mxu0 %v9327_v33  ;;  %v8959_v58 = vld [vmem:[%s11886_s1 + $0x1490] ss:$28 sps:$4 sm:$0xff]  }
 0x1e1   : > { %4297 = vmatprep.mubr.bf16.mxu1 %v9512_v48  ;;  %v8921_v48 = vld [vmem:[%s11886_s1 + $0xf8] ss:$28 sps:$4 sm:$0xff]  }
 0x1e2   : > { %4235 = vmatpush1.bf16.msra.mxu0 %v8907_v59 }
 0x1e3   : > { %8081 = vmatpush3.bf16.msra.mxu1 %v8911_v60  ;;  %4236 = vmatprep.subr.bf16.mxu0 %v8914_v62 }
 0x1e4   : > { %8082 = vmatprep.subr.bf16.mxu1 %v8915_v63 }
 0x1e6   : > { %4237 = vmatpush1.bf16.msra.mxu0 %v8912_v4 }
 0x1e7   : > { %8083 = vmatpush3.bf16.msra.mxu1 %v8916_v5  ;;  %4238 = vmatprep.subr.bf16.mxu0 %v8919_v6 }
 0x1e8   : > { %8084 = vmatprep.subr.bf16.mxu1 %v8920_v23  ;;  %v8962_v23 = vld [vmem:[%s11886_s1 + $0x10d8] ss:$28 sps:$4 sm:$0xff]  }
 0x1ea   : > { %4239 = vmatpush1.bf16.msra.mxu0 %v8917_v45  ;;  %v8965_v45 = vld [vmem:[%s11886_s1 + $0x1458] ss:$28 sps:$4 sm:$0xff]  }
 0x1eb   : > { %8085 = vmatpush3.bf16.msra.mxu1 %v8921_v48  ;;  %8100 = vmatprep.subr.bf16.mxu0 %v8923_v8  ;;  %v8973_v8 = vld [vmem:[%s11886_s1 + $0x1424] ss:$28 sps:$4 sm:$0xff]  }
 0x1ec   : > { %8086 = vmatprep.subr.bf16.mxu1 %v8922_v7 }
 0x1ed   : > { %7468 = vmatmul.mubr.msk.bf16.vlgmr.msra.gmra.mxu0 %vm2101_vm0, %v10916_v13 }
 0x1ee   : > { %8101 = vmatpush3.bf16.msra.mxu0 %v8925_v10  ;;  %4337 = vmatprep.mubr.bf16.mxu0 %v9521_v52  ;;  %v8935_v52 = vld [vmem:[%s11886_s1 + $0x638] ss:$28 sps:$4 sm:$0xff]   ;;  %v8971_v10 = vld [vmem:[%s11886_s1 + $0x1420] ss:$28 sps:$4 sm:$0xff]  }
 0x1ef   : > { %8087 = vmatpush3.bf16.msra.mxu1 %v8924_v9  ;;  %8102 = vmatprep.subr.bf16.mxu0 %v8927_v12  ;;  %v8968_v9 = vld [vmem:[%s11886_s1 + $0x10a0] ss:$28 sps:$4 sm:$0xff]   ;;  %v8979_v12 = vld [vmem:[%s11886_s1 + $0x13ec] ss:$28 sps:$4 sm:$0xff]  }
 0x1f0   : > { %8088 = vmatprep.subr.bf16.mxu1 %v8926_v11  ;;  %v8976_v11 = vld [vmem:[%s11886_s1 + $0x106c] ss:$28 sps:$4 sm:$0xff]  }
 0x1f2   : > { %8103 = vmatpush3.bf16.msra.mxu0 %v8929_v15  ;;  %v8982_v15 = vld [vmem:[%s11886_s1 + $0x1034] ss:$28 sps:$4 sm:$0xff]  }
 0x1f3   : > { %8089 = vmatpush3.bf16.msra.mxu1 %v8928_v14  ;;  %8104 = vmatprep.subr.bf16.mxu0 %v8931_v17  ;;  %v8977_v14 = vld [vmem:[%s11886_s1 + $0x13e8] ss:$28 sps:$4 sm:$0xff]  }
 0x1f4   : > { %8090 = vmatprep.subr.bf16.mxu1 %v8930_v16  ;;  %v8985_v16 = vld [vmem:[%s11886_s1 + $0x13b4] ss:$28 sps:$4 sm:$0xff]  }
 0x1f6   : > { %8105 = vmatpush3.bf16.msra.mxu0 %v8933_v18  ;;  %v8980_v18 = vld [vmem:[%s11886_s1 + $0x1030] ss:$28 sps:$4 sm:$0xff]  }
 0x1f7   : > { %8091 = vmatpush3.bf16.msra.mxu1 %v8932_v47  ;;  %8106 = vmatprep.subr.bf16.mxu0 %v8935_v52 }
 0x1f8   : > { %8092 = vmatprep.subr.bf16.mxu1 %v8934_v0  ;;  %v8983_v0 = vld [vmem:[%s11886_s1 + $0x13b0] ss:$28 sps:$4 sm:$0xff]  }
 0x1fa   : > { %8107 = vmatpush3.bf16.msra.mxu0 %v8937_v20  ;;  %v8991_v20 = vld [vmem:[%s11886_s1 + $0x137c] ss:$28 sps:$4 sm:$0xff]  }
 0x1fb   : > { %8093 = vmatpush3.bf16.msra.mxu1 %v8936_v19  ;;  %8108 = vmatprep.subr.bf16.mxu0 %v8938_v21  ;;  %v8988_v19 = vld [vmem:[%s11886_s1 + $0xffc] ss:$28 sps:$4 sm:$0xff]  }
 0x1fc   : > { %8188 = vmatprep.subr.bf16.mxu1 %v9328_v42 }
 0x1fe   : > { %4298 = vmatmul.mubr.bf16.vlgmr.msra.gmra.mxu1 %v9547_v2  ;;  %8109 = vmatpush3.bf16.msra.mxu0 %v8939_v24  ;;  %v8945_v2 = vld [vmem:[%s11886_s1 + $0x3d0] ss:$28 sps:$4 sm:$0xff]  }
 0x1ff   : > { %8189 = vmatpush3.bf16.msra.mxu1 %v8940_v25  ;;  %8110 = vmatprep.subr.bf16.mxu0 %v8941_v26  ;;  %v8986_v25 = vld [vmem:[%s11886_s1 + $0xff8] ss:$28 sps:$4 sm:$0xff]  }
 0x200   : > { %8190 = vmatprep.subr.bf16.mxu1 %v9328_v42  ;;  %8196 = vmatprep.mubr.msk.bf16.mxu1 %vm9329_vm1, %v9328_v42  ;;  %v8989_v26 = vld [vmem:[%s11886_s1 + $0x1378] ss:$28 sps:$4 sm:$0xff]  }
 0x202   : > { %8111 = vmatpush3.bf16.msra.mxu0 %v8942_v27 }
 0x203   : > { %8191 = vmatpush3.bf16.msra.mxu1 %v8943_v29  ;;  %8112 = vmatprep.subr.bf16.mxu0 %v8944_v30  ;;  %v8994_v29 = vld [vmem:[%s11886_s1 + $0xfc4] ss:$28 sps:$4 sm:$0xff]  }
 0x204   : > { %8192 = vmatprep.subr.bf16.mxu1 %v9328_v42  ;;  %v8997_v30 = vld [vmem:[%s11886_s1 + $0x1344] ss:$28 sps:$4 sm:$0xff]  }
 0x206   : > { %8113 = vmatpush3.bf16.msra.mxu0 %v8945_v2  ;;  %v8992_v2 = vld [vmem:[%s11886_s1 + $0xfc0] ss:$28 sps:$4 sm:$0xff]  }
 0x207   : > { %8193 = vmatpush3.bf16.msra.mxu1 %v8946_v31  ;;  %8114 = vmatprep.subr.bf16.mxu0 %v8947_v34  ;;  %v8995_v31 = vld [vmem:[%s11886_s1 + $0x1340] ss:$28 sps:$4 sm:$0xff]   ;;  %v9000_v34 = vld [vmem:[%s11886_s1 + $0x130c] ss:$28 sps:$4 sm:$0xff]  }
 0x208   : > { %8194 = vmatprep.subr.bf16.mxu1 %v9328_v42 }
 0x20a   : > { %8115 = vmatpush3.bf16.msra.mxu0 %v8948_v35  ;;  %v9003_v35 = vld [vmem:[%s11886_s1 + $0x168c] ss:$28 sps:$4 sm:$0xff]  }
 0x20b   : > { %8195 = vmatpush3.bf16.msra.mxu1 %v8949_v36  ;;  %6009 = vmatprep.subr.bf16.mxu0 %v8952_v1  ;;  %v8998_v36 = vld [vmem:[%s11886_s1 + $0x1308] ss:$28 sps:$4 sm:$0xff]  }
 0x20c   : > { %6050 = vmatprep.subr.bf16.mxu1 %v8955_v38  ;;  %v9001_v1 = vld [vmem:[%s11886_s1 + $0x1688] ss:$28 sps:$4 sm:$0xff]   ;;  %v9006_v38 = vld [vmem:[%s11886_s1 + $0x12d4] ss:$28 sps:$4 sm:$0xff]  }
 0x20d   : > { %v3930_v53 = vpop.f32.mrf.mxu0  ;;  %4338 = vmatmul.mubr.bf16.vlgmr.msra.gmra.mxu0 %v9549_v3  ;;  %v8964_v3 = vld [vmem:[%s11886_s1 + $0x10dc] ss:$28 sps:$4 sm:$0xff]  }
 0x20e   : > { %v3971_v54 = vpop.f32.mrf.mxu1  ;;  %8197 = vmatmul.mubr.msk.bf16.vlgmr.msra.gmra.mxu1 %vm2101_vm0, %v10916_v13  ;;  %v3931_v55 = vadd.f32 %v3930_v53, %v10262_v28  ;;  %6010 = vmatpush1.bf16.msra.mxu0 %v8950_v41  ;;  %v8967_v28 = vld [vmem:[%s11886_s1 + $0x145c] ss:$28 sps:$4 sm:$0xff]   ;;  %v8974_v13 = vld [vmem:[%s11886_s1 + $0x1068] ss:$28 sps:$4 sm:$0xff]   ;;  %v9007_v41 = vld [vmem:[%s11886_s1 + $0x1650] ss:$28 sps:$4 sm:$0xff]  }
 0x20f   : > { %6051 = vmatpush1.bf16.msra.mxu1 %v8953_v43  ;;  %v3932_v59 = vpop.f32.mrf.mxu0  ;;  %6011 = vmatprep.subr.bf16.mxu0 %v8958_v46  ;;  %v9012_v43 = vld [vmem:[%s11886_s1 + $0x129c] ss:$28 sps:$4 sm:$0xff]  }
 0x210   : > { %v3973_v60 = vpop.f32.mrf.mxu1  ;;  %6052 = vmatprep.subr.bf16.mxu1 %v8961_v49  ;;  %v3972_v62 = vadd.f32 %v3971_v54, %v3931_v55  ;;  %v3933_v63 = vadd.f32 %v3932_v59, %v10270_v32  ;;  %6041 = vmatprep.mubr.bf16.mxu0 %v11014_v50  ;;  %v8970_v32 = vld [vmem:[%s11886_s1 + $0x10a4] ss:$28 sps:$4 sm:$0xff]   ;;  %v9015_v46 = vld [vmem:[%s11886_s1 + $0x161c] ss:$28 sps:$4 sm:$0xff]   ;;  %v9024_v59 = vld [vmem:[%s11886_s1 + $0x122c] ss:$28 sps:$4 sm:$0xff]  }
 0x211   : > { %6082 = vmatprep.mubr.bf16.mxu1 %v11016_v51  ;;  %v3934_v4 = vpop.f32.mrf.mxu0  ;;  %v9010_v49 = vld [vmem:[%s11886_s1 + $0x1298] ss:$28 sps:$4 sm:$0xff]   ;;  %v9018_v54 = vld [vmem:[%s11886_s1 + $0x1264] ss:$28 sps:$4 sm:$0xff]  }
 0x212   : > { %v3975_v5 = vpop.f32.mrf.mxu1  ;;  %v3974_v6 = vadd.f32 %v3973_v60, %v3933_v63  ;;  %6012 = vmatpush1.bf16.msra.mxu0 %v8956_v57  ;;  %v9013_v53 = vld [vmem:[%s11886_s1 + $0x1618] ss:$28 sps:$4 sm:$0xff]   ;;  %v9021_v55 = vld [vmem:[%s11886_s1 + $0x15e4] ss:$28 sps:$4 sm:$0xff]   ;;  %v9027_v60 = vld [vmem:[%s11886_s1 + $0x15ac] ss:$28 sps:$4 sm:$0xff]  }
 0x213   : > { %6053 = vmatpush1.bf16.msra.mxu1 %v8959_v58  ;;  %v3935_v48 = vpop.f32.mrf.mxu0  ;;  %6013 = vmatprep.subr.bf16.mxu0 %v8964_v3  ;;  %v9016_v57 = vld [vmem:[%s11886_s1 + $0x1260] ss:$28 sps:$4 sm:$0xff]   ;;  %v9022_v3 = vld [vmem:[%s11886_s1 + $0x1228] ss:$28 sps:$4 sm:$0xff]   ;;  %v9033_v63 = vld [vmem:[%s11886_s1 + $0x1574] ss:$28 sps:$4 sm:$0xff]  }
 0x214   : > { %v3976_v7 = vpop.f32.mrf.mxu1  ;;  %6054 = vmatprep.subr.bf16.mxu1 %v8967_v28  ;;  %v9019_v58 = vld [vmem:[%s11886_s1 + $0x15e0] ss:$28 sps:$4 sm:$0xff]   ;;  %v9025_v28 = vld [vmem:[%s11886_s1 + $0x15a8] ss:$28 sps:$4 sm:$0xff]   ;;  %v9028_v4 = vld [vmem:[%s11886_s1 + $0x11f0] ss:$28 sps:$4 sm:$0xff]  }
 0x215   : > { %v9031_v5 = vld [vmem:[%s11886_s1 + $0x1570] ss:$28 sps:$4 sm:$0xff]   ;;  %v9037_v48 = vld [vmem:[%s11886_s1 + $0x1538] ss:$28 sps:$4 sm:$0xff]   ;;  %v9042_v7 = vld [vmem:[%s11886_s1 + $0x1184] ss:$28 sps:$4 sm:$0xff]  }
 0x216   : > { %6014 = vmatpush1.bf16.msra.mxu0 %v8962_v23  ;;  %v9039_v23 = vld [vmem:[%s11886_s1 + $0x153c] ss:$28 sps:$4 sm:$0xff]  }
 0x217   : > { %6055 = vmatpush1.bf16.msra.mxu1 %v8965_v45  ;;  %6015 = vmatprep.subr.bf16.mxu0 %v8970_v32  ;;  %v9034_v45 = vld [vmem:[%s11886_s1 + $0x11b8] ss:$28 sps:$4 sm:$0xff]   ;;  %v9045_v32 = vld [vmem:[%s11886_s1 + $0x1504] ss:$28 sps:$4 sm:$0xff]  }
 0x218   : > { %6056 = vmatprep.subr.bf16.mxu1 %v8973_v8  ;;  %v9050_v8 = vld [vmem:[%s9500_s30] ss:$20 sps:$4 sm:$0x1e]  }
 0x21a   : > { %6016 = vmatpush1.bf16.msra.mxu0 %v8968_v9  ;;  %v9051_v9 = vld [vmem:[%s9500_s30 + $0x8] ss:$20 sps:$4 sm:$0x1e]  }
 0x21b   : > { %6057 = vmatpush1.bf16.msra.mxu1 %v8971_v10  ;;  %6017 = vmatprep.subr.bf16.mxu0 %v8976_v11  ;;  %v9040_v10 = vld [vmem:[%s11886_s1 + $0x1180] ss:$28 sps:$4 sm:$0xff]  }
 0x21c   : > { %6058 = vmatprep.subr.bf16.mxu1 %v8979_v12  ;;  %v9043_v11 = vld [vmem:[%s11886_s1 + $0x1500] ss:$28 sps:$4 sm:$0xff]   ;;  %v9054_v12 = vld [vmem:[%s11886_s1 + $0x176c] ss:$28 sps:$4 sm:$0xff]  }
 0x21d   : > { %v4012_v17 = vpop.f32.mrf.mxu0 }
 0x21e   : > { %v11073_v47 = vadd.f32 %v4012_v17, %v3972_v62  ;;  %6018 = vmatpush1.bf16.msra.mxu0 %v8974_v13  ;;  %v9030_v62 = vld [vmem:[%s11886_s1 + $0x11f4] ss:$28 sps:$4 sm:$0xff]  }
 0x21f   : > { %6059 = vmatpush1.bf16.msra.mxu1 %v8977_v14  ;;  %v4014_v52 = vpop.f32.mrf.mxu0  ;;  %6019 = vmatprep.subr.bf16.mxu0 %v8982_v15  ;;  %v9057_v13 = vld [vmem:[%s11886_s1 + $0x1154] ss:$28 sps:$4 sm:$0xff]   ;;  %v11211_v14 = vrot.slane %v9050_v8, 1  ;;  %v11213_v15 = vrot.slane %v9051_v9, 1  ;;  %v9100_v8 = vld [vmem:[%s11886_s1 + $0x142c] ss:$28 sps:$4 sm:$0xff]  }
 0x220   : > { %6060 = vmatprep.subr.bf16.mxu1 %v8985_v16  ;;  %v11087_v21 = vadd.f32 %v4014_v52, %v3974_v6  ;;  %v9036_v6 = vld [vmem:[%s11886_s1 + $0x11bc] ss:$28 sps:$4 sm:$0xff]   ;;  %v9052_v16 = vld [vmem:[%s11886_s1 + $0x1768] ss:$28 sps:$4 sm:$0xff]   ;;  %v9055_v17 = vld [vmem:[%s11886_s1 + $0x1150] ss:$28 sps:$4 sm:$0xff]  }
 0x221   : > { %v4016_v24 = vpop.f32.mrf.mxu0  ;;  %v9095_v9 = vld [vmem:[%s11886_s1 + $0xfc8] ss:$28 sps:$4 sm:$0xff]  }
 0x222   : > { %6020 = vmatpush1.bf16.msra.mxu0 %v8980_v18  ;;  %v9060_v18 = vld [vmem:[%s11886_s1 + $0x1734] ss:$28 sps:$4 sm:$0xff]  }
 0x223   : > { %6061 = vmatpush1.bf16.msra.mxu1 %v8983_v0  ;;  %v4017_v27 = vpop.f32.mrf.mxu0  ;;  %6021 = vmatprep.subr.bf16.mxu0 %v8988_v19  ;;  %v9063_v0 = vld [vmem:[%s11886_s1 + $0x111c] ss:$28 sps:$4 sm:$0xff]  }
 0x224   : > { %6062 = vmatprep.subr.bf16.mxu1 %v8991_v20  ;;  %v9058_v20 = vld [vmem:[%s11886_s1 + $0x1730] ss:$28 sps:$4 sm:$0xff]   ;;  %v9061_v24 = vld [vmem:[%s11886_s1 + $0x1118] ss:$28 sps:$4 sm:$0xff]  }
 0x226   : > { %6022 = vmatpush1.bf16.msra.mxu0 %v8986_v25 }
 0x227   : > { %6063 = vmatpush1.bf16.msra.mxu1 %v8989_v26  ;;  %6023 = vmatprep.subr.bf16.mxu0 %v8994_v29  ;;  %v9066_v26 = vld [vmem:[%s11886_s1 + $0x16fc] ss:$28 sps:$4 sm:$0xff]  }
 0x228   : > { %6064 = vmatprep.subr.bf16.mxu1 %v8997_v30  ;;  %v9064_v30 = vld [vmem:[%s11886_s1 + $0x16f8] ss:$28 sps:$4 sm:$0xff]  }
 0x22a   : > { %6024 = vmatpush1.bf16.msra.mxu0 %v8992_v2  ;;  %v9067_v2 = vld [vmem:[%s11886_s1 + $0x10e0] ss:$28 sps:$4 sm:$0xff]  }
 0x22b   : > { %6065 = vmatpush1.bf16.msra.mxu1 %v8995_v31  ;;  %6025 = vmatprep.subr.bf16.mxu0 %v9000_v34  ;;  %v9075_v34 = vld [vmem:[%s11886_s1 + $0x10ac] ss:$28 sps:$4 sm:$0xff]  }
 0x22c   : > { %6066 = vmatprep.subr.bf16.mxu1 %v9003_v35  ;;  %v9076_v35 = vld [vmem:[%s9500_s30 + $0x10] ss:$20 sps:$4 sm:$0x1e]  }
 0x22e   : > { %6026 = vmatpush2.bf16.msra.mxu0 %v8998_v36  ;;  %v9070_v36 = vld [vmem:[%s11886_s1 + $0x16c0] ss:$28 sps:$4 sm:$0xff]  }
 0x22f   : > { %6067 = vmatpush2.bf16.msra.mxu1 %v9001_v1  ;;  %6027 = vmatprep.subr.bf16.mxu0 %v9006_v38  ;;  %v9073_v1 = vld [vmem:[%s11886_s1 + $0x10a8] ss:$28 sps:$4 sm:$0xff]   ;;  %v9079_v38 = vld [vmem:[%s11886_s1 + $0x1074] ss:$28 sps:$4 sm:$0xff]  }
 0x230   : > { %6068 = vmatprep.subr.bf16.mxu1 %v9009_v39  ;;  %v9082_v39 = vld [vmem:[%s11886_s1 + $0x14d4] ss:$28 sps:$4 sm:$0xff]  }
 0x232   : > { %6028 = vmatpush2.bf16.msra.mxu0 %v9004_v40  ;;  %v11270_v40 = vrot.slane %v9076_v35, 1  ;;  %v9136_v35 = vld [vmem:[%s11886_s1 + $0x165c] ss:$28 sps:$4 sm:$0xff]  }
 0x233   : > { %6069 = vmatpush2.bf16.msra.mxu1 %v9007_v41  ;;  %6029 = vmatprep.subr.bf16.mxu0 %v9012_v43  ;;  %v9077_v41 = vld [vmem:[%s11886_s1 + $0x1070] ss:$28 sps:$4 sm:$0xff]  }
 0x234   : > { %6070 = vmatprep.subr.bf16.mxu1 %v9015_v46  ;;  %v9080_v43 = vld [vmem:[%s11886_s1 + $0x14d0] ss:$28 sps:$4 sm:$0xff]   ;;  %v9085_v46 = vld [vmem:[%s11886_s1 + $0x103c] ss:$28 sps:$4 sm:$0xff]  }
 0x236   : > { %6030 = vmatpush2.bf16.msra.mxu0 %v9010_v49  ;;  %v9088_v49 = vld [vmem:[%s11886_s1 + $0x149c] ss:$28 sps:$4 sm:$0xff]  }
 0x237   : > { %6071 = vmatpush2.bf16.msra.mxu1 %v9013_v53  ;;  %6031 = vmatprep.subr.bf16.mxu0 %v9018_v54 }
 0x238   : > { %6072 = vmatprep.subr.bf16.mxu1 %v9021_v55 }
 0x23a   : > { %6032 = vmatpush2.bf16.msra.mxu0 %v9016_v57  ;;  %v9083_v57 = vld [vmem:[%s11886_s1 + $0x1038] ss:$28 sps:$4 sm:$0xff]  }
 0x23b   : > { %6073 = vmatpush2.bf16.msra.mxu1 %v9019_v58  ;;  %6033 = vmatprep.subr.bf16.mxu0 %v9024_v59  ;;  %v9086_v58 = vld [vmem:[%s11886_s1 + $0x1498] ss:$28 sps:$4 sm:$0xff]  }
 0x23c   : > { %6074 = vmatprep.subr.bf16.mxu1 %v9027_v60 }
 0x23e   : > { %6034 = vmatpush2.bf16.msra.mxu0 %v9022_v3  ;;  %v9091_v3 = vld [vmem:[%s11886_s1 + $0x1004] ss:$28 sps:$4 sm:$0xff]  }
 0x23f   : > { %6075 = vmatpush2.bf16.msra.mxu1 %v9025_v28  ;;  %6035 = vmatprep.subr.bf16.mxu0 %v9030_v62  ;;  %v9094_v28 = vld [vmem:[%s11886_s1 + $0x1464] ss:$28 sps:$4 sm:$0xff]  }
 0x240   : > { %6076 = vmatprep.subr.bf16.mxu1 %v9033_v63 }
 0x242   : > { %6036 = vmatpush2.bf16.msra.mxu0 %v9028_v4 }
 0x243   : > { %6077 = vmatpush2.bf16.msra.mxu1 %v9031_v5  ;;  %6037 = vmatprep.subr.bf16.mxu0 %v9036_v6 }
 0x244   : > { %6078 = vmatprep.subr.bf16.mxu1 %v9039_v23  ;;  %v9089_v23 = vld [vmem:[%s11886_s1 + $0x1000] ss:$28 sps:$4 sm:$0xff]  }
 0x246   : > { %6038 = vmatpush2.bf16.msra.mxu0 %v9034_v45  ;;  %v9092_v45 = vld [vmem:[%s11886_s1 + $0x1460] ss:$28 sps:$4 sm:$0xff]  }
 0x247   : > { %6079 = vmatpush2.bf16.msra.mxu1 %v9037_v48  ;;  %6039 = vmatprep.subr.bf16.mxu0 %v9042_v7 }
 0x248   : > { %6080 = vmatprep.subr.bf16.mxu1 %v9045_v32  ;;  %v9097_v32 = vld [vmem:[%s11886_s1 + $0xfcc] ss:$28 sps:$4 sm:$0xff]  }
 0x24a   : > { %6040 = vmatpush2.bf16.msra.mxu0 %v9040_v10  ;;  %v9098_v10 = vld [vmem:[%s11886_s1 + $0x1428] ss:$28 sps:$4 sm:$0xff]  }
 0x24b   : > { %6081 = vmatpush2.bf16.msra.mxu1 %v9043_v11  ;;  %6099 = vmatprep.subr.bf16.mxu0 %v9054_v12  ;;  %v9103_v11 = vld [vmem:[%s11886_s1 + $0x1314] ss:$28 sps:$4 sm:$0xff]  }
 0x24c   : > { %6132 = vmatprep.subr.bf16.mxu1 %v9057_v13  ;;  %v9106_v12 = vld [vmem:[%s11886_s1 + $0x13f4] ss:$28 sps:$4 sm:$0xff]  }
 0x24d   : > { %6042 = vmatmul.mubr.bf16.vlgmr.msra.gmra.mxu0 %v11211_v14  ;;  %v9101_v13 = vld [vmem:[%s11886_s1 + $0x1310] ss:$28 sps:$4 sm:$0xff]  }
 0x24e   : > { %v4053_v52 = vpop.f32.mrf.mxu1  ;;  %6083 = vmatmul.mubr.bf16.vlgmr.msra.gmra.mxu1 %v11213_v15  ;;  %6100 = vmatpush1.bf16.msra.mxu0 %v9052_v16  ;;  %v9104_v16 = vld [vmem:[%s11886_s1 + $0x13f0] ss:$28 sps:$4 sm:$0xff]  }
 0x24f   : > { %v4054_v19 = vadd.f32 %v4053_v52, %v10473_v56  ;;  %6133 = vmatpush1.bf16.msra.mxu1 %v9055_v17  ;;  %6101 = vmatprep.subr.bf16.mxu0 %v9060_v18  ;;  %v9069_v56 = vld [vmem:[%s11886_s1 + $0x10e4] ss:$28 sps:$4 sm:$0xff]   ;;  %v9109_v17 = vld [vmem:[%s11886_s1 + $0x12dc] ss:$28 sps:$4 sm:$0xff]  }
 0x250   : > { %v4055_v25 = vpop.f32.mrf.mxu1  ;;  %6134 = vmatprep.subr.bf16.mxu1 %v9063_v0  ;;  %6123 = vmatprep.mubr.bf16.mxu0 %v9327_v33  ;;  %v9112_v18 = vld [vmem:[%s11886_s1 + $0x13bc] ss:$28 sps:$4 sm:$0xff]  }
 0x251   : > { %v4056_v27 = vadd.f32 %v4055_v25, %v10479_v61  ;;  %6164 = vmatprep.mubr.bf16.mxu1 %v11014_v50  ;;  %v9072_v61 = vld [vmem:[%s11886_s1 + $0x16c4] ss:$28 sps:$4 sm:$0xff]   ;;  %v9107_v0 = vld [vmem:[%s11886_s1 + $0x12d8] ss:$28 sps:$4 sm:$0xff]  }
 0x252   : > { %v4057_v29 = vpop.f32.mrf.mxu1  ;;  %6102 = vmatpush1.bf16.msra.mxu0 %v9058_v20  ;;  %v9110_v52 = vld [vmem:[%s11886_s1 + $0x13b8] ss:$28 sps:$4 sm:$0xff]   ;;  %v9118_v20 = vld [vmem:[%s11886_s1 + $0x1384] ss:$28 sps:$4 sm:$0xff]  }
 0x253   : > { %6135 = vmatpush1.bf16.msra.mxu1 %v9061_v24  ;;  %6103 = vmatprep.subr.bf16.mxu0 %v9066_v26  ;;  %v9113_v24 = vld [vmem:[%s11886_s1 + $0x12a0] ss:$28 sps:$4 sm:$0xff]   ;;  %v9121_v26 = vld [vmem:[%s11886_s1 + $0x126c] ss:$28 sps:$4 sm:$0xff]  }
 0x254   : > { %v4058_v31 = vpop.f32.mrf.mxu1  ;;  %6136 = vmatprep.subr.bf16.mxu1 %v9069_v56  ;;  %v9116_v25 = vld [vmem:[%s11886_s1 + $0x1380] ss:$28 sps:$4 sm:$0xff]   ;;  %v9124_v56 = vld [vmem:[%s11886_s1 + $0x134c] ss:$28 sps:$4 sm:$0xff]  }
 0x255   : > { %v9122_v29 = vld [vmem:[%s11886_s1 + $0x1348] ss:$28 sps:$4 sm:$0xff]   ;;  %v9125_v31 = vld [vmem:[%s11886_s1 + $0x1230] ss:$28 sps:$4 sm:$0xff]  }
 0x256   : > { %6104 = vmatpush1.bf16.msra.mxu0 %v9064_v30  ;;  %v9127_v30 = vld [vmem:[%s11886_s1 + $0x1234] ss:$28 sps:$4 sm:$0xff]  }
 0x257   : > { %6137 = vmatpush1.bf16.msra.mxu1 %v9067_v2  ;;  %6105 = vmatprep.subr.bf16.mxu0 %v9072_v61  ;;  %v9130_v2 = vld [vmem:[%s11886_s1 + $0x1694] ss:$28 sps:$4 sm:$0xff]  }
 0x258   : > { %6138 = vmatprep.subr.bf16.mxu1 %v9075_v34  ;;  %v9128_v61 = vld [vmem:[%s11886_s1 + $0x1690] ss:$28 sps:$4 sm:$0xff]   ;;  %v9133_v34 = vld [vmem:[%s11886_s1 + $0x11fc] ss:$28 sps:$4 sm:$0xff]  }
 0x25a   : > { %6106 = vmatpush1.bf16.msra.mxu0 %v9070_v36  ;;  %v9131_v36 = vld [vmem:[%s11886_s1 + $0x11f8] ss:$28 sps:$4 sm:$0xff]  }
 0x25b   : > { %6139 = vmatpush1.bf16.msra.mxu1 %v9073_v1  ;;  %6173 = vmatprep.subr.bf16.mxu0 %v9082_v39  ;;  %v9134_v1 = vld [vmem:[%s11886_s1 + $0x1658] ss:$28 sps:$4 sm:$0xff]   ;;  %v9142_v39 = vld [vmem:[%s11886_s1 + $0x1624] ss:$28 sps:$4 sm:$0xff]  }
 0x25c   : > { %6140 = vmatprep.subr.bf16.mxu1 %v9079_v38  ;;  %v9139_v38 = vld [vmem:[%s11886_s1 + $0x11c4] ss:$28 sps:$4 sm:$0xff]  }
 0x25d   : > { %v4094_v53 = vpop.f32.mrf.mxu0  ;;  %8015 = vmatmul.mubr.msk.bf16.vlgmr.msra.gmra.mxu0 %vm2101_vm0, %v11270_v40 }
 0x25e   : > { %v4135_v54 = vpop.f32.mrf.mxu1  ;;  %v4095_v55 = vadd.f32 %v4094_v53, %v4054_v19  ;;  %6174 = vmatpush1.bf16.msra.mxu0 %v9080_v43  ;;  %6205 = vmatprep.mubr.bf16.mxu0 %v11016_v51  ;;  %v9115_v19 = vld [vmem:[%s11886_s1 + $0x12a4] ss:$28 sps:$4 sm:$0xff]  }
 0x25f   : > { %6141 = vmatpush1.bf16.msra.mxu1 %v9077_v41  ;;  %v4096_v59 = vpop.f32.mrf.mxu0  ;;  %6175 = vmatprep.subr.bf16.mxu0 %v9088_v49  ;;  %v9137_v41 = vld [vmem:[%s11886_s1 + $0x11c0] ss:$28 sps:$4 sm:$0xff]   ;;  %v9148_v49 = vld [vmem:[%s11886_s1 + $0x15ec] ss:$28 sps:$4 sm:$0xff]  }
 0x260   : > { %v4137_v60 = vpop.f32.mrf.mxu1  ;;  %6142 = vmatprep.subr.bf16.mxu1 %v9085_v46  ;;  %v11298_v62 = vadd.f32 %v4135_v54, %v4095_v55  ;;  %v4097_v63 = vadd.f32 %v4096_v59, %v4056_v27  ;;  %v9119_v27 = vld [vmem:[%s11886_s1 + $0x1268] ss:$28 sps:$4 sm:$0xff]   ;;  %v9140_v43 = vld [vmem:[%s11886_s1 + $0x1620] ss:$28 sps:$4 sm:$0xff]   ;;  %v9151_v55 = vld [vmem:[%s11886_s1 + $0x15b4] ss:$28 sps:$4 sm:$0xff]  }
 0x261   : > { %v4098_v4 = vpop.f32.mrf.mxu0  ;;  %v9145_v46 = vld [vmem:[%s11886_s1 + $0x118c] ss:$28 sps:$4 sm:$0xff]  }
 0x262   : > { %v4139_v5 = vpop.f32.mrf.mxu1  ;;  %v11301_v6 = vadd.f32 %v4137_v60, %v4097_v63  ;;  %6176 = vmatpush1.bf16.msra.mxu0 %v9086_v58  ;;  %v9143_v53 = vld [vmem:[%s11886_s1 + $0x1188] ss:$28 sps:$4 sm:$0xff]   ;;  %v9149_v58 = vld [vmem:[%s11886_s1 + $0x15b0] ss:$28 sps:$4 sm:$0xff]   ;;  %v9157_v60 = vld [vmem:[%s11886_s1 + $0x157c] ss:$28 sps:$4 sm:$0xff]  }
 0x263   : > { %6143 = vmatpush1.bf16.msra.mxu1 %v9083_v57  ;;  %v4099_v48 = vpop.f32.mrf.mxu0  ;;  %6177 = vmatprep.subr.bf16.mxu0 %v9094_v28  ;;  %v9146_v54 = vld [vmem:[%s11886_s1 + $0x15e8] ss:$28 sps:$4 sm:$0xff]   ;;  %v9154_v57 = vld [vmem:[%s11886_s1 + $0x1774] ss:$28 sps:$4 sm:$0xff]  }
 0x264   : > { %v4140_v7 = vpop.f32.mrf.mxu1  ;;  %6144 = vmatprep.subr.bf16.mxu1 %v9091_v3  ;;  %v9152_v59 = vld [vmem:[%s11886_s1 + $0x1770] ss:$28 sps:$4 sm:$0xff]   ;;  %v9160_v3 = vld [vmem:[%s11886_s1 + $0x173c] ss:$28 sps:$4 sm:$0xff]   ;;  %v9163_v4 = vld [vmem:[%s11886_s1 + $0x1544] ss:$28 sps:$4 sm:$0xff]  }
 0x265   : > { %v9155_v28 = vld [vmem:[%s11886_s1 + $0x1578] ss:$28 sps:$4 sm:$0xff]   ;;  %v9166_v5 = vld [vmem:[%s11886_s1 + $0x1704] ss:$28 sps:$4 sm:$0xff]   ;;  %v9169_v48 = vld [vmem:[%s11886_s1 + $0x150c] ss:$28 sps:$4 sm:$0xff]  }
 0x266   : > { %6178 = vmatpush1.bf16.msra.mxu0 %v9092_v45  ;;  %v9158_v63 = vld [vmem:[%s11886_s1 + $0x1738] ss:$28 sps:$4 sm:$0xff]   ;;  %v9164_v45 = vld [vmem:[%s11886_s1 + $0x1700] ss:$28 sps:$4 sm:$0xff]   ;;  %v9172_v7 = vld [vmem:[%s11886_s1 + $0x16cc] ss:$28 sps:$4 sm:$0xff]  }
 0x267   : > { %6145 = vmatpush1.bf16.msra.mxu1 %v9089_v23  ;;  %6179 = vmatprep.subr.bf16.mxu0 %v9100_v8  ;;  %v9161_v23 = vld [vmem:[%s11886_s1 + $0x1540] ss:$28 sps:$4 sm:$0xff]   ;;  %v9170_v8 = vld [vmem:[%s11886_s1 + $0x16c8] ss:$28 sps:$4 sm:$0xff]  }
 0x268   : > { %6146 = vmatprep.subr.bf16.mxu1 %v9097_v32  ;;  %v9167_v32 = vld [vmem:[%s11886_s1 + $0x1508] ss:$28 sps:$4 sm:$0xff]  }
 0x26a   : > { %6180 = vmatpush1.bf16.msra.mxu0 %v9098_v10  ;;  %v9178_v10 = vld [vmem:[%s11886_s1 + $0x14dc] ss:$28 sps:$4 sm:$0xff]  }
 0x26b   : > { %6147 = vmatpush1.bf16.msra.mxu1 %v9095_v9  ;;  %6181 = vmatprep.subr.bf16.mxu0 %v9106_v12  ;;  %v9175_v9 = vld [vmem:[%s11886_s1 + $0x115c] ss:$28 sps:$4 sm:$0xff]  }
 0x26c   : > { %6148 = vmatprep.subr.bf16.mxu1 %v9103_v11  ;;  %v9173_v11 = vld [vmem:[%s11886_s1 + $0x1158] ss:$28 sps:$4 sm:$0xff]  }
 0x26d   : > { %v9176_v12 = vld [vmem:[%s11886_s1 + $0x14d8] ss:$28 sps:$4 sm:$0xff]  }
 0x26e   : > { %6182 = vmatpush1.bf16.msra.mxu0 %v9104_v16  ;;  %v9184_v16 = vld [vmem:[%s11886_s1 + $0x14a4] ss:$28 sps:$4 sm:$0xff]  }
 0x26f   : > { %6149 = vmatpush2.bf16.msra.mxu1 %v9101_v13  ;;  %6183 = vmatprep.subr.bf16.mxu0 %v9112_v18  ;;  %v9181_v13 = vld [vmem:[%s11886_s1 + $0x1124] ss:$28 sps:$4 sm:$0xff]  }
 0x270   : > { %6150 = vmatprep.subr.bf16.mxu1 %v9109_v17 }
 0x272   : > { %6184 = vmatpush1.bf16.msra.mxu0 %v9110_v52  ;;  %v9179_v52 = vld [vmem:[%s11886_s1 + $0x1120] ss:$28 sps:$4 sm:$0xff]  }
 0x273   : > { %6151 = vmatpush2.bf16.msra.mxu1 %v9107_v0  ;;  %6185 = vmatprep.subr.bf16.mxu0 %v9118_v20 }
 0x274   : > { %6152 = vmatprep.subr.bf16.mxu1 %v9115_v19  ;;  %v9182_v19 = vld [vmem:[%s11886_s1 + $0x14a0] ss:$28 sps:$4 sm:$0xff]  }
 0x276   : > { %6186 = vmatpush1.bf16.msra.mxu0 %v9116_v25  ;;  %v9187_v25 = vld [vmem:[%s11886_s1 + $0x10ec] ss:$28 sps:$4 sm:$0xff]  }
 0x277   : > { %6153 = vmatpush2.bf16.msra.mxu1 %v9113_v24  ;;  %6187 = vmatprep.subr.bf16.mxu0 %v9124_v56 }
 0x278   : > { %6154 = vmatprep.subr.bf16.mxu1 %v9121_v26 }
 0x27a   : > { %6188 = vmatpush1.bf16.msra.mxu0 %v9122_v29 }
 0x27b   : > { %6155 = vmatpush2.bf16.msra.mxu1 %v9119_v27  ;;  %6189 = vmatprep.subr.bf16.mxu0 %v9130_v2  ;;  %v9185_v2 = vld [vmem:[%s11886_s1 + $0x10e8] ss:$28 sps:$4 sm:$0xff]  }
 0x27c   : > { %6156 = vmatprep.subr.bf16.mxu1 %v9127_v30 }
 0x27e   : > { %6190 = vmatpush2.bf16.msra.mxu0 %v9128_v61 }
 0x27f   : > { %6157 = vmatpush2.bf16.msra.mxu1 %v9125_v31  ;;  %6191 = vmatprep.subr.bf16.mxu0 %v9136_v35  ;;  %v9188_v31 = vld [vmem:[%s11886_s1 + $0x1468] ss:$28 sps:$4 sm:$0xff]   ;;  %v9196_v35 = vld [vmem:[%s11886_s1 + $0x1434] ss:$28 sps:$4 sm:$0xff]  }
 0x280   : > { %6158 = vmatprep.subr.bf16.mxu1 %v9133_v34 }
 0x282   : > { %6192 = vmatpush2.bf16.msra.mxu0 %v9134_v1  ;;  %v9194_v1 = vld [vmem:[%s11886_s1 + $0x1430] ss:$28 sps:$4 sm:$0xff]  }
 0x283   : > { %6159 = vmatpush2.bf16.msra.mxu1 %v9131_v36  ;;  %6193 = vmatprep.subr.bf16.mxu0 %v9142_v39  ;;  %v9191_v36 = vld [vmem:[%s11886_s1 + $0x10b0] ss:$28 sps:$4 sm:$0xff]   ;;  %v9202_v39 = vld [vmem:[%s11886_s1 + $0x13fc] ss:$28 sps:$4 sm:$0xff]  }
 0x284   : > { %6160 = vmatprep.subr.bf16.mxu1 %v9139_v38  ;;  %v9199_v38 = vld [vmem:[%s11886_s1 + $0x107c] ss:$28 sps:$4 sm:$0xff]  }
 0x286   : > { %6194 = vmatpush2.bf16.msra.mxu0 %v9140_v43  ;;  %v9200_v43 = vld [vmem:[%s11886_s1 + $0x13f8] ss:$28 sps:$4 sm:$0xff]  }
 0x287   : > { %6161 = vmatpush2.bf16.msra.mxu1 %v9137_v41  ;;  %6195 = vmatprep.subr.bf16.mxu0 %v9148_v49  ;;  %v9197_v41 = vld [vmem:[%s11886_s1 + $0x1078] ss:$28 sps:$4 sm:$0xff]   ;;  %v9208_v49 = vld [vmem:[%s11886_s1 + $0x13c4] ss:$28 sps:$4 sm:$0xff]  }
 0x288   : > { %6162 = vmatprep.subr.bf16.mxu1 %v9145_v46  ;;  %v9205_v46 = vld [vmem:[%s11886_s1 + $0x1044] ss:$28 sps:$4 sm:$0xff]  }
 0x28a   : > { %6196 = vmatpush2.bf16.msra.mxu0 %v9146_v54 }
 0x28b   : > { %6163 = vmatpush2.bf16.msra.mxu1 %v9143_v53  ;;  %6197 = vmatprep.subr.bf16.mxu0 %v9151_v55  ;;  %v9203_v55 = vld [vmem:[%s11886_s1 + $0x1040] ss:$28 sps:$4 sm:$0xff]  }
 0x28c   : > { %6222 = vmatprep.subr.bf16.mxu1 %v9154_v57  ;;  %v9206_v57 = vld [vmem:[%s11886_s1 + $0x13c0] ss:$28 sps:$4 sm:$0xff]  }
 0x28e   : > { %6165 = vmatmul.mubr.bf16.vlgmr.msra.gmra.mxu1 %v11211_v14  ;;  %6198 = vmatpush2.bf16.msra.mxu0 %v9149_v58 }
 0x28f   : > { %6223 = vmatpush1.bf16.msra.mxu1 %v9152_v59  ;;  %6199 = vmatprep.subr.bf16.mxu0 %v9157_v60  ;;  %v9211_v59 = vld [vmem:[%s11886_s1 + $0x100c] ss:$28 sps:$4 sm:$0xff]  }
 0x290   : > { %6224 = vmatprep.subr.bf16.mxu1 %v9160_v3  ;;  %6246 = vmatprep.mubr.bf16.mxu1 %v9327_v33  ;;  %v9214_v60 = vld [vmem:[%s11886_s1 + $0x138c] ss:$28 sps:$4 sm:$0xff]  }
 0x292   : > { %6200 = vmatpush2.bf16.msra.mxu0 %v9155_v28 }
 0x293   : > { %6225 = vmatpush1.bf16.msra.mxu1 %v9158_v63  ;;  %6201 = vmatprep.subr.bf16.mxu0 %v9163_v4  ;;  %v9209_v63 = vld [vmem:[%s11886_s1 + $0x1008] ss:$28 sps:$4 sm:$0xff]  }
 0x294   : > { %6226 = vmatprep.subr.bf16.mxu1 %v9166_v5  ;;  %v9212_v4 = vld [vmem:[%s11886_s1 + $0x1388] ss:$28 sps:$4 sm:$0xff]  }
 0x296   : > { %6202 = vmatpush2.bf16.msra.mxu0 %v9161_v23  ;;  %v9217_v23 = vld [vmem:[%s11886_s1 + $0xfd4] ss:$28 sps:$4 sm:$0xff]  }
 0x297   : > { %6227 = vmatpush1.bf16.msra.mxu1 %v9164_v45  ;;  %6203 = vmatprep.subr.bf16.mxu0 %v9169_v48  ;;  %v9220_v45 = vld [vmem:[%s11886_s1 + $0x1354] ss:$28 sps:$4 sm:$0xff]  }
 0x298   : > { %6228 = vmatprep.subr.bf16.mxu1 %v9172_v7  ;;  %v9215_v48 = vld [vmem:[%s11886_s1 + $0xfd0] ss:$28 sps:$4 sm:$0xff]  }
 0x299   : > { %v9218_v7 = vld [vmem:[%s11886_s1 + $0x1350] ss:$28 sps:$4 sm:$0xff]  }
 0x29a   : > { %6204 = vmatpush2.bf16.msra.mxu0 %v9167_v32  ;;  %v9223_v32 = vld [vmem:[%s11886_s1 + $0x131c] ss:$28 sps:$4 sm:$0xff]  }
 0x29b   : > { %6229 = vmatpush1.bf16.msra.mxu1 %v9170_v8  ;;  %6255 = vmatprep.subr.bf16.mxu0 %v9175_v9  ;;  %v9226_v8 = vld [vmem:[%s11886_s1 + $0x169c] ss:$28 sps:$4 sm:$0xff]  }
 0x29c   : > { %6296 = vmatprep.subr.bf16.mxu1 %v9178_v10  ;;  %v9221_v9 = vld [vmem:[%s11886_s1 + $0x1318] ss:$28 sps:$4 sm:$0xff]  }
 0x29d   : > { %v4176_v17 = vpop.f32.mrf.mxu0  ;;  %6206 = vmatmul.mubr.bf16.vlgmr.msra.gmra.mxu0 %v11213_v15  ;;  %v9224_v10 = vld [vmem:[%s11886_s1 + $0x1698] ss:$28 sps:$4 sm:$0xff]  }
 0x29e   : > { %v4217_v18 = vpop.f32.mrf.mxu1  ;;  %8016 = vmatmul.mubr.msk.bf16.vlgmr.msra.gmra.mxu1 %vm2101_vm0, %v11270_v40  ;;  %v4177_v0 = vadd.f32 %v4176_v17, %v10713_v37  ;;  %6256 = vmatpush1.bf16.msra.mxu0 %v9173_v11  ;;  %v9190_v37 = vld [vmem:[%s11886_s1 + $0x146c] ss:$28 sps:$4 sm:$0xff]   ;;  %v9229_v11 = vld [vmem:[%s11886_s1 + $0x12e4] ss:$28 sps:$4 sm:$0xff]  }
 0x29f   : > { %6297 = vmatpush1.bf16.msra.mxu1 %v9176_v12  ;;  %v4178_v20 = vpop.f32.mrf.mxu0  ;;  %6257 = vmatprep.subr.bf16.mxu0 %v9181_v13  ;;  %v9232_v12 = vld [vmem:[%s11886_s1 + $0x1664] ss:$28 sps:$4 sm:$0xff]  }
 0x2a0   : > { %v4219_v24 = vpop.f32.mrf.mxu1  ;;  %6298 = vmatprep.subr.bf16.mxu1 %v9184_v16  ;;  %v4218_v26 = vadd.f32 %v4217_v18, %v4177_v0  ;;  %v4179_v56 = vadd.f32 %v4178_v20, %v10727_v44  ;;  %6287 = vmatprep.mubr.bf16.mxu0 %v11014_v50  ;;  %v9193_v44 = vld [vmem:[%s11886_s1 + $0x10b4] ss:$28 sps:$4 sm:$0xff]   ;;  %v9227_v16 = vld [vmem:[%s11886_s1 + $0x12e0] ss:$28 sps:$4 sm:$0xff]   ;;  %v9235_v0 = vld [vmem:[%s11886_s1 + $0x12ac] ss:$28 sps:$4 sm:$0xff]  }
 0x2a1   : > { %6328 = vmatprep.mubr.bf16.mxu1 %v11016_v51  ;;  %v4180_v27 = vpop.f32.mrf.mxu0  ;;  %v9230_v17 = vld [vmem:[%s11886_s1 + $0x1660] ss:$28 sps:$4 sm:$0xff]  }
 0x2a2   : > { %v4221_v29 = vpop.f32.mrf.mxu1  ;;  %v4220_v30 = vadd.f32 %v4219_v24, %v4179_v56  ;;  %6258 = vmatpush1.bf16.msra.mxu0 %v9179_v52  ;;  %v9238_v52 = vld [vmem:[%s11886_s1 + $0x162c] ss:$28 sps:$4 sm:$0xff]   ;;  %v9241_v56 = vld [vmem:[%s11886_s1 + $0x1274] ss:$28 sps:$4 sm:$0xff]  }
 0x2a3   : > { %6299 = vmatpush1.bf16.msra.mxu1 %v9182_v19  ;;  %v4181_v61 = vpop.f32.mrf.mxu0  ;;  %6259 = vmatprep.subr.bf16.mxu0 %v9187_v25  ;;  %v9233_v25 = vld [vmem:[%s11886_s1 + $0x12a8] ss:$28 sps:$4 sm:$0xff]   ;;  %v9239_v27 = vld [vmem:[%s11886_s1 + $0x1270] ss:$28 sps:$4 sm:$0xff]  }
 0x2a4   : > { %v4222_v34 = vpop.f32.mrf.mxu1  ;;  %6300 = vmatprep.subr.bf16.mxu1 %v9190_v37  ;;  %v9236_v37 = vld [vmem:[%s11886_s1 + $0x1628] ss:$28 sps:$4 sm:$0xff]   ;;  %v9242_v29 = vld [vmem:[%s11886_s1 + $0x15f0] ss:$28 sps:$4 sm:$0xff]   ;;  %v9248_v61 = vld [vmem:[%s11886_s1 + $0x15b8] ss:$28 sps:$4 sm:$0xff]  }
 0x2a5   : > { %v9253_v34 = vld [vmem:[%s11886_s1 + $0x1204] ss:$28 sps:$4 sm:$0xff]  }
 0x2a6   : > { %6260 = vmatpush1.bf16.msra.mxu0 %v9185_v2  ;;  %v9250_v2 = vld [vmem:[%s11886_s1 + $0x15bc] ss:$28 sps:$4 sm:$0xff]  }
 0x2a7   : > { %6301 = vmatpush1.bf16.msra.mxu1 %v9188_v31  ;;  %6261 = vmatprep.subr.bf16.mxu0 %v9193_v44  ;;  %v9245_v31 = vld [vmem:[%s11886_s1 + $0x1238] ss:$28 sps:$4 sm:$0xff]   ;;  %v9256_v44 = vld [vmem:[%s11886_s1 + $0x1584] ss:$28 sps:$4 sm:$0xff]  }
 0x2a8   : > { %6302 = vmatprep.subr.bf16.mxu1 %v9196_v35 }
 0x2aa   : > { %6262 = vmatpush1.bf16.msra.mxu0 %v9191_v36 }
 0x2ab   : > { %6303 = vmatpush1.bf16.msra.mxu1 %v9194_v1  ;;  %6263 = vmatprep.subr.bf16.mxu0 %v9199_v38  ;;  %v9251_v1 = vld [vmem:[%s11886_s1 + $0x1200] ss:$28 sps:$4 sm:$0xff]  }
 0x2ac   : > { %6304 = vmatprep.subr.bf16.mxu1 %v9202_v39  ;;  %v9254_v38 = vld [vmem:[%s11886_s1 + $0x1580] ss:$28 sps:$4 sm:$0xff]  }
 0x2ad   : > { %v4258_v53 = vpop.f32.mrf.mxu0 }
 0x2ae   : > { %v11540_v54 = vadd.f32 %v4258_v53, %v4218_v26  ;;  %6264 = vmatpush1.bf16.msra.mxu0 %v9197_v41 }
 0x2af   : > { %6305 = vmatpush1.bf16.msra.mxu1 %v9200_v43  ;;  %v4260_v58 = vpop.f32.mrf.mxu0  ;;  %6265 = vmatprep.subr.bf16.mxu0 %v9205_v46  ;;  %v9259_v43 = vld [vmem:[%s11886_s1 + $0x11cc] ss:$28 sps:$4 sm:$0xff]  }
 0x2b0   : > { %6306 = vmatprep.subr.bf16.mxu1 %v9208_v49  ;;  %v11554_v3 = vadd.f32 %v4260_v58, %v4220_v30  ;;  %v9247_v30 = vld [vmem:[%s11886_s1 + $0x123c] ss:$28 sps:$4 sm:$0xff]   ;;  %v9262_v46 = vld [vmem:[%s11886_s1 + $0x154c] ss:$28 sps:$4 sm:$0xff]  }
 0x2b1   : > { %v4262_v28 = vpop.f32.mrf.mxu0  ;;  %v9257_v58 = vld [vmem:[%s11886_s1 + $0x11c8] ss:$28 sps:$4 sm:$0xff]  }
 0x2b2   : > { %6266 = vmatpush1.bf16.msra.mxu0 %v9203_v55 }
 0x2b3   : > { %6307 = vmatpush1.bf16.msra.mxu1 %v9206_v57  ;;  %v4263_v5 = vpop.f32.mrf.mxu0  ;;  %6267 = vmatprep.subr.bf16.mxu0 %v9211_v59  ;;  %v9260_v59 = vld [vmem:[%s11886_s1 + $0x1548] ss:$28 sps:$4 sm:$0xff]  }
 0x2b4   : > { %6308 = vmatprep.subr.bf16.mxu1 %v9214_v60 }
 0x2b6   : > { %6268 = vmatpush1.bf16.msra.mxu0 %v9209_v63  ;;  %v9265_v63 = vld [vmem:[%s11886_s1 + $0x1194] ss:$28 sps:$4 sm:$0xff]  }
 0x2b7   : > { %6309 = vmatpush1.bf16.msra.mxu1 %v9212_v4  ;;  %6269 = vmatprep.subr.bf16.mxu0 %v9217_v23  ;;  %v9268_v4 = vld [vmem:[%s11886_s1 + $0x1514] ss:$28 sps:$4 sm:$0xff]  }
 0x2b8   : > { %6310 = vmatprep.subr.bf16.mxu1 %v9220_v45  ;;  %v9263_v23 = vld [vmem:[%s11886_s1 + $0x1190] ss:$28 sps:$4 sm:$0xff]  }
 0x2b9   : > { %v9266_v45 = vld [vmem:[%s11886_s1 + $0x1510] ss:$28 sps:$4 sm:$0xff]  }
 0x2ba   : > { %6270 = vmatpush1.bf16.msra.mxu0 %v9215_v48  ;;  %v9271_v48 = vld [vmem:[%s11886_s1 + $0x177c] ss:$28 sps:$4 sm:$0xff]  }
 0x2bb   : > { %6311 = vmatpush1.bf16.msra.mxu1 %v9218_v7  ;;  %6271 = vmatprep.subr.bf16.mxu0 %v9223_v32  ;;  %v9272_v7 = vld [vmem:[%s11886_s1 + $0x1320] ss:$28 sps:$4 sm:$0xff]   ;;  %v9269_v32 = vld [vmem:[%s11886_s1 + $0x1778] ss:$28 sps:$4 sm:$0xff]  }
 0x2bc   : > { %6312 = vmatprep.subr.bf16.mxu1 %v9226_v8  ;;  %v9273_v8 = vld [vmem:[%s11886_s1 + $0x1160] ss:$28 sps:$4 sm:$0xff]  }
 0x2be   : > { %v8094_v13 = vpop.f32.mrf.mxu1  ;;  %6272 = vmatpush2.bf16.msra.mxu0 %v9221_v9  ;;  %v9276_v9 = vld [vmem:[%s11886_s1 + $0x1744] ss:$28 sps:$4 sm:$0xff]  }
 0x2bf   : > { %6313 = vmatpush2.bf16.msra.mxu1 %v9224_v10  ;;  %6273 = vmatprep.subr.bf16.mxu0 %v9229_v11  ;;  %v9277_v10 = vld [vmem:[%s11886_s1 + $0x12e8] ss:$28 sps:$4 sm:$0xff]   ;;  %v9274_v11 = vld [vmem:[%s11886_s1 + $0x1740] ss:$28 sps:$4 sm:$0xff]  }
 0x2c0   : > { %v8095_v18 = vpop.f32.mrf.mxu1  ;;  %6314 = vmatprep.subr.bf16.mxu1 %v9232_v12  ;;  %v9278_v12 = vld [vmem:[%s11886_s1 + $0x1128] ss:$28 sps:$4 sm:$0xff]  }
 0x2c1   : > { %v8096_v19 = vadd.f32 %v8095_v18, %v8094_v13  ;;  %v9281_v13 = vld [vmem:[%s11886_s1 + $0x170c] ss:$28 sps:$4 sm:$0xff]  }
 0x2c2   : > { %v8097_v20 = vpop.f32.mrf.mxu1  ;;  %6274 = vmatpush2.bf16.msra.mxu0 %v9227_v16  ;;  %v9282_v16 = vld [vmem:[%s11886_s1 + $0x12b0] ss:$28 sps:$4 sm:$0xff]  }
 0x2c3   : > { %v4300_v24 = vadd.f32 %v8096_v19, %v10837_v22  ;;  %6315 = vmatpush2.bf16.msra.mxu1 %v9230_v17  ;;  %6275 = vmatprep.subr.bf16.mxu0 %v9235_v0  ;;  %v9244_v22 = vld [vmem:[%s11886_s1 + $0x15f4] ss:$28 sps:$4 sm:$0xff]   ;;  %v9279_v17 = vld [vmem:[%s11886_s1 + $0x1708] ss:$28 sps:$4 sm:$0xff]   ;;  %v9289_v19 = vld [vmem:[%s11886_s1 + $0x1240] ss:$28 sps:$4 sm:$0xff]  }
 0x2c4   : > { %v8098_v26 = vpop.f32.mrf.mxu1  ;;  %6316 = vmatprep.subr.bf16.mxu1 %v9238_v52  ;;  %v9283_v18 = vld [vmem:[%s11886_s1 + $0x10f0] ss:$28 sps:$4 sm:$0xff]   ;;  %v9288_v52 = vld [vmem:[%s11886_s1 + $0x10b8] ss:$28 sps:$4 sm:$0xff]   ;;  %v9290_v20 = vld [vmem:[%s11886_s1 + $0x16a0] ss:$28 sps:$4 sm:$0xff]  }
 0x2c5   : > { %v9286_v0 = vld [vmem:[%s11886_s1 + $0x16d4] ss:$28 sps:$4 sm:$0xff]   ;;  %v9294_v26 = vld [vmem:[%s11886_s1 + $0x1668] ss:$28 sps:$4 sm:$0xff]  }
 0x2c6   : > { %6276 = vmatpush2.bf16.msra.mxu0 %v9233_v25  ;;  %v9292_v25 = vld [vmem:[%s11886_s1 + $0x14e0] ss:$28 sps:$4 sm:$0xff]  }
 0x2c7   : > { %6317 = vmatpush2.bf16.msra.mxu1 %v9236_v37  ;;  %6277 = vmatprep.subr.bf16.mxu0 %v9241_v56  ;;  %v9293_v37 = vld [vmem:[%s11886_s1 + $0x1208] ss:$28 sps:$4 sm:$0xff]  }
 0x2c8   : > { %6318 = vmatprep.subr.bf16.mxu1 %v9244_v22  ;;  %v9295_v56 = vld [vmem:[%s11886_s1 + $0x1048] ss:$28 sps:$4 sm:$0xff]  }
 0x2c9   : > { %v9296_v22 = vld [vmem:[%s11886_s1 + $0x14a8] ss:$28 sps:$4 sm:$0xff]  }
 0x2ca   : > { %6278 = vmatpush2.bf16.msra.mxu0 %v9239_v27  ;;  %v9297_v27 = vld [vmem:[%s11886_s1 + $0x11d0] ss:$28 sps:$4 sm:$0xff]  }
 0x2cb   : > { %6319 = vmatpush2.bf16.msra.mxu1 %v9242_v29  ;;  %6279 = vmatprep.subr.bf16.mxu0 %v9247_v30  ;;  %v9298_v29 = vld [vmem:[%s11886_s1 + $0x1630] ss:$28 sps:$4 sm:$0xff]  }
 0x2cc   : > { %6320 = vmatprep.subr.bf16.mxu1 %v9250_v2  ;;  %v9299_v30 = vld [vmem:[%s11886_s1 + $0x1010] ss:$28 sps:$4 sm:$0xff]  }
 0x2cd   : > { %v8116_v35 = vpop.f32.mrf.mxu0  ;;  %v9300_v2 = vld [vmem:[%s11886_s1 + $0x1470] ss:$28 sps:$4 sm:$0xff]  }
 0x2ce   : > { %v4379_v36 = vpop.f32.mrf.mxu1  ;;  %6280 = vmatpush2.bf16.msra.mxu0 %v9245_v31  ;;  %v9301_v31 = vld [vmem:[%s11886_s1 + $0x1198] ss:$28 sps:$4 sm:$0xff]  }
 0x2cf   : > { %6321 = vmatpush2.bf16.msra.mxu1 %v9248_v61  ;;  %v8117_v39 = vpop.f32.mrf.mxu0  ;;  %6281 = vmatprep.subr.bf16.mxu0 %v9253_v34  ;;  %v9303_v61 = vld [vmem:[%s11886_s1 + $0xfd8] ss:$28 sps:$4 sm:$0xff]  }
 0x2d0   : > { %v8198_v41 = vpop.f32.mrf.mxu1  ;;  %6322 = vmatprep.subr.bf16.mxu1 %v9256_v44  ;;  %v8118_v49 = vadd.f32 %v8117_v39, %v8116_v35  ;;  %v9304_v34 = vld [vmem:[%s11886_s1 + $0x1438] ss:$28 sps:$4 sm:$0xff]   ;;  %v9305_v44 = vld [vmem:[%s11886_s1 + $0x15c0] ss:$28 sps:$4 sm:$0xff]   ;;  %v9310_v39 = vld [vmem:[%s11886_s1 + $0x1748] ss:$28 sps:$4 sm:$0xff]  }
 0x2d1   : > { %v8119_v53 = vpop.f32.mrf.mxu0  ;;  %v9306_v35 = vld [vmem:[%s11886_s1 + $0x1400] ss:$28 sps:$4 sm:$0xff]   ;;  %v9311_v41 = vld [vmem:[%s11886_s1 + $0x1550] ss:$28 sps:$4 sm:$0xff]  }
 0x2d2   : > { %v4382_v55 = vpop.f32.mrf.mxu1  ;;  %v4340_v57 = vadd.f32 %v8118_v49, %v4300_v24  ;;  %6282 = vmatpush2.bf16.msra.mxu0 %v9251_v1  ;;  %v9291_v24 = vld [vmem:[%s11886_s1 + $0x1080] ss:$28 sps:$4 sm:$0xff]   ;;  %v9308_v1 = vld [vmem:[%s11886_s1 + $0x1588] ss:$28 sps:$4 sm:$0xff]   ;;  %v9315_v49 = vld [vmem:[%s11886_s1 + $0x1358] ss:$28 sps:$4 sm:$0xff]  }
 0x2d3   : > { %6323 = vmatpush2.bf16.msra.mxu1 %v9254_v38  ;;  %v8120_v60 = vpop.f32.mrf.mxu0  ;;  %6283 = vmatprep.subr.bf16.mxu0 %v9259_v43  ;;  %v9309_v38 = vld [vmem:[%s11886_s1 + $0x13c8] ss:$28 sps:$4 sm:$0xff]   ;;  %v9313_v43 = vld [vmem:[%s11886_s1 + $0x1710] ss:$28 sps:$4 sm:$0xff]   ;;  %v9316_v53 = vld [vmem:[%s11886_s1 + $0x16d8] ss:$28 sps:$4 sm:$0xff]  }
 0x2d4   : > { %v8199_v28 = vpop.f32.mrf.mxu1  ;;  %6324 = vmatprep.subr.bf16.mxu1 %v9262_v46  ;;  %v11665_v5 = vadd.f32 %v4379_v36, %v4340_v57  ;;  %v9307_v36 = vld [vmem:[%s11886_s1 + $0x1780] ss:$28 sps:$4 sm:$0xff]   ;;  %v9314_v46 = vld [vmem:[%s11886_s1 + $0x1518] ss:$28 sps:$4 sm:$0xff]  }
 0x2d6   : > { %6284 = vmatpush2.bf16.msra.mxu0 %v9257_v58 }
 0x2d7   : > { %6325 = vmatpush2.bf16.msra.mxu1 %v9260_v59  ;;  %6285 = vmatprep.subr.bf16.mxu0 %v9265_v63  ;;  %v6506_v63 = vlaneseq }
 0x2d8   : > { %6326 = vmatprep.subr.bf16.mxu1 %v9268_v4 }
 0x2da   : > { %6286 = vmatpush2.bf16.msra.mxu0 %v9263_v23 }
 0x2db   : > { %6327 = vmatpush2.bf16.msra.mxu1 %v9266_v45  ;;  %6345 = vmatprep.subr.bf16.mxu0 %v9271_v48  ;;  %v11822_v45 = vshrl.u32 %v6506_v63, 7  ;;  %v11828_v48 = vld [vmem:[%s11887_s2] sm:$0xff] }
 0x2dc   : > { %8127 = vmatprep.subr.bf16.mxu1 %v9272_v7 }
 0x2dd   : > { %6288 = vmatmul.mubr.bf16.vlgmr.msra.gmra.mxu0 %v11211_v14 }
 0x2de   : > { %6329 = vmatmul.mubr.bf16.vlgmr.msra.gmra.mxu1 %v11213_v15  ;;  %6346 = vmatpush1.bf16.msra.mxu0 %v9269_v32 }
 0x2df   : > { %8128 = vmatpush3.bf16.msra.mxu1 %v9273_v8  ;;  %6347 = vmatprep.subr.bf16.mxu0 %v9276_v9 }
 0x2e0   : > { %8129 = vmatprep.subr.bf16.mxu1 %v9277_v10  ;;  %6369 = vmatprep.mubr.bf16.mxu0 %v9327_v33  ;;  %v9287_v33 = vld [vmem:[%s11886_s1 + $0x1278] ss:$28 sps:$4 sm:$0xff]  }
 0x2e1   : > { %6410 = vmatprep.mubr.bf16.mxu1 %v11014_v50  ;;  %v9284_v50 = vld [vmem:[%s11886_s1 + $0x16d0] ss:$28 sps:$4 sm:$0xff]  }
 0x2e2   : > { %6348 = vmatpush1.bf16.msra.mxu0 %v9274_v11 }
 0x2e3   : > { %8130 = vmatpush3.bf16.msra.mxu1 %v9278_v12  ;;  %6349 = vmatprep.subr.bf16.mxu0 %v9281_v13 }
 0x2e4   : > { %8131 = vmatprep.subr.bf16.mxu1 %v9282_v16 }
 0x2e6   : > { %6350 = vmatpush1.bf16.msra.mxu0 %v9279_v17 }
 0x2e7   : > { %8132 = vmatpush3.bf16.msra.mxu1 %v9283_v18  ;;  %6351 = vmatprep.subr.bf16.mxu0 %v9286_v0 }
 0x2e8   : > { %8133 = vmatprep.subr.bf16.mxu1 %v9287_v33 }
 0x2ea   : > { %6352 = vmatpush1.bf16.msra.mxu0 %v9284_v50 }
 0x2eb   : > { %8134 = vmatpush3.bf16.msra.mxu1 %v9288_v52  ;;  %8149 = vmatprep.subr.bf16.mxu0 %v9290_v20 }
 0x2ec   : > { %8135 = vmatprep.subr.bf16.mxu1 %v9289_v19  ;;  %v6591_v19 = vld [vmem:[%s11843_s29] sm:$0xff] }
 0x2ed   : > { %8017 = vmatmul.mubr.msk.bf16.vlgmr.msra.gmra.mxu0 %vm2101_vm0, %v11270_v40 }
 0x2ee   : > { %8150 = vmatpush3.bf16.msra.mxu0 %v9292_v25  ;;  %6450 = vmatprep.mubr.bf16.mxu0 %v11016_v51  ;;  %v9302_v51 = vld [vmem:[%s11886_s1 + $0x15f8] ss:$28 sps:$4 sm:$0xff]  }
 0x2ef   : > { %8136 = vmatpush3.bf16.msra.mxu1 %v9291_v24  ;;  %8151 = vmatprep.subr.bf16.mxu0 %v9294_v26 }
 0x2f0   : > { %8137 = vmatprep.subr.bf16.mxu1 %v9293_v37 }
 0x2f2   : > { %8152 = vmatpush3.bf16.msra.mxu0 %v9296_v22  ;;  %v6516_v22 = vsub.s32 2, %v11822_v45 }
 0x2f3   : > { %8138 = vmatpush3.bf16.msra.mxu1 %v9295_v56  ;;  %8153 = vmatprep.subr.bf16.mxu0 %v9298_v29 }
 0x2f4   : > { %8139 = vmatprep.subr.bf16.mxu1 %v9297_v27 }
 0x2f6   : > { %8154 = vmatpush3.bf16.msra.mxu0 %v9300_v2  ;;  %v6520_v2 = vsub.s32 3, %v11822_v45 }
 0x2f7   : > { %8140 = vmatpush3.bf16.msra.mxu1 %v9299_v30  ;;  %8155 = vmatprep.subr.bf16.mxu0 %v9302_v51 }
 0x2f8   : > { %8141 = vmatprep.subr.bf16.mxu1 %v9301_v31 }
 0x2fa   : > { %8156 = vmatpush3.bf16.msra.mxu0 %v9304_v34  ;;  %v6517_v34 = vrot.slane %v11828_v48, %v6516_v22 }
 0x2fb   : > { %8142 = vmatpush3.bf16.msra.mxu1 %v9303_v61  ;;  %8157 = vmatprep.subr.bf16.mxu0 %v9305_v44 }
 0x2fc   : > { %8200 = vmatprep.subr.bf16.mxu1 %v9328_v42 }
 0x2fe   : > { %6411 = vmatmul.mubr.bf16.vlgmr.msra.gmra.mxu1 %v11211_v14  ;;  %8158 = vmatpush3.bf16.msra.mxu0 %v9306_v35  ;;  %v9312_v14 = vld [vmem:[%s11886_s1 + $0x1390] ss:$28 sps:$4 sm:$0xff]  }
 0x2ff   : > { %8201 = vmatpush3.bf16.msra.mxu1 %v9307_v36  ;;  %8159 = vmatprep.subr.bf16.mxu0 %v9308_v1 }
 0x300   : > { %8202 = vmatprep.subr.bf16.mxu1 %v9328_v42  ;;  %8208 = vmatprep.mubr.msk.bf16.mxu1 %vm9329_vm1, %v9328_v42 }
 0x302   : > { %8160 = vmatpush3.bf16.msra.mxu0 %v9309_v38 }
 0x303   : > { %8203 = vmatpush3.bf16.msra.mxu1 %v9310_v39  ;;  %8161 = vmatprep.subr.bf16.mxu0 %v9311_v41  ;;  %v6521_v39 = vrot.slane %v11828_v48, %v6520_v2 }
 0x304   : > { %8204 = vmatprep.subr.bf16.mxu1 %v9328_v42 }
 0x306   : > { %8162 = vmatpush3.bf16.msra.mxu0 %v9312_v14 }
 0x307   : > { %8205 = vmatpush3.bf16.msra.mxu1 %v9313_v43  ;;  %8163 = vmatprep.subr.bf16.mxu0 %v9314_v46 }
 0x308   : > { %8206 = vmatprep.subr.bf16.mxu1 %v9328_v42  ;;  %v6508_v42 = vsub.s32 0, %v11822_v45 }
 0x30a   : > { %8164 = vmatpush3.bf16.msra.mxu0 %v9315_v49  ;;  %v6509_v9 = vrot.slane %v11828_v48, %v6508_v42 }
 0x30b   : > { %8207 = vmatpush3.bf16.msra.mxu1 %v9316_v53 }
 0x30d   : > { %v6043_v55 = vpop.f32.mrf.mxu0  ;;  %6451 = vmatmul.mubr.bf16.vlgmr.msra.gmra.mxu0 %v11213_v15  ;;  %v6512_v15 = vsub.s32 1, %v11822_v45 }
 0x30e   : > { %v6084_v57 = vpop.f32.mrf.mxu1  ;;  %8209 = vmatmul.mubr.msk.bf16.vlgmr.msra.gmra.mxu1 %vm2101_vm0, %v11270_v40 }
 0x30f   : > { %v6045_v58 = vpop.f32.mrf.mxu0  ;;  %v6085_v40 = vadd.f32 %v6084_v57, %v6043_v55  ;;  %v6513_v11 = vrot.slane %v11828_v48, %v6512_v15  ;;  %v6594_v57 = vld [vmem:[%s11843_s29 + $0x8] sm:$0xff] }
 0x310   : > { %v6086_v59 = vpop.f32.mrf.mxu1 }
 0x311   : > { %v6047_v60 = vpop.f32.mrf.mxu0  ;;  %v6087_v32 = vadd.f32 %v6086_v59, %v6045_v58 }
 0x312   : > { %v6088_v28 = vpop.f32.mrf.mxu1 }
 0x313   : > { %v6048_v4 = vpop.f32.mrf.mxu0 }
 0x314   : > { %v6089_v23 = vpop.f32.mrf.mxu1 }
 0x31d   : > { %v6125_v7 = vpop.f32.mrf.mxu0 }
 0x31e   : > { %v6126_v8 = vadd.f32 %v6125_v7, %v6085_v40  ;;  %v6524_v40 = vsub.s32 4, %v11822_v45  ;;  %v6528_v7 = vsub.s32 5, %v11822_v45 }
 0x31f   : > { %v6127_v10 = vpop.f32.mrf.mxu0 }
 0x320   : > { %v6498_v12 = vadd.f32 %v6126_v8, %v11073_v47  ;;  %v6128_v13 = vadd.f32 %v6127_v10, %v6087_v32  ;;  %v6525_v10 = vrot.slane %v11828_v48, %v6524_v40 }
 0x321   : > { %v6129_v16 = vpop.f32.mrf.mxu0 }
 0x322   : > { %v6541_v17 = vadd.f32 %v6509_v9, %v6498_v12  ;;  %v6499_v18 = vadd.f32 %v6128_v13, %v11087_v21  ;;  %v6529_v16 = vrot.slane %v11828_v48, %v6528_v7 }
 0x323   : > { %v6130_v33 = vpop.f32.mrf.mxu0 }
 0x324   : > { %v6542_v47 = vadd.f32 %v6513_v11, %v6499_v18  ;;  %v6548_v50 = vmax.f32 %v6541_v17, 0.0 }
 0x326   : > { %v6549_v52 = vmax.f32 %v6542_v47, 0.0 }
 0x328   : > { %v8025_v20 = vpack.c.bf16 %v6549_v52, %v6548_v50 }
 0x32a   : > { %v6592_v24 = vsel %vm11847_vm8, %v8025_v20, %v6591_v19  ;;  %v6597_v20 = vld [vmem:[%s11843_s29 + $0x10] sm:$0xff] }
 0x32b   : > { %6593 = vst [vmem:[%s11843_s29] sm:$0xff] %v6592_v24 }
 0x34e   : > { %v6166_v25 = vpop.f32.mrf.mxu1 }
 0x350   : > { %v6168_v37 = vpop.f32.mrf.mxu1 }
 0x352   : > { %v6170_v26 = vpop.f32.mrf.mxu1 }
 0x354   : > { %v6171_v56 = vpop.f32.mrf.mxu1 }
 0x35d   : > { %v6207_v27 = vpop.f32.mrf.mxu0 }
 0x35e   : > { %v6248_v29 = vpop.f32.mrf.mxu1  ;;  %v6208_v30 = vadd.f32 %v6207_v27, %v6166_v25 }
 0x35f   : > { %v6209_v31 = vpop.f32.mrf.mxu0 }
 0x360   : > { %v6250_v51 = vpop.f32.mrf.mxu1  ;;  %v6249_v61 = vadd.f32 %v6248_v29, %v6208_v30  ;;  %v6210_v44 = vadd.f32 %v6209_v31, %v6168_v37  ;;  %v6532_v31 = vsub.s32 6, %v11822_v45 }
 0x361   : > { %v6211_v35 = vpop.f32.mrf.mxu0 }
 0x362   : > { %v6252_v36 = vpop.f32.mrf.mxu1  ;;  %v6500_v1 = vadd.f32 %v6249_v61, %v11298_v62  ;;  %v6251_v38 = vadd.f32 %v6250_v51, %v6210_v44 }
 0x363   : > { %v6212_v41 = vpop.f32.mrf.mxu0  ;;  %v6533_v36 = vrot.slane %v11828_v48, %v6532_v31 }
 0x364   : > { %v6253_v14 = vpop.f32.mrf.mxu1  ;;  %v6543_v43 = vadd.f32 %v6517_v34, %v6500_v1  ;;  %v6501_v46 = vadd.f32 %v6251_v38, %v11301_v6  ;;  %v6600_v41 = vld [vmem:[%s11843_s29 + $0x18] sm:$0xf] }
 0x366   : > { %v6544_v49 = vadd.f32 %v6521_v39, %v6501_v46  ;;  %v6550_v53 = vmax.f32 %v6543_v43, 0.0 }
 0x368   : > { %v6551_v55 = vmax.f32 %v6544_v49, 0.0 }
 0x36a   : > { %v8026_v58 = vpack.c.bf16 %v6551_v55, %v6550_v53 }
 0x36c   : > { %v6595_v59 = vsel %vm11847_vm8, %v8026_v58, %v6594_v57 }
 0x36d   : > { %6596 = vst [vmem:[%s11843_s29 + $0x8] sm:$0xff] %v6595_v59 }
 0x39d   : > { %v6289_v60 = vpop.f32.mrf.mxu0 }
 0x39e   : > { %v6330_v28 = vpop.f32.mrf.mxu1 }
 0x39f   : > { %v6291_v62 = vpop.f32.mrf.mxu0  ;;  %v6331_v6 = vadd.f32 %v6330_v28, %v6289_v60 }
 0x3a0   : > { %v6332_v63 = vpop.f32.mrf.mxu1 }
 0x3a1   : > { %v6293_v4 = vpop.f32.mrf.mxu0  ;;  %v6333_v8 = vadd.f32 %v6332_v63, %v6291_v62 }
 0x3a2   : > { %v6334_v23 = vpop.f32.mrf.mxu1 }
 0x3a3   : > { %v6294_v42 = vpop.f32.mrf.mxu0 }
 0x3a4   : > { %v6335_v15 = vpop.f32.mrf.mxu1 }
 0x3ad   : > { %v6371_v32 = vpop.f32.mrf.mxu0 }
 0x3ae   : > { %v6372_v9 = vadd.f32 %v6371_v32, %v6331_v6 }
 0x3af   : > { %v6373_v11 = vpop.f32.mrf.mxu0 }
 0x3b0   : > { %v6502_v12 = vadd.f32 %v6372_v9, %v11540_v54  ;;  %v6374_v13 = vadd.f32 %v6373_v11, %v6333_v8 }
 0x3b1   : > { %v6375_v17 = vpop.f32.mrf.mxu0 }
 0x3b2   : > { %v6545_v18 = vadd.f32 %v6525_v10, %v6502_v12  ;;  %v6503_v33 = vadd.f32 %v6374_v13, %v11554_v3 }
 0x3b3   : > { %v6376_v47 = vpop.f32.mrf.mxu0 }
 0x3b4   : > { %v6546_v50 = vadd.f32 %v6529_v16, %v6503_v33  ;;  %v6552_v52 = vmax.f32 %v6545_v18, 0.0 }
 0x3b6   : > { %v6553_v19 = vmax.f32 %v6546_v50, 0.0 }
 0x3b8   : > { %v8027_v24 = vpack.c.bf16 %v6553_v19, %v6552_v52 }
 0x3ba   : > { %v6598_v25 = vsel %vm11847_vm8, %v8027_v24, %v6597_v20 }
 0x3bb   : > { %6599 = vst [vmem:[%s11843_s29 + $0x10] sm:$0xff] %v6598_v25 }
 0x3be   : > { %v8143_v37 = vpop.f32.mrf.mxu1 }
 0x3c0   : > { %v8144_v26 = vpop.f32.mrf.mxu1 }
 0x3c1   : > { %v8145_v3 = vadd.f32 %v8144_v26, %v8143_v37 }
 0x3c2   : > { %v8146_v54 = vpop.f32.mrf.mxu1 }
 0x3c4   : > { %v8147_v56 = vpop.f32.mrf.mxu1 }
 0x3cd   : > { %v8165_v22 = vpop.f32.mrf.mxu0 }
 0x3ce   : > { %v6492_v27 = vpop.f32.mrf.mxu1 }
 0x3cf   : > { %v8166_v29 = vpop.f32.mrf.mxu0 }
 0x3d0   : > { %v8210_v30 = vpop.f32.mrf.mxu1  ;;  %v8167_v2 = vadd.f32 %v8166_v29, %v8165_v22 }
 0x3d1   : > { %v8168_v51 = vpop.f32.mrf.mxu0 }
 0x3d2   : > { %v6495_v61 = vpop.f32.mrf.mxu1  ;;  %v6453_v34 = vadd.f32 %v8167_v2, %v8145_v3 }
 0x3d3   : > { %v8169_v21 = vpop.f32.mrf.mxu0 }
 0x3d4   : > { %v8211_v44 = vpop.f32.mrf.mxu1  ;;  %v6493_v35 = vadd.f32 %v6492_v27, %v6453_v34 }
 0x3d6   : > { %v6504_v1 = vadd.f32 %v6493_v35, %v11665_v5 }
 0x3d8   : > { %v6547_v38 = vadd.f32 %v6533_v36, %v6504_v1 }
 0x3da   : > { %v6554_v39 = vmax.f32 %v6547_v38, 0.0 }
 0x3dc   : > { %v8028_v14 = vpack.c.bf16 %v6554_v39, %v6554_v39 }
 0x3de   : > { %v6601_v43 = vsel %vm11836_vm6, %v8028_v14, %v6600_v41 }
 0x3df   : > { %6602 = vst [vmem:[%s11843_s29 + $0x18] sm:$0xf] %v6601_v43 }
 0x3e0 PF: > { %s13_s12 = sadd.s32 1, %s9325_s12  }
 0x3e1   : > { %p10_p4 = scmp.ge.s32.totalorder %s13_s12, 4  }
 0x3e3   :  { %12 = sbr.rel (!%p10_p4) target bundleno = 1 (0x1), region = 64 }

</bundles_post_ra>
